<compile_context>
chip_gen: v5e
topology: v5e:2x2
jax: 0.10.0
libtpu: 0.0.40
codegen_flags: <defaults>
</compile_context>

<pallas_src>
import functools
import math

import jax
import jax.numpy as jnp
from jax import lax
from jax.experimental import pallas as pl
from jax.experimental.pallas import tpu as pltpu

_HALF_LOG_2PI = 0.5 * math.log(2.0 * math.pi)


def _lrelu(x, c=1.0 / 3.0):
    # LReLU module: clamp(leaky_relu(x, 1/3), -3, 3)
    return jnp.clip(jnp.where(x >= 0.0, x, c * x), -3.0, 3.0)


def _mm(a, w):
    # Matmul whose RHS (weight) dtype decides the MXU input dtype (bf16
    # opt-in), always accumulating in f32.
    return jnp.dot(a.astype(w.dtype), w, preferred_element_type=jnp.float32)


def _reorder_gates(w, R):
    # torch LSTM gate order (i, f, g, o) -> (i, f, o, g) along the last axis
    # so the kernel applies one sigmoid over [:, :3R] and one tanh over
    # [:, 3R:].
    return jnp.concatenate([w[..., :2 * R], w[..., 3 * R:], w[..., 2 * R:3 * R]],
                           axis=-1)


def _vmem_limit(step_bytes, const_bytes, scratch_bytes):
    # double-buffered step streams + (conservatively) double-buffered constant
    # blocks + scratch, 2x headroom, clamped to a safe scoped-VMEM range.
    est = 2 * step_bytes + 2 * const_bytes + scratch_bytes
    return int(min(max(2 * est, 32 << 20), 96 << 20))


# ----------------------------------------------------------------------------
# Kernel 1: backward LSTM recurrence (bwd_mod). Input gates (emb @ w_ih + b)
# are precomputed in JAX; only the h @ w_hh matmul stays on the serial path.
# Gate columns are pre-reordered to (i, f, o, g).
# ----------------------------------------------------------------------------
def _bwd_lstm_kernel(gih_ref, h0_ref, c0_ref, w_hh_ref,
                     states_ref, h_scr, c_scr, *, unroll):
    @pl.when(pl.program_id(1) == 0)
    def _():
        h_scr[...] = h0_ref[...]
        c_scr[...] = c0_ref[...]

    TT = gih_ref.shape[0]
    R = h_scr.shape[1]
    w_hh = w_hh_ref[...]

    def step(i, carry):
        h, c = carry
        g = gih_ref[i] + _mm(h, w_hh)
        s3 = jax.nn.sigmoid(g[:, :3 * R])        # one EUP slab: i | f | o
        cg = jnp.tanh(g[:, 3 * R:])
        c_new = s3[:, R:2 * R] * c + s3[:, :R] * cg
        h_new = s3[:, 2 * R:3 * R] * jnp.tanh(c_new)
        states_ref[i] = h_new
        return (h_new, c_new)

    h, c = lax.fori_loop(0, TT, step, (h_scr[...], c_scr[...]), unroll=unroll)
    h_scr[...] = h
    c_scr[...] = c


# ----------------------------------------------------------------------------
# Kernel 2: forward recurrence (fwd_pass body). Emb, emb@w_ih_x and the
# output head are hoisted; b@w_inf1_b is computed block-level in-kernel;
# h-LHS and z-LHS matmuls are fused.
# ----------------------------------------------------------------------------
def _zforcing_fwd_kernel(
        gx_ref, bwd_ref, eps_ref, m_ref, h0_ref, c0_ref,
        w_h_ref, b_pri1_ref, w_pri2_ref, b_pri2_ref,
        w_inf1b_ref, b_inf1_ref, w_inf2_ref, b_inf2_ref,
        w_z_ref, b_aux1_ref, w_aux2_ref, b_aux2_ref,
        b_gen_ref, w_ih_i_ref, b_lstm_ref,
        states_ref, kld_ref, aux_ref,
        h_scr, c_scr, binf_scr, *, unroll):
    tb = pl.program_id(1)                 # time-block axis (trailing, arbitrary)

    @pl.when(tb == 0)
    def _():
        h_scr[...] = h0_ref[...]
        c_scr[...] = c0_ref[...]

    TT, B, _ = gx_ref.shape
    R = h_scr.shape[1]
    Z = eps_ref.shape[2]
    M = b_gen_ref.shape[1]

    # hoist weight / bias loads out of the time loop
    w_h = w_h_ref[...]
    w_pri2 = w_pri2_ref[...]
    w_inf2 = w_inf2_ref[...]
    w_z = w_z_ref[...]
    w_aux2 = w_aux2_ref[...]
    w_ih_i = w_ih_i_ref[...]
    b_pri1 = b_pri1_ref[...]
    b_pri2 = b_pri2_ref[...]
    b_inf1 = b_inf1_ref[...]
    b_inf2 = b_inf2_ref[...]
    b_aux1 = b_aux1_ref[...]
    b_aux2 = b_aux2_ref[...]
    b_gen = b_gen_ref[...]
    b_lstm = b_lstm_ref[...]

    # Block-level bwd-state -> inf first-layer term: one (TT*B, R) @ (R, M)
    # MXU matmul off the serial per-step chain (replaces the HBM binf stream).
    bwd_blk = bwd_ref[...]                               # (TT, B, R)
    binf_scr[...] = _mm(bwd_blk.reshape(TT * B, R),
                        w_inf1b_ref[...]).reshape(TT, B, M)

    def step(i, carry):
        h, c, kacc, aacc = carry
        b_t = bwd_ref[TT - 1 - i]     # bwd states stored in bwd-time order
        bW = binf_scr[TT - 1 - i]     # b_t @ w_inf1_b (block-precomputed)
        r_t = eps_ref[i]
        m_t = m_ref[i]                # (B, 1) loss mask
        gx_t = gx_ref[i]              # emb(x_t) @ w_ih_x (precomputed, batched)

        # one wide matmul for every h-LHS product: pri1 | inf1 | aux1 | hh
        hW = _mm(h, w_h)
        hp = hW[:, 0 * M:1 * M]
        hi = hW[:, 1 * M:2 * M]
        ha = hW[:, 2 * M:3 * M]
        hh = hW[:, 3 * M:]

        # prior network: Linear -> LReLU -> Linear, clamp(-8, 8)
        pri = _lrelu(hp + b_pri1)
        pri = jnp.clip(_mm(pri, w_pri2) + b_pri2, -8.0, 8.0)
        pri_mu, pri_lv = pri[:, :Z], pri[:, Z:]

        # inference network on cat(h, b)
        inf = _lrelu(hi + bW + b_inf1)
        inf = jnp.clip(_mm(inf, w_inf2) + b_inf2, -8.0, 8.0)
        inf_mu, inf_lv = inf[:, :Z], inf[:, Z:]

        # KL(N(inf) || N(pri)) — divide-free (logvars clamped to +-8)
        kld = 0.5 * (pri_lv - inf_lv + jnp.exp(inf_lv - pri_lv)
                     + (inf_mu - pri_mu) ** 2 * jnp.exp(-pri_lv) - 1.0)
        kld = jnp.sum(kld, axis=1, keepdims=True)

        # reparametrize with the supplied eps
        z = r_t * jnp.exp(0.5 * inf_lv) + inf_mu

        # one wide matmul for every z-LHS product: aux1 | gen
        zW = _mm(z, w_z)
        za = zW[:, :M]
        zg = zW[:, M:]

        # aux network on cat(h, z)  (z_force=False -> use h); use_l2=False
        aux = _lrelu(ha + za + b_aux1)
        aux = jnp.clip(_mm(aux, w_aux2) + b_aux2, -8.0, 8.0)
        aux_mu, aux_lv = aux[:, :R], aux[:, R:]
        aux_step = -jnp.sum(
            -_HALF_LOG_2PI - 0.5 * aux_lv
            - (b_t - jnp.tanh(aux_mu)) ** 2 * (0.5 * jnp.exp(-aux_lv)),
            axis=1, keepdims=True)

        i_step = zg + b_gen           # gen_mod (cond_ln=False)

        # fused LSTM cell on cat(i_step, x_emb); gate order (i, f, o | g)
        g = _mm(i_step, w_ih_i) + gx_t + hh + b_lstm
        s3 = jax.nn.sigmoid(g[:, :3 * R])
        cg = jnp.tanh(g[:, 3 * R:])
        c_new = s3[:, R:2 * R] * c + s3[:, :R] * cg
        h_new = s3[:, 2 * R:3 * R] * jnp.tanh(c_new)

        states_ref[i] = h_new
        kacc = kacc + kld * m_t
        aacc = aacc + aux_step * m_t
        return (h_new, c_new, kacc, aacc)

    init = (h_scr[...], c_scr[...],
            jnp.zeros((B, 1), jnp.float32), jnp.zeros((B, 1), jnp.float32))
    h, c, kacc, aacc = lax.fori_loop(0, TT, step, init, unroll=unroll)
    h_scr[...] = h
    c_scr[...] = c

    # masked-sum accumulators live in the resident (constant time-index)
    # output blocks; single HBM writeback per batch shard.
    @pl.when(tb == 0)
    def _():
        kld_ref[...] = kacc
        aux_ref[...] = aacc

    @pl.when(tb != 0)
    def _():
        kld_ref[...] = kld_ref[...] + kacc
        aux_ref[...] = aux_ref[...] + aacc


# ----------------------------------------------------------------------------
# Wrappers (pallas_call plumbing)
# ----------------------------------------------------------------------------
_FWD_W_ORDER = ('w_h_fused', 'b_pri1', 'w_pri2', 'b_pri2',
                'w_inf1_b', 'b_inf1', 'w_inf2', 'b_inf2',
                'w_z_fused', 'b_aux1', 'w_aux2', 'b_aux2',
                'b_gen', 'w_ih_i', 'b_lstm')


def _const_spec(shape):
    # TODO(synk): pipeline_mode=pl.Buffered(1) here for single-buffered
    # weights at production sizes on v7x (64 MiB VMEM).
    nd = len(shape)
    return pl.BlockSpec(shape, lambda p, t: (0,) * nd)


def run_bwd_lstm(gih_pad, h0, c0, w_hh, *, TT, shards, unroll):
    Tp, B, G4 = gih_pad.shape
    R = h0.shape[1]
    BS = B // shards
    NB = Tp // TT

    step_bytes = TT * BS * (G4 * gih_pad.dtype.itemsize + R * 4)
    const_bytes = 2 * BS * R * 4 + w_hh.size * w_hh.dtype.itemsize
    scratch_bytes = 2 * BS * R * 4

    grid_spec = pltpu.PrefetchScalarGridSpec(
        num_scalar_prefetch=0,
        grid=(shards, NB),
        in_specs=[pl.BlockSpec((TT, BS, G4), lambda p, t: (t, p, 0)),
                  pl.BlockSpec((BS, R), lambda p, t: (p, 0)),
                  pl.BlockSpec((BS, R), lambda p, t: (p, 0)),
                  _const_spec(w_hh.shape)],
        out_specs=pl.BlockSpec((TT, BS, R), lambda p, t: (t, p, 0)),
        scratch_shapes=[pltpu.VMEM((BS, R), jnp.float32),
                        pltpu.VMEM((BS, R), jnp.float32)],
    )
    return pl.pallas_call(
        functools.partial(_bwd_lstm_kernel, unroll=unroll),
        out_shape=jax.ShapeDtypeStruct((Tp, B, R), jnp.float32),
        grid_spec=grid_spec,
        compiler_params=pltpu.CompilerParams(
            dimension_semantics=("parallel", "arbitrary"),
            vmem_limit_bytes=_vmem_limit(step_bytes, const_bytes, scratch_bytes)),
    )(gih_pad, h0, c0, w_hh)


def run_fwd_pass(gx_pad, bwd_states, eps_pad, mask_pad, h0, c0, w, *,
                 TT, shards, unroll):
    Tp, B, G4 = gx_pad.shape
    R = h0.shape[1]
    Z = eps_pad.shape[2]
    M = w['b_gen'].shape[1]
    BS = B // shards
    NB = Tp // TT

    def step_spec(d):
        return pl.BlockSpec((TT, BS, d), lambda p, t: (t, p, 0))

    def rev_spec(d):
        # read the bwd-time-ordered array in reverse: block NB-1-t, and the
        # kernel indexes rows as TT-1-i within the block.
        return pl.BlockSpec((TT, BS, d), lambda p, t: (NB - 1 - t, p, 0))

    def bshard_spec(d):
        return pl.BlockSpec((BS, d), lambda p, t: (p, 0))

    weights = [w[n] for n in _FWD_W_ORDER]

    step_bytes = TT * BS * (G4 * gx_pad.dtype.itemsize + R * 4 + Z * 4 + 4
                            + R * 4)
    const_bytes = (2 * BS * R * 4
                   + sum(a.size * a.dtype.itemsize for a in weights))
    scratch_bytes = 2 * BS * R * 4 + TT * BS * M * 4

    grid_spec = pltpu.PrefetchScalarGridSpec(
        num_scalar_prefetch=0,
        grid=(shards, NB),
        in_specs=[step_spec(G4), rev_spec(R), step_spec(Z), step_spec(1),
                  bshard_spec(R), bshard_spec(R)]
                 + [_const_spec(a.shape) for a in weights],
        out_specs=[step_spec(R),
                   bshard_spec(1),
                   bshard_spec(1)],
        scratch_shapes=[pltpu.VMEM((BS, R), jnp.float32),
                        pltpu.VMEM((BS, R), jnp.float32),
                        pltpu.VMEM((TT, BS, M), jnp.float32)],
    )
    out_shapes = (jax.ShapeDtypeStruct((Tp, B, R), jnp.float32),   # h states
                  jax.ShapeDtypeStruct((B, 1), jnp.float32),        # sum kld*mask
                  jax.ShapeDtypeStruct((B, 1), jnp.float32))        # sum aux*mask
    return pl.pallas_call(
        functools.partial(_zforcing_fwd_kernel, unroll=unroll),
        out_shape=out_shapes,
        grid_spec=grid_spec,
        compiler_params=pltpu.CompilerParams(
            dimension_semantics=("parallel", "arbitrary"),
            vmem_limit_bytes=_vmem_limit(step_bytes, const_bytes, scratch_bytes)),
    )(gx_pad, bwd_states, eps_pad, mask_pad, h0, c0, *weights)


# ----------------------------------------------------------------------------
# ZForcing.forward (out_type='gaussian')
# ----------------------------------------------------------------------------
def zforcing_forward(p, x, y, x_mask, eps, *, TT=4, use_bf16=False,
                     batch_shards=1):
    """Returns means of (fwd_nll, bwd_nll, aux_nll, kld).

    batch_shards=2 splits the batch over a leading 'parallel' grid axis for
    the two TensorCores of a v7x chip (requires B % (8*batch_shards) == 0).
    """
    T, B, inp = x.shape
    R = p['w_hh_f'].shape[0]
    Z = p['w_gen'].shape[0]
    assert B % batch_shards == 0
    NB = (T + TT - 1) // TT
    Tp = NB * TT
    pad = Tp - T
    unroll = True if TT <= 8 else 4       # partial unroll for long blocks
    f32 = jnp.float32
    cdt = jnp.bfloat16 if use_bf16 else jnp.float32

    h0 = jnp.zeros((B, R), f32)           # init_hidden -> zeros
    c0 = jnp.zeros((B, R), f32)
    w_emb, b_emb = p['w_emb'], p['b_emb']

    # ---- bwd pass: emb + input gates hoisted to one batched matmul ----
    # FRONT-pad with zero gates: zero gates + zero init state keep (h, c) == 0
    # exactly through the pad prefix, so no in-kernel masking is needed.
    e_bwd = y[::-1].reshape(T * B, inp) @ w_emb + b_emb         # emb(y reversed)
    gih = (e_bwd @ _reorder_gates(p['w_ih_b'], R)
           + _reorder_gates(p['b_b'], R)).reshape(T, B, -1)
    G4 = gih.shape[-1]
    gih_pad = (jnp.concatenate([jnp.zeros((pad, B, G4), f32), gih], axis=0)
               if pad else gih)

    states_bwd = run_bwd_lstm(gih_pad, h0, c0,
                              _reorder_gates(p['w_hh_b'], R).astype(cdt),
                              TT=TT, shards=batch_shards, unroll=unroll)

    # bwd_out_mod hoisted: one (T*B, R) @ (R, out) matmul; compare against
    # reversed x / mask instead of reversing the R-sized states. Real bwd
    # states live at positions [pad, Tp) (bwd-time order).
    sb = states_bwd[pad:] if pad else states_bwd
    bo = (sb.reshape(T * B, R) @ p['w_bo'] + p['b_bo']).reshape(T, B, -1)
    out_mu, out_lv = jnp.split(bo, 2, axis=-1)
    x_rev = x[::-1]
    mask_rev = x_mask[::-1]
    bwd_nll_t = -jnp.sum(-_HALF_LOG_2PI - out_lv / 2.0
                         - (x_rev - out_mu) ** 2 * (0.5 * jnp.exp(-out_lv)),
                         axis=-1)
    bwd_nll = jnp.sum(bwd_nll_t * mask_rev, axis=0)

    # ---- fwd pass: hoisted batched matmuls that do not touch the state ----
    e_fwd = x.reshape(T * B, inp) @ w_emb + b_emb
    gx = (e_fwd @ _reorder_gates(p['w_ih_x'], R)).astype(cdt).reshape(T, B, -1)

    # END-pad the fwd streams: mask zeros neutralise kld/aux contributions and
    # trailing states are discarded, so no per-step pad blend is required.
    if pad:
        gx_pad = jnp.concatenate(
            [gx, jnp.zeros((pad, B, gx.shape[-1]), gx.dtype)], 0)
        eps_pad = jnp.concatenate([eps, jnp.zeros((pad, B, Z), f32)], 0)
        m_pad = jnp.concatenate([x_mask[..., None],
                                 jnp.zeros((pad, B, 1), f32)], 0)
    else:
        gx_pad, eps_pad, m_pad = gx, eps, x_mask[..., None]

    fused = dict(p)
    fused['w_h_fused'] = jnp.concatenate(
        [p['w_pri1'], p['w_inf1_h'], p['w_aux1_h'],
         _reorder_gates(p['w_hh_f'], R)], axis=1).astype(cdt)
    fused['w_z_fused'] = jnp.concatenate(
        [p['w_aux1_z'], p['w_gen']], axis=1).astype(cdt)
    fused['w_ih_i'] = _reorder_gates(p['w_ih_i'], R).astype(cdt)
    fused['b_lstm'] = _reorder_gates(p['b_lstm'], R)
    for n in ('w_pri2', 'w_inf2', 'w_aux2', 'w_inf1_b'):
        fused[n] = p[n].astype(cdt)

    states_fwd, kld_sum, aux_sum = run_fwd_pass(
        gx_pad, states_bwd, eps_pad, m_pad, h0, c0, fused,
        TT=TT, shards=batch_shards, unroll=unroll)

    # fwd_out_mod hoisted: one (T*B, R) @ (R, out) matmul (real steps [0, T))
    hs = states_fwd[:T]
    fo = (hs.reshape(T * B, R) @ p['w_fo'] + p['b_fo']).reshape(T, B, -1)
    out_mu, out_lv = jnp.split(fo, 2, axis=-1)
    fwd_nll_t = -jnp.sum(-_HALF_LOG_2PI - out_lv / 2.0
                         - (y - out_mu) ** 2 * (0.5 * jnp.exp(-out_lv)),
                         axis=-1)
    fwd_nll = jnp.sum(fwd_nll_t * x_mask, axis=0)

    kld = kld_sum[:, 0]
    aux_nll = aux_sum[:, 0]
    return fwd_nll.mean(), bwd_nll.mean(), aux_nll.mean(), kld.mean()


# ----------------------------------------------------------------------------
# Deterministic parameter init (shapes follow ZForcing.__init__)
# ----------------------------------------------------------------------------
def init_zforcing_params(key, inp_dim, emb_dim, rnn_dim, z_dim, mlp_dim, out_dim):
    shapes = {
        'w_emb': (inp_dim, emb_dim), 'b_emb': (1, emb_dim),
        # bwd nn.LSTM (1 layer); b_b = bias_ih + bias_hh
        'w_ih_b': (emb_dim, 4 * rnn_dim), 'w_hh_b': (rnn_dim, 4 * rnn_dim),
        'b_b': (1, 4 * rnn_dim),
        'w_bo': (rnn_dim, out_dim), 'b_bo': (1, out_dim),
        # pri_mod
        'w_pri1': (rnn_dim, mlp_dim), 'b_pri1': (1, mlp_dim),
        'w_pri2': (mlp_dim, 2 * z_dim), 'b_pri2': (1, 2 * z_dim),
        # inf_mod (input cat(h, b), split row-wise)
        'w_inf1_h': (rnn_dim, mlp_dim), 'w_inf1_b': (rnn_dim, mlp_dim),
        'b_inf1': (1, mlp_dim),
        'w_inf2': (mlp_dim, 2 * z_dim), 'b_inf2': (1, 2 * z_dim),
        # aux_mod (input cat(h, z), split row-wise)
        'w_aux1_h': (rnn_dim, mlp_dim), 'w_aux1_z': (z_dim, mlp_dim),
        'b_aux1': (1, mlp_dim),
        'w_aux2': (mlp_dim, 2 * rnn_dim), 'b_aux2': (1, 2 * rnn_dim),
        # gen_mod
        'w_gen': (z_dim, mlp_dim), 'b_gen': (1, mlp_dim),
        # fwd LSTMCell (input cat(i_step, x_emb), split row-wise)
        'w_ih_i': (mlp_dim, 4 * rnn_dim), 'w_ih_x': (emb_dim, 4 * rnn_dim),
        'w_hh_f': (rnn_dim, 4 * rnn_dim), 'b_lstm': (1, 4 * rnn_dim),
        # output heads
        'w_fo': (rnn_dim, out_dim), 'b_fo': (1, out_dim),
    }
    params = {}
    keys = jax.random.split(key, len(shapes))
    for (name, shape), k in zip(shapes.items(), keys):
        if name.startswith('b_'):
            params[name] = jnp.zeros(shape, jnp.float32)
        else:
            scale = 1.0 / math.sqrt(shape[0])
            params[name] = scale * jax.random.normal(k, shape, dtype=jnp.float32)
    return params


# ----------------------------------------------------------------------------
# Pure-JAX reference (mirrors the PyTorch forward) for correctness checking
# ----------------------------------------------------------------------------
def reference_forward(p, x, y, x_mask, eps):
    T, B, _ = x.shape
    R = p['w_hh_f'].shape[0]
    Z = p['w_gen'].shape[0]
    h0 = jnp.zeros((B, R), jnp.float32)
    c0 = jnp.zeros((B, R), jnp.float32)
    emb = lambda v: v @ p['w_emb'] + p['b_emb']

    def lstm(e_t, h, c, w_ih, w_hh, b):
        g = e_t @ w_ih + h @ w_hh + b
        i, f, cg, o = g[:, :R], g[:, R:2 * R], g[:, 2 * R:3 * R], g[:, 3 * R:]
        c = jax.nn.sigmoid(f) * c + jax.nn.sigmoid(i) * jnp.tanh(cg)
        h = jax.nn.sigmoid(o) * jnp.tanh(c)
        return h, c

    # bwd pass
    x_bwd = emb(jnp.concatenate([y[::-1], x[:1]], axis=0))
    h, c = h0, c0
    states = []
    for t in range(T + 1):
        h, c = lstm(x_bwd[t], h, c, p['w_ih_b'], p['w_hh_b'], p['b_b'])
        states.append(h)
    states_raw = jnp.stack(states, 0)
    bwd_outputs = (states_raw[:T] @ p['w_bo'] + p['b_bo'])[::-1]
    bwd_states = states_raw[:T][::-1]

    # fwd pass
    e_fwd = emb(x)
    h, c = h0, c0
    klds, auxs, outs = [], [], []
    for t in range(T):
        x_t, b_t, r_t = e_fwd[t], bwd_states[t], eps[t]
        pri = jnp.clip(_lrelu(h @ p['w_pri1'] + p['b_pri1']) @ p['w_pri2']
                       + p['b_pri2'], -8.0, 8.0)
        pri_mu, pri_lv = pri[:, :Z], pri[:, Z:]
        inf = jnp.clip(_lrelu(h @ p['w_inf1_h'] + b_t @ p['w_inf1_b']
                              + p['b_inf1']) @ p['w_inf2'] + p['b_inf2'],
                       -8.0, 8.0)
        inf_mu, inf_lv = inf[:, :Z], inf[:, Z:]
        kld = jnp.sum(0.5 * (pri_lv - inf_lv + jnp.exp(inf_lv) / jnp.exp(pri_lv)
                             + (inf_mu - pri_mu) ** 2 / jnp.exp(pri_lv) - 1.0),
                      axis=1)
        z = r_t * jnp.exp(0.5 * inf_lv) + inf_mu
        aux = jnp.clip(_lrelu(h @ p['w_aux1_h'] + z @ p['w_aux1_z']
                              + p['b_aux1']) @ p['w_aux2'] + p['b_aux2'],
                       -8.0, 8.0)
        aux_mu, aux_lv = aux[:, :R], aux[:, R:]
        aux_step = -jnp.sum(-_HALF_LOG_2PI - aux_lv / 2.0
                            - (b_t - jnp.tanh(aux_mu)) ** 2
                            / (2.0 * jnp.exp(aux_lv)), axis=1)
        i_step = z @ p['w_gen'] + p['b_gen']
        h, c = lstm(jnp.concatenate([i_step, x_t], axis=1), h, c,
                    jnp.concatenate([p['w_ih_i'], p['w_ih_x']], axis=0),
                    p['w_hh_f'], p['b_lstm'])
        outs.append(h @ p['w_fo'] + p['b_fo'])
        klds.append(kld)
        auxs.append(aux_step)
    fwd_outputs = jnp.stack(outs, 0)
    klds = jnp.stack(klds, 0)
    aux_cs = jnp.stack(auxs, 0)

    kld = jnp.sum(klds * x_mask, axis=0)
    aux_nll = jnp.sum(aux_cs * x_mask, axis=0)
    out_mu, out_lv = jnp.split(fwd_outputs, 2, axis=-1)
    fwd_nll = jnp.sum(-jnp.sum(-_HALF_LOG_2PI - out_lv / 2.0
                               - (y - out_mu) ** 2 / (2.0 * jnp.exp(out_lv)),
                               axis=-1) * x_mask, axis=0)
    out_mu, out_lv = jnp.split(bwd_outputs, 2, axis=-1)
    bwd_nll = jnp.sum(-jnp.sum(-_HALF_LOG_2PI - out_lv / 2.0
                               - (x - out_mu) ** 2 / (2.0 * jnp.exp(out_lv)),
                               axis=-1) * x_mask, axis=0)
    return fwd_nll.mean(), bwd_nll.mean(), aux_nll.mean(), kld.mean()


if __name__ == "__main__":
    key = jax.random.PRNGKey(0)
    k_param, k_x, k_y, k_eps = jax.random.split(key, 4)

    # Small but lane-friendly demo shapes: R = M = 128 keeps the fused matmul
    # segments, gate slabs and state stores 128-lane aligned; B = 16 allows
    # the 2-way batch-shard path (8 sublane-aligned rows per shard).
    T, B = 6, 16
    inp_dim, emb_dim, rnn_dim, z_dim, mlp_dim = 8, 64, 128, 64, 128
    out_dim = 2 * inp_dim   # gaussian output head -> (mu, logvar) chunks

    params = init_zforcing_params(k_param, inp_dim, emb_dim, rnn_dim,
                                  z_dim, mlp_dim, out_dim)
    x = jax.random.normal(k_x, (T, B, inp_dim), dtype=jnp.float32)
    y = jax.random.normal(k_y, (T, B, inp_dim), dtype=jnp.float32)
    eps = jax.random.normal(k_eps, (T, B, z_dim), dtype=jnp.float32)
    x_mask = jnp.ones((T, B), jnp.float32)

    ref = jax.block_until_ready(reference_forward(params, x, y, x_mask, eps))

    # f32, time padding (TT=4 -> Tp=8, pad=2), 2-way batch shard (v7x path)
    fwd_a = jax.jit(functools.partial(zforcing_forward, TT=4, batch_shards=2))
    out_a = jax.block_until_ready(fwd_a(params, x, y, x_mask, eps))
    # f32, exact multiple (TT=3, no padding), single shard (v5e/v6e path)
    fwd_b = jax.jit(functools.partial(zforcing_forward, TT=3, batch_shards=1))
    out_b = jax.block_until_ready(fwd_b(params, x, y, x_mask, eps))

    for out in (out_a, out_b):
        for got, want in zip(out, ref):
            assert bool(jnp.isfinite(got).all())
            assert bool(jnp.allclose(got, want, rtol=1e-2, atol=1e-2)), (got, want)

    # bf16 matmul-operand + bf16 gx-stream path (v6e/v7x): finite and within a
    # generous tolerance of the f32 reference (f32 accumulation throughout).
    fwd_bf16 = jax.jit(functools.partial(zforcing_forward, TT=4,
                                         use_bf16=True, batch_shards=2))
    out_bf16 = jax.block_until_ready(fwd_bf16(params, x, y, x_mask, eps))
    for got, want in zip(out_bf16, ref):
        assert bool(jnp.isfinite(got).all())
        assert bool(jnp.allclose(got, want, rtol=0.25, atol=2.0)), (got, want)

    print("KERNEL_OK")
</pallas_src>

<mosaic_0001>
module attributes {stable_mosaic.version = 11 : i64} {
  func.func @_bwd_lstm_kernel(%arg0: i32, %arg1: i32, %arg2: memref<4x8x512xf32, #tpu.memory_space<vmem>>, %arg3: memref<8x128xf32, #tpu.memory_space<vmem>>, %arg4: memref<8x128xf32, #tpu.memory_space<vmem>>, %arg5: memref<128x512xf32, #tpu.memory_space<vmem>>, %arg6: memref<4x8x128xf32, #tpu.memory_space<vmem>>, %arg7: memref<8x128xf32, #tpu.memory_space<vmem>>, %arg8: memref<8x128xf32, #tpu.memory_space<vmem>>) attributes {dimension_semantics = [#tpu.dimension_semantics<parallel>, #tpu.dimension_semantics<arbitrary>], iteration_bounds = array<i64: 2, 2>, scalar_prefetch = 0 : i64, scratch_operands = 2 : i64, tpu.core_type = #tpu.core_type<tc>, window_params = [{transform_indices = @transform_0, window_bounds = array<i64: 4, 8, 512>}, {transform_indices = @transform_1, window_bounds = array<i64: 8, 128>}, {transform_indices = @transform_2, window_bounds = array<i64: 8, 128>}, {pipeline_mode = #tpu.pipeline_mode<synchronous>, transform_indices = @transform_3, window_bounds = array<i64: 128, 512>}, {transform_indices = @transform_4, window_bounds = array<i64: 4, 8, 128>}]} {
    %c0_i32 = arith.constant 0 : i32
    %0 = arith.cmpi eq, %arg1, %c0_i32 : i32
    %1 = arith.extui %0 : i1 to i32
    %c0_i32_0 = arith.constant 0 : i32
    %2 = arith.cmpi ne, %1, %c0_i32_0 : i32
    scf.if %2 {
      %c0_34 = arith.constant 0 : index
      %c0_35 = arith.constant 0 : index
      %108 = vector.load %arg3[%c0_34, %c0_35] : memref<8x128xf32, #tpu.memory_space<vmem>>, vector<8x128xf32>
      %c0_36 = arith.constant 0 : index
      %c0_37 = arith.constant 0 : index
      %109 = vector.load %arg7[%c0_36, %c0_37] : memref<8x128xf32, #tpu.memory_space<vmem>>, vector<8x128xf32>
      tpu.vector_store %arg7[%c0_36, %c0_37], %108 {strides = array<i32>} : memref<8x128xf32, #tpu.memory_space<vmem>>, vector<8x128xf32>,
      %c0_38 = arith.constant 0 : index
      %c0_39 = arith.constant 0 : index
      %110 = vector.load %arg4[%c0_38, %c0_39] : memref<8x128xf32, #tpu.memory_space<vmem>>, vector<8x128xf32>
      %c0_40 = arith.constant 0 : index
      %c0_41 = arith.constant 0 : index
      %111 = vector.load %arg8[%c0_40, %c0_41] : memref<8x128xf32, #tpu.memory_space<vmem>>, vector<8x128xf32>
      tpu.vector_store %arg8[%c0_40, %c0_41], %110 {strides = array<i32>} : memref<8x128xf32, #tpu.memory_space<vmem>>, vector<8x128xf32>,
    } else {
    }
    %c0 = arith.constant 0 : index
    %c0_1 = arith.constant 0 : index
    %3 = vector.load %arg5[%c0, %c0_1] : memref<128x512xf32, #tpu.memory_space<vmem>>, vector<128x512xf32>
    %c0_2 = arith.constant 0 : index
    %c0_3 = arith.constant 0 : index
    %4 = vector.load %arg7[%c0_2, %c0_3] : memref<8x128xf32, #tpu.memory_space<vmem>>, vector<8x128xf32>
    %c0_4 = arith.constant 0 : index
    %c0_5 = arith.constant 0 : index
    %5 = vector.load %arg8[%c0_4, %c0_5] : memref<8x128xf32, #tpu.memory_space<vmem>>, vector<8x128xf32>
    %c0_i32_6 = arith.constant 0 : i32
    %6 = arith.index_cast %c0_i32_6 : i32 to index
    %c0_7 = arith.constant 0 : index
    %c0_8 = arith.constant 0 : index
    %7 = vector.load %arg2[%6, %c0_7, %c0_8] : memref<4x8x512xf32, #tpu.memory_space<vmem>>, vector<1x8x512xf32>
    %8 = vector.shape_cast %7 : vector<1x8x512xf32> to vector<8x512xf32>
    %cst = arith.constant dense<0.000000e+00> : vector<8x512xf32>
    %9 = tpu.matmul %4, %3, %cst {dimension_numbers = #tpu.dot_dimension_numbers<[1], [0], [0], [1], [0, 0, 1, 1], [], []>} : vector<8x128xf32>, vector<128x512xf32>, vector<8x512xf32> -> vector<8x512xf32>
    %10 = arith.addf %8, %9 : vector<8x512xf32>
    %11 = vector.extract_strided_slice %10 {offsets = [0, 0], sizes = [8, 384], strides = [1, 1]} : vector<8x512xf32> to vector<8x384xf32>
    %12 = arith.negf %11 : vector<8x384xf32>
    %13 = math.exp %12 : vector<8x384xf32>
    %cst_9 = arith.constant 1.000000e+00 : f32
    %14 = vector.broadcast %cst_9 : f32 to vector<8x384xf32>
    %15 = arith.addf %14, %13 : vector<8x384xf32>
    %16 = arith.divf %14, %15 : vector<8x384xf32>
    %17 = vector.extract_strided_slice %10 {offsets = [0, 384], sizes = [8, 128], strides = [1, 1]} : vector<8x512xf32> to vector<8x128xf32>
    %18 = math.tanh %17 : vector<8x128xf32>
    %19 = vector.extract_strided_slice %16 {offsets = [0, 128], sizes = [8, 128], strides = [1, 1]} : vector<8x384xf32> to vector<8x128xf32>
    %20 = arith.mulf %19, %5 : vector<8x128xf32>
    %21 = vector.extract_strided_slice %16 {offsets = [0, 0], sizes = [8, 128], strides = [1, 1]} : vector<8x384xf32> to vector<8x128xf32>
    %22 = arith.mulf %21, %18 : vector<8x128xf32>
    %23 = arith.addf %20, %22 : vector<8x128xf32>
    %24 = vector.extract_strided_slice %16 {offsets = [0, 256], sizes = [8, 128], strides = [1, 1]} : vector<8x384xf32> to vector<8x128xf32>
    %25 = math.tanh %23 : vector<8x128xf32>
    %26 = arith.mulf %24, %25 : vector<8x128xf32>
    %27 = arith.index_cast %c0_i32_6 : i32 to index
    %c0_10 = arith.constant 0 : index
    %c0_11 = arith.constant 0 : index
    %28 = vector.load %arg6[%27, %c0_10, %c0_11] : memref<4x8x128xf32, #tpu.memory_space<vmem>>, vector<1x8x128xf32>
    %29 = vector.shape_cast %28 : vector<1x8x128xf32> to vector<8x128xf32>
    %30 = vector.shape_cast %26 : vector<8x128xf32> to vector<1x8x128xf32>
    tpu.vector_store %arg6[%27, %c0_10, %c0_11], %30 {strides = array<i32>} : memref<4x8x128xf32, #tpu.memory_space<vmem>>, vector<1x8x128xf32>,
    %c1_i32 = arith.constant 1 : i32
    %31 = arith.index_cast %c1_i32 : i32 to index
    %c0_12 = arith.constant 0 : index
    %c0_13 = arith.constant 0 : index
    %32 = vector.load %arg2[%31, %c0_12, %c0_13] : memref<4x8x512xf32, #tpu.memory_space<vmem>>, vector<1x8x512xf32>
    %33 = vector.shape_cast %32 : vector<1x8x512xf32> to vector<8x512xf32>
    %cst_14 = arith.constant dense<0.000000e+00> : vector<8x512xf32>
    %34 = tpu.matmul %26, %3, %cst_14 {dimension_numbers = #tpu.dot_dimension_numbers<[1], [0], [0], [1], [0, 0, 1, 1], [], []>} : vector<8x128xf32>, vector<128x512xf32>, vector<8x512xf32> -> vector<8x512xf32>
    %35 = arith.addf %33, %34 : vector<8x512xf32>
    %36 = vector.extract_strided_slice %35 {offsets = [0, 0], sizes = [8, 384], strides = [1, 1]} : vector<8x512xf32> to vector<8x384xf32>
    %37 = arith.negf %36 : vector<8x384xf32>
    %38 = math.exp %37 : vector<8x384xf32>
    %cst_15 = arith.constant 1.000000e+00 : f32
    %39 = vector.broadcast %cst_15 : f32 to vector<8x384xf32>
    %40 = arith.addf %39, %38 : vector<8x384xf32>
    %41 = arith.divf %39, %40 : vector<8x384xf32>
    %42 = vector.extract_strided_slice %35 {offsets = [0, 384], sizes = [8, 128], strides = [1, 1]} : vector<8x512xf32> to vector<8x128xf32>
    %43 = math.tanh %42 : vector<8x128xf32>
    %44 = vector.extract_strided_slice %41 {offsets = [0, 128], sizes = [8, 128], strides = [1, 1]} : vector<8x384xf32> to vector<8x128xf32>
    %45 = arith.mulf %44, %23 : vector<8x128xf32>
    %46 = vector.extract_strided_slice %41 {offsets = [0, 0], sizes = [8, 128], strides = [1, 1]} : vector<8x384xf32> to vector<8x128xf32>
    %47 = arith.mulf %46, %43 : vector<8x128xf32>
    %48 = arith.addf %45, %47 : vector<8x128xf32>
    %49 = vector.extract_strided_slice %41 {offsets = [0, 256], sizes = [8, 128], strides = [1, 1]} : vector<8x384xf32> to vector<8x128xf32>
    %50 = math.tanh %48 : vector<8x128xf32>
    %51 = arith.mulf %49, %50 : vector<8x128xf32>
    %52 = arith.index_cast %c1_i32 : i32 to index
    %c0_16 = arith.constant 0 : index
    %c0_17 = arith.constant 0 : index
    %53 = vector.load %arg6[%52, %c0_16, %c0_17] : memref<4x8x128xf32, #tpu.memory_space<vmem>>, vector<1x8x128xf32>
    %54 = vector.shape_cast %53 : vector<1x8x128xf32> to vector<8x128xf32>
    %55 = vector.shape_cast %51 : vector<8x128xf32> to vector<1x8x128xf32>
    tpu.vector_store %arg6[%52, %c0_16, %c0_17], %55 {strides = array<i32>} : memref<4x8x128xf32, #tpu.memory_space<vmem>>, vector<1x8x128xf32>,
    %c2_i32 = arith.constant 2 : i32
    %56 = arith.index_cast %c2_i32 : i32 to index
    %c0_18 = arith.constant 0 : index
    %c0_19 = arith.constant 0 : index
    %57 = vector.load %arg2[%56, %c0_18, %c0_19] : memref<4x8x512xf32, #tpu.memory_space<vmem>>, vector<1x8x512xf32>
    %58 = vector.shape_cast %57 : vector<1x8x512xf32> to vector<8x512xf32>
    %cst_20 = arith.constant dense<0.000000e+00> : vector<8x512xf32>
    %59 = tpu.matmul %51, %3, %cst_20 {dimension_numbers = #tpu.dot_dimension_numbers<[1], [0], [0], [1], [0, 0, 1, 1], [], []>} : vector<8x128xf32>, vector<128x512xf32>, vector<8x512xf32> -> vector<8x512xf32>
    %60 = arith.addf %58, %59 : vector<8x512xf32>
    %61 = vector.extract_strided_slice %60 {offsets = [0, 0], sizes = [8, 384], strides = [1, 1]} : vector<8x512xf32> to vector<8x384xf32>
    %62 = arith.negf %61 : vector<8x384xf32>
    %63 = math.exp %62 : vector<8x384xf32>
    %cst_21 = arith.constant 1.000000e+00 : f32
    %64 = vector.broadcast %cst_21 : f32 to vector<8x384xf32>
    %65 = arith.addf %64, %63 : vector<8x384xf32>
    %66 = arith.divf %64, %65 : vector<8x384xf32>
    %67 = vector.extract_strided_slice %60 {offsets = [0, 384], sizes = [8, 128], strides = [1, 1]} : vector<8x512xf32> to vector<8x128xf32>
    %68 = math.tanh %67 : vector<8x128xf32>
    %69 = vector.extract_strided_slice %66 {offsets = [0, 128], sizes = [8, 128], strides = [1, 1]} : vector<8x384xf32> to vector<8x128xf32>
    %70 = arith.mulf %69, %48 : vector<8x128xf32>
    %71 = vector.extract_strided_slice %66 {offsets = [0, 0], sizes = [8, 128], strides = [1, 1]} : vector<8x384xf32> to vector<8x128xf32>
    %72 = arith.mulf %71, %68 : vector<8x128xf32>
    %73 = arith.addf %70, %72 : vector<8x128xf32>
    %74 = vector.extract_strided_slice %66 {offsets = [0, 256], sizes = [8, 128], strides = [1, 1]} : vector<8x384xf32> to vector<8x128xf32>
    %75 = math.tanh %73 : vector<8x128xf32>
    %76 = arith.mulf %74, %75 : vector<8x128xf32>
    %77 = arith.index_cast %c2_i32 : i32 to index
    %c0_22 = arith.constant 0 : index
    %c0_23 = arith.constant 0 : index
    %78 = vector.load %arg6[%77, %c0_22, %c0_23] : memref<4x8x128xf32, #tpu.memory_space<vmem>>, vector<1x8x128xf32>
    %79 = vector.shape_cast %78 : vector<1x8x128xf32> to vector<8x128xf32>
    %80 = vector.shape_cast %76 : vector<8x128xf32> to vector<1x8x128xf32>
    tpu.vector_store %arg6[%77, %c0_22, %c0_23], %80 {strides = array<i32>} : memref<4x8x128xf32, #tpu.memory_space<vmem>>, vector<1x8x128xf32>,
    %c3_i32 = arith.constant 3 : i32
    %81 = arith.index_cast %c3_i32 : i32 to index
    %c0_24 = arith.constant 0 : index
    %c0_25 = arith.constant 0 : index
    %82 = vector.load %arg2[%81, %c0_24, %c0_25] : memref<4x8x512xf32, #tpu.memory_space<vmem>>, vector<1x8x512xf32>
    %83 = vector.shape_cast %82 : vector<1x8x512xf32> to vector<8x512xf32>
    %cst_26 = arith.constant dense<0.000000e+00> : vector<8x512xf32>
    %84 = tpu.matmul %76, %3, %cst_26 {dimension_numbers = #tpu.dot_dimension_numbers<[1], [0], [0], [1], [0, 0, 1, 1], [], []>} : vector<8x128xf32>, vector<128x512xf32>, vector<8x512xf32> -> vector<8x512xf32>
    %85 = arith.addf %83, %84 : vector<8x512xf32>
    %86 = vector.extract_strided_slice %85 {offsets = [0, 0], sizes = [8, 384], strides = [1, 1]} : vector<8x512xf32> to vector<8x384xf32>
    %87 = arith.negf %86 : vector<8x384xf32>
    %88 = math.exp %87 : vector<8x384xf32>
    %cst_27 = arith.constant 1.000000e+00 : f32
    %89 = vector.broadcast %cst_27 : f32 to vector<8x384xf32>
    %90 = arith.addf %89, %88 : vector<8x384xf32>
    %91 = arith.divf %89, %90 : vector<8x384xf32>
    %92 = vector.extract_strided_slice %85 {offsets = [0, 384], sizes = [8, 128], strides = [1, 1]} : vector<8x512xf32> to vector<8x128xf32>
    %93 = math.tanh %92 : vector<8x128xf32>
    %94 = vector.extract_strided_slice %91 {offsets = [0, 128], sizes = [8, 128], strides = [1, 1]} : vector<8x384xf32> to vector<8x128xf32>
    %95 = arith.mulf %94, %73 : vector<8x128xf32>
    %96 = vector.extract_strided_slice %91 {offsets = [0, 0], sizes = [8, 128], strides = [1, 1]} : vector<8x384xf32> to vector<8x128xf32>
    %97 = arith.mulf %96, %93 : vector<8x128xf32>
    %98 = arith.addf %95, %97 : vector<8x128xf32>
    %99 = vector.extract_strided_slice %91 {offsets = [0, 256], sizes = [8, 128], strides = [1, 1]} : vector<8x384xf32> to vector<8x128xf32>
    %100 = math.tanh %98 : vector<8x128xf32>
    %101 = arith.mulf %99, %100 : vector<8x128xf32>
    %102 = arith.index_cast %c3_i32 : i32 to index
    %c0_28 = arith.constant 0 : index
    %c0_29 = arith.constant 0 : index
    %103 = vector.load %arg6[%102, %c0_28, %c0_29] : memref<4x8x128xf32, #tpu.memory_space<vmem>>, vector<1x8x128xf32>
    %104 = vector.shape_cast %103 : vector<1x8x128xf32> to vector<8x128xf32>
    %105 = vector.shape_cast %101 : vector<8x128xf32> to vector<1x8x128xf32>
    tpu.vector_store %arg6[%102, %c0_28, %c0_29], %105 {strides = array<i32>} : memref<4x8x128xf32, #tpu.memory_space<vmem>>, vector<1x8x128xf32>,
    %c4_i32 = arith.constant 4 : i32
    %c0_30 = arith.constant 0 : index
    %c0_31 = arith.constant 0 : index
    %106 = vector.load %arg7[%c0_30, %c0_31] : memref<8x128xf32, #tpu.memory_space<vmem>>, vector<8x128xf32>
    tpu.vector_store %arg7[%c0_30, %c0_31], %101 {strides = array<i32>} : memref<8x128xf32, #tpu.memory_space<vmem>>, vector<8x128xf32>,
    %c0_32 = arith.constant 0 : index
    %c0_33 = arith.constant 0 : index
    %107 = vector.load %arg8[%c0_32, %c0_33] : memref<8x128xf32, #tpu.memory_space<vmem>>, vector<8x128xf32>
    tpu.vector_store %arg8[%c0_32, %c0_33], %98 {strides = array<i32>} : memref<8x128xf32, #tpu.memory_space<vmem>>, vector<8x128xf32>,
    return
  }
  func.func @transform_0(%arg0: i32, %arg1: i32) -> (i32, i32, i32) {
    %c0_i32 = arith.constant 0 : i32
    %c0_i32_0 = arith.constant 0 : i32
    return %arg1, %arg0, %c0_i32 : i32, i32, i32
  }
  func.func @transform_1(%arg0: i32, %arg1: i32) -> (i32, i32) {
    %c0_i32 = arith.constant 0 : i32
    %c0_i32_0 = arith.constant 0 : i32
    return %arg0, %c0_i32 : i32, i32
  }
  func.func @transform_2(%arg0: i32, %arg1: i32) -> (i32, i32) {
    %c0_i32 = arith.constant 0 : i32
    %c0_i32_0 = arith.constant 0 : i32
    return %arg0, %c0_i32 : i32, i32
  }
  func.func @transform_3(%arg0: i32, %arg1: i32) -> (i32, i32) {
    %c0_i32 = arith.constant 0 : i32
    %c0_i32_0 = arith.constant 0 : i32
    %c0_i32_1 = arith.constant 0 : i32
    return %c0_i32, %c0_i32_0 : i32, i32
  }
  func.func @transform_4(%arg0: i32, %arg1: i32) -> (i32, i32, i32) {
    %c0_i32 = arith.constant 0 : i32
    %c0_i32_0 = arith.constant 0 : i32
    return %arg1, %arg0, %c0_i32 : i32, i32, i32
  }
}

module attributes {stable_mosaic.version = 11 : i64} {
  func.func @_zforcing_fwd_kernel(%arg0: i32, %arg1: i32, %arg2: memref<4x8x512xf32, #tpu.memory_space<vmem>>, %arg3: memref<4x8x128xf32, #tpu.memory_space<vmem>>, %arg4: memref<4x8x64xf32, #tpu.memory_space<vmem>>, %arg5: memref<4x8x1xf32, #tpu.memory_space<vmem>>, %arg6: memref<8x128xf32, #tpu.memory_space<vmem>>, %arg7: memref<8x128xf32, #tpu.memory_space<vmem>>, %arg8: memref<128x896xf32, #tpu.memory_space<vmem>>, %arg9: memref<1x128xf32, #tpu.memory_space<vmem>>, %arg10: memref<128x128xf32, #tpu.memory_space<vmem>>, %arg11: memref<1x128xf32, #tpu.memory_space<vmem>>, %arg12: memref<128x128xf32, #tpu.memory_space<vmem>>, %arg13: memref<1x128xf32, #tpu.memory_space<vmem>>, %arg14: memref<128x128xf32, #tpu.memory_space<vmem>>, %arg15: memref<1x128xf32, #tpu.memory_space<vmem>>, %arg16: memref<64x256xf32, #tpu.memory_space<vmem>>, %arg17: memref<1x128xf32, #tpu.memory_space<vmem>>, %arg18: memref<128x256xf32, #tpu.memory_space<vmem>>, %arg19: memref<1x256xf32, #tpu.memory_space<vmem>>, %arg20: memref<1x128xf32, #tpu.memory_space<vmem>>, %arg21: memref<128x512xf32, #tpu.memory_space<vmem>>, %arg22: memref<1x512xf32, #tpu.memory_space<vmem>>, %arg23: memref<4x8x128xf32, #tpu.memory_space<vmem>>, %arg24: memref<8x1xf32, #tpu.memory_space<vmem>>, %arg25: memref<8x1xf32, #tpu.memory_space<vmem>>, %arg26: memref<8x128xf32, #tpu.memory_space<vmem>>, %arg27: memref<8x128xf32, #tpu.memory_space<vmem>>, %arg28: memref<4x8x128xf32, #tpu.memory_space<vmem>>) attributes {dimension_semantics = [#tpu.dimension_semantics<parallel>, #tpu.dimension_semantics<arbitrary>], iteration_bounds = array<i64: 2, 2>, scalar_prefetch = 0 : i64, scratch_operands = 3 : i64, tpu.core_type = #tpu.core_type<tc>, window_params = [{transform_indices = @transform_0, window_bounds = array<i64: 4, 8, 512>}, {transform_indices = @transform_1, window_bounds = array<i64: 4, 8, 128>}, {transform_indices = @transform_2, window_bounds = array<i64: 4, 8, 64>}, {transform_indices = @transform_3, window_bounds = array<i64: 4, 8, 1>}, {transform_indices = @transform_4, window_bounds = array<i64: 8, 128>}, {transform_indices = @transform_5, window_bounds = array<i64: 8, 128>}, {pipeline_mode = #tpu.pipeline_mode<synchronous>, transform_indices = @transform_6, window_bounds = array<i64: 128, 896>}, {pipeline_mode = #tpu.pipeline_mode<synchronous>, transform_indices = @transform_7, window_bounds = array<i64: 1, 128>}, {pipeline_mode = #tpu.pipeline_mode<synchronous>, transform_indices = @transform_8, window_bounds = array<i64: 128, 128>}, {pipeline_mode = #tpu.pipeline_mode<synchronous>, transform_indices = @transform_9, window_bounds = array<i64: 1, 128>}, {pipeline_mode = #tpu.pipeline_mode<synchronous>, transform_indices = @transform_10, window_bounds = array<i64: 128, 128>}, {pipeline_mode = #tpu.pipeline_mode<synchronous>, transform_indices = @transform_11, window_bounds = array<i64: 1, 128>}, {pipeline_mode = #tpu.pipeline_mode<synchronous>, transform_indices = @transform_12, window_bounds = array<i64: 128, 128>}, {pipeline_mode = #tpu.pipeline_mode<synchronous>, transform_indices = @transform_13, window_bounds = array<i64: 1, 128>}, {pipeline_mode = #tpu.pipeline_mode<synchronous>, transform_indices = @transform_14, window_bounds = array<i64: 64, 256>}, {pipeline_mode = #tpu.pipeline_mode<synchronous>, transform_indices = @transform_15, window_bounds = array<i64: 1, 128>}, {pipeline_mode = #tpu.pipeline_mode<synchronous>, transform_indices = @transform_16, window_bounds = array<i64: 128, 256>}, {pipeline_mode = #tpu.pipeline_mode<synchronous>, transform_indices = @transform_17, window_bounds = array<i64: 1, 256>}, {pipeline_mode = #tpu.pipeline_mode<synchronous>, transform_indices = @transform_18, window_bounds = array<i64: 1, 128>}, {pipeline_mode = #tpu.pipeline_mode<synchronous>, transform_indices = @transform_19, window_bounds = array<i64: 128, 512>}, {pipeline_mode = #tpu.pipeline_mode<synchronous>, transform_indices = @transform_20, window_bounds = array<i64: 1, 512>}, {transform_indices = @transform_21, window_bounds = array<i64: 4, 8, 128>}, {transform_indices = @transform_22, window_bounds = array<i64: 8, 1>}, {transform_indices = @transform_23, window_bounds = array<i64: 8, 1>}]} {
    %c0_i32 = arith.constant 0 : i32
    %0 = arith.cmpi eq, %arg1, %c0_i32 : i32
    %1 = arith.extui %0 : i1 to i32
    %c0_i32_0 = arith.constant 0 : i32
    %2 = arith.cmpi ne, %1, %c0_i32_0 : i32
    scf.if %2 {
      %c0_251 = arith.constant 0 : index
      %c0_252 = arith.constant 0 : index
      %667 = vector.load %arg6[%c0_251, %c0_252] : memref<8x128xf32, #tpu.memory_space<vmem>>, vector<8x128xf32>
      %c0_253 = arith.constant 0 : index
      %c0_254 = arith.constant 0 : index
      %668 = vector.load %arg26[%c0_253, %c0_254] : memref<8x128xf32, #tpu.memory_space<vmem>>, vector<8x128xf32>
      tpu.vector_store %arg26[%c0_253, %c0_254], %667 {strides = array<i32>} : memref<8x128xf32, #tpu.memory_space<vmem>>, vector<8x128xf32>,
      %c0_255 = arith.constant 0 : index
      %c0_256 = arith.constant 0 : index
      %669 = vector.load %arg7[%c0_255, %c0_256] : memref<8x128xf32, #tpu.memory_space<vmem>>, vector<8x128xf32>
      %c0_257 = arith.constant 0 : index
      %c0_258 = arith.constant 0 : index
      %670 = vector.load %arg27[%c0_257, %c0_258] : memref<8x128xf32, #tpu.memory_space<vmem>>, vector<8x128xf32>
      tpu.vector_store %arg27[%c0_257, %c0_258], %669 {strides = array<i32>} : memref<8x128xf32, #tpu.memory_space<vmem>>, vector<8x128xf32>,
    } else {
    }
    %c0 = arith.constant 0 : index
    %c0_1 = arith.constant 0 : index
    %3 = vector.load %arg8[%c0, %c0_1] : memref<128x896xf32, #tpu.memory_space<vmem>>, vector<128x896xf32>
    %c0_2 = arith.constant 0 : index
    %c0_3 = arith.constant 0 : index
    %4 = vector.load %arg10[%c0_2, %c0_3] : memref<128x128xf32, #tpu.memory_space<vmem>>, vector<128x128xf32>
    %c0_4 = arith.constant 0 : index
    %c0_5 = arith.constant 0 : index
    %5 = vector.load %arg14[%c0_4, %c0_5] : memref<128x128xf32, #tpu.memory_space<vmem>>, vector<128x128xf32>
    %c0_6 = arith.constant 0 : index
    %c0_7 = arith.constant 0 : index
    %6 = vector.load %arg16[%c0_6, %c0_7] : memref<64x256xf32, #tpu.memory_space<vmem>>, vector<64x256xf32>
    %c0_8 = arith.constant 0 : index
    %c0_9 = arith.constant 0 : index
    %7 = vector.load %arg18[%c0_8, %c0_9] : memref<128x256xf32, #tpu.memory_space<vmem>>, vector<128x256xf32>
    %c0_10 = arith.constant 0 : index
    %c0_11 = arith.constant 0 : index
    %8 = vector.load %arg21[%c0_10, %c0_11] : memref<128x512xf32, #tpu.memory_space<vmem>>, vector<128x512xf32>
    %c0_12 = arith.constant 0 : index
    %c0_13 = arith.constant 0 : index
    %9 = vector.load %arg9[%c0_12, %c0_13] : memref<1x128xf32, #tpu.memory_space<vmem>>, vector<1x128xf32>
    %c0_14 = arith.constant 0 : index
    %c0_15 = arith.constant 0 : index
    %10 = vector.load %arg11[%c0_14, %c0_15] : memref<1x128xf32, #tpu.memory_space<vmem>>, vector<1x128xf32>
    %c0_16 = arith.constant 0 : index
    %c0_17 = arith.constant 0 : index
    %11 = vector.load %arg13[%c0_16, %c0_17] : memref<1x128xf32, #tpu.memory_space<vmem>>, vector<1x128xf32>
    %c0_18 = arith.constant 0 : index
    %c0_19 = arith.constant 0 : index
    %12 = vector.load %arg15[%c0_18, %c0_19] : memref<1x128xf32, #tpu.memory_space<vmem>>, vector<1x128xf32>
    %c0_20 = arith.constant 0 : index
    %c0_21 = arith.constant 0 : index
    %13 = vector.load %arg17[%c0_20, %c0_21] : memref<1x128xf32, #tpu.memory_space<vmem>>, vector<1x128xf32>
    %c0_22 = arith.constant 0 : index
    %c0_23 = arith.constant 0 : index
    %14 = vector.load %arg19[%c0_22, %c0_23] : memref<1x256xf32, #tpu.memory_space<vmem>>, vector<1x256xf32>
    %c0_24 = arith.constant 0 : index
    %c0_25 = arith.constant 0 : index
    %15 = vector.load %arg20[%c0_24, %c0_25] : memref<1x128xf32, #tpu.memory_space<vmem>>, vector<1x128xf32>
    %c0_26 = arith.constant 0 : index
    %c0_27 = arith.constant 0 : index
    %16 = vector.load %arg22[%c0_26, %c0_27] : memref<1x512xf32, #tpu.memory_space<vmem>>, vector<1x512xf32>
    %c0_28 = arith.constant 0 : index
    %c0_29 = arith.constant 0 : index
    %c0_30 = arith.constant 0 : index
    %17 = vector.load %arg3[%c0_28, %c0_29, %c0_30] : memref<4x8x128xf32, #tpu.memory_space<vmem>>, vector<4x8x128xf32>
    %18 = vector.shape_cast %17 : vector<4x8x128xf32> to vector<32x128xf32>
    %c0_31 = arith.constant 0 : index
    %c0_32 = arith.constant 0 : index
    %19 = vector.load %arg12[%c0_31, %c0_32] : memref<128x128xf32, #tpu.memory_space<vmem>>, vector<128x128xf32>
    %cst = arith.constant dense<0.000000e+00> : vector<32x128xf32>
    %20 = tpu.matmul %18, %19, %cst {dimension_numbers = #tpu.dot_dimension_numbers<[1], [0], [0], [1], [0, 0, 1, 1], [], []>} : vector<32x128xf32>, vector<128x128xf32>, vector<32x128xf32> -> vector<32x128xf32>
    %21 = vector.shape_cast %20 : vector<32x128xf32> to vector<4x8x128xf32>
    %c0_33 = arith.constant 0 : index
    %c0_34 = arith.constant 0 : index
    %c0_35 = arith.constant 0 : index
    %22 = vector.load %arg28[%c0_33, %c0_34, %c0_35] : memref<4x8x128xf32, #tpu.memory_space<vmem>>, vector<4x8x128xf32>
    tpu.vector_store %arg28[%c0_33, %c0_34, %c0_35], %21 {strides = array<i32>} : memref<4x8x128xf32, #tpu.memory_space<vmem>>, vector<4x8x128xf32>,
    %c0_36 = arith.constant 0 : index
    %c0_37 = arith.constant 0 : index
    %23 = vector.load %arg26[%c0_36, %c0_37] : memref<8x128xf32, #tpu.memory_space<vmem>>, vector<8x128xf32>
    %c0_38 = arith.constant 0 : index
    %c0_39 = arith.constant 0 : index
    %24 = vector.load %arg27[%c0_38, %c0_39] : memref<8x128xf32, #tpu.memory_space<vmem>>, vector<8x128xf32>
    %cst_40 = arith.constant 0.000000e+00 : f32
    %25 = vector.broadcast %cst_40 : f32 to vector<8x1xf32>
    %cst_41 = arith.constant 0.000000e+00 : f32
    %26 = vector.broadcast %cst_41 : f32 to vector<8x1xf32>
    %c0_i32_42 = arith.constant 0 : i32
    %c3_i32 = arith.constant 3 : i32
    %27 = arith.subi %c3_i32, %c0_i32_42 : i32
    %28 = arith.index_cast %27 : i32 to index
    %c0_43 = arith.constant 0 : index
    %c0_44 = arith.constant 0 : index
    %29 = vector.load %arg3[%28, %c0_43, %c0_44] : memref<4x8x128xf32, #tpu.memory_space<vmem>>, vector<1x8x128xf32>
    %30 = vector.shape_cast %29 : vector<1x8x128xf32> to vector<8x128xf32>
    %c3_i32_45 = arith.constant 3 : i32
    %31 = arith.subi %c3_i32_45, %c0_i32_42 : i32
    %32 = arith.index_cast %31 : i32 to index
    %c0_46 = arith.constant 0 : index
    %c0_47 = arith.constant 0 : index
    %33 = vector.load %arg28[%32, %c0_46, %c0_47] : memref<4x8x128xf32, #tpu.memory_space<vmem>>, vector<1x8x128xf32>
    %34 = vector.shape_cast %33 : vector<1x8x128xf32> to vector<8x128xf32>
    %35 = arith.index_cast %c0_i32_42 : i32 to index
    %c0_48 = arith.constant 0 : index
    %c0_49 = arith.constant 0 : index
    %36 = vector.load %arg4[%35, %c0_48, %c0_49] : memref<4x8x64xf32, #tpu.memory_space<vmem>>, vector<1x8x64xf32>
    %37 = vector.shape_cast %36 : vector<1x8x64xf32> to vector<8x64xf32>
    %38 = arith.index_cast %c0_i32_42 : i32 to index
    %c0_50 = arith.constant 0 : index
    %c0_51 = arith.constant 0 : index
    %39 = vector.load %arg5[%38, %c0_50, %c0_51] : memref<4x8x1xf32, #tpu.memory_space<vmem>>, vector<1x8x1xf32>
    %40 = vector.shape_cast %39 : vector<1x8x1xf32> to vector<8x1xf32>
    %41 = arith.index_cast %c0_i32_42 : i32 to index
    %c0_52 = arith.constant 0 : index
    %c0_53 = arith.constant 0 : index
    %42 = vector.load %arg2[%41, %c0_52, %c0_53] : memref<4x8x512xf32, #tpu.memory_space<vmem>>, vector<1x8x512xf32>
    %43 = vector.shape_cast %42 : vector<1x8x512xf32> to vector<8x512xf32>
    %cst_54 = arith.constant dense<0.000000e+00> : vector<8x896xf32>
    %44 = tpu.matmul %23, %3, %cst_54 {dimension_numbers = #tpu.dot_dimension_numbers<[1], [0], [0], [1], [0, 0, 1, 1], [], []>} : vector<8x128xf32>, vector<128x896xf32>, vector<8x896xf32> -> vector<8x896xf32>
    %45 = vector.extract_strided_slice %44 {offsets = [0, 0], sizes = [8, 128], strides = [1, 1]} : vector<8x896xf32> to vector<8x128xf32>
    %46 = vector.extract_strided_slice %44 {offsets = [0, 128], sizes = [8, 128], strides = [1, 1]} : vector<8x896xf32> to vector<8x128xf32>
    %47 = vector.extract_strided_slice %44 {offsets = [0, 256], sizes = [8, 128], strides = [1, 1]} : vector<8x896xf32> to vector<8x128xf32>
    %48 = vector.extract_strided_slice %44 {offsets = [0, 384], sizes = [8, 512], strides = [1, 1]} : vector<8x896xf32> to vector<8x512xf32>
    %49 = vector.broadcast %9 : vector<1x128xf32> to vector<8x128xf32>
    %50 = arith.addf %45, %49 : vector<8x128xf32>
    %cst_55 = arith.constant 0.000000e+00 : f32
    %51 = vector.broadcast %cst_55 : f32 to vector<8x128xf32>
    %52 = arith.cmpf oge, %50, %51 : vector<8x128xf32>
    %cst_56 = arith.constant 0.333333343 : f32
    %53 = vector.broadcast %cst_56 : f32 to vector<8x128xf32>
    %54 = arith.mulf %53, %50 : vector<8x128xf32>
    %55 = arith.select %52, %50, %54 : vector<8x128xi1>, vector<8x128xf32>
    %cst_57 = arith.constant -3.000000e+00 : f32
    %cst_58 = arith.constant 3.000000e+00 : f32
    %56 = vector.broadcast %cst_57 : f32 to vector<8x128xf32>
    %57 = arith.maximumf %56, %55 : vector<8x128xf32>
    %58 = vector.broadcast %cst_58 : f32 to vector<8x128xf32>
    %59 = arith.minimumf %58, %57 : vector<8x128xf32>
    %cst_59 = arith.constant dense<0.000000e+00> : vector<8x128xf32>
    %60 = tpu.matmul %59, %4, %cst_59 {dimension_numbers = #tpu.dot_dimension_numbers<[1], [0], [0], [1], [0, 0, 1, 1], [], []>} : vector<8x128xf32>, vector<128x128xf32>, vector<8x128xf32> -> vector<8x128xf32>
    %61 = vector.broadcast %10 : vector<1x128xf32> to vector<8x128xf32>
    %62 = arith.addf %60, %61 : vector<8x128xf32>
    %cst_60 = arith.constant -8.000000e+00 : f32
    %cst_61 = arith.constant 8.000000e+00 : f32
    %63 = vector.broadcast %cst_60 : f32 to vector<8x128xf32>
    %64 = arith.maximumf %63, %62 : vector<8x128xf32>
    %65 = vector.broadcast %cst_61 : f32 to vector<8x128xf32>
    %66 = arith.minimumf %65, %64 : vector<8x128xf32>
    %67 = vector.extract_strided_slice %66 {offsets = [0, 0], sizes = [8, 64], strides = [1, 1]} : vector<8x128xf32> to vector<8x64xf32>
    %68 = vector.extract_strided_slice %66 {offsets = [0, 64], sizes = [8, 64], strides = [1, 1]} : vector<8x128xf32> to vector<8x64xf32>
    %69 = arith.addf %46, %34 : vector<8x128xf32>
    %70 = vector.broadcast %11 : vector<1x128xf32> to vector<8x128xf32>
    %71 = arith.addf %69, %70 : vector<8x128xf32>
    %cst_62 = arith.constant 0.000000e+00 : f32
    %72 = vector.broadcast %cst_62 : f32 to vector<8x128xf32>
    %73 = arith.cmpf oge, %71, %72 : vector<8x128xf32>
    %cst_63 = arith.constant 0.333333343 : f32
    %74 = vector.broadcast %cst_63 : f32 to vector<8x128xf32>
    %75 = arith.mulf %74, %71 : vector<8x128xf32>
    %76 = arith.select %73, %71, %75 : vector<8x128xi1>, vector<8x128xf32>
    %cst_64 = arith.constant -3.000000e+00 : f32
    %cst_65 = arith.constant 3.000000e+00 : f32
    %77 = vector.broadcast %cst_64 : f32 to vector<8x128xf32>
    %78 = arith.maximumf %77, %76 : vector<8x128xf32>
    %79 = vector.broadcast %cst_65 : f32 to vector<8x128xf32>
    %80 = arith.minimumf %79, %78 : vector<8x128xf32>
    %cst_66 = arith.constant dense<0.000000e+00> : vector<8x128xf32>
    %81 = tpu.matmul %80, %5, %cst_66 {dimension_numbers = #tpu.dot_dimension_numbers<[1], [0], [0], [1], [0, 0, 1, 1], [], []>} : vector<8x128xf32>, vector<128x128xf32>, vector<8x128xf32> -> vector<8x128xf32>
    %82 = vector.broadcast %12 : vector<1x128xf32> to vector<8x128xf32>
    %83 = arith.addf %81, %82 : vector<8x128xf32>
    %cst_67 = arith.constant -8.000000e+00 : f32
    %cst_68 = arith.constant 8.000000e+00 : f32
    %84 = vector.broadcast %cst_67 : f32 to vector<8x128xf32>
    %85 = arith.maximumf %84, %83 : vector<8x128xf32>
    %86 = vector.broadcast %cst_68 : f32 to vector<8x128xf32>
    %87 = arith.minimumf %86, %85 : vector<8x128xf32>
    %88 = vector.extract_strided_slice %87 {offsets = [0, 0], sizes = [8, 64], strides = [1, 1]} : vector<8x128xf32> to vector<8x64xf32>
    %89 = vector.extract_strided_slice %87 {offsets = [0, 64], sizes = [8, 64], strides = [1, 1]} : vector<8x128xf32> to vector<8x64xf32>
    %90 = arith.subf %68, %89 : vector<8x64xf32>
    %91 = arith.subf %89, %68 : vector<8x64xf32>
    %92 = math.exp %91 : vector<8x64xf32>
    %93 = arith.addf %90, %92 : vector<8x64xf32>
    %94 = arith.subf %88, %67 : vector<8x64xf32>
    %95 = arith.mulf %94, %94 : vector<8x64xf32>
    %cst_69 = arith.constant 0.000000e+00 : f32
    %96 = vector.broadcast %cst_69 : f32 to vector<8x64xf32>
    %97 = arith.subf %96, %68 : vector<8x64xf32>
    %98 = math.exp %97 : vector<8x64xf32>
    %99 = arith.mulf %95, %98 : vector<8x64xf32>
    %100 = arith.addf %93, %99 : vector<8x64xf32>
    %cst_70 = arith.constant 1.000000e+00 : f32
    %101 = vector.broadcast %cst_70 : f32 to vector<8x64xf32>
    %102 = arith.subf %100, %101 : vector<8x64xf32>
    %cst_71 = arith.constant 5.000000e-01 : f32
    %103 = vector.broadcast %cst_71 : f32 to vector<8x64xf32>
    %104 = arith.mulf %103, %102 : vector<8x64xf32>
    %cst_72 = arith.constant dense<0.000000e+00> : vector<8xf32>
    %105 = vector.multi_reduction <add>, %104, %cst_72 [1] : vector<8x64xf32> to vector<8xf32>
    %106 = vector.shape_cast %105 : vector<8xf32> to vector<8x1xf32>
    %cst_73 = arith.constant 5.000000e-01 : f32
    %107 = vector.broadcast %cst_73 : f32 to vector<8x64xf32>
    %108 = arith.mulf %107, %89 : vector<8x64xf32>
    %109 = math.exp %108 : vector<8x64xf32>
    %110 = arith.mulf %37, %109 : vector<8x64xf32>
    %111 = arith.addf %110, %88 : vector<8x64xf32>
    %cst_74 = arith.constant dense<0.000000e+00> : vector<8x256xf32>
    %112 = tpu.matmul %111, %6, %cst_74 {dimension_numbers = #tpu.dot_dimension_numbers<[1], [0], [0], [1], [0, 0, 1, 1], [], []>} : vector<8x64xf32>, vector<64x256xf32>, vector<8x256xf32> -> vector<8x256xf32>
    %113 = vector.extract_strided_slice %112 {offsets = [0, 0], sizes = [8, 128], strides = [1, 1]} : vector<8x256xf32> to vector<8x128xf32>
    %114 = vector.extract_strided_slice %112 {offsets = [0, 128], sizes = [8, 128], strides = [1, 1]} : vector<8x256xf32> to vector<8x128xf32>
    %115 = arith.addf %47, %113 : vector<8x128xf32>
    %116 = vector.broadcast %13 : vector<1x128xf32> to vector<8x128xf32>
    %117 = arith.addf %115, %116 : vector<8x128xf32>
    %cst_75 = arith.constant 0.000000e+00 : f32
    %118 = vector.broadcast %cst_75 : f32 to vector<8x128xf32>
    %119 = arith.cmpf oge, %117, %118 : vector<8x128xf32>
    %cst_76 = arith.constant 0.333333343 : f32
    %120 = vector.broadcast %cst_76 : f32 to vector<8x128xf32>
    %121 = arith.mulf %120, %117 : vector<8x128xf32>
    %122 = arith.select %119, %117, %121 : vector<8x128xi1>, vector<8x128xf32>
    %cst_77 = arith.constant -3.000000e+00 : f32
    %cst_78 = arith.constant 3.000000e+00 : f32
    %123 = vector.broadcast %cst_77 : f32 to vector<8x128xf32>
    %124 = arith.maximumf %123, %122 : vector<8x128xf32>
    %125 = vector.broadcast %cst_78 : f32 to vector<8x128xf32>
    %126 = arith.minimumf %125, %124 : vector<8x128xf32>
    %cst_79 = arith.constant dense<0.000000e+00> : vector<8x256xf32>
    %127 = tpu.matmul %126, %7, %cst_79 {dimension_numbers = #tpu.dot_dimension_numbers<[1], [0], [0], [1], [0, 0, 1, 1], [], []>} : vector<8x128xf32>, vector<128x256xf32>, vector<8x256xf32> -> vector<8x256xf32>
    %128 = vector.broadcast %14 : vector<1x256xf32> to vector<8x256xf32>
    %129 = arith.addf %127, %128 : vector<8x256xf32>
    %cst_80 = arith.constant -8.000000e+00 : f32
    %cst_81 = arith.constant 8.000000e+00 : f32
    %130 = vector.broadcast %cst_80 : f32 to vector<8x256xf32>
    %131 = arith.maximumf %130, %129 : vector<8x256xf32>
    %132 = vector.broadcast %cst_81 : f32 to vector<8x256xf32>
    %133 = arith.minimumf %132, %131 : vector<8x256xf32>
    %134 = vector.extract_strided_slice %133 {offsets = [0, 0], sizes = [8, 128], strides = [1, 1]} : vector<8x256xf32> to vector<8x128xf32>
    %135 = vector.extract_strided_slice %133 {offsets = [0, 128], sizes = [8, 128], strides = [1, 1]} : vector<8x256xf32> to vector<8x128xf32>
    %cst_82 = arith.constant 5.000000e-01 : f32
    %136 = vector.broadcast %cst_82 : f32 to vector<8x128xf32>
    %137 = arith.mulf %136, %135 : vector<8x128xf32>
    %cst_83 = arith.constant -0.918938517 : f32
    %138 = vector.broadcast %cst_83 : f32 to vector<8x128xf32>
    %139 = arith.subf %138, %137 : vector<8x128xf32>
    %140 = math.tanh %134 : vector<8x128xf32>
    %141 = arith.subf %30, %140 : vector<8x128xf32>
    %142 = arith.mulf %141, %141 : vector<8x128xf32>
    %cst_84 = arith.constant 0.000000e+00 : f32
    %143 = vector.broadcast %cst_84 : f32 to vector<8x128xf32>
    %144 = arith.subf %143, %135 : vector<8x128xf32>
    %145 = math.exp %144 : vector<8x128xf32>
    %cst_85 = arith.constant 5.000000e-01 : f32
    %146 = vector.broadcast %cst_85 : f32 to vector<8x128xf32>
    %147 = arith.mulf %146, %145 : vector<8x128xf32>
    %148 = arith.mulf %142, %147 : vector<8x128xf32>
    %149 = arith.subf %139, %148 : vector<8x128xf32>
    %cst_86 = arith.constant dense<0.000000e+00> : vector<8xf32>
    %150 = vector.multi_reduction <add>, %149, %cst_86 [1] : vector<8x128xf32> to vector<8xf32>
    %151 = vector.shape_cast %150 : vector<8xf32> to vector<8x1xf32>
    %cst_87 = arith.constant 0.000000e+00 : f32
    %152 = vector.broadcast %cst_87 : f32 to vector<8x1xf32>
    %153 = arith.subf %152, %151 : vector<8x1xf32>
    %154 = vector.broadcast %15 : vector<1x128xf32> to vector<8x128xf32>
    %155 = arith.addf %114, %154 : vector<8x128xf32>
    %cst_88 = arith.constant dense<0.000000e+00> : vector<8x512xf32>
    %156 = tpu.matmul %155, %8, %cst_88 {dimension_numbers = #tpu.dot_dimension_numbers<[1], [0], [0], [1], [0, 0, 1, 1], [], []>} : vector<8x128xf32>, vector<128x512xf32>, vector<8x512xf32> -> vector<8x512xf32>
    %157 = arith.addf %156, %43 : vector<8x512xf32>
    %158 = arith.addf %157, %48 : vector<8x512xf32>
    %159 = vector.broadcast %16 : vector<1x512xf32> to vector<8x512xf32>
    %160 = arith.addf %158, %159 : vector<8x512xf32>
    %161 = vector.extract_strided_slice %160 {offsets = [0, 0], sizes = [8, 384], strides = [1, 1]} : vector<8x512xf32> to vector<8x384xf32>
    %162 = arith.negf %161 : vector<8x384xf32>
    %163 = math.exp %162 : vector<8x384xf32>
    %cst_89 = arith.constant 1.000000e+00 : f32
    %164 = vector.broadcast %cst_89 : f32 to vector<8x384xf32>
    %165 = arith.addf %164, %163 : vector<8x384xf32>
    %166 = arith.divf %164, %165 : vector<8x384xf32>
    %167 = vector.extract_strided_slice %160 {offsets = [0, 384], sizes = [8, 128], strides = [1, 1]} : vector<8x512xf32> to vector<8x128xf32>
    %168 = math.tanh %167 : vector<8x128xf32>
    %169 = vector.extract_strided_slice %166 {offsets = [0, 128], sizes = [8, 128], strides = [1, 1]} : vector<8x384xf32> to vector<8x128xf32>
    %170 = arith.mulf %169, %24 : vector<8x128xf32>
    %171 = vector.extract_strided_slice %166 {offsets = [0, 0], sizes = [8, 128], strides = [1, 1]} : vector<8x384xf32> to vector<8x128xf32>
    %172 = arith.mulf %171, %168 : vector<8x128xf32>
    %173 = arith.addf %170, %172 : vector<8x128xf32>
    %174 = vector.extract_strided_slice %166 {offsets = [0, 256], sizes = [8, 128], strides = [1, 1]} : vector<8x384xf32> to vector<8x128xf32>
    %175 = math.tanh %173 : vector<8x128xf32>
    %176 = arith.mulf %174, %175 : vector<8x128xf32>
    %177 = arith.index_cast %c0_i32_42 : i32 to index
    %c0_90 = arith.constant 0 : index
    %c0_91 = arith.constant 0 : index
    %178 = vector.load %arg23[%177, %c0_90, %c0_91] : memref<4x8x128xf32, #tpu.memory_space<vmem>>, vector<1x8x128xf32>
    %179 = vector.shape_cast %178 : vector<1x8x128xf32> to vector<8x128xf32>
    %180 = vector.shape_cast %176 : vector<8x128xf32> to vector<1x8x128xf32>
    tpu.vector_store %arg23[%177, %c0_90, %c0_91], %180 {strides = array<i32>} : memref<4x8x128xf32, #tpu.memory_space<vmem>>, vector<1x8x128xf32>,
    %181 = arith.mulf %106, %40 : vector<8x1xf32>
    %182 = arith.addf %25, %181 : vector<8x1xf32>
    %183 = arith.mulf %153, %40 : vector<8x1xf32>
    %184 = arith.addf %26, %183 : vector<8x1xf32>
    %c1_i32 = arith.constant 1 : i32
    %c3_i32_92 = arith.constant 3 : i32
    %185 = arith.subi %c3_i32_92, %c1_i32 : i32
    %186 = arith.index_cast %185 : i32 to index
    %c0_93 = arith.constant 0 : index
    %c0_94 = arith.constant 0 : index
    %187 = vector.load %arg3[%186, %c0_93, %c0_94] : memref<4x8x128xf32, #tpu.memory_space<vmem>>, vector<1x8x128xf32>
    %188 = vector.shape_cast %187 : vector<1x8x128xf32> to vector<8x128xf32>
    %c3_i32_95 = arith.constant 3 : i32
    %189 = arith.subi %c3_i32_95, %c1_i32 : i32
    %190 = arith.index_cast %189 : i32 to index
    %c0_96 = arith.constant 0 : index
    %c0_97 = arith.constant 0 : index
    %191 = vector.load %arg28[%190, %c0_96, %c0_97] : memref<4x8x128xf32, #tpu.memory_space<vmem>>, vector<1x8x128xf32>
    %192 = vector.shape_cast %191 : vector<1x8x128xf32> to vector<8x128xf32>
    %193 = arith.index_cast %c1_i32 : i32 to index
    %c0_98 = arith.constant 0 : index
    %c0_99 = arith.constant 0 : index
    %194 = vector.load %arg4[%193, %c0_98, %c0_99] : memref<4x8x64xf32, #tpu.memory_space<vmem>>, vector<1x8x64xf32>
    %195 = vector.shape_cast %194 : vector<1x8x64xf32> to vector<8x64xf32>
    %196 = arith.index_cast %c1_i32 : i32 to index
    %c0_100 = arith.constant 0 : index
    %c0_101 = arith.constant 0 : index
    %197 = vector.load %arg5[%196, %c0_100, %c0_101] : memref<4x8x1xf32, #tpu.memory_space<vmem>>, vector<1x8x1xf32>
    %198 = vector.shape_cast %197 : vector<1x8x1xf32> to vector<8x1xf32>
    %199 = arith.index_cast %c1_i32 : i32 to index
    %c0_102 = arith.constant 0 : index
    %c0_103 = arith.constant 0 : index
    %200 = vector.load %arg2[%199, %c0_102, %c0_103] : memref<4x8x512xf32, #tpu.memory_space<vmem>>, vector<1x8x512xf32>
    %201 = vector.shape_cast %200 : vector<1x8x512xf32> to vector<8x512xf32>
    %cst_104 = arith.constant dense<0.000000e+00> : vector<8x896xf32>
    %202 = tpu.matmul %176, %3, %cst_104 {dimension_numbers = #tpu.dot_dimension_numbers<[1], [0], [0], [1], [0, 0, 1, 1], [], []>} : vector<8x128xf32>, vector<128x896xf32>, vector<8x896xf32> -> vector<8x896xf32>
    %203 = vector.extract_strided_slice %202 {offsets = [0, 0], sizes = [8, 128], strides = [1, 1]} : vector<8x896xf32> to vector<8x128xf32>
    %204 = vector.extract_strided_slice %202 {offsets = [0, 128], sizes = [8, 128], strides = [1, 1]} : vector<8x896xf32> to vector<8x128xf32>
    %205 = vector.extract_strided_slice %202 {offsets = [0, 256], sizes = [8, 128], strides = [1, 1]} : vector<8x896xf32> to vector<8x128xf32>
    %206 = vector.extract_strided_slice %202 {offsets = [0, 384], sizes = [8, 512], strides = [1, 1]} : vector<8x896xf32> to vector<8x512xf32>
    %207 = vector.broadcast %9 : vector<1x128xf32> to vector<8x128xf32>
    %208 = arith.addf %203, %207 : vector<8x128xf32>
    %cst_105 = arith.constant 0.000000e+00 : f32
    %209 = vector.broadcast %cst_105 : f32 to vector<8x128xf32>
    %210 = arith.cmpf oge, %208, %209 : vector<8x128xf32>
    %cst_106 = arith.constant 0.333333343 : f32
    %211 = vector.broadcast %cst_106 : f32 to vector<8x128xf32>
    %212 = arith.mulf %211, %208 : vector<8x128xf32>
    %213 = arith.select %210, %208, %212 : vector<8x128xi1>, vector<8x128xf32>
    %cst_107 = arith.constant -3.000000e+00 : f32
    %cst_108 = arith.constant 3.000000e+00 : f32
    %214 = vector.broadcast %cst_107 : f32 to vector<8x128xf32>
    %215 = arith.maximumf %214, %213 : vector<8x128xf32>
    %216 = vector.broadcast %cst_108 : f32 to vector<8x128xf32>
    %217 = arith.minimumf %216, %215 : vector<8x128xf32>
    %cst_109 = arith.constant dense<0.000000e+00> : vector<8x128xf32>
    %218 = tpu.matmul %217, %4, %cst_109 {dimension_numbers = #tpu.dot_dimension_numbers<[1], [0], [0], [1], [0, 0, 1, 1], [], []>} : vector<8x128xf32>, vector<128x128xf32>, vector<8x128xf32> -> vector<8x128xf32>
    %219 = vector.broadcast %10 : vector<1x128xf32> to vector<8x128xf32>
    %220 = arith.addf %218, %219 : vector<8x128xf32>
    %cst_110 = arith.constant -8.000000e+00 : f32
    %cst_111 = arith.constant 8.000000e+00 : f32
    %221 = vector.broadcast %cst_110 : f32 to vector<8x128xf32>
    %222 = arith.maximumf %221, %220 : vector<8x128xf32>
    %223 = vector.broadcast %cst_111 : f32 to vector<8x128xf32>
    %224 = arith.minimumf %223, %222 : vector<8x128xf32>
    %225 = vector.extract_strided_slice %224 {offsets = [0, 0], sizes = [8, 64], strides = [1, 1]} : vector<8x128xf32> to vector<8x64xf32>
    %226 = vector.extract_strided_slice %224 {offsets = [0, 64], sizes = [8, 64], strides = [1, 1]} : vector<8x128xf32> to vector<8x64xf32>
    %227 = arith.addf %204, %192 : vector<8x128xf32>
    %228 = vector.broadcast %11 : vector<1x128xf32> to vector<8x128xf32>
    %229 = arith.addf %227, %228 : vector<8x128xf32>
    %cst_112 = arith.constant 0.000000e+00 : f32
    %230 = vector.broadcast %cst_112 : f32 to vector<8x128xf32>
    %231 = arith.cmpf oge, %229, %230 : vector<8x128xf32>
    %cst_113 = arith.constant 0.333333343 : f32
    %232 = vector.broadcast %cst_113 : f32 to vector<8x128xf32>
    %233 = arith.mulf %232, %229 : vector<8x128xf32>
    %234 = arith.select %231, %229, %233 : vector<8x128xi1>, vector<8x128xf32>
    %cst_114 = arith.constant -3.000000e+00 : f32
    %cst_115 = arith.constant 3.000000e+00 : f32
    %235 = vector.broadcast %cst_114 : f32 to vector<8x128xf32>
    %236 = arith.maximumf %235, %234 : vector<8x128xf32>
    %237 = vector.broadcast %cst_115 : f32 to vector<8x128xf32>
    %238 = arith.minimumf %237, %236 : vector<8x128xf32>
    %cst_116 = arith.constant dense<0.000000e+00> : vector<8x128xf32>
    %239 = tpu.matmul %238, %5, %cst_116 {dimension_numbers = #tpu.dot_dimension_numbers<[1], [0], [0], [1], [0, 0, 1, 1], [], []>} : vector<8x128xf32>, vector<128x128xf32>, vector<8x128xf32> -> vector<8x128xf32>
    %240 = vector.broadcast %12 : vector<1x128xf32> to vector<8x128xf32>
    %241 = arith.addf %239, %240 : vector<8x128xf32>
    %cst_117 = arith.constant -8.000000e+00 : f32
    %cst_118 = arith.constant 8.000000e+00 : f32
    %242 = vector.broadcast %cst_117 : f32 to vector<8x128xf32>
    %243 = arith.maximumf %242, %241 : vector<8x128xf32>
    %244 = vector.broadcast %cst_118 : f32 to vector<8x128xf32>
    %245 = arith.minimumf %244, %243 : vector<8x128xf32>
    %246 = vector.extract_strided_slice %245 {offsets = [0, 0], sizes = [8, 64], strides = [1, 1]} : vector<8x128xf32> to vector<8x64xf32>
    %247 = vector.extract_strided_slice %245 {offsets = [0, 64], sizes = [8, 64], strides = [1, 1]} : vector<8x128xf32> to vector<8x64xf32>
    %248 = arith.subf %226, %247 : vector<8x64xf32>
    %249 = arith.subf %247, %226 : vector<8x64xf32>
    %250 = math.exp %249 : vector<8x64xf32>
    %251 = arith.addf %248, %250 : vector<8x64xf32>
    %252 = arith.subf %246, %225 : vector<8x64xf32>
    %253 = arith.mulf %252, %252 : vector<8x64xf32>
    %cst_119 = arith.constant 0.000000e+00 : f32
    %254 = vector.broadcast %cst_119 : f32 to vector<8x64xf32>
    %255 = arith.subf %254, %226 : vector<8x64xf32>
    %256 = math.exp %255 : vector<8x64xf32>
    %257 = arith.mulf %253, %256 : vector<8x64xf32>
    %258 = arith.addf %251, %257 : vector<8x64xf32>
    %cst_120 = arith.constant 1.000000e+00 : f32
    %259 = vector.broadcast %cst_120 : f32 to vector<8x64xf32>
    %260 = arith.subf %258, %259 : vector<8x64xf32>
    %cst_121 = arith.constant 5.000000e-01 : f32
    %261 = vector.broadcast %cst_121 : f32 to vector<8x64xf32>
    %262 = arith.mulf %261, %260 : vector<8x64xf32>
    %cst_122 = arith.constant dense<0.000000e+00> : vector<8xf32>
    %263 = vector.multi_reduction <add>, %262, %cst_122 [1] : vector<8x64xf32> to vector<8xf32>
    %264 = vector.shape_cast %263 : vector<8xf32> to vector<8x1xf32>
    %cst_123 = arith.constant 5.000000e-01 : f32
    %265 = vector.broadcast %cst_123 : f32 to vector<8x64xf32>
    %266 = arith.mulf %265, %247 : vector<8x64xf32>
    %267 = math.exp %266 : vector<8x64xf32>
    %268 = arith.mulf %195, %267 : vector<8x64xf32>
    %269 = arith.addf %268, %246 : vector<8x64xf32>
    %cst_124 = arith.constant dense<0.000000e+00> : vector<8x256xf32>
    %270 = tpu.matmul %269, %6, %cst_124 {dimension_numbers = #tpu.dot_dimension_numbers<[1], [0], [0], [1], [0, 0, 1, 1], [], []>} : vector<8x64xf32>, vector<64x256xf32>, vector<8x256xf32> -> vector<8x256xf32>
    %271 = vector.extract_strided_slice %270 {offsets = [0, 0], sizes = [8, 128], strides = [1, 1]} : vector<8x256xf32> to vector<8x128xf32>
    %272 = vector.extract_strided_slice %270 {offsets = [0, 128], sizes = [8, 128], strides = [1, 1]} : vector<8x256xf32> to vector<8x128xf32>
    %273 = arith.addf %205, %271 : vector<8x128xf32>
    %274 = vector.broadcast %13 : vector<1x128xf32> to vector<8x128xf32>
    %275 = arith.addf %273, %274 : vector<8x128xf32>
    %cst_125 = arith.constant 0.000000e+00 : f32
    %276 = vector.broadcast %cst_125 : f32 to vector<8x128xf32>
    %277 = arith.cmpf oge, %275, %276 : vector<8x128xf32>
    %cst_126 = arith.constant 0.333333343 : f32
    %278 = vector.broadcast %cst_126 : f32 to vector<8x128xf32>
    %279 = arith.mulf %278, %275 : vector<8x128xf32>
    %280 = arith.select %277, %275, %279 : vector<8x128xi1>, vector<8x128xf32>
    %cst_127 = arith.constant -3.000000e+00 : f32
    %cst_128 = arith.constant 3.000000e+00 : f32
    %281 = vector.broadcast %cst_127 : f32 to vector<8x128xf32>
    %282 = arith.maximumf %281, %280 : vector<8x128xf32>
    %283 = vector.broadcast %cst_128 : f32 to vector<8x128xf32>
    %284 = arith.minimumf %283, %282 : vector<8x128xf32>
    %cst_129 = arith.constant dense<0.000000e+00> : vector<8x256xf32>
    %285 = tpu.matmul %284, %7, %cst_129 {dimension_numbers = #tpu.dot_dimension_numbers<[1], [0], [0], [1], [0, 0, 1, 1], [], []>} : vector<8x128xf32>, vector<128x256xf32>, vector<8x256xf32> -> vector<8x256xf32>
    %286 = vector.broadcast %14 : vector<1x256xf32> to vector<8x256xf32>
    %287 = arith.addf %285, %286 : vector<8x256xf32>
    %cst_130 = arith.constant -8.000000e+00 : f32
    %cst_131 = arith.constant 8.000000e+00 : f32
    %288 = vector.broadcast %cst_130 : f32 to vector<8x256xf32>
    %289 = arith.maximumf %288, %287 : vector<8x256xf32>
    %290 = vector.broadcast %cst_131 : f32 to vector<8x256xf32>
    %291 = arith.minimumf %290, %289 : vector<8x256xf32>
    %292 = vector.extract_strided_slice %291 {offsets = [0, 0], sizes = [8, 128], strides = [1, 1]} : vector<8x256xf32> to vector<8x128xf32>
    %293 = vector.extract_strided_slice %291 {offsets = [0, 128], sizes = [8, 128], strides = [1, 1]} : vector<8x256xf32> to vector<8x128xf32>
    %cst_132 = arith.constant 5.000000e-01 : f32
    %294 = vector.broadcast %cst_132 : f32 to vector<8x128xf32>
    %295 = arith.mulf %294, %293 : vector<8x128xf32>
    %cst_133 = arith.constant -0.918938517 : f32
    %296 = vector.broadcast %cst_133 : f32 to vector<8x128xf32>
    %297 = arith.subf %296, %295 : vector<8x128xf32>
    %298 = math.tanh %292 : vector<8x128xf32>
    %299 = arith.subf %188, %298 : vector<8x128xf32>
    %300 = arith.mulf %299, %299 : vector<8x128xf32>
    %cst_134 = arith.constant 0.000000e+00 : f32
    %301 = vector.broadcast %cst_134 : f32 to vector<8x128xf32>
    %302 = arith.subf %301, %293 : vector<8x128xf32>
    %303 = math.exp %302 : vector<8x128xf32>
    %cst_135 = arith.constant 5.000000e-01 : f32
    %304 = vector.broadcast %cst_135 : f32 to vector<8x128xf32>
    %305 = arith.mulf %304, %303 : vector<8x128xf32>
    %306 = arith.mulf %300, %305 : vector<8x128xf32>
    %307 = arith.subf %297, %306 : vector<8x128xf32>
    %cst_136 = arith.constant dense<0.000000e+00> : vector<8xf32>
    %308 = vector.multi_reduction <add>, %307, %cst_136 [1] : vector<8x128xf32> to vector<8xf32>
    %309 = vector.shape_cast %308 : vector<8xf32> to vector<8x1xf32>
    %cst_137 = arith.constant 0.000000e+00 : f32
    %310 = vector.broadcast %cst_137 : f32 to vector<8x1xf32>
    %311 = arith.subf %310, %309 : vector<8x1xf32>
    %312 = vector.broadcast %15 : vector<1x128xf32> to vector<8x128xf32>
    %313 = arith.addf %272, %312 : vector<8x128xf32>
    %cst_138 = arith.constant dense<0.000000e+00> : vector<8x512xf32>
    %314 = tpu.matmul %313, %8, %cst_138 {dimension_numbers = #tpu.dot_dimension_numbers<[1], [0], [0], [1], [0, 0, 1, 1], [], []>} : vector<8x128xf32>, vector<128x512xf32>, vector<8x512xf32> -> vector<8x512xf32>
    %315 = arith.addf %314, %201 : vector<8x512xf32>
    %316 = arith.addf %315, %206 : vector<8x512xf32>
    %317 = vector.broadcast %16 : vector<1x512xf32> to vector<8x512xf32>
    %318 = arith.addf %316, %317 : vector<8x512xf32>
    %319 = vector.extract_strided_slice %318 {offsets = [0, 0], sizes = [8, 384], strides = [1, 1]} : vector<8x512xf32> to vector<8x384xf32>
    %320 = arith.negf %319 : vector<8x384xf32>
    %321 = math.exp %320 : vector<8x384xf32>
    %cst_139 = arith.constant 1.000000e+00 : f32
    %322 = vector.broadcast %cst_139 : f32 to vector<8x384xf32>
    %323 = arith.addf %322, %321 : vector<8x384xf32>
    %324 = arith.divf %322, %323 : vector<8x384xf32>
    %325 = vector.extract_strided_slice %318 {offsets = [0, 384], sizes = [8, 128], strides = [1, 1]} : vector<8x512xf32> to vector<8x128xf32>
    %326 = math.tanh %325 : vector<8x128xf32>
    %327 = vector.extract_strided_slice %324 {offsets = [0, 128], sizes = [8, 128], strides = [1, 1]} : vector<8x384xf32> to vector<8x128xf32>
    %328 = arith.mulf %327, %173 : vector<8x128xf32>
    %329 = vector.extract_strided_slice %324 {offsets = [0, 0], sizes = [8, 128], strides = [1, 1]} : vector<8x384xf32> to vector<8x128xf32>
    %330 = arith.mulf %329, %326 : vector<8x128xf32>
    %331 = arith.addf %328, %330 : vector<8x128xf32>
    %332 = vector.extract_strided_slice %324 {offsets = [0, 256], sizes = [8, 128], strides = [1, 1]} : vector<8x384xf32> to vector<8x128xf32>
    %333 = math.tanh %331 : vector<8x128xf32>
    %334 = arith.mulf %332, %333 : vector<8x128xf32>
    %335 = arith.index_cast %c1_i32 : i32 to index
    %c0_140 = arith.constant 0 : index
    %c0_141 = arith.constant 0 : index
    %336 = vector.load %arg23[%335, %c0_140, %c0_141] : memref<4x8x128xf32, #tpu.memory_space<vmem>>, vector<1x8x128xf32>
    %337 = vector.shape_cast %336 : vector<1x8x128xf32> to vector<8x128xf32>
    %338 = vector.shape_cast %334 : vector<8x128xf32> to vector<1x8x128xf32>
    tpu.vector_store %arg23[%335, %c0_140, %c0_141], %338 {strides = array<i32>} : memref<4x8x128xf32, #tpu.memory_space<vmem>>, vector<1x8x128xf32>,
    %339 = arith.mulf %264, %198 : vector<8x1xf32>
    %340 = arith.addf %182, %339 : vector<8x1xf32>
    %341 = arith.mulf %311, %198 : vector<8x1xf32>
    %342 = arith.addf %184, %341 : vector<8x1xf32>
    %c2_i32 = arith.constant 2 : i32
    %c3_i32_142 = arith.constant 3 : i32
    %343 = arith.subi %c3_i32_142, %c2_i32 : i32
    %344 = arith.index_cast %343 : i32 to index
    %c0_143 = arith.constant 0 : index
    %c0_144 = arith.constant 0 : index
    %345 = vector.load %arg3[%344, %c0_143, %c0_144] : memref<4x8x128xf32, #tpu.memory_space<vmem>>, vector<1x8x128xf32>
    %346 = vector.shape_cast %345 : vector<1x8x128xf32> to vector<8x128xf32>
    %c3_i32_145 = arith.constant 3 : i32
    %347 = arith.subi %c3_i32_145, %c2_i32 : i32
    %348 = arith.index_cast %347 : i32 to index
    %c0_146 = arith.constant 0 : index
    %c0_147 = arith.constant 0 : index
    %349 = vector.load %arg28[%348, %c0_146, %c0_147] : memref<4x8x128xf32, #tpu.memory_space<vmem>>, vector<1x8x128xf32>
    %350 = vector.shape_cast %349 : vector<1x8x128xf32> to vector<8x128xf32>
    %351 = arith.index_cast %c2_i32 : i32 to index
    %c0_148 = arith.constant 0 : index
    %c0_149 = arith.constant 0 : index
    %352 = vector.load %arg4[%351, %c0_148, %c0_149] : memref<4x8x64xf32, #tpu.memory_space<vmem>>, vector<1x8x64xf32>
    %353 = vector.shape_cast %352 : vector<1x8x64xf32> to vector<8x64xf32>
    %354 = arith.index_cast %c2_i32 : i32 to index
    %c0_150 = arith.constant 0 : index
    %c0_151 = arith.constant 0 : index
    %355 = vector.load %arg5[%354, %c0_150, %c0_151] : memref<4x8x1xf32, #tpu.memory_space<vmem>>, vector<1x8x1xf32>
    %356 = vector.shape_cast %355 : vector<1x8x1xf32> to vector<8x1xf32>
    %357 = arith.index_cast %c2_i32 : i32 to index
    %c0_152 = arith.constant 0 : index
    %c0_153 = arith.constant 0 : index
    %358 = vector.load %arg2[%357, %c0_152, %c0_153] : memref<4x8x512xf32, #tpu.memory_space<vmem>>, vector<1x8x512xf32>
    %359 = vector.shape_cast %358 : vector<1x8x512xf32> to vector<8x512xf32>
    %cst_154 = arith.constant dense<0.000000e+00> : vector<8x896xf32>
    %360 = tpu.matmul %334, %3, %cst_154 {dimension_numbers = #tpu.dot_dimension_numbers<[1], [0], [0], [1], [0, 0, 1, 1], [], []>} : vector<8x128xf32>, vector<128x896xf32>, vector<8x896xf32> -> vector<8x896xf32>
    %361 = vector.extract_strided_slice %360 {offsets = [0, 0], sizes = [8, 128], strides = [1, 1]} : vector<8x896xf32> to vector<8x128xf32>
    %362 = vector.extract_strided_slice %360 {offsets = [0, 128], sizes = [8, 128], strides = [1, 1]} : vector<8x896xf32> to vector<8x128xf32>
    %363 = vector.extract_strided_slice %360 {offsets = [0, 256], sizes = [8, 128], strides = [1, 1]} : vector<8x896xf32> to vector<8x128xf32>
    %364 = vector.extract_strided_slice %360 {offsets = [0, 384], sizes = [8, 512], strides = [1, 1]} : vector<8x896xf32> to vector<8x512xf32>
    %365 = vector.broadcast %9 : vector<1x128xf32> to vector<8x128xf32>
    %366 = arith.addf %361, %365 : vector<8x128xf32>
    %cst_155 = arith.constant 0.000000e+00 : f32
    %367 = vector.broadcast %cst_155 : f32 to vector<8x128xf32>
    %368 = arith.cmpf oge, %366, %367 : vector<8x128xf32>
    %cst_156 = arith.constant 0.333333343 : f32
    %369 = vector.broadcast %cst_156 : f32 to vector<8x128xf32>
    %370 = arith.mulf %369, %366 : vector<8x128xf32>
    %371 = arith.select %368, %366, %370 : vector<8x128xi1>, vector<8x128xf32>
    %cst_157 = arith.constant -3.000000e+00 : f32
    %cst_158 = arith.constant 3.000000e+00 : f32
    %372 = vector.broadcast %cst_157 : f32 to vector<8x128xf32>
    %373 = arith.maximumf %372, %371 : vector<8x128xf32>
    %374 = vector.broadcast %cst_158 : f32 to vector<8x128xf32>
    %375 = arith.minimumf %374, %373 : vector<8x128xf32>
    %cst_159 = arith.constant dense<0.000000e+00> : vector<8x128xf32>
    %376 = tpu.matmul %375, %4, %cst_159 {dimension_numbers = #tpu.dot_dimension_numbers<[1], [0], [0], [1], [0, 0, 1, 1], [], []>} : vector<8x128xf32>, vector<128x128xf32>, vector<8x128xf32> -> vector<8x128xf32>
    %377 = vector.broadcast %10 : vector<1x128xf32> to vector<8x128xf32>
    %378 = arith.addf %376, %377 : vector<8x128xf32>
    %cst_160 = arith.constant -8.000000e+00 : f32
    %cst_161 = arith.constant 8.000000e+00 : f32
    %379 = vector.broadcast %cst_160 : f32 to vector<8x128xf32>
    %380 = arith.maximumf %379, %378 : vector<8x128xf32>
    %381 = vector.broadcast %cst_161 : f32 to vector<8x128xf32>
    %382 = arith.minimumf %381, %380 : vector<8x128xf32>
    %383 = vector.extract_strided_slice %382 {offsets = [0, 0], sizes = [8, 64], strides = [1, 1]} : vector<8x128xf32> to vector<8x64xf32>
    %384 = vector.extract_strided_slice %382 {offsets = [0, 64], sizes = [8, 64], strides = [1, 1]} : vector<8x128xf32> to vector<8x64xf32>
    %385 = arith.addf %362, %350 : vector<8x128xf32>
    %386 = vector.broadcast %11 : vector<1x128xf32> to vector<8x128xf32>
    %387 = arith.addf %385, %386 : vector<8x128xf32>
    %cst_162 = arith.constant 0.000000e+00 : f32
    %388 = vector.broadcast %cst_162 : f32 to vector<8x128xf32>
    %389 = arith.cmpf oge, %387, %388 : vector<8x128xf32>
    %cst_163 = arith.constant 0.333333343 : f32
    %390 = vector.broadcast %cst_163 : f32 to vector<8x128xf32>
    %391 = arith.mulf %390, %387 : vector<8x128xf32>
    %392 = arith.select %389, %387, %391 : vector<8x128xi1>, vector<8x128xf32>
    %cst_164 = arith.constant -3.000000e+00 : f32
    %cst_165 = arith.constant 3.000000e+00 : f32
    %393 = vector.broadcast %cst_164 : f32 to vector<8x128xf32>
    %394 = arith.maximumf %393, %392 : vector<8x128xf32>
    %395 = vector.broadcast %cst_165 : f32 to vector<8x128xf32>
    %396 = arith.minimumf %395, %394 : vector<8x128xf32>
    %cst_166 = arith.constant dense<0.000000e+00> : vector<8x128xf32>
    %397 = tpu.matmul %396, %5, %cst_166 {dimension_numbers = #tpu.dot_dimension_numbers<[1], [0], [0], [1], [0, 0, 1, 1], [], []>} : vector<8x128xf32>, vector<128x128xf32>, vector<8x128xf32> -> vector<8x128xf32>
    %398 = vector.broadcast %12 : vector<1x128xf32> to vector<8x128xf32>
    %399 = arith.addf %397, %398 : vector<8x128xf32>
    %cst_167 = arith.constant -8.000000e+00 : f32
    %cst_168 = arith.constant 8.000000e+00 : f32
    %400 = vector.broadcast %cst_167 : f32 to vector<8x128xf32>
    %401 = arith.maximumf %400, %399 : vector<8x128xf32>
    %402 = vector.broadcast %cst_168 : f32 to vector<8x128xf32>
    %403 = arith.minimumf %402, %401 : vector<8x128xf32>
    %404 = vector.extract_strided_slice %403 {offsets = [0, 0], sizes = [8, 64], strides = [1, 1]} : vector<8x128xf32> to vector<8x64xf32>
    %405 = vector.extract_strided_slice %403 {offsets = [0, 64], sizes = [8, 64], strides = [1, 1]} : vector<8x128xf32> to vector<8x64xf32>
    %406 = arith.subf %384, %405 : vector<8x64xf32>
    %407 = arith.subf %405, %384 : vector<8x64xf32>
    %408 = math.exp %407 : vector<8x64xf32>
    %409 = arith.addf %406, %408 : vector<8x64xf32>
    %410 = arith.subf %404, %383 : vector<8x64xf32>
    %411 = arith.mulf %410, %410 : vector<8x64xf32>
    %cst_169 = arith.constant 0.000000e+00 : f32
    %412 = vector.broadcast %cst_169 : f32 to vector<8x64xf32>
    %413 = arith.subf %412, %384 : vector<8x64xf32>
    %414 = math.exp %413 : vector<8x64xf32>
    %415 = arith.mulf %411, %414 : vector<8x64xf32>
    %416 = arith.addf %409, %415 : vector<8x64xf32>
    %cst_170 = arith.constant 1.000000e+00 : f32
    %417 = vector.broadcast %cst_170 : f32 to vector<8x64xf32>
    %418 = arith.subf %416, %417 : vector<8x64xf32>
    %cst_171 = arith.constant 5.000000e-01 : f32
    %419 = vector.broadcast %cst_171 : f32 to vector<8x64xf32>
    %420 = arith.mulf %419, %418 : vector<8x64xf32>
    %cst_172 = arith.constant dense<0.000000e+00> : vector<8xf32>
    %421 = vector.multi_reduction <add>, %420, %cst_172 [1] : vector<8x64xf32> to vector<8xf32>
    %422 = vector.shape_cast %421 : vector<8xf32> to vector<8x1xf32>
    %cst_173 = arith.constant 5.000000e-01 : f32
    %423 = vector.broadcast %cst_173 : f32 to vector<8x64xf32>
    %424 = arith.mulf %423, %405 : vector<8x64xf32>
    %425 = math.exp %424 : vector<8x64xf32>
    %426 = arith.mulf %353, %425 : vector<8x64xf32>
    %427 = arith.addf %426, %404 : vector<8x64xf32>
    %cst_174 = arith.constant dense<0.000000e+00> : vector<8x256xf32>
    %428 = tpu.matmul %427, %6, %cst_174 {dimension_numbers = #tpu.dot_dimension_numbers<[1], [0], [0], [1], [0, 0, 1, 1], [], []>} : vector<8x64xf32>, vector<64x256xf32>, vector<8x256xf32> -> vector<8x256xf32>
    %429 = vector.extract_strided_slice %428 {offsets = [0, 0], sizes = [8, 128], strides = [1, 1]} : vector<8x256xf32> to vector<8x128xf32>
    %430 = vector.extract_strided_slice %428 {offsets = [0, 128], sizes = [8, 128], strides = [1, 1]} : vector<8x256xf32> to vector<8x128xf32>
    %431 = arith.addf %363, %429 : vector<8x128xf32>
    %432 = vector.broadcast %13 : vector<1x128xf32> to vector<8x128xf32>
    %433 = arith.addf %431, %432 : vector<8x128xf32>
    %cst_175 = arith.constant 0.000000e+00 : f32
    %434 = vector.broadcast %cst_175 : f32 to vector<8x128xf32>
    %435 = arith.cmpf oge, %433, %434 : vector<8x128xf32>
    %cst_176 = arith.constant 0.333333343 : f32
    %436 = vector.broadcast %cst_176 : f32 to vector<8x128xf32>
    %437 = arith.mulf %436, %433 : vector<8x128xf32>
    %438 = arith.select %435, %433, %437 : vector<8x128xi1>, vector<8x128xf32>
    %cst_177 = arith.constant -3.000000e+00 : f32
    %cst_178 = arith.constant 3.000000e+00 : f32
    %439 = vector.broadcast %cst_177 : f32 to vector<8x128xf32>
    %440 = arith.maximumf %439, %438 : vector<8x128xf32>
    %441 = vector.broadcast %cst_178 : f32 to vector<8x128xf32>
    %442 = arith.minimumf %441, %440 : vector<8x128xf32>
    %cst_179 = arith.constant dense<0.000000e+00> : vector<8x256xf32>
    %443 = tpu.matmul %442, %7, %cst_179 {dimension_numbers = #tpu.dot_dimension_numbers<[1], [0], [0], [1], [0, 0, 1, 1], [], []>} : vector<8x128xf32>, vector<128x256xf32>, vector<8x256xf32> -> vector<8x256xf32>
    %444 = vector.broadcast %14 : vector<1x256xf32> to vector<8x256xf32>
    %445 = arith.addf %443, %444 : vector<8x256xf32>
    %cst_180 = arith.constant -8.000000e+00 : f32
    %cst_181 = arith.constant 8.000000e+00 : f32
    %446 = vector.broadcast %cst_180 : f32 to vector<8x256xf32>
    %447 = arith.maximumf %446, %445 : vector<8x256xf32>
    %448 = vector.broadcast %cst_181 : f32 to vector<8x256xf32>
    %449 = arith.minimumf %448, %447 : vector<8x256xf32>
    %450 = vector.extract_strided_slice %449 {offsets = [0, 0], sizes = [8, 128], strides = [1, 1]} : vector<8x256xf32> to vector<8x128xf32>
    %451 = vector.extract_strided_slice %449 {offsets = [0, 128], sizes = [8, 128], strides = [1, 1]} : vector<8x256xf32> to vector<8x128xf32>
    %cst_182 = arith.constant 5.000000e-01 : f32
    %452 = vector.broadcast %cst_182 : f32 to vector<8x128xf32>
    %453 = arith.mulf %452, %451 : vector<8x128xf32>
    %cst_183 = arith.constant -0.918938517 : f32
    %454 = vector.broadcast %cst_183 : f32 to vector<8x128xf32>
    %455 = arith.subf %454, %453 : vector<8x128xf32>
    %456 = math.tanh %450 : vector<8x128xf32>
    %457 = arith.subf %346, %456 : vector<8x128xf32>
    %458 = arith.mulf %457, %457 : vector<8x128xf32>
    %cst_184 = arith.constant 0.000000e+00 : f32
    %459 = vector.broadcast %cst_184 : f32 to vector<8x128xf32>
    %460 = arith.subf %459, %451 : vector<8x128xf32>
    %461 = math.exp %460 : vector<8x128xf32>
    %cst_185 = arith.constant 5.000000e-01 : f32
    %462 = vector.broadcast %cst_185 : f32 to vector<8x128xf32>
    %463 = arith.mulf %462, %461 : vector<8x128xf32>
    %464 = arith.mulf %458, %463 : vector<8x128xf32>
    %465 = arith.subf %455, %464 : vector<8x128xf32>
    %cst_186 = arith.constant dense<0.000000e+00> : vector<8xf32>
    %466 = vector.multi_reduction <add>, %465, %cst_186 [1] : vector<8x128xf32> to vector<8xf32>
    %467 = vector.shape_cast %466 : vector<8xf32> to vector<8x1xf32>
    %cst_187 = arith.constant 0.000000e+00 : f32
    %468 = vector.broadcast %cst_187 : f32 to vector<8x1xf32>
    %469 = arith.subf %468, %467 : vector<8x1xf32>
    %470 = vector.broadcast %15 : vector<1x128xf32> to vector<8x128xf32>
    %471 = arith.addf %430, %470 : vector<8x128xf32>
    %cst_188 = arith.constant dense<0.000000e+00> : vector<8x512xf32>
    %472 = tpu.matmul %471, %8, %cst_188 {dimension_numbers = #tpu.dot_dimension_numbers<[1], [0], [0], [1], [0, 0, 1, 1], [], []>} : vector<8x128xf32>, vector<128x512xf32>, vector<8x512xf32> -> vector<8x512xf32>
    %473 = arith.addf %472, %359 : vector<8x512xf32>
    %474 = arith.addf %473, %364 : vector<8x512xf32>
    %475 = vector.broadcast %16 : vector<1x512xf32> to vector<8x512xf32>
    %476 = arith.addf %474, %475 : vector<8x512xf32>
    %477 = vector.extract_strided_slice %476 {offsets = [0, 0], sizes = [8, 384], strides = [1, 1]} : vector<8x512xf32> to vector<8x384xf32>
    %478 = arith.negf %477 : vector<8x384xf32>
    %479 = math.exp %478 : vector<8x384xf32>
    %cst_189 = arith.constant 1.000000e+00 : f32
    %480 = vector.broadcast %cst_189 : f32 to vector<8x384xf32>
    %481 = arith.addf %480, %479 : vector<8x384xf32>
    %482 = arith.divf %480, %481 : vector<8x384xf32>
    %483 = vector.extract_strided_slice %476 {offsets = [0, 384], sizes = [8, 128], strides = [1, 1]} : vector<8x512xf32> to vector<8x128xf32>
    %484 = math.tanh %483 : vector<8x128xf32>
    %485 = vector.extract_strided_slice %482 {offsets = [0, 128], sizes = [8, 128], strides = [1, 1]} : vector<8x384xf32> to vector<8x128xf32>
    %486 = arith.mulf %485, %331 : vector<8x128xf32>
    %487 = vector.extract_strided_slice %482 {offsets = [0, 0], sizes = [8, 128], strides = [1, 1]} : vector<8x384xf32> to vector<8x128xf32>
    %488 = arith.mulf %487, %484 : vector<8x128xf32>
    %489 = arith.addf %486, %488 : vector<8x128xf32>
    %490 = vector.extract_strided_slice %482 {offsets = [0, 256], sizes = [8, 128], strides = [1, 1]} : vector<8x384xf32> to vector<8x128xf32>
    %491 = math.tanh %489 : vector<8x128xf32>
    %492 = arith.mulf %490, %491 : vector<8x128xf32>
    %493 = arith.index_cast %c2_i32 : i32 to index
    %c0_190 = arith.constant 0 : index
    %c0_191 = arith.constant 0 : index
    %494 = vector.load %arg23[%493, %c0_190, %c0_191] : memref<4x8x128xf32, #tpu.memory_space<vmem>>, vector<1x8x128xf32>
    %495 = vector.shape_cast %494 : vector<1x8x128xf32> to vector<8x128xf32>
    %496 = vector.shape_cast %492 : vector<8x128xf32> to vector<1x8x128xf32>
    tpu.vector_store %arg23[%493, %c0_190, %c0_191], %496 {strides = array<i32>} : memref<4x8x128xf32, #tpu.memory_space<vmem>>, vector<1x8x128xf32>,
    %497 = arith.mulf %422, %356 : vector<8x1xf32>
    %498 = arith.addf %340, %497 : vector<8x1xf32>
    %499 = arith.mulf %469, %356 : vector<8x1xf32>
    %500 = arith.addf %342, %499 : vector<8x1xf32>
    %c3_i32_192 = arith.constant 3 : i32
    %c3_i32_193 = arith.constant 3 : i32
    %501 = arith.subi %c3_i32_193, %c3_i32_192 : i32
    %502 = arith.index_cast %501 : i32 to index
    %c0_194 = arith.constant 0 : index
    %c0_195 = arith.constant 0 : index
    %503 = vector.load %arg3[%502, %c0_194, %c0_195] : memref<4x8x128xf32, #tpu.memory_space<vmem>>, vector<1x8x128xf32>
    %504 = vector.shape_cast %503 : vector<1x8x128xf32> to vector<8x128xf32>
    %c3_i32_196 = arith.constant 3 : i32
    %505 = arith.subi %c3_i32_196, %c3_i32_192 : i32
    %506 = arith.index_cast %505 : i32 to index
    %c0_197 = arith.constant 0 : index
    %c0_198 = arith.constant 0 : index
    %507 = vector.load %arg28[%506, %c0_197, %c0_198] : memref<4x8x128xf32, #tpu.memory_space<vmem>>, vector<1x8x128xf32>
    %508 = vector.shape_cast %507 : vector<1x8x128xf32> to vector<8x128xf32>
    %509 = arith.index_cast %c3_i32_192 : i32 to index
    %c0_199 = arith.constant 0 : index
    %c0_200 = arith.constant 0 : index
    %510 = vector.load %arg4[%509, %c0_199, %c0_200] : memref<4x8x64xf32, #tpu.memory_space<vmem>>, vector<1x8x64xf32>
    %511 = vector.shape_cast %510 : vector<1x8x64xf32> to vector<8x64xf32>
    %512 = arith.index_cast %c3_i32_192 : i32 to index
    %c0_201 = arith.constant 0 : index
    %c0_202 = arith.constant 0 : index
    %513 = vector.load %arg5[%512, %c0_201, %c0_202] : memref<4x8x1xf32, #tpu.memory_space<vmem>>, vector<1x8x1xf32>
    %514 = vector.shape_cast %513 : vector<1x8x1xf32> to vector<8x1xf32>
    %515 = arith.index_cast %c3_i32_192 : i32 to index
    %c0_203 = arith.constant 0 : index
    %c0_204 = arith.constant 0 : index
    %516 = vector.load %arg2[%515, %c0_203, %c0_204] : memref<4x8x512xf32, #tpu.memory_space<vmem>>, vector<1x8x512xf32>
    %517 = vector.shape_cast %516 : vector<1x8x512xf32> to vector<8x512xf32>
    %cst_205 = arith.constant dense<0.000000e+00> : vector<8x896xf32>
    %518 = tpu.matmul %492, %3, %cst_205 {dimension_numbers = #tpu.dot_dimension_numbers<[1], [0], [0], [1], [0, 0, 1, 1], [], []>} : vector<8x128xf32>, vector<128x896xf32>, vector<8x896xf32> -> vector<8x896xf32>
    %519 = vector.extract_strided_slice %518 {offsets = [0, 0], sizes = [8, 128], strides = [1, 1]} : vector<8x896xf32> to vector<8x128xf32>
    %520 = vector.extract_strided_slice %518 {offsets = [0, 128], sizes = [8, 128], strides = [1, 1]} : vector<8x896xf32> to vector<8x128xf32>
    %521 = vector.extract_strided_slice %518 {offsets = [0, 256], sizes = [8, 128], strides = [1, 1]} : vector<8x896xf32> to vector<8x128xf32>
    %522 = vector.extract_strided_slice %518 {offsets = [0, 384], sizes = [8, 512], strides = [1, 1]} : vector<8x896xf32> to vector<8x512xf32>
    %523 = vector.broadcast %9 : vector<1x128xf32> to vector<8x128xf32>
    %524 = arith.addf %519, %523 : vector<8x128xf32>
    %cst_206 = arith.constant 0.000000e+00 : f32
    %525 = vector.broadcast %cst_206 : f32 to vector<8x128xf32>
    %526 = arith.cmpf oge, %524, %525 : vector<8x128xf32>
    %cst_207 = arith.constant 0.333333343 : f32
    %527 = vector.broadcast %cst_207 : f32 to vector<8x128xf32>
    %528 = arith.mulf %527, %524 : vector<8x128xf32>
    %529 = arith.select %526, %524, %528 : vector<8x128xi1>, vector<8x128xf32>
    %cst_208 = arith.constant -3.000000e+00 : f32
    %cst_209 = arith.constant 3.000000e+00 : f32
    %530 = vector.broadcast %cst_208 : f32 to vector<8x128xf32>
    %531 = arith.maximumf %530, %529 : vector<8x128xf32>
    %532 = vector.broadcast %cst_209 : f32 to vector<8x128xf32>
    %533 = arith.minimumf %532, %531 : vector<8x128xf32>
    %cst_210 = arith.constant dense<0.000000e+00> : vector<8x128xf32>
    %534 = tpu.matmul %533, %4, %cst_210 {dimension_numbers = #tpu.dot_dimension_numbers<[1], [0], [0], [1], [0, 0, 1, 1], [], []>} : vector<8x128xf32>, vector<128x128xf32>, vector<8x128xf32> -> vector<8x128xf32>
    %535 = vector.broadcast %10 : vector<1x128xf32> to vector<8x128xf32>
    %536 = arith.addf %534, %535 : vector<8x128xf32>
    %cst_211 = arith.constant -8.000000e+00 : f32
    %cst_212 = arith.constant 8.000000e+00 : f32
    %537 = vector.broadcast %cst_211 : f32 to vector<8x128xf32>
    %538 = arith.maximumf %537, %536 : vector<8x128xf32>
    %539 = vector.broadcast %cst_212 : f32 to vector<8x128xf32>
    %540 = arith.minimumf %539, %538 : vector<8x128xf32>
    %541 = vector.extract_strided_slice %540 {offsets = [0, 0], sizes = [8, 64], strides = [1, 1]} : vector<8x128xf32> to vector<8x64xf32>
    %542 = vector.extract_strided_slice %540 {offsets = [0, 64], sizes = [8, 64], strides = [1, 1]} : vector<8x128xf32> to vector<8x64xf32>
    %543 = arith.addf %520, %508 : vector<8x128xf32>
    %544 = vector.broadcast %11 : vector<1x128xf32> to vector<8x128xf32>
    %545 = arith.addf %543, %544 : vector<8x128xf32>
    %cst_213 = arith.constant 0.000000e+00 : f32
    %546 = vector.broadcast %cst_213 : f32 to vector<8x128xf32>
    %547 = arith.cmpf oge, %545, %546 : vector<8x128xf32>
    %cst_214 = arith.constant 0.333333343 : f32
    %548 = vector.broadcast %cst_214 : f32 to vector<8x128xf32>
    %549 = arith.mulf %548, %545 : vector<8x128xf32>
    %550 = arith.select %547, %545, %549 : vector<8x128xi1>, vector<8x128xf32>
    %cst_215 = arith.constant -3.000000e+00 : f32
    %cst_216 = arith.constant 3.000000e+00 : f32
    %551 = vector.broadcast %cst_215 : f32 to vector<8x128xf32>
    %552 = arith.maximumf %551, %550 : vector<8x128xf32>
    %553 = vector.broadcast %cst_216 : f32 to vector<8x128xf32>
    %554 = arith.minimumf %553, %552 : vector<8x128xf32>
    %cst_217 = arith.constant dense<0.000000e+00> : vector<8x128xf32>
    %555 = tpu.matmul %554, %5, %cst_217 {dimension_numbers = #tpu.dot_dimension_numbers<[1], [0], [0], [1], [0, 0, 1, 1], [], []>} : vector<8x128xf32>, vector<128x128xf32>, vector<8x128xf32> -> vector<8x128xf32>
    %556 = vector.broadcast %12 : vector<1x128xf32> to vector<8x128xf32>
    %557 = arith.addf %555, %556 : vector<8x128xf32>
    %cst_218 = arith.constant -8.000000e+00 : f32
    %cst_219 = arith.constant 8.000000e+00 : f32
    %558 = vector.broadcast %cst_218 : f32 to vector<8x128xf32>
    %559 = arith.maximumf %558, %557 : vector<8x128xf32>
    %560 = vector.broadcast %cst_219 : f32 to vector<8x128xf32>
    %561 = arith.minimumf %560, %559 : vector<8x128xf32>
    %562 = vector.extract_strided_slice %561 {offsets = [0, 0], sizes = [8, 64], strides = [1, 1]} : vector<8x128xf32> to vector<8x64xf32>
    %563 = vector.extract_strided_slice %561 {offsets = [0, 64], sizes = [8, 64], strides = [1, 1]} : vector<8x128xf32> to vector<8x64xf32>
    %564 = arith.subf %542, %563 : vector<8x64xf32>
    %565 = arith.subf %563, %542 : vector<8x64xf32>
    %566 = math.exp %565 : vector<8x64xf32>
    %567 = arith.addf %564, %566 : vector<8x64xf32>
    %568 = arith.subf %562, %541 : vector<8x64xf32>
    %569 = arith.mulf %568, %568 : vector<8x64xf32>
    %cst_220 = arith.constant 0.000000e+00 : f32
    %570 = vector.broadcast %cst_220 : f32 to vector<8x64xf32>
    %571 = arith.subf %570, %542 : vector<8x64xf32>
    %572 = math.exp %571 : vector<8x64xf32>
    %573 = arith.mulf %569, %572 : vector<8x64xf32>
    %574 = arith.addf %567, %573 : vector<8x64xf32>
    %cst_221 = arith.constant 1.000000e+00 : f32
    %575 = vector.broadcast %cst_221 : f32 to vector<8x64xf32>
    %576 = arith.subf %574, %575 : vector<8x64xf32>
    %cst_222 = arith.constant 5.000000e-01 : f32
    %577 = vector.broadcast %cst_222 : f32 to vector<8x64xf32>
    %578 = arith.mulf %577, %576 : vector<8x64xf32>
    %cst_223 = arith.constant dense<0.000000e+00> : vector<8xf32>
    %579 = vector.multi_reduction <add>, %578, %cst_223 [1] : vector<8x64xf32> to vector<8xf32>
    %580 = vector.shape_cast %579 : vector<8xf32> to vector<8x1xf32>
    %cst_224 = arith.constant 5.000000e-01 : f32
    %581 = vector.broadcast %cst_224 : f32 to vector<8x64xf32>
    %582 = arith.mulf %581, %563 : vector<8x64xf32>
    %583 = math.exp %582 : vector<8x64xf32>
    %584 = arith.mulf %511, %583 : vector<8x64xf32>
    %585 = arith.addf %584, %562 : vector<8x64xf32>
    %cst_225 = arith.constant dense<0.000000e+00> : vector<8x256xf32>
    %586 = tpu.matmul %585, %6, %cst_225 {dimension_numbers = #tpu.dot_dimension_numbers<[1], [0], [0], [1], [0, 0, 1, 1], [], []>} : vector<8x64xf32>, vector<64x256xf32>, vector<8x256xf32> -> vector<8x256xf32>
    %587 = vector.extract_strided_slice %586 {offsets = [0, 0], sizes = [8, 128], strides = [1, 1]} : vector<8x256xf32> to vector<8x128xf32>
    %588 = vector.extract_strided_slice %586 {offsets = [0, 128], sizes = [8, 128], strides = [1, 1]} : vector<8x256xf32> to vector<8x128xf32>
    %589 = arith.addf %521, %587 : vector<8x128xf32>
    %590 = vector.broadcast %13 : vector<1x128xf32> to vector<8x128xf32>
    %591 = arith.addf %589, %590 : vector<8x128xf32>
    %cst_226 = arith.constant 0.000000e+00 : f32
    %592 = vector.broadcast %cst_226 : f32 to vector<8x128xf32>
    %593 = arith.cmpf oge, %591, %592 : vector<8x128xf32>
    %cst_227 = arith.constant 0.333333343 : f32
    %594 = vector.broadcast %cst_227 : f32 to vector<8x128xf32>
    %595 = arith.mulf %594, %591 : vector<8x128xf32>
    %596 = arith.select %593, %591, %595 : vector<8x128xi1>, vector<8x128xf32>
    %cst_228 = arith.constant -3.000000e+00 : f32
    %cst_229 = arith.constant 3.000000e+00 : f32
    %597 = vector.broadcast %cst_228 : f32 to vector<8x128xf32>
    %598 = arith.maximumf %597, %596 : vector<8x128xf32>
    %599 = vector.broadcast %cst_229 : f32 to vector<8x128xf32>
    %600 = arith.minimumf %599, %598 : vector<8x128xf32>
    %cst_230 = arith.constant dense<0.000000e+00> : vector<8x256xf32>
    %601 = tpu.matmul %600, %7, %cst_230 {dimension_numbers = #tpu.dot_dimension_numbers<[1], [0], [0], [1], [0, 0, 1, 1], [], []>} : vector<8x128xf32>, vector<128x256xf32>, vector<8x256xf32> -> vector<8x256xf32>
    %602 = vector.broadcast %14 : vector<1x256xf32> to vector<8x256xf32>
    %603 = arith.addf %601, %602 : vector<8x256xf32>
    %cst_231 = arith.constant -8.000000e+00 : f32
    %cst_232 = arith.constant 8.000000e+00 : f32
    %604 = vector.broadcast %cst_231 : f32 to vector<8x256xf32>
    %605 = arith.maximumf %604, %603 : vector<8x256xf32>
    %606 = vector.broadcast %cst_232 : f32 to vector<8x256xf32>
    %607 = arith.minimumf %606, %605 : vector<8x256xf32>
    %608 = vector.extract_strided_slice %607 {offsets = [0, 0], sizes = [8, 128], strides = [1, 1]} : vector<8x256xf32> to vector<8x128xf32>
    %609 = vector.extract_strided_slice %607 {offsets = [0, 128], sizes = [8, 128], strides = [1, 1]} : vector<8x256xf32> to vector<8x128xf32>
    %cst_233 = arith.constant 5.000000e-01 : f32
    %610 = vector.broadcast %cst_233 : f32 to vector<8x128xf32>
    %611 = arith.mulf %610, %609 : vector<8x128xf32>
    %cst_234 = arith.constant -0.918938517 : f32
    %612 = vector.broadcast %cst_234 : f32 to vector<8x128xf32>
    %613 = arith.subf %612, %611 : vector<8x128xf32>
    %614 = math.tanh %608 : vector<8x128xf32>
    %615 = arith.subf %504, %614 : vector<8x128xf32>
    %616 = arith.mulf %615, %615 : vector<8x128xf32>
    %cst_235 = arith.constant 0.000000e+00 : f32
    %617 = vector.broadcast %cst_235 : f32 to vector<8x128xf32>
    %618 = arith.subf %617, %609 : vector<8x128xf32>
    %619 = math.exp %618 : vector<8x128xf32>
    %cst_236 = arith.constant 5.000000e-01 : f32
    %620 = vector.broadcast %cst_236 : f32 to vector<8x128xf32>
    %621 = arith.mulf %620, %619 : vector<8x128xf32>
    %622 = arith.mulf %616, %621 : vector<8x128xf32>
    %623 = arith.subf %613, %622 : vector<8x128xf32>
    %cst_237 = arith.constant dense<0.000000e+00> : vector<8xf32>
    %624 = vector.multi_reduction <add>, %623, %cst_237 [1] : vector<8x128xf32> to vector<8xf32>
    %625 = vector.shape_cast %624 : vector<8xf32> to vector<8x1xf32>
    %cst_238 = arith.constant 0.000000e+00 : f32
    %626 = vector.broadcast %cst_238 : f32 to vector<8x1xf32>
    %627 = arith.subf %626, %625 : vector<8x1xf32>
    %628 = vector.broadcast %15 : vector<1x128xf32> to vector<8x128xf32>
    %629 = arith.addf %588, %628 : vector<8x128xf32>
    %cst_239 = arith.constant dense<0.000000e+00> : vector<8x512xf32>
    %630 = tpu.matmul %629, %8, %cst_239 {dimension_numbers = #tpu.dot_dimension_numbers<[1], [0], [0], [1], [0, 0, 1, 1], [], []>} : vector<8x128xf32>, vector<128x512xf32>, vector<8x512xf32> -> vector<8x512xf32>
    %631 = arith.addf %630, %517 : vector<8x512xf32>
    %632 = arith.addf %631, %522 : vector<8x512xf32>
    %633 = vector.broadcast %16 : vector<1x512xf32> to vector<8x512xf32>
    %634 = arith.addf %632, %633 : vector<8x512xf32>
    %635 = vector.extract_strided_slice %634 {offsets = [0, 0], sizes = [8, 384], strides = [1, 1]} : vector<8x512xf32> to vector<8x384xf32>
    %636 = arith.negf %635 : vector<8x384xf32>
    %637 = math.exp %636 : vector<8x384xf32>
    %cst_240 = arith.constant 1.000000e+00 : f32
    %638 = vector.broadcast %cst_240 : f32 to vector<8x384xf32>
    %639 = arith.addf %638, %637 : vector<8x384xf32>
    %640 = arith.divf %638, %639 : vector<8x384xf32>
    %641 = vector.extract_strided_slice %634 {offsets = [0, 384], sizes = [8, 128], strides = [1, 1]} : vector<8x512xf32> to vector<8x128xf32>
    %642 = math.tanh %641 : vector<8x128xf32>
    %643 = vector.extract_strided_slice %640 {offsets = [0, 128], sizes = [8, 128], strides = [1, 1]} : vector<8x384xf32> to vector<8x128xf32>
    %644 = arith.mulf %643, %489 : vector<8x128xf32>
    %645 = vector.extract_strided_slice %640 {offsets = [0, 0], sizes = [8, 128], strides = [1, 1]} : vector<8x384xf32> to vector<8x128xf32>
    %646 = arith.mulf %645, %642 : vector<8x128xf32>
    %647 = arith.addf %644, %646 : vector<8x128xf32>
    %648 = vector.extract_strided_slice %640 {offsets = [0, 256], sizes = [8, 128], strides = [1, 1]} : vector<8x384xf32> to vector<8x128xf32>
    %649 = math.tanh %647 : vector<8x128xf32>
    %650 = arith.mulf %648, %649 : vector<8x128xf32>
    %651 = arith.index_cast %c3_i32_192 : i32 to index
    %c0_241 = arith.constant 0 : index
    %c0_242 = arith.constant 0 : index
    %652 = vector.load %arg23[%651, %c0_241, %c0_242] : memref<4x8x128xf32, #tpu.memory_space<vmem>>, vector<1x8x128xf32>
    %653 = vector.shape_cast %652 : vector<1x8x128xf32> to vector<8x128xf32>
    %654 = vector.shape_cast %650 : vector<8x128xf32> to vector<1x8x128xf32>
    tpu.vector_store %arg23[%651, %c0_241, %c0_242], %654 {strides = array<i32>} : memref<4x8x128xf32, #tpu.memory_space<vmem>>, vector<1x8x128xf32>,
    %655 = arith.mulf %580, %514 : vector<8x1xf32>
    %656 = arith.addf %498, %655 : vector<8x1xf32>
    %657 = arith.mulf %627, %514 : vector<8x1xf32>
    %658 = arith.addf %500, %657 : vector<8x1xf32>
    %c4_i32 = arith.constant 4 : i32
    %c0_243 = arith.constant 0 : index
    %c0_244 = arith.constant 0 : index
    %659 = vector.load %arg26[%c0_243, %c0_244] : memref<8x128xf32, #tpu.memory_space<vmem>>, vector<8x128xf32>
    tpu.vector_store %arg26[%c0_243, %c0_244], %650 {strides = array<i32>} : memref<8x128xf32, #tpu.memory_space<vmem>>, vector<8x128xf32>,
    %c0_245 = arith.constant 0 : index
    %c0_246 = arith.constant 0 : index
    %660 = vector.load %arg27[%c0_245, %c0_246] : memref<8x128xf32, #tpu.memory_space<vmem>>, vector<8x128xf32>
    tpu.vector_store %arg27[%c0_245, %c0_246], %647 {strides = array<i32>} : memref<8x128xf32, #tpu.memory_space<vmem>>, vector<8x128xf32>,
    %c0_i32_247 = arith.constant 0 : i32
    %661 = arith.cmpi eq, %arg1, %c0_i32_247 : i32
    %662 = arith.extui %661 : i1 to i32
    %c0_i32_248 = arith.constant 0 : i32
    %663 = arith.cmpi ne, %662, %c0_i32_248 : i32
    scf.if %663 {
      %c0_251 = arith.constant 0 : index
      %c0_252 = arith.constant 0 : index
      %667 = vector.load %arg24[%c0_251, %c0_252] : memref<8x1xf32, #tpu.memory_space<vmem>>, vector<8x1xf32>
      tpu.vector_store %arg24[%c0_251, %c0_252], %656 {strides = array<i32>} : memref<8x1xf32, #tpu.memory_space<vmem>>, vector<8x1xf32>,
      %c0_253 = arith.constant 0 : index
      %c0_254 = arith.constant 0 : index
      %668 = vector.load %arg25[%c0_253, %c0_254] : memref<8x1xf32, #tpu.memory_space<vmem>>, vector<8x1xf32>
      tpu.vector_store %arg25[%c0_253, %c0_254], %658 {strides = array<i32>} : memref<8x1xf32, #tpu.memory_space<vmem>>, vector<8x1xf32>,
    } else {
    }
    %c0_i32_249 = arith.constant 0 : i32
    %664 = arith.cmpi ne, %arg1, %c0_i32_249 : i32
    %665 = arith.extui %664 : i1 to i32
    %c0_i32_250 = arith.constant 0 : i32
    %666 = arith.cmpi ne, %665, %c0_i32_250 : i32
    scf.if %666 {
      %c0_251 = arith.constant 0 : index
      %c0_252 = arith.constant 0 : index
      %667 = vector.load %arg24[%c0_251, %c0_252] : memref<8x1xf32, #tpu.memory_space<vmem>>, vector<8x1xf32>
      %668 = arith.addf %667, %656 : vector<8x1xf32>
      %c0_253 = arith.constant 0 : index
      %c0_254 = arith.constant 0 : index
      %669 = vector.load %arg24[%c0_253, %c0_254] : memref<8x1xf32, #tpu.memory_space<vmem>>, vector<8x1xf32>
      tpu.vector_store %arg24[%c0_253, %c0_254], %668 {strides = array<i32>} : memref<8x1xf32, #tpu.memory_space<vmem>>, vector<8x1xf32>,
      %c0_255 = arith.constant 0 : index
      %c0_256 = arith.constant 0 : index
      %670 = vector.load %arg25[%c0_255, %c0_256] : memref<8x1xf32, #tpu.memory_space<vmem>>, vector<8x1xf32>
      %671 = arith.addf %670, %658 : vector<8x1xf32>
      %c0_257 = arith.constant 0 : index
      %c0_258 = arith.constant 0 : index
      %672 = vector.load %arg25[%c0_257, %c0_258] : memref<8x1xf32, #tpu.memory_space<vmem>>, vector<8x1xf32>
      tpu.vector_store %arg25[%c0_257, %c0_258], %671 {strides = array<i32>} : memref<8x1xf32, #tpu.memory_space<vmem>>, vector<8x1xf32>,
    } else {
    }
    return
  }
  func.func @transform_0(%arg0: i32, %arg1: i32) -> (i32, i32, i32) {
    %c0_i32 = arith.constant 0 : i32
    %c0_i32_0 = arith.constant 0 : i32
    return %arg1, %arg0, %c0_i32 : i32, i32, i32
  }
  func.func @transform_1(%arg0: i32, %arg1: i32) -> (i32, i32, i32) {
    %c1_i32 = arith.constant 1 : i32
    %0 = arith.subi %c1_i32, %arg1 : i32
    %c0_i32 = arith.constant 0 : i32
    %c0_i32_0 = arith.constant 0 : i32
    return %0, %arg0, %c0_i32 : i32, i32, i32
  }
  func.func @transform_2(%arg0: i32, %arg1: i32) -> (i32, i32, i32) {
    %c0_i32 = arith.constant 0 : i32
    %c0_i32_0 = arith.constant 0 : i32
    return %arg1, %arg0, %c0_i32 : i32, i32, i32
  }
  func.func @transform_3(%arg0: i32, %arg1: i32) -> (i32, i32, i32) {
    %c0_i32 = arith.constant 0 : i32
    %c0_i32_0 = arith.constant 0 : i32
    return %arg1, %arg0, %c0_i32 : i32, i32, i32
  }
  func.func @transform_4(%arg0: i32, %arg1: i32) -> (i32, i32) {
    %c0_i32 = arith.constant 0 : i32
    %c0_i32_0 = arith.constant 0 : i32
    return %arg0, %c0_i32 : i32, i32
  }
  func.func @transform_5(%arg0: i32, %arg1: i32) -> (i32, i32) {
    %c0_i32 = arith.constant 0 : i32
    %c0_i32_0 = arith.constant 0 : i32
    return %arg0, %c0_i32 : i32, i32
  }
  func.func @transform_6(%arg0: i32, %arg1: i32) -> (i32, i32) {
    %c0_i32 = arith.constant 0 : i32
    %c0_i32_0 = arith.constant 0 : i32
    %c0_i32_1 = arith.constant 0 : i32
    return %c0_i32, %c0_i32_0 : i32, i32
  }
  func.func @transform_7(%arg0: i32, %arg1: i32) -> (i32, i32) {
    %c0_i32 = arith.constant 0 : i32
    %c0_i32_0 = arith.constant 0 : i32
    %c0_i32_1 = arith.constant 0 : i32
    return %c0_i32, %c0_i32_0 : i32, i32
  }
  func.func @transform_8(%arg0: i32, %arg1: i32) -> (i32, i32) {
    %c0_i32 = arith.constant 0 : i32
    %c0_i32_0 = arith.constant 0 : i32
    %c0_i32_1 = arith.constant 0 : i32
    return %c0_i32, %c0_i32_0 : i32, i32
  }
  func.func @transform_9(%arg0: i32, %arg1: i32) -> (i32, i32) {
    %c0_i32 = arith.constant 0 : i32
    %c0_i32_0 = arith.constant 0 : i32
    %c0_i32_1 = arith.constant 0 : i32
    return %c0_i32, %c0_i32_0 : i32, i32
  }
  func.func @transform_10(%arg0: i32, %arg1: i32) -> (i32, i32) {
    %c0_i32 = arith.constant 0 : i32
    %c0_i32_0 = arith.constant 0 : i32
    %c0_i32_1 = arith.constant 0 : i32
    return %c0_i32, %c0_i32_0 : i32, i32
  }
  func.func @transform_11(%arg0: i32, %arg1: i32) -> (i32, i32) {
    %c0_i32 = arith.constant 0 : i32
    %c0_i32_0 = arith.constant 0 : i32
    %c0_i32_1 = arith.constant 0 : i32
    return %c0_i32, %c0_i32_0 : i32, i32
  }
  func.func @transform_12(%arg0: i32, %arg1: i32) -> (i32, i32) {
    %c0_i32 = arith.constant 0 : i32
    %c0_i32_0 = arith.constant 0 : i32
    %c0_i32_1 = arith.constant 0 : i32
    return %c0_i32, %c0_i32_0 : i32, i32
  }
  func.func @transform_13(%arg0: i32, %arg1: i32) -> (i32, i32) {
    %c0_i32 = arith.constant 0 : i32
    %c0_i32_0 = arith.constant 0 : i32
    %c0_i32_1 = arith.constant 0 : i32
    return %c0_i32, %c0_i32_0 : i32, i32
  }
  func.func @transform_14(%arg0: i32, %arg1: i32) -> (i32, i32) {
    %c0_i32 = arith.constant 0 : i32
    %c0_i32_0 = arith.constant 0 : i32
    %c0_i32_1 = arith.constant 0 : i32
    return %c0_i32, %c0_i32_0 : i32, i32
  }
  func.func @transform_15(%arg0: i32, %arg1: i32) -> (i32, i32) {
    %c0_i32 = arith.constant 0 : i32
    %c0_i32_0 = arith.constant 0 : i32
    %c0_i32_1 = arith.constant 0 : i32
    return %c0_i32, %c0_i32_0 : i32, i32
  }
  func.func @transform_16(%arg0: i32, %arg1: i32) -> (i32, i32) {
    %c0_i32 = arith.constant 0 : i32
    %c0_i32_0 = arith.constant 0 : i32
    %c0_i32_1 = arith.constant 0 : i32
    return %c0_i32, %c0_i32_0 : i32, i32
  }
  func.func @transform_17(%arg0: i32, %arg1: i32) -> (i32, i32) {
    %c0_i32 = arith.constant 0 : i32
    %c0_i32_0 = arith.constant 0 : i32
    %c0_i32_1 = arith.constant 0 : i32
    return %c0_i32, %c0_i32_0 : i32, i32
  }
  func.func @transform_18(%arg0: i32, %arg1: i32) -> (i32, i32) {
    %c0_i32 = arith.constant 0 : i32
    %c0_i32_0 = arith.constant 0 : i32
    %c0_i32_1 = arith.constant 0 : i32
    return %c0_i32, %c0_i32_0 : i32, i32
  }
  func.func @transform_19(%arg0: i32, %arg1: i32) -> (i32, i32) {
    %c0_i32 = arith.constant 0 : i32
    %c0_i32_0 = arith.constant 0 : i32
    %c0_i32_1 = arith.constant 0 : i32
    return %c0_i32, %c0_i32_0 : i32, i32
  }
  func.func @transform_20(%arg0: i32, %arg1: i32) -> (i32, i32) {
    %c0_i32 = arith.constant 0 : i32
    %c0_i32_0 = arith.constant 0 : i32
    %c0_i32_1 = arith.constant 0 : i32
    return %c0_i32, %c0_i32_0 : i32, i32
  }
  func.func @transform_21(%arg0: i32, %arg1: i32) -> (i32, i32, i32) {
    %c0_i32 = arith.constant 0 : i32
    %c0_i32_0 = arith.constant 0 : i32
    return %arg1, %arg0, %c0_i32 : i32, i32, i32
  }
  func.func @transform_22(%arg0: i32, %arg1: i32) -> (i32, i32) {
    %c0_i32 = arith.constant 0 : i32
    %c0_i32_0 = arith.constant 0 : i32
    return %arg0, %c0_i32 : i32, i32
  }
  func.func @transform_23(%arg0: i32, %arg1: i32) -> (i32, i32) {
    %c0_i32 = arith.constant 0 : i32
    %c0_i32_0 = arith.constant 0 : i32
    return %arg0, %c0_i32 : i32, i32
  }
}

</mosaic_0001>

<bundles_post_ra>
// kernel: zforcing_forward.2
= control target key start
LH: loop header
LB: loop body
LE: loop exit
PB: predicated region body
PF: predicated region fallthrough
CT: control target
= control target key end

     0   :  { %s1392_s15 = smov 0   ;;  %s1394_s16 = smov 0   ;;  %s2131_s0 = inlined_call_operand.vmem [shape: f32[8,16,512], index: 0, kind: input, shape index: {}]   ;;  %s2132_s1 = inlined_call_operand.vmem [shape: f32[16,128], index: 1, kind: input, shape index: {}, may-alias: {1,2}]   ;;  %s2133_s2 = inlined_call_operand.vmem [shape: f32[16,128], index: 2, kind: input, shape index: {}, may-alias: {1,2}]   ;;  %s2134_s3 = inlined_call_operand.vmem [shape: f32[128,512], index: 3, kind: input, shape index: {}]   ;;  %s2135_s4 = inlined_call_operand.vmem [shape: f32[8,16,128], index: 4, kind: output, shape index: {}]  }
   0x1   :  { %s1396_s17 = smov 0   ;;  %s1398_s18 = smov 0  }
   0x2   :  { %s1400_s19 = smov 0   ;;  %s1402_s20 = smov 0  }
   0x3   :  { %s1404_s21 = smov 0  }
   0x4 LB: > { %s23_s22 = sadd.s32 1, %s1357_s19  ;;  %s26_s23 = sadd.s32 1, %s1361_s20  ;;  %s1365_s21 = sphi %s1404_s21, %s14_s21   ;;  %s1361_s20 = sphi %s1402_s20, %s2224_s20   ;;  %s1357_s19 = sphi %s1400_s19, %s2223_s19   ;;  %s1353_s18 = sphi %s1398_s18, %s2222_s18   ;;  %s1349_s17 = sphi %s1396_s17, %s2221_s17   ;;  %s1345_s16 = sphi %s1394_s16, %s2220_s16   ;;  %s1341_s15 = sphi %s1392_s15, %s2219_s15  }
   0x5   : > { %p24_p0 = scmp.ge.s32.totalorder %s23_s22, 2  ;;  %s1141_s24 = sadd.s32 4294967295, %s1365_s21  }
   0x6   : > { %p42_p1 = scmp.ne.s32.totalorder %s1345_s16, %s1341_s15  ;;  %p43_p2 = scmp.eq.s32.totalorder %s1365_s21, 0 }
   0x7   : > { %s2226_s22 = smov (%p24_p0, %s23_s22), 0  ;;  %s2228_s23 = smov (!%p24_p0, %s26_s23), %s1361_s20 }
   0x8   : > { %p28_p3 = scmp.ge.s32.totalorder %s2228_s23, 2  ;;  %p147_p4 = scmp.eq.s32.totalorder %s1141_s24, 3 }
   0x9   : > { %s30_s25 = ssub.s32 %s1357_s19, %s2226_s22  ;;  %p44_p5 = por %p43_p2, %p42_p1 }
   0xa   : > { %s2230_s23 = smov (%p28_p3, %s2228_s23), 0  ;;  %p1440_p6 = por %p147_p4, %p42_p1 }
   0xb   : > { %s31_s27 = ssub.s32 %s1361_s20, %s2230_s23  ;;  %s35_s29 = sadd.s32 1, %s1345_s16 }
   0xc   : > { %s32_s28 = sor.u32 %s31_s27, %s30_s25  ;;  %p1144_p8 = scmp.ge.s32.totalorder %s1365_s21, 4 }
   0xd   : > { %p33_p7 = scmp.eq.s32.totalorder %s32_s28, 0 }
   0xe   : > { %172 = sbr.rel (%p1144_p8) target bundleno = 42 (0x2a), region = 20 }
   0xf   : > { %s1448_s30 = scalar_select %p33_p7, %s1345_s16, %s35_s29  }
  0x13   : > { %175 = sbr.rel (!%p44_p5) target bundleno = 42 (0x2a), region = 24  ;;  %s177_s5 = sand.u32 (%p44_p5), 1, %s1345_s16  }
  0x14   : > { %s1147_s6 = sshll.u32 (%p44_p5), %s1361_s20, 2  ;;  %s1145_s7 = sshll.u32 (%p44_p5), %s177_s5, 7 }
  0x15   : > { %s1189_s8 = sshll.u32 (%p44_p5), %s1357_s19, 5  ;;  %s179_s14 = scalar_lea.vmem (%p44_p5), [#allocation4], %s1145_s7 }
  0x16   : > { %s183_s9 = sadd.s32 (%p44_p5), %s1189_s8, %s1147_s6 }
  0x17   : > { %s1149_s10 = sshll.u32 (%p44_p5), %s183_s9, 3 }
  0x18   : > { %s1457_s13 = scalar_lea.vmem %s2131_s0, %s1149_s10 }
  0x19   : > { %v198_v0 = vld [vmem:[%s1457_s13] sm:$0xff]  ;;  %v200_v1 = vld [vmem:[%s1457_s13 + $0x8] sm:$0xff]  ;;  %v202_v2 = vld [vmem:[%s1457_s13 + $0x10] sm:$0xff] }
  0x1a   : > { %199 = vst [vmem:[%s179_s14] sm:$0xff] %v198_v0  ;;  %v204_v3 = vld [vmem:[%s1457_s13 + $0x18] sm:$0xff]  ;;  %v206_v4 = vld [vmem:[%s1457_s13 + $0x40] sm:$0xff]  ;;  %v208_v5 = vld [vmem:[%s1457_s13 + $0x48] sm:$0xff] }
  0x1b   : > { %201 = vst [vmem:[%s179_s14 + $0x8] sm:$0xff] %v200_v1  ;;  %v210_v6 = vld [vmem:[%s1457_s13 + $0x50] sm:$0xff]  ;;  %v212_v7 = vld [vmem:[%s1457_s13 + $0x58] sm:$0xff]  ;;  %v214_v8 = vld [vmem:[%s1457_s13 + $0x80] sm:$0xff] }
  0x1c   : > { %203 = vst [vmem:[%s179_s14 + $0x10] sm:$0xff] %v202_v2  ;;  %v216_v9 = vld [vmem:[%s1457_s13 + $0x88] sm:$0xff]  ;;  %v218_v10 = vld [vmem:[%s1457_s13 + $0x90] sm:$0xff]  ;;  %v220_v11 = vld [vmem:[%s1457_s13 + $0x98] sm:$0xff] }
  0x1d   : > { %205 = vst [vmem:[%s179_s14 + $0x18] sm:$0xff] %v204_v3  ;;  %v222_v12 = vld [vmem:[%s1457_s13 + $0xc0] sm:$0xff]  ;;  %v224_v13 = vld [vmem:[%s1457_s13 + $0xc8] sm:$0xff]  ;;  %v226_v14 = vld [vmem:[%s1457_s13 + $0xd0] sm:$0xff] }
  0x1e   : > { %207 = vst [vmem:[%s179_s14 + $0x20] sm:$0xff] %v206_v4  ;;  %v228_v15 = vld [vmem:[%s1457_s13 + $0xd8] sm:$0xff] }
  0x1f   : > { %209 = vst [vmem:[%s179_s14 + $0x28] sm:$0xff] %v208_v5 }
  0x20   : > { %211 = vst [vmem:[%s179_s14 + $0x30] sm:$0xff] %v210_v6 }
  0x21   : > { %213 = vst [vmem:[%s179_s14 + $0x38] sm:$0xff] %v212_v7 }
  0x22   : > { %215 = vst [vmem:[%s179_s14 + $0x40] sm:$0xff] %v214_v8 }
  0x23   : > { %217 = vst [vmem:[%s179_s14 + $0x48] sm:$0xff] %v216_v9 }
  0x24   : > { %219 = vst [vmem:[%s179_s14 + $0x50] sm:$0xff] %v218_v10 }
  0x25   : > { %221 = vst [vmem:[%s179_s14 + $0x58] sm:$0xff] %v220_v11 }
  0x26   : > { %223 = vst [vmem:[%s179_s14 + $0x60] sm:$0xff] %v222_v12 }
  0x27   : > { %225 = vst [vmem:[%s179_s14 + $0x68] sm:$0xff] %v224_v13 }
  0x28   : > { %227 = vst [vmem:[%s179_s14 + $0x70] sm:$0xff] %v226_v14 }
  0x29   : > { %229 = vst [vmem:[%s179_s14 + $0x78] sm:$0xff] %v228_v15 }
  0x2a PF: > { %p1150_p9 = scmp.ge.s32.totalorder %s1365_s21, 1  ;;  %p248_p10 = scmp.lt.s32.totalorder %s1365_s21, 5 }
  0x2c   : > { %p249_p11 = pnand %p1150_p9, %p248_p10 }
  0x2e   : > { %252 = sbr.rel (%p249_p11) target bundleno = 786 (0x312), region = 55 }
  0x33   : > { %s255_s24 = sand.u32 1, %s1341_s15   ;;  %p288_p12 = scmp.lt.s32.totalorder %s1353_s18, 1 }
  0x34   : > { %s1151_s25 = sshll.u32 %s255_s24, 7  ;;  %s1152_s27 = sshll.u32 %s255_s24, 5 }
  0x35   : > { %s289_s28 = scalar_select %p288_p12, %s1353_s18, 1 }
  0x36   : > { %s1486_s11 = scalar_lea.vmem [#allocation4], %s1151_s25  ;;  %s1488_s12 = scalar_lea.vmem [#allocation5], %s1152_s27 }
  0x37   : > { %s1153_s29 = sshll.u32 %s289_s28, 3  ;;  %p1155_p13 = scmp.ne.s32.totalorder %s1349_s17, 0 }
  0x38   : > { %s291_s7 = scalar_lea.vmem %s2132_s1, %s1153_s29  ;;  %s295_s10 = scalar_lea.vmem %s2133_s2, %s1153_s29 }
  0x39   : > { %300 = sbr.rel (%p1155_p13) target bundleno = 65 (0x41), region = 63 }
  0x3e   : > { %v301_v16 = vld [vmem:[%s291_s7] sm:$0xff] }
  0x3f   : > { %v303_v17 = vld [vmem:[%s295_s10] sm:$0xff]  ;;  %302 = vst [vmem:[#allocation2] sm:$0xff] %v301_v16 }
  0x40   : > { %304 = vst [vmem:[#allocation3] sm:$0xff] %v303_v17 }
  0x41 PF: > { %v1494_v18 = vld [vmem:[%s2134_s3 + $0x1e0] sm:$0xff]  ;;  %v1499_v19 = vld [vmem:[%s2134_s3 + $0x1e8] sm:$0xff]  ;;  %v1504_v20 = vld [vmem:[%s2134_s3 + $0x1f0] sm:$0xff] }
  0x42   : > { %2165 = vst [vmem:[#allocation6_spill] sm:$0xff] %v1504_v20  ;;  %375 = vmatpush.msra.mxu0 %v1494_v18  ;;  %395 = vmatpush.msra.mxu1 %v1499_v19  ;;  %v1511_v21 = vld [vmem:[%s2134_s3 + $0x1c0] sm:$0xff]  ;;  %v1516_v22 = vld [vmem:[%s2134_s3 + $0x1c8] sm:$0xff]  ;;  %v1521_v23 = vld [vmem:[%s2134_s3 + $0x1d0] sm:$0xff] }
  0x43   : > { %415 = vmatpush.msra.mxu2 %v1504_v20  ;;  %v1527_v24 = vld [vmem:[%s2134_s3 + $0x1a0] sm:$0xff]  ;;  %v1532_v25 = vld [vmem:[%s2134_s3 + $0x1a8] sm:$0xff]  ;;  %v1539_v26 = vld [vmem:[%s2134_s3 + $0x1b0] sm:$0xff] }
  0x44   : > { %376 = vmatpush.msra.mxu0 %v1511_v21  ;;  %396 = vmatpush.msra.mxu1 %v1516_v22  ;;  %v1545_v27 = vld [vmem:[%s2134_s3 + $0x180] sm:$0xff]  ;;  %v1550_v28 = vld [vmem:[%s2134_s3 + $0x188] sm:$0xff]  ;;  %v1557_v29 = vld [vmem:[%s2134_s3 + $0x190] sm:$0xff] }
  0x45   : > { %416 = vmatpush.msra.mxu2 %v1521_v23  ;;  %v1563_v30 = vld [vmem:[%s2134_s3 + $0x160] sm:$0xff]  ;;  %v1568_v31 = vld [vmem:[%s2134_s3 + $0x168] sm:$0xff]  ;;  %v1575_v32 = vld [vmem:[%s2134_s3 + $0x170] sm:$0xff] }
  0x46   : > { %377 = vmatpush.msra.mxu0 %v1527_v24  ;;  %397 = vmatpush.msra.mxu1 %v1532_v25  ;;  %v1581_v33 = vld [vmem:[%s2134_s3 + $0x140] sm:$0xff]  ;;  %v1586_v34 = vld [vmem:[%s2134_s3 + $0x148] sm:$0xff]  ;;  %v1591_v35 = vld [vmem:[%s2134_s3 + $0x1f8] sm:$0xff] }
  0x47   : > { %417 = vmatpush.msra.mxu2 %v1539_v26  ;;  %v1598_v36 = vld [vmem:[%s2134_s3 + $0x150] sm:$0xff]  ;;  %v1603_v37 = vld [vmem:[%s2134_s3 + $0x1d8] sm:$0xff]  ;;  %v1609_v38 = vld [vmem:[%s2134_s3 + $0x120] sm:$0xff]  ;;  %435 = vmatpush.msra.mxu3 %v1591_v35 }
  0x48   : > { %378 = vmatpush.msra.mxu0 %v1545_v27  ;;  %398 = vmatpush.msra.mxu1 %v1550_v28  ;;  %v1614_v39 = vld [vmem:[%s2134_s3 + $0x128] sm:$0xff]  ;;  %v1622_v40 = vld [vmem:[%s2134_s3 + $0x130] sm:$0xff]  ;;  %v1627_v41 = vld [vmem:[%s2134_s3 + $0x1b8] sm:$0xff] }
  0x49   : > { %418 = vmatpush.msra.mxu2 %v1557_v29  ;;  %v1633_v42 = vld [vmem:[%s2134_s3 + $0x100] sm:$0xff]  ;;  %v1638_v43 = vld [vmem:[%s2134_s3 + $0x108] sm:$0xff]  ;;  %436 = vmatpush.msra.mxu3 %v1603_v37  ;;  %v1646_v44 = vld [vmem:[%s2134_s3 + $0x110] sm:$0xff] }
  0x4a   : > { %379 = vmatpush.msra.mxu0 %v1563_v30  ;;  %399 = vmatpush.msra.mxu1 %v1568_v31  ;;  %v1651_v45 = vld [vmem:[%s2134_s3 + $0x198] sm:$0xff]  ;;  %v1657_v46 = vld [vmem:[%s2134_s3 + $0xe0] sm:$0xff]  ;;  %v1662_v47 = vld [vmem:[%s2134_s3 + $0xe8] sm:$0xff] }
  0x4b   : > { %419 = vmatpush.msra.mxu2 %v1575_v32  ;;  %437 = vmatpush.msra.mxu3 %v1627_v41  ;;  %v1670_v48 = vld [vmem:[%s2134_s3 + $0xf0] sm:$0xff]  ;;  %v1675_v49 = vld [vmem:[%s2134_s3 + $0x178] sm:$0xff]  ;;  %v1681_v50 = vld [vmem:[%s2134_s3 + $0xc0] sm:$0xff] }
  0x4c   : > { %380 = vmatpush.msra.mxu0 %v1581_v33  ;;  %400 = vmatpush.msra.mxu1 %v1586_v34  ;;  %v1686_v51 = vld [vmem:[%s2134_s3 + $0xc8] sm:$0xff]  ;;  %v1694_v52 = vld [vmem:[%s2134_s3 + $0xd0] sm:$0xff]  ;;  %v1699_v53 = vld [vmem:[%s2134_s3 + $0x158] sm:$0xff] }
  0x4d   : > { %420 = vmatpush.msra.mxu2 %v1598_v36  ;;  %438 = vmatpush.msra.mxu3 %v1651_v45  ;;  %2166 = vst [vmem:[#allocation7_spill] sm:$0xff] %v1694_v52  ;;  %v1705_v54 = vld [vmem:[%s2134_s3 + $0xa0] sm:$0xff]  ;;  %v1710_v55 = vld [vmem:[%s2134_s3 + $0xa8] sm:$0xff]  ;;  %v1718_v56 = vld [vmem:[%s2134_s3 + $0xb0] sm:$0xff] }
  0x4e   : > { %381 = vmatpush.msra.mxu0 %v1609_v38  ;;  %401 = vmatpush.msra.mxu1 %v1614_v39  ;;  %2167 = vst [vmem:[#allocation8_spill] sm:$0xff] %v1705_v54  ;;  %v1723_v57 = vld [vmem:[%s2134_s3 + $0x138] sm:$0xff]  ;;  %v1729_v58 = vld [vmem:[%s2134_s3 + $0x80] sm:$0xff]  ;;  %v1734_v59 = vld [vmem:[%s2134_s3 + $0x88] sm:$0xff] }
  0x4f   : > { %421 = vmatpush.msra.mxu2 %v1622_v40  ;;  %2168 = vst [vmem:[#allocation9_spill] sm:$0xff] %v1710_v55  ;;  %439 = vmatpush.msra.mxu3 %v1675_v49  ;;  %v1742_v60 = vld [vmem:[%s2134_s3 + $0x90] sm:$0xff]  ;;  %v1747_v61 = vld [vmem:[%s2134_s3 + $0x118] sm:$0xff]  ;;  %v1753_v62 = vld [vmem:[%s2134_s3 + $0x60] sm:$0xff] }
  0x50   : > { %382 = vmatpush.msra.mxu0 %v1633_v42  ;;  %402 = vmatpush.msra.mxu1 %v1638_v43  ;;  %2169 = vst [vmem:[#allocation10_spill] sm:$0xff] %v1718_v56  ;;  %v1758_v63 = vld [vmem:[%s2134_s3 + $0x68] sm:$0xff]  ;;  %v1766_v0 = vld [vmem:[%s2134_s3 + $0x70] sm:$0xff]  ;;  %v1771_v1 = vld [vmem:[%s2134_s3 + $0xf8] sm:$0xff] }
  0x51   : > { %422 = vmatpush.msra.mxu2 %v1646_v44  ;;  %2170 = vst [vmem:[#allocation11_spill] sm:$0xff] %v1729_v58  ;;  %440 = vmatpush.msra.mxu3 %v1699_v53  ;;  %v1777_v2 = vld [vmem:[%s2134_s3 + $0x40] sm:$0xff]  ;;  %v1782_v3 = vld [vmem:[%s2134_s3 + $0x48] sm:$0xff]  ;;  %v1790_v4 = vld [vmem:[%s2134_s3 + $0x50] sm:$0xff] }
  0x52   : > { %383 = vmatpush.msra.mxu0 %v1657_v46  ;;  %403 = vmatpush.msra.mxu1 %v1662_v47  ;;  %2171 = vst [vmem:[#allocation12_spill] sm:$0xff] %v1734_v59  ;;  %v1795_v5 = vld [vmem:[%s2134_s3 + $0xd8] sm:$0xff]  ;;  %v1801_v6 = vld [vmem:[%s2134_s3 + $0x20] sm:$0xff]  ;;  %v1806_v7 = vld [vmem:[%s2134_s3 + $0x28] sm:$0xff] }
  0x53   : > { %423 = vmatpush.msra.mxu2 %v1670_v48  ;;  %2172 = vst [vmem:[#allocation13_spill] sm:$0xff] %v1742_v60  ;;  %441 = vmatpush.msra.mxu3 %v1723_v57  ;;  %v1814_v8 = vld [vmem:[%s2134_s3 + $0x30] sm:$0xff]  ;;  %v1819_v9 = vld [vmem:[%s2134_s3 + $0xb8] sm:$0xff]  ;;  %v1825_v10 = vld [vmem:[%s2134_s3] sm:$0xff] }
  0x54   : > { %384 = vmatpush.msra.mxu0 %v1681_v50  ;;  %404 = vmatpush.msra.mxu1 %v1686_v51  ;;  %2173 = vst [vmem:[#allocation14_spill] sm:$0xff] %v1753_v62  ;;  %v1830_v11 = vld [vmem:[%s2134_s3 + $0x8] sm:$0xff]  ;;  %v1838_v12 = vld [vmem:[%s2134_s3 + $0x10] sm:$0xff]  ;;  %v369_v13 = vld [vmem:[#allocation2] sm:$0xff] }
  0x55   : > { %424 = vmatpush.msra.mxu2 %v1694_v52  ;;  %2174 = vst [vmem:[#allocation15_spill] sm:$0xff] %v1758_v63  ;;  %442 = vmatpush.msra.mxu3 %v1747_v61  ;;  %v1847_v14 = vld [vmem:[%s2134_s3 + $0x98] sm:$0xff] }
  0x56   : > { %385 = vmatpush.msra.mxu0 %v1705_v54  ;;  %405 = vmatpush.msra.mxu1 %v1710_v55  ;;  %2175 = vst [vmem:[#allocation16_spill] sm:$0xff] %v1766_v0  ;;  %v1853_v15 = vld [vmem:[%s2134_s3 + $0x78] sm:$0xff] }
  0x57   : > { %425 = vmatpush.msra.mxu2 %v1718_v56  ;;  %2176 = vst [vmem:[#allocation17_spill] sm:$0xff] %v1777_v2  ;;  %443 = vmatpush.msra.mxu3 %v1771_v1  ;;  %v1860_v16 = vld [vmem:[%s2134_s3 + $0x58] sm:$0xff] }
  0x58   : > { %386 = vmatpush.msra.mxu0 %v1729_v58  ;;  %406 = vmatpush.msra.mxu1 %v1734_v59  ;;  %2177 = vst [vmem:[#allocation18_spill] sm:$0xff] %v1782_v3  ;;  %v1869_v17 = vld [vmem:[%s2134_s3 + $0x38] sm:$0xff] }
  0x59   : > { %426 = vmatpush.msra.mxu2 %v1742_v60  ;;  %2178 = vst [vmem:[#allocation19_spill] sm:$0xff] %v1790_v4  ;;  %444 = vmatpush.msra.mxu3 %v1795_v5 }
  0x5a   : > { %387 = vmatpush.msra.mxu0 %v1753_v62  ;;  %407 = vmatpush.msra.mxu1 %v1758_v63  ;;  %2179 = vst [vmem:[#allocation20_spill] sm:$0xff] %v1795_v5 }
  0x5b   : > { %427 = vmatpush.msra.mxu2 %v1766_v0  ;;  %2180 = vst [vmem:[#allocation21_spill] sm:$0xff] %v1801_v6  ;;  %445 = vmatpush.msra.mxu3 %v1819_v9 }
  0x5c   : > { %2181 = vst [vmem:[#allocation22_spill] sm:$0xff] %v1806_v7  ;;  %388 = vmatpush.msra.mxu0 %v1777_v2  ;;  %408 = vmatpush.msra.mxu1 %v1782_v3 }
  0x5d   : > { %2182 = vst [vmem:[#allocation23_spill] sm:$0xff] %v1814_v8  ;;  %428 = vmatpush.msra.mxu2 %v1790_v4  ;;  %446 = vmatpush.msra.mxu3 %v1847_v14 }
  0x5e   : > { %2183 = vst [vmem:[#allocation24_spill] sm:$0xff] %v1819_v9  ;;  %389 = vmatpush.msra.mxu0 %v1801_v6  ;;  %409 = vmatpush.msra.mxu1 %v1806_v7 }
  0x5f   : > { %2184 = vst [vmem:[#allocation25_spill] sm:$0xff] %v1825_v10  ;;  %429 = vmatpush.msra.mxu2 %v1814_v8  ;;  %447 = vmatpush.msra.mxu3 %v1853_v15 }
  0x60   : > { %2185 = vst [vmem:[#allocation26_spill] sm:$0xff] %v1830_v11  ;;  %390 = vmatpush.msra.mxu0 %v1825_v10  ;;  %410 = vmatpush.msra.mxu1 %v1830_v11 }
  0x61   : > { %2186 = vst [vmem:[#allocation27_spill] sm:$0xff] %v1838_v12  ;;  %430 = vmatpush.msra.mxu2 %v1838_v12  ;;  %391 = vmatmul.f32.vlgmr.msra.gmra.mxu0 %v369_v13 }
  0x62   : > { %2187 = vst [vmem:[#allocation28_spill] sm:$0xff] %v1847_v14  ;;  %411 = vmatmul.f32.vlgmr.msra.gmra.mxu1 %v369_v13  ;;  %431 = vmatmul.f32.vlgmr.msra.gmra.mxu2 %v369_v13 }
  0x63   : > { %2188 = vst [vmem:[#allocation29_spill] sm:$0xff] %v1853_v15  ;;  %528 = vmatpush.msrb.mxu0 %v1494_v18  ;;  %548 = vmatpush.msrb.mxu1 %v1499_v19 }
  0x64   : > { %2189 = vst [vmem:[#allocation30_spill] sm:$0xff] %v1860_v16  ;;  %568 = vmatpush.msrb.mxu2 %v1504_v20  ;;  %448 = vmatpush.msra.mxu3 %v1860_v16  ;;  %v1878_v20 = vld [vmem:[%s2134_s3 + $0x18] sm:$0xff] }
  0x65   : > { %529 = vmatpush.msrb.mxu0 %v1511_v21  ;;  %2190 = vst [vmem:[#allocation31_spill] sm:$0xff] %v1869_v17  ;;  %549 = vmatpush.msrb.mxu1 %v1516_v22 }
  0x66   : > { %569 = vmatpush.msrb.mxu2 %v1521_v23  ;;  %2191 = vst [vmem:[#allocation32_spill] sm:$0xff] %v1878_v20  ;;  %449 = vmatpush.msra.mxu3 %v1869_v17 }
  0x67   : > { %530 = vmatpush.msrb.mxu0 %v1527_v24  ;;  %550 = vmatpush.msrb.mxu1 %v1532_v25 }
  0x68   : > { %570 = vmatpush.msrb.mxu2 %v1539_v26  ;;  %450 = vmatpush.msra.mxu3 %v1878_v20 }
  0x69   : > { %531 = vmatpush.msrb.mxu0 %v1545_v27  ;;  %551 = vmatpush.msrb.mxu1 %v1550_v28 }
  0x6a   : > { %571 = vmatpush.msrb.mxu2 %v1557_v29  ;;  %451 = vmatmul.f32.vlgmr.msra.gmra.mxu3 %v369_v13  ;;  %v2192_v13 = vld [vmem:[#allocation6_spill] sm:$0xff] }
  0x6b   : > { %532 = vmatpush.msrb.mxu0 %v1563_v30  ;;  %552 = vmatpush.msrb.mxu1 %v1568_v31 }
  0x6c   : > { %588 = vmatpush.msrb.mxu3 %v1591_v35  ;;  %572 = vmatpush.msrb.mxu2 %v1575_v32 }
  0x6d   : > { %533 = vmatpush.msrb.mxu0 %v1581_v33  ;;  %553 = vmatpush.msrb.mxu1 %v1586_v34 }
  0x6e   : > { %589 = vmatpush.msrb.mxu3 %v1603_v37  ;;  %573 = vmatpush.msrb.mxu2 %v1598_v36 }
  0x6f   : > { %534 = vmatpush.msrb.mxu0 %v1609_v38  ;;  %554 = vmatpush.msrb.mxu1 %v1614_v39 }
  0x70   : > { %590 = vmatpush.msrb.mxu3 %v1627_v41  ;;  %574 = vmatpush.msrb.mxu2 %v1622_v40 }
  0x71   : > { %535 = vmatpush.msrb.mxu0 %v1633_v42  ;;  %555 = vmatpush.msrb.mxu1 %v1638_v43 }
  0x72   : > { %591 = vmatpush.msrb.mxu3 %v1651_v45  ;;  %575 = vmatpush.msrb.mxu2 %v1646_v44 }
  0x73   : > { %536 = vmatpush.msrb.mxu0 %v1657_v46  ;;  %556 = vmatpush.msrb.mxu1 %v1662_v47 }
  0x74   : > { %592 = vmatpush.msrb.mxu3 %v1675_v49  ;;  %576 = vmatpush.msrb.mxu2 %v1670_v48 }
  0x75   : > { %537 = vmatpush.msrb.mxu0 %v1681_v50  ;;  %557 = vmatpush.msrb.mxu1 %v1686_v51 }
  0x76   : > { %593 = vmatpush.msrb.mxu3 %v1699_v53  ;;  %577 = vmatpush.msrb.mxu2 %v1694_v52 }
  0x77   : > { %538 = vmatpush.msrb.mxu0 %v1705_v54  ;;  %558 = vmatpush.msrb.mxu1 %v1710_v55 }
  0x78   : > { %594 = vmatpush.msrb.mxu3 %v1723_v57  ;;  %578 = vmatpush.msrb.mxu2 %v1718_v56 }
  0x79   : > { %539 = vmatpush.msrb.mxu0 %v1729_v58  ;;  %559 = vmatpush.msrb.mxu1 %v1734_v59 }
  0x7a   : > { %595 = vmatpush.msrb.mxu3 %v1747_v61  ;;  %579 = vmatpush.msrb.mxu2 %v1742_v60 }
  0x7b   : > { %540 = vmatpush.msrb.mxu0 %v1753_v62  ;;  %560 = vmatpush.msrb.mxu1 %v1758_v63 }
  0x7c   : > { %596 = vmatpush.msrb.mxu3 %v1771_v1  ;;  %580 = vmatpush.msrb.mxu2 %v1766_v0 }
  0x7d   : > { %541 = vmatpush.msrb.mxu0 %v1777_v2  ;;  %561 = vmatpush.msrb.mxu1 %v1782_v3 }
  0x7e   : > { %597 = vmatpush.msrb.mxu3 %v1795_v5  ;;  %581 = vmatpush.msrb.mxu2 %v1790_v4 }
  0x7f   : > { %542 = vmatpush.msrb.mxu0 %v1801_v6  ;;  %562 = vmatpush.msrb.mxu1 %v1806_v7 }
  0x80   : > { %598 = vmatpush.msrb.mxu3 %v1819_v9  ;;  %582 = vmatpush.msrb.mxu2 %v1814_v8 }
  0x81   : > { %543 = vmatpush.msrb.mxu0 %v1825_v10  ;;  %563 = vmatpush.msrb.mxu1 %v1830_v11 }
  0x82   : > { %599 = vmatpush.msrb.mxu3 %v1847_v14  ;;  %583 = vmatpush.msrb.mxu2 %v1838_v12 }
  0x83   : > { %682 = vmatpush.msra.mxu0 %v1494_v18  ;;  %702 = vmatpush.msra.mxu1 %v1499_v19 }
  0x84   : > { %600 = vmatpush.msrb.mxu3 %v1853_v15  ;;  %722 = vmatpush.msra.mxu2 %v2192_v13 }
  0x85   : > { %683 = vmatpush.msra.mxu0 %v1511_v21  ;;  %703 = vmatpush.msra.mxu1 %v1516_v22 }
  0x86   : > { %601 = vmatpush.msrb.mxu3 %v1860_v16  ;;  %723 = vmatpush.msra.mxu2 %v1521_v23 }
  0x87   : > { %684 = vmatpush.msra.mxu0 %v1527_v24  ;;  %704 = vmatpush.msra.mxu1 %v1532_v25 }
  0x88   : > { %602 = vmatpush.msrb.mxu3 %v1869_v17  ;;  %724 = vmatpush.msra.mxu2 %v1539_v26 }
  0x89   : > { %685 = vmatpush.msra.mxu0 %v1545_v27  ;;  %705 = vmatpush.msra.mxu1 %v1550_v28 }
  0x8a   : > { %603 = vmatpush.msrb.mxu3 %v1878_v20  ;;  %725 = vmatpush.msra.mxu2 %v1557_v29 }
  0x8b   : > { %686 = vmatpush.msra.mxu0 %v1563_v30  ;;  %706 = vmatpush.msra.mxu1 %v1568_v31 }
  0x8c   : > { %742 = vmatpush.msra.mxu3 %v1591_v35  ;;  %726 = vmatpush.msra.mxu2 %v1575_v32 }
  0x8d   : > { %687 = vmatpush.msra.mxu0 %v1581_v33  ;;  %707 = vmatpush.msra.mxu1 %v1586_v34 }
  0x8e   : > { %743 = vmatpush.msra.mxu3 %v1603_v37  ;;  %727 = vmatpush.msra.mxu2 %v1598_v36 }
  0x8f   : > { %688 = vmatpush.msra.mxu0 %v1609_v38  ;;  %708 = vmatpush.msra.mxu1 %v1614_v39 }
  0x90   : > { %744 = vmatpush.msra.mxu3 %v1627_v41  ;;  %728 = vmatpush.msra.mxu2 %v1622_v40 }
  0x91   : > { %689 = vmatpush.msra.mxu0 %v1633_v42  ;;  %709 = vmatpush.msra.mxu1 %v1638_v43 }
  0x92   : > { %745 = vmatpush.msra.mxu3 %v1651_v45  ;;  %729 = vmatpush.msra.mxu2 %v1646_v44 }
  0x93   : > { %690 = vmatpush.msra.mxu0 %v1657_v46  ;;  %710 = vmatpush.msra.mxu1 %v1662_v47 }
  0x94   : > { %746 = vmatpush.msra.mxu3 %v1675_v49  ;;  %730 = vmatpush.msra.mxu2 %v1670_v48 }
  0x95   : > { %691 = vmatpush.msra.mxu0 %v1681_v50  ;;  %711 = vmatpush.msra.mxu1 %v1686_v51 }
  0x96   : > { %747 = vmatpush.msra.mxu3 %v1699_v53  ;;  %731 = vmatpush.msra.mxu2 %v1694_v52 }
  0x97   : > { %692 = vmatpush.msra.mxu0 %v1705_v54  ;;  %712 = vmatpush.msra.mxu1 %v1710_v55 }
  0x98   : > { %748 = vmatpush.msra.mxu3 %v1723_v57  ;;  %732 = vmatpush.msra.mxu2 %v1718_v56 }
  0x99   : > { %693 = vmatpush.msra.mxu0 %v1729_v58  ;;  %713 = vmatpush.msra.mxu1 %v1734_v59 }
  0x9a   : > { %749 = vmatpush.msra.mxu3 %v1747_v61  ;;  %733 = vmatpush.msra.mxu2 %v1742_v60 }
  0x9b   : > { %694 = vmatpush.msra.mxu0 %v1753_v62  ;;  %714 = vmatpush.msra.mxu1 %v1758_v63 }
  0x9c   : > { %750 = vmatpush.msra.mxu3 %v1771_v1  ;;  %734 = vmatpush.msra.mxu2 %v1766_v0 }
  0x9d   : > { %695 = vmatpush.msra.mxu0 %v1777_v2  ;;  %715 = vmatpush.msra.mxu1 %v1782_v3 }
  0x9e   : > { %751 = vmatpush.msra.mxu3 %v1795_v5  ;;  %735 = vmatpush.msra.mxu2 %v1790_v4 }
  0x9f   : > { %696 = vmatpush.msra.mxu0 %v1801_v6  ;;  %716 = vmatpush.msra.mxu1 %v1806_v7  ;;  %v371_v7 = vld [vmem:[%s1486_s11] sm:$0xff]  ;;  %v372_v6 = vld [vmem:[%s1486_s11 + $0x8] sm:$0xff] }
  0xa0   : > { %752 = vmatpush.msra.mxu3 %v1819_v9  ;;  %736 = vmatpush.msra.mxu2 %v1814_v8 }
  0xa1   : > { %697 = vmatpush.msra.mxu0 %v1825_v10  ;;  %717 = vmatpush.msra.mxu1 %v1830_v11  ;;  %v373_v11 = vld [vmem:[%s1486_s11 + $0x10] sm:$0xff] }
  0xa2   : > { %753 = vmatpush.msra.mxu3 %v1847_v14  ;;  %737 = vmatpush.msra.mxu2 %v1838_v12  ;;  %v374_v14 = vld [vmem:[%s1486_s11 + $0x18] sm:$0xff] }
  0xa4   : > { %754 = vmatpush.msra.mxu3 %v1853_v15 }
  0xa6   : > { %755 = vmatpush.msra.mxu3 %v1860_v16 }
  0xa8   : > { %756 = vmatpush.msra.mxu3 %v1869_v17 }
  0xaa   : > { %757 = vmatpush.msra.mxu3 %v1878_v20 }
  0xde   : > { %v392_v8 = vpop.f32.mrf.mxu0 }
  0xdf   : > { %v455_v4 = vadd.f32 %v392_v8, %v371_v7  ;;  %v412_v3 = vpop.f32.mrf.mxu1 }
  0xe0   : > { %v456_v2 = vadd.f32 %v412_v3, %v372_v6 }
  0xe1   : > { %v1156_v10 = vmul.f32 -1.442695, %v455_v4 }
  0xe2   : > { %v1157_v0 = vmul.f32 -1.442695, %v456_v2 }
  0xe3   : > { %1247 = vpow2.f32 %v1156_v10 }
  0xe4   : > { %1249 = vpow2.f32 %v1157_v0 }
  0xe5   : > { %v432_v12 = vpop.f32.mrf.mxu2 }
  0xe6   : > { %v457_v15 = vadd.f32 %v432_v12, %v373_v11 }
  0xe8   : > { %v1158_v63 = vmul.f32 -1.442695, %v457_v15 }
  0xe9   : > { %v1248_v16 = vpop.eup %1247 }
  0xea   : > { %v1250_v62 = vpop.eup %1249  ;;  %v468_v17 = vadd.f32 1.0, %v1248_v16  ;;  %1251 = vpow2.f32 %v1158_v63 }
  0xeb   : > { %v469_v20 = vadd.f32 1.0, %v1250_v62 }
  0xec   : > { %1253 = vrcp.f32 %v468_v17  ;;  %v482_v15 = vand.u32 2147483648, %v468_v17  ;;  %v480_v62 = vand.u32 2147483647, %v468_v17  ;;  %vm476_vm2 = vweird.f32 %v468_v17 }
  0xed   : > { %1255 = vrcp.f32 %v469_v20  ;;  %v452_v7 = vpop.f32.mrf.mxu3  ;;  %v497_v60 = vand.u32 2147483648, %v469_v20  ;;  %v495_v59 = vand.u32 2147483647, %v469_v20  ;;  %vm491_vm3 = vweird.f32 %v469_v20 }
  0xee   : > { %v458_v3 = vadd.f32 %v452_v7, %v374_v14  ;;  %vm481_vm6 = vcmp.eq.f32.partialorder %v480_v62, 8.507059e+37 }
  0xef   : > { %vm496_vm7 = vcmp.eq.f32.partialorder %v495_v59, 8.507059e+37 }
  0xf0   : > { %v1252_v8 = vpop.eup %1251 }
  0xf1   : > { %v470_v6 = vadd.f32 1.0, %v1252_v8  ;;  %v483_v8 = vor.u32 1.1754944e-38, %v482_v15 }
  0xf2   : > { %v1254_v4 = vpop.eup %1253 }
  0xf3   : > { %v1256_v2 = vpop.eup %1255  ;;  %v472_v10 = vmul.f32 %v1254_v4, %v468_v17  ;;  %1257 = vrcp.f32 %v470_v6  ;;  %vm477_vm0 = vweird.f32 %v1254_v4  ;;  %v512_v15 = vand.u32 2147483648, %v470_v6 }
  0xf4   : > { %v487_v0 = vmul.f32 %v1256_v2, %v469_v20  ;;  %1259 = vtanh.f32 %v458_v3  ;;  %vm492_vm1 = vweird.f32 %v1256_v2  ;;  %vm478_vm4 = vmor %vm476_vm2, %vm477_vm0  ;;  %v498_v3 = vor.u32 1.1754944e-38, %v497_v60 }
  0xf5   : > { %v473_v11 = vsub.f32 1.0, %v472_v10  ;;  %vm493_vm5 = vmor %vm491_vm3, %vm492_vm1  ;;  %v370_v10 = vld [vmem:[#allocation3] sm:$0xff]  ;;  %vm506_vm9 = vweird.f32 %v470_v6  ;;  %v510_v60 = vand.u32 2147483647, %v470_v6 }
  0xf6   : > { %v488_v12 = vsub.f32 1.0, %v487_v0 }
  0xf7   : > { %v474_v16 = vmul.f32 %v1254_v4, %v473_v11  ;;  %vm511_vm11 = vcmp.eq.f32.partialorder %v510_v60, 8.507059e+37 }
  0xf8   : > { %v489_v63 = vmul.f32 %v1256_v2, %v488_v12 }
  0xf9   : > { %v1258_v58 = vpop.eup %1257  ;;  %v475_v9 = vadd.f32 %v1254_v4, %v474_v16 }
  0xfa   : > { %v1260_v14 = vpop.eup %1259  ;;  %v502_v7 = vmul.f32 %v1258_v58, %v470_v6  ;;  %v490_v56 = vadd.f32 %v1256_v2, %v489_v63  ;;  %vm507_vm8 = vweird.f32 %v1258_v58  ;;  %v1162_v6 = vld [vmem:[%s1486_s11 + $0x38] sm:$0xff] }
  0xfb   : > { %v479_v0 = vsel %vm478_vm4, %v1254_v4, %v475_v9  ;;  %vm508_vm10 = vmor %vm506_vm9, %vm507_vm8  ;;  %v513_v4 = vor.u32 1.1754944e-38, %v512_v15 }
  0xfc   : > { %v503_v11 = vsub.f32 1.0, %v502_v7  ;;  %v484_v55 = vsel %vm481_vm6, %v483_v8, %v479_v0  ;;  %v494_v54 = vsel %vm493_vm5, %v1256_v2, %v490_v56 }
  0xfd   : > { %v499_v12 = vsel %vm496_vm7, %v498_v3, %v494_v54  ;;  %v518_v5 = vmul.f32 %v1260_v14, %v484_v55 }
  0xfe   : > { %v504_v52 = vmul.f32 %v1258_v58, %v503_v11  ;;  %v517_v17 = vmul.f32 %v499_v12, %v370_v10 }
 0x100   : > { %v2007_v16 = vadd.f32 %v518_v5, %v517_v17  ;;  %v505_v20 = vadd.f32 %v1258_v58, %v504_v52 }
 0x102   : > { %1261 = vtanh.f32 %v2007_v16  ;;  %v509_v9 = vsel %vm508_vm10, %v1258_v58, %v505_v20 }
 0x103   : > { %v514_v59 = vsel %vm511_vm11, %v513_v4, %v509_v9 }
 0x108   : > { %v1262_v56 = vpop.eup %1261 }
 0x109   : > { %v521_v54 = vmul.f32 %v1262_v56, %v514_v59 }
 0x10b   : > { %522 = vst [vmem:[%s1488_s12] sm:$0xff] %v521_v54  ;;  %544 = vmatmul.f32.vlgmr.msrb.gmra.mxu0 %v521_v54  ;;  %564 = vmatmul.f32.vlgmr.msrb.gmra.mxu1 %v521_v54 }
 0x10c   : > { %584 = vmatmul.f32.vlgmr.msrb.gmra.mxu2 %v521_v54  ;;  %604 = vmatmul.f32.vlgmr.msrb.gmra.mxu3 %v521_v54 }
 0x10d   : > { %836 = vmatpush.msrb.mxu0 %v1494_v18  ;;  %856 = vmatpush.msrb.mxu1 %v1499_v19  ;;  %v2193_v18 = vld [vmem:[#allocation7_spill] sm:$0xff]  ;;  %v2194_v19 = vld [vmem:[#allocation20_spill] sm:$0xff] }
 0x10e   : > { %876 = vmatpush.msrb.mxu2 %v2192_v13  ;;  %896 = vmatpush.msrb.mxu3 %v1591_v35  ;;  %v2209_v35 = vld [vmem:[#allocation19_spill] sm:$0xff] }
 0x10f   : > { %837 = vmatpush.msrb.mxu0 %v1511_v21  ;;  %857 = vmatpush.msrb.mxu1 %v1516_v22  ;;  %v2195_v21 = vld [vmem:[#allocation8_spill] sm:$0xff]  ;;  %v2196_v22 = vld [vmem:[#allocation9_spill] sm:$0xff] }
 0x110   : > { %877 = vmatpush.msrb.mxu2 %v1521_v23  ;;  %897 = vmatpush.msrb.mxu3 %v1603_v37  ;;  %v2197_v23 = vld [vmem:[#allocation10_spill] sm:$0xff]  ;;  %v2211_v37 = vld [vmem:[#allocation21_spill] sm:$0xff] }
 0x111   : > { %838 = vmatpush.msrb.mxu0 %v1527_v24  ;;  %858 = vmatpush.msrb.mxu1 %v1532_v25  ;;  %v2198_v24 = vld [vmem:[#allocation24_spill] sm:$0xff]  ;;  %v2199_v25 = vld [vmem:[#allocation11_spill] sm:$0xff] }
 0x112   : > { %878 = vmatpush.msrb.mxu2 %v1539_v26  ;;  %898 = vmatpush.msrb.mxu3 %v1627_v41  ;;  %v2200_v26 = vld [vmem:[#allocation12_spill] sm:$0xff]  ;;  %v2215_v41 = vld [vmem:[#allocation25_spill] sm:$0xff] }
 0x113   : > { %839 = vmatpush.msrb.mxu0 %v1545_v27  ;;  %859 = vmatpush.msrb.mxu1 %v1550_v28  ;;  %v2201_v27 = vld [vmem:[#allocation13_spill] sm:$0xff]  ;;  %v2202_v28 = vld [vmem:[#allocation28_spill] sm:$0xff] }
 0x114   : > { %879 = vmatpush.msrb.mxu2 %v1557_v29  ;;  %899 = vmatpush.msrb.mxu3 %v1651_v45  ;;  %v2203_v29 = vld [vmem:[#allocation14_spill] sm:$0xff] }
 0x115   : > { %840 = vmatpush.msrb.mxu0 %v1563_v30  ;;  %860 = vmatpush.msrb.mxu1 %v1568_v31  ;;  %v2204_v30 = vld [vmem:[#allocation15_spill] sm:$0xff]  ;;  %v2205_v31 = vld [vmem:[#allocation16_spill] sm:$0xff]  ;;  %v1159_v45 = vld [vmem:[%s1486_s11 + $0x20] sm:$0xff] }
 0x116   : > { %880 = vmatpush.msrb.mxu2 %v1575_v32  ;;  %900 = vmatpush.msrb.mxu3 %v1675_v49  ;;  %v2206_v32 = vld [vmem:[#allocation29_spill] sm:$0xff] }
 0x117   : > { %841 = vmatpush.msrb.mxu0 %v1581_v33  ;;  %861 = vmatpush.msrb.mxu1 %v1586_v34  ;;  %v2207_v33 = vld [vmem:[#allocation17_spill] sm:$0xff]  ;;  %v2208_v34 = vld [vmem:[#allocation18_spill] sm:$0xff] }
 0x118   : > { %881 = vmatpush.msrb.mxu2 %v1598_v36  ;;  %901 = vmatpush.msrb.mxu3 %v1699_v53  ;;  %v2210_v36 = vld [vmem:[#allocation30_spill] sm:$0xff]  ;;  %v1161_v53 = vld [vmem:[%s1486_s11 + $0x30] sm:$0xff] }
 0x119   : > { %842 = vmatpush.msrb.mxu0 %v1609_v38  ;;  %862 = vmatpush.msrb.mxu1 %v1614_v39  ;;  %v2212_v38 = vld [vmem:[#allocation22_spill] sm:$0xff]  ;;  %v2213_v39 = vld [vmem:[#allocation23_spill] sm:$0xff] }
 0x11a   : > { %882 = vmatpush.msrb.mxu2 %v1622_v40  ;;  %902 = vmatpush.msrb.mxu3 %v1723_v57  ;;  %v2214_v40 = vld [vmem:[#allocation31_spill] sm:$0xff] }
 0x11b   : > { %843 = vmatpush.msrb.mxu0 %v1633_v42  ;;  %863 = vmatpush.msrb.mxu1 %v1638_v43  ;;  %v2216_v42 = vld [vmem:[#allocation26_spill] sm:$0xff]  ;;  %v2217_v43 = vld [vmem:[#allocation27_spill] sm:$0xff] }
 0x11c   : > { %883 = vmatpush.msrb.mxu2 %v1646_v44  ;;  %903 = vmatpush.msrb.mxu3 %v1747_v61  ;;  %v2218_v44 = vld [vmem:[#allocation32_spill] sm:$0xff] }
 0x11d   : > { %844 = vmatpush.msrb.mxu0 %v1657_v46  ;;  %864 = vmatpush.msrb.mxu1 %v1662_v47  ;;  %v1160_v46 = vld [vmem:[%s1486_s11 + $0x28] sm:$0xff] }
 0x11e   : > { %884 = vmatpush.msrb.mxu2 %v1670_v48  ;;  %904 = vmatpush.msrb.mxu3 %v1771_v1 }
 0x11f   : > { %845 = vmatpush.msrb.mxu0 %v1681_v50  ;;  %865 = vmatpush.msrb.mxu1 %v1686_v51 }
 0x120   : > { %885 = vmatpush.msrb.mxu2 %v2193_v18  ;;  %905 = vmatpush.msrb.mxu3 %v2194_v19 }
 0x121   : > { %846 = vmatpush.msrb.mxu0 %v2195_v21  ;;  %866 = vmatpush.msrb.mxu1 %v2196_v22 }
 0x122   : > { %886 = vmatpush.msrb.mxu2 %v2197_v23  ;;  %906 = vmatpush.msrb.mxu3 %v2198_v24 }
 0x123   : > { %847 = vmatpush.msrb.mxu0 %v2199_v25  ;;  %867 = vmatpush.msrb.mxu1 %v2200_v26 }
 0x124   : > { %887 = vmatpush.msrb.mxu2 %v2201_v27  ;;  %907 = vmatpush.msrb.mxu3 %v2202_v28 }
 0x125   : > { %848 = vmatpush.msrb.mxu0 %v2203_v29  ;;  %868 = vmatpush.msrb.mxu1 %v2204_v30 }
 0x126   : > { %888 = vmatpush.msrb.mxu2 %v2205_v31  ;;  %908 = vmatpush.msrb.mxu3 %v2206_v32 }
 0x127   : > { %849 = vmatpush.msrb.mxu0 %v2207_v33  ;;  %869 = vmatpush.msrb.mxu1 %v2208_v34 }
 0x128   : > { %889 = vmatpush.msrb.mxu2 %v2209_v35  ;;  %909 = vmatpush.msrb.mxu3 %v2210_v36 }
 0x129   : > { %850 = vmatpush.msrb.mxu0 %v2211_v37  ;;  %870 = vmatpush.msrb.mxu1 %v2212_v38 }
 0x12a   : > { %890 = vmatpush.msrb.mxu2 %v2213_v39  ;;  %910 = vmatpush.msrb.mxu3 %v2214_v40  ;;  %v1168_v39 = vld [vmem:[%s1486_s11 + $0x48] sm:$0xff] }
 0x12b   : > { %851 = vmatpush.msrb.mxu0 %v2215_v41  ;;  %871 = vmatpush.msrb.mxu1 %v2216_v42 }
 0x12c   : > { %891 = vmatpush.msrb.mxu2 %v2217_v43  ;;  %911 = vmatpush.msrb.mxu3 %v2218_v44 }
 0x188   : > { %v545_v47 = vpop.f32.mrf.mxu0  ;;  %v565_v48 = vpop.f32.mrf.mxu1 }
 0x189   : > { %v608_v49 = vadd.f32 %v1159_v45, %v545_v47  ;;  %v609_v50 = vadd.f32 %v1160_v46, %v565_v48  ;;  %v1169_v46 = vld [vmem:[%s1486_s11 + $0x50] sm:$0xff] }
 0x18b   : > { %v1163_v51 = vmul.f32 -1.442695, %v608_v49  ;;  %v1164_v52 = vmul.f32 -1.442695, %v609_v50 }
 0x18d   : > { %1263 = vpow2.f32 %v1163_v51 }
 0x18e   : > { %1265 = vpow2.f32 %v1164_v52 }
 0x18f   : > { %v585_v55 = vpop.f32.mrf.mxu2  ;;  %v605_v2 = vpop.f32.mrf.mxu3 }
 0x190   : > { %v610_v57 = vadd.f32 %v1161_v53, %v585_v55  ;;  %v611_v7 = vadd.f32 %v1162_v6, %v605_v2  ;;  %v1170_v55 = vld [vmem:[%s1486_s11 + $0x58] sm:$0xff] }
 0x192   : > { %v1165_v58 = vmul.f32 -1.442695, %v610_v57 }
 0x193   : > { %v1264_v61 = vpop.eup %1263 }
 0x194   : > { %v1266_v1 = vpop.eup %1265  ;;  %v621_v5 = vadd.f32 1.0, %v1264_v61  ;;  %1267 = vpow2.f32 %v1165_v58 }
 0x195   : > { %v622_v13 = vadd.f32 1.0, %v1266_v1 }
 0x196   : > { %1269 = vrcp.f32 %v621_v5  ;;  %v635_v12 = vand.u32 2147483648, %v621_v5  ;;  %v633_v15 = vand.u32 2147483647, %v621_v5  ;;  %vm629_vm14 = vweird.f32 %v621_v5 }
 0x197   : > { %1271 = vrcp.f32 %v622_v13  ;;  %v650_v17 = vand.u32 2147483648, %v622_v13  ;;  %v648_v9 = vand.u32 2147483647, %v622_v13  ;;  %vm644_vm15 = vweird.f32 %v622_v13 }
 0x198   : > { %v636_v54 = vor.u32 1.1754944e-38, %v635_v12  ;;  %vm634_vm2 = vcmp.eq.f32.partialorder %v633_v15, 8.507059e+37 }
 0x199   : > { %v651_v19 = vor.u32 1.1754944e-38, %v650_v17  ;;  %vm649_vm3 = vcmp.eq.f32.partialorder %v648_v9, 8.507059e+37 }
 0x19a   : > { %v1268_v62 = vpop.eup %1267 }
 0x19b   : > { %v623_v63 = vadd.f32 1.0, %v1268_v62 }
 0x19c   : > { %v1270_v14 = vpop.eup %1269 }
 0x19d   : > { %v1272_v8 = vpop.eup %1271  ;;  %v625_v3 = vmul.f32 %v1270_v14, %v621_v5  ;;  %1273 = vrcp.f32 %v623_v63  ;;  %vm630_vm12 = vweird.f32 %v1270_v14  ;;  %v665_v32 = vand.u32 2147483648, %v623_v63 }
 0x19e   : > { %v640_v10 = vmul.f32 %v1272_v8, %v622_v13  ;;  %1275 = vtanh.f32 %v611_v7  ;;  %vm645_vm13 = vweird.f32 %v1272_v8  ;;  %vm631_vm0 = vmor %vm629_vm14, %vm630_vm12  ;;  %vm659_vm5 = vweird.f32 %v623_v63 }
 0x19f   : > { %v626_v0 = vsub.f32 1.0, %v625_v3  ;;  %vm646_vm1 = vmor %vm644_vm15, %vm645_vm13  ;;  %v663_v33 = vand.u32 2147483647, %v623_v63  ;;  %v666_v35 = vor.u32 1.1754944e-38, %v665_v32 }
 0x1a0   : > { %v641_v11 = vsub.f32 1.0, %v640_v10 }
 0x1a1   : > { %v627_v20 = vmul.f32 %v1270_v14, %v626_v0  ;;  %vm664_vm7 = vcmp.eq.f32.partialorder %v663_v33, 8.507059e+37  ;;  %v1176_v33 = vld [vmem:[%s1486_s11 + $0x68] sm:$0xff] }
 0x1a2   : > { %v642_v60 = vmul.f32 %v1272_v8, %v641_v11 }
 0x1a3   : > { %v1274_v4 = vpop.eup %1273  ;;  %v628_v56 = vadd.f32 %v1270_v14, %v627_v20 }
 0x1a4   : > { %v655_v59 = vmul.f32 %v1274_v4, %v623_v63  ;;  %v643_v18 = vadd.f32 %v1272_v8, %v642_v60  ;;  %v1276_v22 = vpop.eup %1275  ;;  %vm660_vm4 = vweird.f32 %v1274_v4 }
 0x1a5   : > { %v632_v21 = vsel %vm631_vm0, %v1270_v14, %v628_v56  ;;  %vm661_vm6 = vmor %vm659_vm5, %vm660_vm4 }
 0x1a6   : > { %v656_v23 = vsub.f32 1.0, %v655_v59  ;;  %v637_v24 = vsel %vm634_vm2, %v636_v54, %v632_v21  ;;  %v647_v25 = vsel %vm646_vm1, %v1272_v8, %v643_v18 }
 0x1a7   : > { %v652_v26 = vsel %vm649_vm3, %v651_v19, %v647_v25  ;;  %v671_v27 = vmul.f32 %v1276_v22, %v637_v24 }
 0x1a8   : > { %v657_v28 = vmul.f32 %v1274_v4, %v656_v23  ;;  %v670_v29 = vmul.f32 %v652_v26, %v2007_v16  ;;  %v1167_v16 = vld [vmem:[%s1486_s11 + $0x40] sm:$0xff] }
 0x1aa   : > { %v2080_v30 = vadd.f32 %v671_v27, %v670_v29  ;;  %v658_v31 = vadd.f32 %v1274_v4, %v657_v28 }
 0x1ac   : > { %1277 = vtanh.f32 %v2080_v30  ;;  %v662_v34 = vsel %vm661_vm6, %v1274_v4, %v658_v31 }
 0x1ad   : > { %v667_v37 = vsel %vm664_vm7, %v666_v35, %v662_v34 }
 0x1b2   : > { %v1278_v36 = vpop.eup %1277 }
 0x1b3   : > { %v674_v38 = vmul.f32 %v1278_v36, %v667_v37 }
 0x1b5   : > { %1166 = vst [vmem:[%s1488_s12 + $0x8] sm:$0xff] %v674_v38  ;;  %698 = vmatmul.f32.vlgmr.msra.gmra.mxu0 %v674_v38  ;;  %718 = vmatmul.f32.vlgmr.msra.gmra.mxu1 %v674_v38 }
 0x1b6   : > { %738 = vmatmul.f32.vlgmr.msra.gmra.mxu2 %v674_v38  ;;  %758 = vmatmul.f32.vlgmr.msra.gmra.mxu3 %v674_v38 }
 0x232   : > { %v699_v40 = vpop.f32.mrf.mxu0  ;;  %v719_v41 = vpop.f32.mrf.mxu1 }
 0x233   : > { %v762_v42 = vadd.f32 %v1167_v16, %v699_v40  ;;  %v763_v43 = vadd.f32 %v1168_v39, %v719_v41  ;;  %v1177_v39 = vld [vmem:[%s1486_s11 + $0x70] sm:$0xff] }
 0x235   : > { %v1171_v44 = vmul.f32 -1.442695, %v762_v42  ;;  %v1172_v45 = vmul.f32 -1.442695, %v763_v43 }
 0x237   : > { %1279 = vpow2.f32 %v1171_v44 }
 0x238   : > { %1281 = vpow2.f32 %v1172_v45 }
 0x239   : > { %v739_v47 = vpop.f32.mrf.mxu2  ;;  %v759_v57 = vpop.f32.mrf.mxu3 }
 0x23a   : > { %v764_v48 = vadd.f32 %v1169_v46, %v739_v47  ;;  %v765_v5 = vadd.f32 %v1170_v55, %v759_v57  ;;  %v1178_v47 = vld [vmem:[%s1486_s11 + $0x78] sm:$0xff] }
 0x23c   : > { %v1173_v49 = vmul.f32 -1.442695, %v764_v48 }
 0x23d   : > { %v1280_v50 = vpop.eup %1279 }
 0x23e   : > { %v1282_v51 = vpop.eup %1281  ;;  %v775_v52 = vadd.f32 1.0, %v1280_v50  ;;  %1283 = vpow2.f32 %v1173_v49 }
 0x23f   : > { %v776_v53 = vadd.f32 1.0, %v1282_v51 }
 0x240   : > { %1285 = vrcp.f32 %v775_v52  ;;  %v789_v14 = vand.u32 2147483648, %v775_v52  ;;  %v787_v3 = vand.u32 2147483647, %v775_v52  ;;  %vm783_vm10 = vweird.f32 %v775_v52 }
 0x241   : > { %1287 = vrcp.f32 %v776_v53  ;;  %v804_v7 = vand.u32 2147483648, %v776_v53  ;;  %v802_v0 = vand.u32 2147483647, %v776_v53  ;;  %vm798_vm11 = vweird.f32 %v776_v53 }
 0x242   : > { %v790_v20 = vor.u32 1.1754944e-38, %v789_v14  ;;  %vm788_vm14 = vcmp.eq.f32.partialorder %v787_v3, 8.507059e+37 }
 0x243   : > { %v805_v60 = vor.u32 1.1754944e-38, %v804_v7  ;;  %vm803_vm15 = vcmp.eq.f32.partialorder %v802_v0, 8.507059e+37 }
 0x244   : > { %v1284_v58 = vpop.eup %1283 }
 0x245   : > { %v777_v61 = vadd.f32 1.0, %v1284_v58 }
 0x246   : > { %v1286_v1 = vpop.eup %1285 }
 0x247   : > { %v1288_v13 = vpop.eup %1287  ;;  %v779_v6 = vmul.f32 %v1286_v1, %v775_v52  ;;  %1289 = vrcp.f32 %v777_v61  ;;  %vm784_vm8 = vweird.f32 %v1286_v1  ;;  %v819_v25 = vand.u32 2147483648, %v777_v61 }
 0x248   : > { %v794_v2 = vmul.f32 %v1288_v13, %v776_v53  ;;  %1291 = vtanh.f32 %v765_v5  ;;  %vm799_vm9 = vweird.f32 %v1288_v13  ;;  %vm785_vm12 = vmor %vm783_vm10, %vm784_vm8  ;;  %vm813_vm1 = vweird.f32 %v777_v61 }
 0x249   : > { %v780_v62 = vsub.f32 1.0, %v779_v6  ;;  %vm800_vm13 = vmor %vm798_vm11, %vm799_vm9  ;;  %v817_v26 = vand.u32 2147483647, %v777_v61  ;;  %v820_v28 = vor.u32 1.1754944e-38, %v819_v25 }
 0x24a   : > { %v795_v63 = vsub.f32 1.0, %v794_v2 }
 0x24b   : > { %v781_v8 = vmul.f32 %v1286_v1, %v780_v62  ;;  %vm818_vm3 = vcmp.eq.f32.partialorder %v817_v26, 8.507059e+37  ;;  %v1035_v26 = vld [vmem:[%s1488_s12 + $0x8] sm:$0xff] (%p1440_p6) }
 0x24c   : > { %v796_v10 = vmul.f32 %v1288_v13, %v795_v63 }
 0x24d   : > { %v1290_v11 = vpop.eup %1289  ;;  %v782_v12 = vadd.f32 %v1286_v1, %v781_v8 }
 0x24e   : > { %v809_v17 = vmul.f32 %v1290_v11, %v777_v61  ;;  %v797_v15 = vadd.f32 %v1288_v13, %v796_v10  ;;  %v1292_v4 = vpop.eup %1291  ;;  %vm814_vm0 = vweird.f32 %v1290_v11 }
 0x24f   : > { %v786_v9 = vsel %vm785_vm12, %v1286_v1, %v782_v12  ;;  %vm815_vm2 = vmor %vm813_vm1, %vm814_vm0 }
 0x250   : > { %v810_v56 = vsub.f32 1.0, %v809_v17  ;;  %v791_v59 = vsel %vm788_vm14, %v790_v20, %v786_v9  ;;  %v801_v54 = vsel %vm800_vm13, %v1288_v13, %v797_v15 }
 0x251   : > { %v806_v18 = vsel %vm803_vm15, %v805_v60, %v801_v54  ;;  %v825_v19 = vmul.f32 %v1292_v4, %v791_v59 }
 0x252   : > { %v811_v21 = vmul.f32 %v1290_v11, %v810_v56  ;;  %v824_v22 = vmul.f32 %v806_v18, %v2080_v30  ;;  %v1175_v30 = vld [vmem:[%s1486_s11 + $0x60] sm:$0xff]  ;;  %s1190_s11 = sshll.u32 (%p1440_p6), %s1349_s17, 3 }
 0x253   : > { %s996_s14 = sadd.s32 (%p1440_p6), %s1353_s18, %s1190_s11 }
 0x254   : > { %v2089_v23 = vadd.f32 %v825_v19, %v824_v22  ;;  %v812_v24 = vadd.f32 %v1290_v11, %v811_v21  ;;  %s1186_s24 = sshll.u32 (%p1440_p6), %s996_s14, 3 }
 0x255   : > { %s998_s28 = scalar_lea.vmem (%p1440_p6), %s2135_s4, %s1186_s24 }
 0x256   : > { %1293 = vtanh.f32 %v2089_v23  ;;  %v816_v27 = vsel %vm815_vm2, %v1290_v11, %v812_v24  ;;  %1036 = vst [vmem:[%s998_s28 + $0x10] sm:$0xff] (%p1440_p6), %v1035_v26 }
 0x257   : > { %v821_v31 = vsel %vm818_vm3, %v820_v28, %v816_v27 }
 0x25c   : > { %v1294_v29 = vpop.eup %1293 }
 0x25d   : > { %v828_v32 = vmul.f32 %v1294_v29, %v821_v31 }
 0x25f   : > { %1174 = vst [vmem:[%s1488_s12 + $0x10] sm:$0xff] %v828_v32  ;;  %852 = vmatmul.f32.vlgmr.msrb.gmra.mxu0 %v828_v32  ;;  %872 = vmatmul.f32.vlgmr.msrb.gmra.mxu1 %v828_v32 }
 0x260   : > { %892 = vmatmul.f32.vlgmr.msrb.gmra.mxu2 %v828_v32  ;;  %912 = vmatmul.f32.vlgmr.msrb.gmra.mxu3 %v828_v32 }
 0x266   : > { %v1037_v27 = vld [vmem:[%s1488_s12 + $0x10] sm:$0xff] (%p1440_p6) }
 0x267   : > { %1038 = vst [vmem:[%s998_s28 + $0x20] sm:$0xff] (%p1440_p6), %v1037_v27 }
 0x2dc   : > { %v853_v34 = vpop.f32.mrf.mxu0  ;;  %v873_v35 = vpop.f32.mrf.mxu1 }
 0x2dd   : > { %v916_v36 = vadd.f32 %v1175_v30, %v853_v34  ;;  %v917_v37 = vadd.f32 %v1176_v33, %v873_v35 }
 0x2df   : > { %v1179_v38 = vmul.f32 -1.442695, %v916_v36  ;;  %v1180_v16 = vmul.f32 -1.442695, %v917_v37 }
 0x2e1   : > { %1295 = vpow2.f32 %v1179_v38 }
 0x2e2   : > { %1297 = vpow2.f32 %v1180_v16 }
 0x2e3   : > { %v893_v40 = vpop.f32.mrf.mxu2  ;;  %v913_v48 = vpop.f32.mrf.mxu3 }
 0x2e4   : > { %v918_v41 = vadd.f32 %v1177_v39, %v893_v40  ;;  %v919_v52 = vadd.f32 %v1178_v47, %v913_v48 }
 0x2e6   : > { %v1181_v42 = vmul.f32 -1.442695, %v918_v41 }
 0x2e7   : > { %v1296_v43 = vpop.eup %1295 }
 0x2e8   : > { %v1298_v44 = vpop.eup %1297  ;;  %v929_v45 = vadd.f32 1.0, %v1296_v43  ;;  %1299 = vpow2.f32 %v1181_v42 }
 0x2e9   : > { %v930_v46 = vadd.f32 1.0, %v1298_v44 }
 0x2ea   : > { %1301 = vrcp.f32 %v929_v45  ;;  %v943_v1 = vand.u32 2147483648, %v929_v45  ;;  %v941_v6 = vand.u32 2147483647, %v929_v45  ;;  %vm937_vm6 = vweird.f32 %v929_v45 }
 0x2eb   : > { %1303 = vrcp.f32 %v930_v46  ;;  %v958_v5 = vand.u32 2147483648, %v930_v46  ;;  %v956_v62 = vand.u32 2147483647, %v930_v46  ;;  %vm952_vm7 = vweird.f32 %v930_v46 }
 0x2ec   : > { %v944_v8 = vor.u32 1.1754944e-38, %v943_v1  ;;  %vm942_vm10 = vcmp.eq.f32.partialorder %v941_v6, 8.507059e+37 }
 0x2ed   : > { %v959_v10 = vor.u32 1.1754944e-38, %v958_v5  ;;  %vm957_vm11 = vcmp.eq.f32.partialorder %v956_v62, 8.507059e+37 }
 0x2ee   : > { %v1300_v49 = vpop.eup %1299 }
 0x2ef   : > { %v931_v50 = vadd.f32 1.0, %v1300_v49 }
 0x2f0   : > { %v1302_v51 = vpop.eup %1301 }
 0x2f1   : > { %v1304_v53 = vpop.eup %1303  ;;  %v933_v55 = vmul.f32 %v1302_v51, %v929_v45  ;;  %1305 = vrcp.f32 %v931_v50  ;;  %vm938_vm4 = vweird.f32 %v1302_v51  ;;  %v973_v54 = vand.u32 2147483648, %v931_v50 }
 0x2f2   : > { %v948_v57 = vmul.f32 %v1304_v53, %v930_v46  ;;  %1307 = vtanh.f32 %v919_v52  ;;  %vm953_vm5 = vweird.f32 %v1304_v53  ;;  %vm939_vm8 = vmor %vm937_vm6, %vm938_vm4  ;;  %vm967_vm13 = vweird.f32 %v931_v50 }
 0x2f3   : > { %v934_v58 = vsub.f32 1.0, %v933_v55  ;;  %vm954_vm9 = vmor %vm952_vm7, %vm953_vm5  ;;  %v971_v18 = vand.u32 2147483647, %v931_v50  ;;  %v974_v21 = vor.u32 1.1754944e-38, %v973_v54 }
 0x2f4   : > { %v949_v61 = vsub.f32 1.0, %v948_v57 }
 0x2f5   : > { %v935_v13 = vmul.f32 %v1302_v51, %v934_v58  ;;  %vm972_vm15 = vcmp.eq.f32.partialorder %v971_v18, 8.507059e+37 }
 0x2f6   : > { %v950_v2 = vmul.f32 %v1304_v53, %v949_v61 }
 0x2f7   : > { %v1306_v63 = vpop.eup %1305  ;;  %v936_v14 = vadd.f32 %v1302_v51, %v935_v13 }
 0x2f8   : > { %v963_v7 = vmul.f32 %v1306_v63, %v931_v50  ;;  %v951_v3 = vadd.f32 %v1304_v53, %v950_v2  ;;  %v1308_v11 = vpop.eup %1307  ;;  %vm968_vm12 = vweird.f32 %v1306_v63 }
 0x2f9   : > { %v940_v0 = vsel %vm939_vm8, %v1302_v51, %v936_v14  ;;  %vm969_vm14 = vmor %vm967_vm13, %vm968_vm12 }
 0x2fa   : > { %v964_v12 = vsub.f32 1.0, %v963_v7  ;;  %v945_v17 = vsel %vm942_vm10, %v944_v8, %v940_v0  ;;  %v955_v20 = vsel %vm954_vm9, %v1304_v53, %v951_v3 }
 0x2fb   : > { %v960_v15 = vsel %vm957_vm11, %v959_v10, %v955_v20  ;;  %v979_v60 = vmul.f32 %v1308_v11, %v945_v17 }
 0x2fc   : > { %v965_v9 = vmul.f32 %v1306_v63, %v964_v12  ;;  %v978_v4 = vmul.f32 %v960_v15, %v2089_v23  ;;  %v1033_v23 = vld [vmem:[%s1488_s12] sm:$0xff] (%p1440_p6) }
 0x2fd   : > { %1034 = vst [vmem:[%s998_s28] sm:$0xff] (%p1440_p6), %v1033_v23 }
 0x2fe   : > { %v980_v56 = vadd.f32 %v979_v60, %v978_v4  ;;  %v966_v59 = vadd.f32 %v1306_v63, %v965_v9 }
 0x300   : > { %1309 = vtanh.f32 %v980_v56  ;;  %986 = vst [vmem:[#allocation3] sm:$0xff] %v980_v56  ;;  %v970_v19 = vsel %vm969_vm14, %v1306_v63, %v966_v59 }
 0x301   : > { %v975_v24 = vsel %vm972_vm15, %v974_v21, %v970_v19 }
 0x306   : > { %v1310_v22 = vpop.eup %1309  ;;  %993 = sbr.rel (!%p1440_p6) target bundleno = 786 (0x312), region = 67 }
 0x307   : > { %v982_v25 = vmul.f32 %v1310_v22, %v975_v24 }
 0x309   : > { %1182 = vst [vmem:[%s1488_s12 + $0x18] sm:$0xff] %v982_v25 }
 0x30a   : > { %985 = vst [vmem:[#allocation2] sm:$0xff] %v982_v25 }
 0x310   : > { %v1039_v28 = vld [vmem:[%s1488_s12 + $0x18] sm:$0xff] }
 0x311   : > { %1040 = vst [vmem:[%s998_s28 + $0x30] sm:$0xff] %v1039_v28 }
 0x312 PF: > { %s14_s21 = sadd.s32 1, %s1365_s21   ;;  %s2219_s15 = smov %s1345_s16 }
 0x313   : > { %p11_p0 = scmp.ge.s32.totalorder %s14_s21, 6   ;;  %s2220_s16 = smov %s1448_s30 }
 0x314   : > { %s2221_s17 = smov %s1357_s19  ;;  %s2222_s18 = smov %s1361_s20 }
 0x315   : > { %s2223_s19 = smov %s2226_s22  ;;  %s2224_s20 = smov %s2230_s23 }
 0x316   :  { %13 = sbr.rel (!%p11_p0) target bundleno = 4 (0x4), region = 148 }

// kernel: zforcing_forward.3
= control target key start
LH: loop header
LB: loop body
LE: loop exit
PB: predicated region body
PF: predicated region fallthrough
CT: control target
= control target key end

     0   :  { %s8689_s0 = inlined_call_operand.vmem [shape: f32[8,16,512], index: 0, kind: input, shape index: {}]   ;;  %s8690_s1 = inlined_call_operand.vmem [shape: f32[8,16,128], index: 1, kind: input, shape index: {}]   ;;  %s8691_s2 = inlined_call_operand.vmem [shape: f32[8,16,64], index: 2, kind: input, shape index: {}]   ;;  %s8692_s3 = inlined_call_operand.vmem [shape: f32[8,16,1], index: 3, kind: input, shape index: {}]   ;;  %s8693_s4 = inlined_call_operand.vmem [shape: f32[16,128], index: 4, kind: input, shape index: {}, may-alias: {4,5}]   ;;  %s8694_s5 = inlined_call_operand.vmem [shape: f32[16,128], index: 5, kind: input, shape index: {}, may-alias: {4,5}]   ;;  %s8695_s6 = inlined_call_operand.vmem [shape: f32[128,896], index: 6, kind: input, shape index: {}]   ;;  %s8696_s7 = inlined_call_operand.vmem [shape: f32[1,128], index: 7, kind: input, shape index: {}]   ;;  %s8697_s8 = inlined_call_operand.vmem [shape: f32[128,128], index: 8, kind: input, shape index: {}]   ;;  %s8698_s9 = inlined_call_operand.vmem [shape: f32[1,128], index: 9, kind: input, shape index: {}]   ;;  %s8699_s10 = inlined_call_operand.vmem [shape: f32[128,128], index: 10, kind: input, shape index: {}]   ;;  %s8700_s11 = inlined_call_operand.vmem [shape: f32[1,128], index: 11, kind: input, shape index: {}]   ;;  %s8701_s12 = inlined_call_operand.vmem [shape: f32[128,128], index: 12, kind: input, shape index: {}]   ;;  %s8702_s13 = inlined_call_operand.vmem [shape: f32[1,128], index: 13, kind: input, shape index: {}]   ;;  %s8703_s14 = inlined_call_operand.vmem [shape: f32[64,256], index: 14, kind: input, shape index: {}]   ;;  %s8704_s15 = inlined_call_operand.vmem [shape: f32[1,128], index: 15, kind: input, shape index: {}]   ;;  %s8705_s16 = inlined_call_operand.vmem [shape: f32[128,256], index: 16, kind: input, shape index: {}]   ;;  %s8706_s17 = inlined_call_operand.vmem [shape: f32[1,256], index: 17, kind: input, shape index: {}]   ;;  %s8707_s18 = inlined_call_operand.vmem [shape: f32[1,128], index: 18, kind: input, shape index: {}]   ;;  %s8708_s19 = inlined_call_operand.vmem [shape: f32[128,512], index: 19, kind: input, shape index: {}]   ;;  %s8709_s20 = inlined_call_operand.vmem [shape: f32[1,512], index: 20, kind: input, shape index: {}]   ;;  %s8710_s21 = inlined_call_operand.vmem [shape: f32[8,16,128], index: 21, kind: output, shape index: {0}]   ;;  %s8711_s22 = inlined_call_operand.vmem [shape: f32[16,1], index: 22, kind: output, shape index: {1}]   ;;  %s8712_s23 = inlined_call_operand.vmem [shape: f32[16,1], index: 23, kind: output, shape index: {2}]  }
   0x1   :  { %9003 = sst [smem:[#allocation166_spill]] %s8689_s0 }
   0x2   :  { %9004 = sst [smem:[#allocation167_spill]] %s8690_s1 }
   0x3   :  { %9005 = sst [smem:[#allocation168_spill]] %s8691_s2 }
   0x4   :  { %9006 = sst [smem:[#allocation169_spill]] %s8692_s3 }
   0x5   :  { %9007 = sst [smem:[#allocation170_spill]] %s8693_s4 }
   0x6   :  { %9008 = sst [smem:[#allocation171_spill]] %s8694_s5 }
   0x7   :  { %9009 = sst [smem:[#allocation172_spill]] %s8695_s6 }
   0x8   :  { %9010 = sst [smem:[#allocation173_spill]] %s8696_s7 }
   0x9   :  { %9011 = sst [smem:[#allocation174_spill]] %s8699_s10 }
   0xa   :  { %9012 = sst [smem:[#allocation175_spill]] %s8702_s13 }
   0xb   :  { %9013 = sst [smem:[#allocation176_spill]] %s8703_s14 }
   0xc   :  { %9014 = sst [smem:[#allocation177_spill]] %s8704_s15 }
   0xd   :  { %9015 = sst [smem:[#allocation178_spill]] %s8705_s16 }
   0xe   :  { %9016 = sst [smem:[#allocation179_spill]] %s8706_s17 }
   0xf   :  { %9017 = sst [smem:[#allocation180_spill]] %s8707_s18 }
  0x10   :  { %9018 = sst [smem:[#allocation181_spill]] %s8708_s19 }
  0x11   :  { %9019 = sst [smem:[#allocation182_spill]] %s8709_s20 }
  0x12   :  { %9020 = sst [smem:[#allocation183_spill]] %s8710_s21 }
  0x13   :  { %9021 = sst [smem:[#allocation184_spill]] %s8711_s22 }
  0x14   :  { %9022 = sst [smem:[#allocation185_spill]] %s8712_s23 }
  0x15   :  { %s4636_s4 = smov 0   ;;  %s4638_s30 = smov 0  }
  0x16   :  { %s4640_s24 = smov 0   ;;  %s4642_s25 = smov 0  }
  0x17   :  { %s4644_s5 = smov 0   ;;  %s4646_s1 = smov 0  }
  0x18   :  { %s4648_s26 = smov 0   ;;  %s4650_s2 = smov 0  }
  0x19   :  { %s4652_s6 = smov 0  }
  0x1a LB: > { %9023 = sst [smem:[#allocation10_spill]] %s4485_s30  ;;  %s3755_s27 = sadd.s32 4294967295, %s4513_s6   ;;  %s4513_s6 = sphi %s4652_s6, %s34_s6   ;;  %s4509_s2 = sphi %s4650_s2, %s9622_s2   ;;  %s4505_s26 = sphi %s4648_s26, %s9621_s26   ;;  %s4501_s1 = sphi %s4646_s1, %s9620_s1   ;;  %s4497_s5 = sphi %s4644_s5, %s9619_s5   ;;  %s4493_s25 = sphi %s4642_s25, %s9618_s25   ;;  %s4489_s24 = sphi %s4640_s24, %s9617_s24   ;;  %s4485_s30 = sphi %s4638_s30, %s9616_s30   ;;  %s4481_s4 = sphi %s4636_s4, %s9615_s4  }
  0x1b   : > { %9024 = sst [smem:[#allocation11_spill]] %s4493_s25  ;;  %s43_s7 = sadd.s32 1, %s4505_s26 }
  0x1c   : > { %9025 = sst [smem:[#allocation12_spill]] %s4505_s26  ;;  %p44_p0 = scmp.ge.s32.totalorder %s43_s7, 2 }
  0x1d   : > { %9026 = sst [smem:[#allocation13_spill]] %s4509_s2  ;;  %s46_s28 = sadd.s32 1, %s4509_s2 }
  0x1e   : > { %9027 = sst [smem:[#allocation14_spill]] %s4513_s6  ;;  %s55_s29 = sadd.s32 1, %s4493_s25 }
  0x1f   : > { %p62_p1 = scmp.ne.s32.totalorder %s4493_s25, %s4489_s24  ;;  %s9624_s7 = smov (%p44_p0, %s43_s7), 0 }
  0x20   : > { %9028 = sst [smem:[#allocation15_spill]] %s9624_s7  ;;  %s9626_s28 = smov (!%p44_p0, %s46_s28), %s4509_s2 }
  0x21   : > { %s50_s3 = ssub.s32 %s4505_s26, %s9624_s7  ;;  %p63_p2 = scmp.eq.s32.totalorder %s4513_s6, 0 }
  0x22   : > { %p48_p3 = scmp.ge.s32.totalorder %s9626_s28, 2  ;;  %s8722_s0 = ssub.s32 1, %s4505_s26 }
  0x23   : > { %p4699_p4 = por %p63_p2, %p62_p1  ;;  %s79_s17 = ssub.s32 1, %s9624_s7 }
  0x24   : > { %s9628_s28 = smov (%p48_p3, %s9626_s28), 0  ;;  %s80_s20 = ssub.s32 %s8722_s0, %s79_s17 }
  0x25   : > { %9030 = sst [smem:[#allocation16_spill]] %s9628_s28  ;;  %s85_s15 = sadd.s32 1, %s4485_s30 }
  0x26   : > { %s51_s18 = ssub.s32 %s4509_s2, %s9628_s28  ;;  %p92_p5 = scmp.ne.s32.totalorder %s4485_s30, %s4481_s4 }
  0x27   : > { %s52_s19 = sor.u32 %s51_s18, %s50_s3  ;;  %s82_s16 = sor.u32 %s80_s20, %s51_s18 }
  0x28   : > { %p53_p6 = scmp.eq.s32.totalorder %s52_s19, 0  ;;  %p83_p7 = scmp.eq.s32.totalorder %s82_s16, 0 }
  0x29   : > { %p4715_p8 = por %p92_p5, %p63_p2  ;;  %p547_p9 = scmp.eq.s32.totalorder %s3755_s27, 3 }
  0x2a   : > { %s4720_s13 = scalar_select %p53_p6, %s4493_s25, %s55_s29  }
  0x2b   : > { %s4723_s7 = scalar_select %p83_p7, %s4485_s30, %s85_s15  }
  0x2c   : > { %9032 = sst [smem:[#allocation17_spill]] %s4720_s13  ;;  %p4728_p10 = por %p547_p9, %p62_p1 }
  0x2d   : > { %9033 = sst [smem:[#allocation18_spill]] %s4723_s7  ;;  %p3758_p11 = scmp.ge.s32.totalorder %s4513_s6, 4 }
  0x2e   : > { %s9034_s17 = scalar_select %p4728_p10, 1, 0 }
  0x2f   : > { %666 = sbr.rel (%p3758_p11) target bundleno = 120 (0x78), region = 76 }
  0x30   : > { %9035 = sst [smem:[#allocation19_spill]] %s9034_s17 }
  0x34   : > { %669 = sbr.rel (!%p4699_p4) target bundleno = 78 (0x4e), region = 80  ;;  %s671_s16 = sand.u32 (%p4699_p4), 1, %s4493_s25  }
  0x35   : > { %s3761_s18 = sshll.u32 (%p4699_p4), %s4509_s2, 2  ;;  %s3759_s19 = sshll.u32 (%p4699_p4), %s671_s16, 7 }
  0x36   : > { %s3871_s20 = sshll.u32 (%p4699_p4), %s4505_s26, 5  ;;  %s9036_s0 = sld [smem:[#allocation166_spill]] (%p4699_p4) }
  0x37   : > { %s677_s15 = sadd.s32 (%p4699_p4), %s3871_s20, %s3761_s18  ;;  %s673_s16 = scalar_lea.vmem (%p4699_p4), [#allocation5], %s3759_s19 }
  0x38   : > { %s3763_s27 = sshll.u32 (%p4699_p4), %s677_s15, 3 }
  0x3c   : > { %s4741_s28 = scalar_lea.vmem %s9036_s0, %s3763_s27 }
  0x3d   : > { %v692_v0 = vld [vmem:[%s4741_s28] sm:$0xff]  ;;  %v694_v1 = vld [vmem:[%s4741_s28 + $0x8] sm:$0xff]  ;;  %v696_v2 = vld [vmem:[%s4741_s28 + $0x10] sm:$0xff] }
  0x3e   : > { %693 = vst [vmem:[%s673_s16] sm:$0xff] %v692_v0  ;;  %v698_v3 = vld [vmem:[%s4741_s28 + $0x18] sm:$0xff]  ;;  %v700_v4 = vld [vmem:[%s4741_s28 + $0x40] sm:$0xff]  ;;  %v702_v5 = vld [vmem:[%s4741_s28 + $0x48] sm:$0xff] }
  0x3f   : > { %695 = vst [vmem:[%s673_s16 + $0x8] sm:$0xff] %v694_v1  ;;  %v704_v6 = vld [vmem:[%s4741_s28 + $0x50] sm:$0xff]  ;;  %v706_v7 = vld [vmem:[%s4741_s28 + $0x58] sm:$0xff]  ;;  %v708_v8 = vld [vmem:[%s4741_s28 + $0x80] sm:$0xff] }
  0x40   : > { %697 = vst [vmem:[%s673_s16 + $0x10] sm:$0xff] %v696_v2  ;;  %v710_v9 = vld [vmem:[%s4741_s28 + $0x88] sm:$0xff]  ;;  %v712_v10 = vld [vmem:[%s4741_s28 + $0x90] sm:$0xff]  ;;  %v714_v11 = vld [vmem:[%s4741_s28 + $0x98] sm:$0xff] }
  0x41   : > { %699 = vst [vmem:[%s673_s16 + $0x18] sm:$0xff] %v698_v3  ;;  %v716_v12 = vld [vmem:[%s4741_s28 + $0xc0] sm:$0xff]  ;;  %v718_v13 = vld [vmem:[%s4741_s28 + $0xc8] sm:$0xff]  ;;  %v720_v14 = vld [vmem:[%s4741_s28 + $0xd0] sm:$0xff] }
  0x42   : > { %701 = vst [vmem:[%s673_s16 + $0x20] sm:$0xff] %v700_v4  ;;  %v722_v15 = vld [vmem:[%s4741_s28 + $0xd8] sm:$0xff] }
  0x43   : > { %703 = vst [vmem:[%s673_s16 + $0x28] sm:$0xff] %v702_v5 }
  0x44   : > { %705 = vst [vmem:[%s673_s16 + $0x30] sm:$0xff] %v704_v6 }
  0x45   : > { %707 = vst [vmem:[%s673_s16 + $0x38] sm:$0xff] %v706_v7 }
  0x46   : > { %709 = vst [vmem:[%s673_s16 + $0x40] sm:$0xff] %v708_v8 }
  0x47   : > { %711 = vst [vmem:[%s673_s16 + $0x48] sm:$0xff] %v710_v9 }
  0x48   : > { %713 = vst [vmem:[%s673_s16 + $0x50] sm:$0xff] %v712_v10 }
  0x49   : > { %715 = vst [vmem:[%s673_s16 + $0x58] sm:$0xff] %v714_v11 }
  0x4a   : > { %717 = vst [vmem:[%s673_s16 + $0x60] sm:$0xff] %v716_v12 }
  0x4b   : > { %719 = vst [vmem:[%s673_s16 + $0x68] sm:$0xff] %v718_v13 }
  0x4c   : > { %721 = vst [vmem:[%s673_s16 + $0x70] sm:$0xff] %v720_v14 }
  0x4d   : > { %723 = vst [vmem:[%s673_s16 + $0x78] sm:$0xff] %v722_v15 }
  0x4e PF: > { %729 = sbr.rel (!%p4715_p8) target bundleno = 92 (0x5c), region = 103  ;;  %s731_s0 = sand.u32 (%p4715_p8), 1, %s4485_s30  }
  0x4f   : > { %s9037_s18 = ssub.s32 (%p4715_p8), 1, %s4505_s26  ;;  %s3764_s20 = sshll.u32 (%p4715_p8), %s731_s0, 5 }
  0x50   : > { %s3872_s19 = sshll.u32 (%p4715_p8), %s9037_s18, 3  ;;  %s9038_s13 = sld [smem:[#allocation167_spill]] (%p4715_p8) }
  0x51   : > { %s737_s15 = sadd.s32 (%p4715_p8), %s4509_s2, %s3872_s19  ;;  %s733_s16 = scalar_lea.vmem (%p4715_p8), [#allocation6], %s3764_s20 }
  0x52   : > { %s3767_s27 = sshll.u32 (%p4715_p8), %s737_s15, 3 }
  0x56   : > { %s739_s28 = scalar_lea.vmem %s9038_s13, %s3767_s27 }
  0x57   : > { %v774_v16 = vld [vmem:[%s739_s28] sm:$0xff]  ;;  %v776_v17 = vld [vmem:[%s739_s28 + $0x10] sm:$0xff] }
  0x58   : > { %v778_v18 = vld [vmem:[%s739_s28 + $0x20] sm:$0xff]  ;;  %775 = vst [vmem:[%s733_s16] sm:$0xff] %v774_v16  ;;  %v780_v19 = vld [vmem:[%s739_s28 + $0x30] sm:$0xff] }
  0x59   : > { %777 = vst [vmem:[%s733_s16 + $0x8] sm:$0xff] %v776_v17 }
  0x5a   : > { %779 = vst [vmem:[%s733_s16 + $0x10] sm:$0xff] %v778_v18 }
  0x5b   : > { %781 = vst [vmem:[%s733_s16 + $0x18] sm:$0xff] %v780_v19 }
  0x5c PF: > { %787 = sbr.rel (!%p4699_p4) target bundleno = 106 (0x6a), region = 141  ;;  %s789_s14 = sand.u32 (%p4699_p4), 1, %s4493_s25  }
  0x5d   : > { %s3873_s0 = sshll.u32 (%p4699_p4), %s4505_s26, 3  ;;  %s3768_s18 = sshll.u32 (%p4699_p4), %s789_s14, 5 }
  0x5e   : > { %s794_s13 = sadd.s32 (%p4699_p4), %s4509_s2, %s3873_s0  ;;  %s9039_s20 = sld [smem:[#allocation168_spill]] (%p4699_p4) }
  0x5f   : > { %s3771_s19 = sshll.u32 (%p4699_p4), %s794_s13, 3  ;;  %s791_s3 = scalar_lea.vmem (%p4699_p4), [#allocation7], %s3768_s18 }
  0x64   : > { %s796_s29 = scalar_lea.vmem %s9039_s20, %s3771_s19 }
  0x65   : > { %v831_v20 = vld [vmem:[%s796_s29] sm:$0xff]  ;;  %v833_v21 = vld [vmem:[%s796_s29 + $0x10] sm:$0xff] }
  0x66   : > { %v835_v22 = vld [vmem:[%s796_s29 + $0x20] sm:$0xff]  ;;  %832 = vst [vmem:[%s791_s3] sm:$0xff] %v831_v20  ;;  %v837_v23 = vld [vmem:[%s796_s29 + $0x30] sm:$0xff] }
  0x67   : > { %834 = vst [vmem:[%s791_s3 + $0x8] sm:$0xff] %v833_v21 }
  0x68   : > { %836 = vst [vmem:[%s791_s3 + $0x10] sm:$0xff] %v835_v22 }
  0x69   : > { %838 = vst [vmem:[%s791_s3 + $0x18] sm:$0xff] %v837_v23 }
  0x6a PF: > { %844 = sbr.rel (!%p4699_p4) target bundleno = 120 (0x78), region = 179  ;;  %s846_s28 = sand.u32 (%p4699_p4), 1, %s4493_s25  }
  0x6b   : > { %s3874_s16 = sshll.u32 (%p4699_p4), %s4505_s26, 3  ;;  %s3772_s14 = sshll.u32 (%p4699_p4), %s846_s28, 5 }
  0x6c   : > { %s851_s0 = sadd.s32 (%p4699_p4), %s4509_s2, %s3874_s16  ;;  %s9040_s18 = sld [smem:[#allocation169_spill]] (%p4699_p4) }
  0x6d   : > { %s3775_s13 = sshll.u32 (%p4699_p4), %s851_s0, 3  ;;  %s848_s20 = scalar_lea.vmem (%p4699_p4), [#allocation8], %s3772_s14 }
  0x72   : > { %s853_s27 = scalar_lea.vmem %s9040_s18, %s3775_s13 }
  0x73   : > { %v888_v24 = vld [vmem:[%s853_s27] sm:$0xff]  ;;  %v890_v25 = vld [vmem:[%s853_s27 + $0x10] sm:$0xff] }
  0x74   : > { %v892_v26 = vld [vmem:[%s853_s27 + $0x20] sm:$0xff]  ;;  %889 = vst [vmem:[%s848_s20] sm:$0xff] %v888_v24  ;;  %v894_v27 = vld [vmem:[%s853_s27 + $0x30] sm:$0xff] }
  0x75   : > { %891 = vst [vmem:[%s848_s20 + $0x8] sm:$0xff] %v890_v25 }
  0x76   : > { %893 = vst [vmem:[%s848_s20 + $0x10] sm:$0xff] %v892_v26 }
  0x77   : > { %895 = vst [vmem:[%s848_s20 + $0x18] sm:$0xff] %v894_v27 }
  0x78 PF: > { %p3776_p12 = scmp.ge.s32.totalorder %s4513_s6, 1  ;;  %p914_p13 = scmp.lt.s32.totalorder %s4513_s6, 5 }
  0x7a   : > { %p915_p0 = pnand %p3776_p12, %p914_p13 }
  0x7c   : > { %918 = sbr.rel (%p915_p0) target bundleno = 3164 (0xc5c), region = 225 }
  0x81   : > { %s921_s21 = sand.u32 1, %s4489_s24   ;;  %s928_s29 = sand.u32 1, %s4481_s4  }
  0x82   : > { %s3777_s3 = sshll.u32 %s921_s21, 7  ;;  %s3778_s28 = sshll.u32 %s928_s29, 5 }
  0x83   : > { %s3779_s16 = sshll.u32 %s921_s21, 5  ;;  %p1037_p1 = scmp.lt.s32.totalorder %s4501_s1, 1 }
  0x84   : > { %s9041_s15 = sld [smem:[#allocation170_spill]]  ;;  %s4806_s29 = scalar_lea.vmem [#allocation5], %s3777_s3 }
  0x85   : > { %s1038_s14 = scalar_select %p1037_p1, %s4501_s1, 1 }
  0x86   : > { %s9042_s2 = sld [smem:[#allocation171_spill]]  ;;  %s4810_s13 = scalar_lea.vmem [#allocation7], %s3779_s16 }
  0x87   : > { %s3782_s0 = sshll.u32 %s1038_s14, 3  ;;  %s9043_s22 = sld [smem:[#allocation184_spill]] }
  0x88   : > { %s9044_s23 = sld [smem:[#allocation185_spill]]  ;;  %s4808_s14 = scalar_lea.vmem [#allocation6], %s3778_s28 }
  0x89   : > { %s4812_s19 = scalar_lea.vmem [#allocation8], %s3779_s16  ;;  %p3786_p2 = scmp.ne.s32.totalorder %s4497_s5, 0 }
  0x8a   : > { %s1040_s18 = scalar_lea.vmem %s9041_s15, %s3782_s0  ;;  %s4814_s15 = scalar_lea.vmem [#allocation9], %s3779_s16 }
  0x8b   : > { %1057 = sbr.rel (%p3786_p2) target bundleno = 147 (0x93), region = 245 }
  0x8c   : > { %s1044_s26 = scalar_lea.vmem %s9042_s2, %s3782_s0 }
  0x8d   : > { %s4799_s30 = scalar_lea.vmem %s9043_s22, %s3782_s0 }
  0x8e   : > { %s4804_s21 = scalar_lea.vmem %s9044_s23, %s3782_s0 }
  0x90   : > { %v1058_v28 = vld [vmem:[%s1040_s18] sm:$0xff] }
  0x91   : > { %v1060_v29 = vld [vmem:[%s1044_s26] sm:$0xff]  ;;  %1059 = vst [vmem:[#allocation2] sm:$0xff] %v1058_v28 }
  0x92   : > { %1061 = vst [vmem:[#allocation3] sm:$0xff] %v1060_v29 }
  0x93 PF: > { %s9045_s10 = sld [smem:[#allocation174_spill]]  ;;  %v1326_v10 = vld [vmem:[%s4808_s14] sm:$0xff]  ;;  %v1327_v23 = vld [vmem:[%s4808_s14 + $0x8] sm:$0xff]  ;;  %s8730_s25 = smov 64   ;;  %vm1625_vm2 = vcmask 523264  }
  0x94   : > { %s9046_s28 = sld [smem:[#allocation172_spill]] }
  0x95   : > { %s9047_s27 = sld [smem:[#allocation173_spill]] }
  0x96   : > { %s9051_s2 = sld [smem:[#allocation175_spill]] }
  0x97   : > { %s9063_s18 = sld [smem:[#allocation178_spill]] }
  0x98   : > { %v4952_v11 = vld [vmem:[#allocation2] sm:$0xff]  ;;  %s9170_s22 = sld [smem:[#allocation180_spill]] }
  0x99   : > { %v1345_v30 = vld [vmem:[%s9045_s10 + $0x78] sm:$0xff]  ;;  %v1344_v32 = vld [vmem:[%s9045_s10 + $0x70] sm:$0xff]  ;;  %v1343_v34 = vld [vmem:[%s9045_s10 + $0x68] sm:$0xff]  ;;  %s9174_s24 = sld [smem:[#allocation177_spill]] }
  0x9a   : > { %v1167_v31 = vld [vmem:[%s9046_s28 + $0x348] sm:$0xff]  ;;  %1346 = vmatpush.msra.mxu0 %v1345_v30  ;;  %v1160_v33 = vld [vmem:[%s9046_s28 + $0x310] sm:$0xff]  ;;  %v1153_v35 = vld [vmem:[%s9046_s28 + $0x2d8] sm:$0xff]  ;;  %s9197_s23 = sld [smem:[#allocation182_spill]] }
  0x9b   : > { %1391 = vmatpush.msra.mxu1 %v1167_v31  ;;  %v1342_v36 = vld [vmem:[%s9045_s10 + $0x60] sm:$0xff]  ;;  %v1341_v38 = vld [vmem:[%s9045_s10 + $0x58] sm:$0xff]  ;;  %v1139_v39 = vld [vmem:[%s9046_s28 + $0x268] sm:$0xff]  ;;  %s9200_s26 = sld [smem:[#allocation179_spill]] }
  0x9c   : > { %1347 = vmatpush.msra.mxu0 %v1344_v32  ;;  %v1146_v37 = vld [vmem:[%s9046_s28 + $0x2a0] sm:$0xff]  ;;  %v1168_v40 = vld [vmem:[%s9046_s28 + $0x350] sm:$0xff]  ;;  %v1161_v41 = vld [vmem:[%s9046_s28 + $0x318] sm:$0xff]  ;;  %s9052_s7 = smov %s9051_s2 }
  0x9d   : > { %1392 = vmatpush.msra.mxu1 %v1160_v33  ;;  %v1340_v42 = vld [vmem:[%s9045_s10 + $0x50] sm:$0xff]  ;;  %1411 = vmatpush.msra.mxu2 %v1168_v40  ;;  %v1154_v44 = vld [vmem:[%s9046_s28 + $0x2e0] sm:$0xff]  ;;  %v1339_v45 = vld [vmem:[%s9045_s10 + $0x48] sm:$0xff] }
  0x9e   : > { %1348 = vmatpush.msra.mxu0 %v1343_v34  ;;  %v1132_v43 = vld [vmem:[%s9046_s28 + $0x230] sm:$0xff]  ;;  %v1125_v46 = vld [vmem:[%s9046_s28 + $0x1f8] sm:$0xff]  ;;  %v1147_v47 = vld [vmem:[%s9046_s28 + $0x2a8] sm:$0xff] }
  0x9f   : > { %1393 = vmatpush.msra.mxu1 %v1153_v35  ;;  %1412 = vmatpush.msra.mxu2 %v1161_v41  ;;  %v1338_v48 = vld [vmem:[%s9045_s10 + $0x40] sm:$0xff]  ;;  %v1140_v50 = vld [vmem:[%s9046_s28 + $0x270] sm:$0xff]  ;;  %v1337_v51 = vld [vmem:[%s9045_s10 + $0x38] sm:$0xff]  ;;  %s9175_s17 = smov %s9174_s24 }
  0xa0   : > { %1349 = vmatpush.msra.mxu0 %v1342_v36  ;;  %v1118_v49 = vld [vmem:[%s9046_s28 + $0x1c0] sm:$0xff]  ;;  %v1111_v52 = vld [vmem:[%s9046_s28 + $0x188] sm:$0xff]  ;;  %v1133_v53 = vld [vmem:[%s9046_s28 + $0x238] sm:$0xff] }
  0xa1   : > { %1394 = vmatpush.msra.mxu1 %v1146_v37  ;;  %1413 = vmatpush.msra.mxu2 %v1154_v44  ;;  %v1336_v54 = vld [vmem:[%s9045_s10 + $0x30] sm:$0xff]  ;;  %v1335_v56 = vld [vmem:[%s9045_s10 + $0x28] sm:$0xff]  ;;  %v1097_v57 = vld [vmem:[%s9046_s28 + $0x118] sm:$0xff] }
  0xa2   : > { %1350 = vmatpush.msra.mxu0 %v1341_v38  ;;  %v1104_v55 = vld [vmem:[%s9046_s28 + $0x150] sm:$0xff]  ;;  %v1126_v58 = vld [vmem:[%s9046_s28 + $0x200] sm:$0xff]  ;;  %v1119_v59 = vld [vmem:[%s9046_s28 + $0x1c8] sm:$0xff] }
  0xa3   : > { %1395 = vmatpush.msra.mxu1 %v1139_v39  ;;  %1414 = vmatpush.msra.mxu2 %v1147_v47  ;;  %v1334_v60 = vld [vmem:[%s9045_s10 + $0x20] sm:$0xff]  ;;  %v1112_v62 = vld [vmem:[%s9046_s28 + $0x190] sm:$0xff]  ;;  %v1333_v63 = vld [vmem:[%s9045_s10 + $0x18] sm:$0xff] }
  0xa4   : > { %1351 = vmatpush.msra.mxu0 %v1340_v42  ;;  %v1090_v61 = vld [vmem:[%s9046_s28 + $0xe0] sm:$0xff]  ;;  %v1083_v0 = vld [vmem:[%s9046_s28 + $0xa8] sm:$0xff]  ;;  %v1105_v1 = vld [vmem:[%s9046_s28 + $0x158] sm:$0xff] }
  0xa5   : > { %1396 = vmatpush.msra.mxu1 %v1132_v43  ;;  %1415 = vmatpush.msra.mxu2 %v1140_v50  ;;  %v1332_v2 = vld [vmem:[%s9045_s10 + $0x10] sm:$0xff]  ;;  %v1098_v4 = vld [vmem:[%s9046_s28 + $0x120] sm:$0xff]  ;;  %v1331_v5 = vld [vmem:[%s9045_s10 + $0x8] sm:$0xff] }
  0xa6   : > { %1352 = vmatpush.msra.mxu0 %v1339_v45  ;;  %v1076_v3 = vld [vmem:[%s9046_s28 + $0x70] sm:$0xff]  ;;  %v1069_v6 = vld [vmem:[%s9046_s28 + $0x38] sm:$0xff]  ;;  %v1091_v7 = vld [vmem:[%s9046_s28 + $0xe8] sm:$0xff] }
  0xa7   : > { %1397 = vmatpush.msra.mxu1 %v1125_v46  ;;  %1416 = vmatpush.msra.mxu2 %v1133_v53  ;;  %v1330_v8 = vld [vmem:[%s9045_s10] sm:$0xff]  ;;  %v1084_v12 = vld [vmem:[%s9046_s28 + $0xb0] sm:$0xff]  ;;  %v1171_v14 = vld [vmem:[%s9046_s28 + $0x368] sm:$0xff]  ;;  %s9073_s10 = sld [smem:[#allocation181_spill]] }
  0xa8   : > { %1353 = vmatpush.msra.mxu0 %v1338_v48  ;;  %v1062_v9 = vld [vmem:[%s9046_s28] sm:$0xff]  ;;  %v1077_v15 = vld [vmem:[%s9046_s28 + $0x78] sm:$0xff]  ;;  %v1163_v16 = vld [vmem:[%s9046_s28 + $0x328] sm:$0xff] }
  0xa9   : > { %1398 = vmatpush.msra.mxu1 %v1118_v49  ;;  %1417 = vmatpush.msra.mxu2 %v1126_v58  ;;  %v1170_v13 = vld [vmem:[%s9046_s28 + $0x360] sm:$0xff]  ;;  %v1164_v17 = vld [vmem:[%s9046_s28 + $0x330] sm:$0xff]  ;;  %v1157_v20 = vld [vmem:[%s9046_s28 + $0x2f8] sm:$0xff] }
  0xaa   : > { %1354 = vmatpush.msra.mxu0 %v1337_v51  ;;  %v1070_v18 = vld [vmem:[%s9046_s28 + $0x40] sm:$0xff]  ;;  %v1156_v19 = vld [vmem:[%s9046_s28 + $0x2f0] sm:$0xff]  ;;  %v1063_v21 = vld [vmem:[%s9046_s28 + $0x8] sm:$0xff] }
  0xab   : > { %1399 = vmatpush.msra.mxu1 %v1111_v52  ;;  %1418 = vmatpush.msra.mxu2 %v1119_v59  ;;  %v1149_v22 = vld [vmem:[%s9046_s28 + $0x2b8] sm:$0xff]  ;;  %v1142_v24 = vld [vmem:[%s9046_s28 + $0x280] sm:$0xff]  ;;  %v1135_v26 = vld [vmem:[%s9046_s28 + $0x248] sm:$0xff] }
  0xac   : > { %1355 = vmatpush.msra.mxu0 %v1336_v54  ;;  %v1150_v25 = vld [vmem:[%s9046_s28 + $0x2c0] sm:$0xff]  ;;  %v1143_v27 = vld [vmem:[%s9046_s28 + $0x288] sm:$0xff]  ;;  %v1128_v28 = vld [vmem:[%s9046_s28 + $0x210] sm:$0xff] }
  0xad   : > { %1400 = vmatpush.msra.mxu1 %v1104_v55  ;;  %1419 = vmatpush.msra.mxu2 %v1112_v62  ;;  %v1136_v29 = vld [vmem:[%s9046_s28 + $0x250] sm:$0xff]  ;;  %v1121_v30 = vld [vmem:[%s9046_s28 + $0x1d8] sm:$0xff]  ;;  %v1328_v32 = vld [vmem:[%s4808_s14 + $0x10] sm:$0xff] }
  0xae   : > { %1356 = vmatpush.msra.mxu0 %v1335_v56  ;;  %v1129_v31 = vld [vmem:[%s9046_s28 + $0x218] sm:$0xff]  ;;  %v1114_v33 = vld [vmem:[%s9046_s28 + $0x1a0] sm:$0xff]  ;;  %v1107_v35 = vld [vmem:[%s9046_s28 + $0x168] sm:$0xff] }
  0xaf   : > { %1401 = vmatpush.msra.mxu1 %v1097_v57  ;;  %1420 = vmatpush.msra.mxu2 %v1105_v1  ;;  %v1122_v34 = vld [vmem:[%s9046_s28 + $0x1e0] sm:$0xff]  ;;  %v1115_v36 = vld [vmem:[%s9046_s28 + $0x1a8] sm:$0xff]  ;;  %v1100_v37 = vld [vmem:[%s9046_s28 + $0x130] sm:$0xff] }
  0xb0   : > { %1357 = vmatpush.msra.mxu0 %v1334_v60  ;;  %v1108_v38 = vld [vmem:[%s9046_s28 + $0x170] sm:$0xff]  ;;  %v1093_v39 = vld [vmem:[%s9046_s28 + $0xf8] sm:$0xff]  ;;  %v1329_v41 = vld [vmem:[%s4808_s14 + $0x18] sm:$0xff] }
  0xb1   : > { %1402 = vmatpush.msra.mxu1 %v1090_v61  ;;  %1421 = vmatpush.msra.mxu2 %v1098_v4  ;;  %v1101_v40 = vld [vmem:[%s9046_s28 + $0x138] sm:$0xff]  ;;  %v1086_v42 = vld [vmem:[%s9046_s28 + $0xc0] sm:$0xff]  ;;  %v1079_v44 = vld [vmem:[%s9046_s28 + $0x88] sm:$0xff] }
  0xb2   : > { %1358 = vmatpush.msra.mxu0 %v1333_v63  ;;  %v1094_v43 = vld [vmem:[%s9046_s28 + $0x100] sm:$0xff]  ;;  %v1087_v45 = vld [vmem:[%s9046_s28 + $0xc8] sm:$0xff]  ;;  %v1072_v46 = vld [vmem:[%s9046_s28 + $0x50] sm:$0xff] }
  0xb3   : > { %1403 = vmatpush.msra.mxu1 %v1083_v0  ;;  %1422 = vmatpush.msra.mxu2 %v1091_v7  ;;  %v1080_v47 = vld [vmem:[%s9046_s28 + $0x90] sm:$0xff]  ;;  %v1065_v48 = vld [vmem:[%s9046_s28 + $0x18] sm:$0xff]  ;;  %v1187_v51 = vld [vmem:[%s8697_s8 + $0x68] sm:$0xff] }
  0xb4   : > { %1359 = vmatpush.msra.mxu0 %v1332_v2  ;;  %v1189_v49 = vld [vmem:[%s8697_s8 + $0x78] sm:$0xff]  ;;  %v1188_v50 = vld [vmem:[%s8697_s8 + $0x70] sm:$0xff]  ;;  %v1186_v52 = vld [vmem:[%s8697_s8 + $0x60] sm:$0xff] }
  0xb5   : > { %1404 = vmatpush.msra.mxu1 %v1076_v3  ;;  %1423 = vmatpush.msra.mxu2 %v1084_v12  ;;  %v1185_v53 = vld [vmem:[%s8697_s8 + $0x58] sm:$0xff]  ;;  %v1184_v54 = vld [vmem:[%s8697_s8 + $0x50] sm:$0xff]  ;;  %v1183_v55 = vld [vmem:[%s8697_s8 + $0x48] sm:$0xff] }
  0xb6   : > { %1360 = vmatpush.msra.mxu0 %v1331_v5  ;;  %v1182_v56 = vld [vmem:[%s8697_s8 + $0x40] sm:$0xff]  ;;  %v1181_v57 = vld [vmem:[%s8697_s8 + $0x38] sm:$0xff]  ;;  %v1180_v58 = vld [vmem:[%s8697_s8 + $0x30] sm:$0xff] }
  0xb7   : > { %1405 = vmatpush.msra.mxu1 %v1069_v6  ;;  %1424 = vmatpush.msra.mxu2 %v1077_v15  ;;  %v1179_v59 = vld [vmem:[%s8697_s8 + $0x28] sm:$0xff]  ;;  %v1178_v60 = vld [vmem:[%s8697_s8 + $0x20] sm:$0xff]  ;;  %v1073_v61 = vld [vmem:[%s9046_s28 + $0x58] sm:$0xff] }
  0xb8   : > { %1361 = vmatpush.msra.mxu0 %v1330_v8  ;;  %v1177_v62 = vld [vmem:[%s8697_s8 + $0x18] sm:$0xff]  ;;  %v1066_v63 = vld [vmem:[%s9046_s28 + $0x20] sm:$0xff]  ;;  %v1176_v0 = vld [vmem:[%s8697_s8 + $0x10] sm:$0xff] }
  0xb9   : > { %1406 = vmatpush.msra.mxu1 %v1062_v9  ;;  %1362 = vmatmul.f32.vlgmr.msra.gmra.mxu0 %v1326_v10  ;;  %v1205_v1 = vld [vmem:[%s8701_s12 + $0x78] sm:$0xff]  ;;  %v1175_v2 = vld [vmem:[%s8697_s8 + $0x8] sm:$0xff]  ;;  %v1204_v3 = vld [vmem:[%s8701_s12 + $0x70] sm:$0xff] }
  0xba   : > { %1407 = vmatmul.f32.vlgmr.msra.gmra.mxu1 %v4952_v11  ;;  %1451 = vmatpush.msrb.mxu0 %v1170_v13  ;;  %v1174_v4 = vld [vmem:[%s8697_s8] sm:$0xff]  ;;  %v1203_v5 = vld [vmem:[%s8701_s12 + $0x68] sm:$0xff]  ;;  %v1201_v7 = vld [vmem:[%s8701_s12 + $0x58] sm:$0xff] }
  0xbb   : > { %1471 = vmatpush.msrb.mxu1 %v1171_v14  ;;  %1425 = vmatpush.msra.mxu2 %v1070_v18  ;;  %v1202_v6 = vld [vmem:[%s8701_s12 + $0x60] sm:$0xff]  ;;  %v1200_v8 = vld [vmem:[%s8701_s12 + $0x50] sm:$0xff]  ;;  %v1199_v9 = vld [vmem:[%s8701_s12 + $0x48] sm:$0xff] }
  0xbc   : > { %1452 = vmatpush.msrb.mxu0 %v1163_v16  ;;  %v1198_v10 = vld [vmem:[%s8701_s12 + $0x40] sm:$0xff]  ;;  %v1197_v12 = vld [vmem:[%s8701_s12 + $0x38] sm:$0xff]  ;;  %v1196_v13 = vld [vmem:[%s8701_s12 + $0x30] sm:$0xff] }
  0xbd   : > { %1472 = vmatpush.msrb.mxu1 %v1164_v17  ;;  %1426 = vmatpush.msra.mxu2 %v1063_v21  ;;  %v1195_v14 = vld [vmem:[%s8701_s12 + $0x28] sm:$0xff]  ;;  %v1194_v15 = vld [vmem:[%s8701_s12 + $0x20] sm:$0xff]  ;;  %v1193_v16 = vld [vmem:[%s8701_s12 + $0x18] sm:$0xff] }
  0xbe   : > { %1453 = vmatpush.msrb.mxu0 %v1156_v19  ;;  %1427 = vmatmul.f32.vlgmr.msra.gmra.mxu2 %v4952_v11  ;;  %v1192_v17 = vld [vmem:[%s8701_s12 + $0x10] sm:$0xff]  ;;  %v3949_v18 = vld [vmem:[%s9047_s27] ss:$0 sm:$0xff]  ;;  %v1191_v19 = vld [vmem:[%s8701_s12 + $0x8] sm:$0xff] }
  0xbf   : > { %1473 = vmatpush.msrb.mxu1 %v1157_v20 }
  0xc0   : > { %1454 = vmatpush.msrb.mxu0 %v1149_v22  ;;  %v1190_v22 = vld [vmem:[%s8701_s12] sm:$0xff] }
  0xc1   : > { %1365 = vmatmul.f32.gmra.mxu0 %v1327_v23  ;;  %1474 = vmatpush.msrb.mxu1 %v1150_v25 }
  0xc2   : > { %1455 = vmatpush.msrb.mxu0 %v1142_v24 }
  0xc3   : > { %1475 = vmatpush.msrb.mxu1 %v1143_v27 }
  0xc4   : > { %1456 = vmatpush.msrb.mxu0 %v1135_v26 }
  0xc5   : > { %1476 = vmatpush.msrb.mxu1 %v1136_v29 }
  0xc6   : > { %1457 = vmatpush.msrb.mxu0 %v1128_v28 }
  0xc7   : > { %1477 = vmatpush.msrb.mxu1 %v1129_v31 }
  0xc8   : > { %1458 = vmatpush.msrb.mxu0 %v1121_v30  ;;  %v3950_v30 = vld [vmem:[%s8700_s11] ss:$0 sm:$0xff] }
  0xc9   : > { %1368 = vmatmul.f32.gmra.mxu0 %v1328_v32  ;;  %1478 = vmatpush.msrb.mxu1 %v1122_v34 }
  0xca   : > { %1459 = vmatpush.msrb.mxu0 %v1114_v33 }
  0xcb   : > { %1479 = vmatpush.msrb.mxu1 %v1115_v36 }
  0xcc   : > { %1460 = vmatpush.msrb.mxu0 %v1107_v35 }
  0xcd   : > { %1480 = vmatpush.msrb.mxu1 %v1108_v38  ;;  %v3951_v38 = vld [vmem:[%s8698_s9] ss:$0 sm:$0xff] }
  0xce   : > { %1461 = vmatpush.msrb.mxu0 %v1100_v37 }
  0xcf   : > { %1481 = vmatpush.msrb.mxu1 %v1101_v40 }
  0xd0   : > { %1462 = vmatpush.msrb.mxu0 %v1093_v39 }
  0xd1   : > { %1371 = vmatmul.f32.gmra.mxu0 %v1329_v41  ;;  %1482 = vmatpush.msrb.mxu1 %v1094_v43 }
  0xd2   : > { %1463 = vmatpush.msrb.mxu0 %v1086_v42 }
  0xd3   : > { %1483 = vmatpush.msrb.mxu1 %v1087_v45  ;;  %v5190_v45 = vld [vmem:[%s9046_s28 + $0x320] sm:$0xff] }
  0xd4   : > { %1464 = vmatpush.msrb.mxu0 %v1079_v44  ;;  %v5185_v44 = vld [vmem:[%s9046_s28 + $0x358] sm:$0xff] }
  0xd5   : > { %1484 = vmatpush.msrb.mxu1 %v1080_v47  ;;  %1431 = vmatpush.msra.mxu3 %v5185_v44  ;;  %v5202_v47 = vld [vmem:[%s9046_s28 + $0x2b0] sm:$0xff] }
  0xd6   : > { %1465 = vmatpush.msrb.mxu0 %v1072_v46  ;;  %v5196_v46 = vld [vmem:[%s9046_s28 + $0x2e8] sm:$0xff] }
  0xd7   : > { %1485 = vmatpush.msrb.mxu1 %v1073_v61  ;;  %1432 = vmatpush.msra.mxu3 %v5190_v45  ;;  %v5258_v61 = vld [vmem:[%s9046_s28 + $0xf0] sm:$0xff] }
  0xd8   : > { %1466 = vmatpush.msrb.mxu0 %v1065_v48 }
  0xd9   : > { %1467 = vmatmul.f32.vlgmr.msrb.gmra.mxu0 %v4952_v11  ;;  %1486 = vmatpush.msrb.mxu1 %v1066_v63 }
  0xda   : > { %1543 = vmatpush.msra.mxu0 %v1189_v49  ;;  %1487 = vmatmul.f32.vlgmr.msrb.gmra.mxu1 %v4952_v11 }
  0xdb   : > { %1578 = vmatpush.msra.mxu1 %v1205_v1  ;;  %1433 = vmatpush.msra.mxu3 %v5196_v46 }
  0xdc   : > { %1544 = vmatpush.msra.mxu0 %v1188_v50  ;;  %v5211_v50 = vld [vmem:[%s9046_s28 + $0x278] sm:$0xff] }
  0xdd   : > { %1579 = vmatpush.msra.mxu1 %v1204_v3  ;;  %1434 = vmatpush.msra.mxu3 %v5202_v47 }
  0xde   : > { %1545 = vmatpush.msra.mxu0 %v1187_v51  ;;  %v5217_v51 = vld [vmem:[%s9046_s28 + $0x240] sm:$0xff] }
  0xdf   : > { %1580 = vmatpush.msra.mxu1 %v1203_v5  ;;  %1435 = vmatpush.msra.mxu3 %v5211_v50 }
  0xe0   : > { %1546 = vmatpush.msra.mxu0 %v1186_v52  ;;  %v5223_v52 = vld [vmem:[%s9046_s28 + $0x208] sm:$0xff] }
  0xe1   : > { %1581 = vmatpush.msra.mxu1 %v1202_v6  ;;  %1436 = vmatpush.msra.mxu3 %v5217_v51  ;;  %v5274_v6 = vld [vmem:[%s9046_s28 + $0xb8] sm:$0xff] }
  0xe2   : > { %1547 = vmatpush.msra.mxu0 %v1185_v53  ;;  %v5229_v53 = vld [vmem:[%s9046_s28 + $0x1d0] sm:$0xff] }
  0xe3   : > { %1582 = vmatpush.msra.mxu1 %v1201_v7  ;;  %1437 = vmatpush.msra.mxu3 %v5223_v52  ;;  %v5280_v7 = vld [vmem:[%s9046_s28 + $0x80] sm:$0xff] }
  0xe4   : > { %1548 = vmatpush.msra.mxu0 %v1184_v54  ;;  %v3952_v54 = vld [vmem:[%s9051_s2] ss:$0 sm:$0xff]  ;;  %s9054_s2 = sld [smem:[#allocation176_spill]] }
  0xe5   : > { %1583 = vmatpush.msra.mxu1 %v1200_v8  ;;  %1438 = vmatpush.msra.mxu3 %v5229_v53  ;;  %v5285_v8 = vld [vmem:[%s9046_s28 + $0x48] sm:$0xff] }
  0xe6   : > { %1549 = vmatpush.msra.mxu0 %v1183_v55  ;;  %v5238_v55 = vld [vmem:[%s9046_s28 + $0x198] sm:$0xff] }
  0xe7   : > { %1584 = vmatpush.msra.mxu1 %v1199_v9  ;;  %1439 = vmatpush.msra.mxu3 %v5238_v55  ;;  %v5291_v9 = vld [vmem:[%s9046_s28 + $0x370] sm:$0xff] }
  0xe8   : > { %1550 = vmatpush.msra.mxu0 %v1182_v56  ;;  %1491 = vmatpush.msrb.mxu2 %v5291_v9 }
  0xe9   : > { %1585 = vmatpush.msra.mxu1 %v1198_v10  ;;  %v5296_v10 = vld [vmem:[%s9046_s28 + $0x338] sm:$0xff] }
  0xea   : > { %1551 = vmatpush.msra.mxu0 %v1181_v57  ;;  %v5244_v57 = vld [vmem:[%s9046_s28 + $0x160] sm:$0xff]  ;;  %1492 = vmatpush.msrb.mxu2 %v5296_v10  ;;  %s9055_s3 = smov %s9054_s2 }
  0xeb   : > { %1586 = vmatpush.msra.mxu1 %v1197_v12  ;;  %1440 = vmatpush.msra.mxu3 %v5244_v57  ;;  %v5301_v12 = vld [vmem:[%s9046_s28 + $0x10] sm:$0xff] }
  0xec   : > { %1552 = vmatpush.msra.mxu0 %v1180_v58 }
  0xed   : > { %1587 = vmatpush.msra.mxu1 %v1196_v13  ;;  %v5308_v13 = vld [vmem:[%s9046_s28 + $0x378] sm:$0xff] }
  0xee   : > { %1553 = vmatpush.msra.mxu0 %v1179_v59  ;;  %v5250_v59 = vld [vmem:[%s9046_s28 + $0x128] sm:$0xff] }
  0xef   : > { %1588 = vmatpush.msra.mxu1 %v1195_v14  ;;  %1441 = vmatpush.msra.mxu3 %v5250_v59  ;;  %v5313_v14 = vld [vmem:[%s9046_s28 + $0x300] sm:$0xff] }
  0xf0   : > { %1554 = vmatpush.msra.mxu0 %v1178_v60  ;;  %1493 = vmatpush.msrb.mxu2 %v5313_v14 }
  0xf1   : > { %1589 = vmatpush.msra.mxu1 %v1194_v15  ;;  %1442 = vmatpush.msra.mxu3 %v5258_v61  ;;  %v5320_v15 = vld [vmem:[%s9046_s28 + $0x340] sm:$0xff] }
  0xf2   : > { %1555 = vmatpush.msra.mxu0 %v1177_v62 }
  0xf3   : > { %1590 = vmatpush.msra.mxu1 %v1193_v16  ;;  %1443 = vmatpush.msra.mxu3 %v5274_v6  ;;  %v5325_v16 = vld [vmem:[%s9046_s28 + $0x2c8] sm:$0xff] }
  0xf4   : > { %1556 = vmatpush.msra.mxu0 %v1176_v0  ;;  %1494 = vmatpush.msrb.mxu2 %v5325_v16 }
  0xf5   : > { %1591 = vmatpush.msra.mxu1 %v1192_v17  ;;  %1444 = vmatpush.msra.mxu3 %v5280_v7  ;;  %v5332_v17 = vld [vmem:[%s9046_s28 + $0x308] sm:$0xff] }
  0xf6   : > { %1557 = vmatpush.msra.mxu0 %v1175_v2 }
  0xf7   : > { %1592 = vmatpush.msra.mxu1 %v1191_v19  ;;  %1445 = vmatpush.msra.mxu3 %v5285_v8  ;;  %v5345_v19 = vld [vmem:[%s9046_s28 + $0x2d0] sm:$0xff] }
  0xf8   : > { %1558 = vmatpush.msra.mxu0 %v1174_v4 }
  0xf9   : > { %1593 = vmatpush.msra.mxu1 %v1190_v22  ;;  %1446 = vmatpush.msra.mxu3 %v5301_v12  ;;  %v5357_v22 = vld [vmem:[%s9046_s28 + $0x298] sm:$0xff] }
  0xfa   : > { %1447 = vmatmul.f32.vlgmr.msra.gmra.mxu3 %v4952_v11 }
  0xfb   : > { %1511 = vmatpush.msrb.mxu3 %v5308_v13 }
  0xfd   : > { %1512 = vmatpush.msrb.mxu3 %v5320_v15 }
  0xff   : > { %1513 = vmatpush.msrb.mxu3 %v5332_v17 }
 0x101   : > { %1514 = vmatpush.msrb.mxu3 %v5345_v19 }
 0x103   : > { %1515 = vmatpush.msrb.mxu3 %v5357_v22 }
 0x136   : > { %v5165_v20 = vpop.f32.mrf.mxu0 }
 0x137   : > { %9048 = vst [vmem:[#allocation20_spill] sm:$0xff] %v5165_v20  ;;  %v1408_v21 = vpop.f32.mrf.mxu1  ;;  %v5537_v20 = vld [vmem:[%s9055_s3 + $0x20] sm:$0xff] }
 0x138   : > { %v1534_v23 = vadd.f32 %v3949_v18, %v1408_v21  ;;  %v5337_v18 = vld [vmem:[%s9046_s28 + $0x290] sm:$0xff]  ;;  %v5350_v21 = vld [vmem:[%s9046_s28 + $0x258] sm:$0xff]  ;;  %9060 = vst [vmem:[#allocation28_spill] sm:$0xff] %v5537_v20 }
 0x139   : > { %1495 = vmatpush.msrb.mxu2 %v5337_v18 }
 0x13a   : > { %vm1535_vm0 = vcmp.ge.f32.partialorder %v1534_v23, 0.0  ;;  %v1536_v24 = vmul.f32 0.33333334, %v1534_v23 }
 0x13b   : > { %1496 = vmatpush.msrb.mxu2 %v5350_v21 }
 0x13c   : > { %v1537_v25 = vsel %vm1535_vm0, %v1534_v23, %v1536_v24  ;;  %v5362_v23 = vld [vmem:[%s9046_s28 + $0x220] sm:$0xff] }
 0x13d   : > { %v3788_v26 = vclamps-f32 %v1537_v25, 3.0  ;;  %v5369_v24 = vld [vmem:[%s9046_s28 + $0x260] sm:$0xff]  ;;  %v5374_v25 = vld [vmem:[%s9046_s28 + $0x1e8] sm:$0xff]  ;;  %1497 = vmatpush.msrb.mxu2 %v5362_v23 }
 0x13e   : > { %v5170_v27 = vpop.f32.mrf.mxu0  ;;  %1516 = vmatpush.msrb.mxu3 %v5369_v24 }
 0x13f   : > { %9049 = vst [vmem:[#allocation21_spill] sm:$0xff] %v5170_v27  ;;  %1559 = vmatmul.f32.vlgmr.msra.gmra.mxu0 %v3788_v26  ;;  %v5381_v26 = vld [vmem:[%s9046_s28 + $0x228] sm:$0xff]  ;;  %1498 = vmatpush.msrb.mxu2 %v5374_v25  ;;  %v1209_v27 = vld [vmem:[%s9055_s3 + $0x18] sm:$0xff] }
 0x140   : > { %1517 = vmatpush.msrb.mxu3 %v5381_v26 }
 0x141   : > { %v1428_v29 = vpop.f32.mrf.mxu2 }
 0x146   : > { %v5172_v28 = vpop.f32.mrf.mxu0 }
 0x147   : > { %9050 = vst [vmem:[#allocation22_spill] sm:$0xff] %v5172_v28 }
 0x14e   : > { %v1372_v31 = vpop.f32.mrf.mxu0 }
 0x14f   : > { %v1565_v32 = vadd.f32 %v1428_v29, %v1372_v31  ;;  %v5386_v29 = vld [vmem:[%s9046_s28 + $0x1b0] sm:$0xff]  ;;  %v5398_v31 = vld [vmem:[%s9046_s28 + $0x178] sm:$0xff] }
 0x150   : > { %1499 = vmatpush.msrb.mxu2 %v5386_v29 }
 0x151   : > { %v1569_v33 = vadd.f32 %v3950_v30, %v1565_v32  ;;  %v5393_v30 = vld [vmem:[%s9046_s28 + $0x1f0] sm:$0xff]  ;;  %v5405_v32 = vld [vmem:[%s9046_s28 + $0x1b8] sm:$0xff] }
 0x152   : > { %1518 = vmatpush.msrb.mxu3 %v5393_v30  ;;  %1500 = vmatpush.msrb.mxu2 %v5398_v31 }
 0x153   : > { %vm1570_vm1 = vcmp.ge.f32.partialorder %v1569_v33, 0.0  ;;  %v1571_v34 = vmul.f32 0.33333334, %v1569_v33 }
 0x154   : > { %1519 = vmatpush.msrb.mxu3 %v5405_v32 }
 0x155   : > { %v1572_v35 = vsel %vm1570_vm1, %v1569_v33, %v1571_v34  ;;  %v5410_v33 = vld [vmem:[%s9046_s28 + $0x140] sm:$0xff] }
 0x156   : > { %v3790_v36 = vclamps-f32 %v1572_v35, 3.0  ;;  %v5177_v37 = vpop.f32.mrf.mxu0  ;;  %v5417_v34 = vld [vmem:[%s9046_s28 + $0x180] sm:$0xff]  ;;  %v5422_v35 = vld [vmem:[%s9046_s28 + $0x108] sm:$0xff]  ;;  %1501 = vmatpush.msrb.mxu2 %v5410_v33 }
 0x157   : > { %v5206_v49 = vpop.f32.mrf.mxu1  ;;  %1520 = vmatpush.msrb.mxu3 %v5417_v34 }
 0x158   : > { %1594 = vmatmul.f32.vlgmr.msra.gmra.mxu1 %v3790_v36  ;;  %v5429_v36 = vld [vmem:[%s9046_s28 + $0x148] sm:$0xff]  ;;  %1502 = vmatpush.msrb.mxu2 %v5422_v35 }
 0x159   : > { %1521 = vmatpush.msrb.mxu3 %v5429_v36 }
 0x1bc   : > { %v1560_v39 = vpop.f32.mrf.mxu0 }
 0x1bd   : > { %v1561_v40 = vadd.f32 %v3951_v38, %v1560_v39  ;;  %v5434_v38 = vld [vmem:[%s9046_s28 + $0xd0] sm:$0xff] }
 0x1be   : > { %v5441_v39 = vld [vmem:[%s9046_s28 + $0x110] sm:$0xff]  ;;  %1503 = vmatpush.msrb.mxu2 %v5434_v38 }
 0x1bf   : > { %v3789_v41 = vclamps-f32 %v1561_v40, 8.0  ;;  %v5446_v40 = vld [vmem:[%s9046_s28 + $0x98] sm:$0xff]  ;;  %1522 = vmatpush.msrb.mxu3 %v5441_v39 }
 0x1c0   : > { %1504 = vmatpush.msrb.mxu2 %v5446_v40 }
 0x1c1   : > { %v1606_v42 = vsub.f32 0.0, %v3789_v41 }
 0x1c3   : > { %v1607_v43 = vmul.f32 1.442695, %v1606_v42  ;;  %v5458_v42 = vld [vmem:[%s9046_s28 + $0x60] sm:$0xff] }
 0x1c4   : > { %1505 = vmatpush.msrb.mxu2 %v5458_v42 }
 0x1c5   : > { %3955 = vpow2.f32 %v1607_v43 }
 0x1cb   : > { %v3956_v48 = vpop.eup %3955 }
 0x1cc   : > { %1610 = vrot.lane.b32.xlu2 %v3956_v48, %s8730_s25 }
 0x1d5   : > { %v1595_v56 = vpop.f32.mrf.mxu1 }
 0x1d6   : > { %v1596_v58 = vadd.f32 %v3952_v54, %v1595_v56  ;;  %v5467_v54 = vld [vmem:[%s9046_s28 + $0xa0] sm:$0xff] }
 0x1d8   : > { %v5252_v60 = vclamps-f32 %v1596_v58, 8.0  ;;  %v5474_v58 = vld [vmem:[%s9046_s28 + $0x28] sm:$0xff] }
 0x1d9   : > { %1506 = vmatpush.msrb.mxu2 %v5474_v58 }
 0x1da   : > { %v1629_v62 = vmul.f32 0.5, %v5252_v60  ;;  %v5263_v63 = vsub.f32 %v5252_v60, %v3789_v41  ;;  %v1600_v3 = vsub.f32 %v3789_v41, %v5252_v60  ;;  %v5453_v41 = vld [vmem:[%s9046_s28 + $0xd8] sm:$0xff]  ;;  %1507 = vmatmul.f32.vlgmr.msrb.gmra.mxu2 %v4952_v11 }
 0x1db   : > { %1523 = vmatpush.msrb.mxu3 %v5453_v41 }
 0x1dc   : > { %v1630_v0 = vmul.f32 1.442695, %v1629_v62  ;;  %v1602_v1 = vmul.f32 1.442695, %v5263_v63  ;;  %v1605_v43 = vmul.f32 %v5263_v63, %v5263_v63  ;;  %v5479_v62 = vld [vmem:[%s9046_s28 + $0x68] sm:$0xff]  ;;  %v5484_v63 = vld [vmem:[%s9054_s2 + $0x70] sm:$0xff] }
 0x1dd   : > { %1524 = vmatpush.msrb.mxu3 %v5467_v54  ;;  %1649 = vmatpush.msra.mxu2 %v5484_v63 }
 0x1de   : > { %3957 = vpow2.f32 %v1630_v0  ;;  %v5492_v0 = vld [vmem:[%s9046_s28 + $0x30] sm:$0xff] }
 0x1df   : > { %3959 = vpow2.f32 %v1602_v1  ;;  %v5497_v1 = vld [vmem:[%s9055_s3 + $0x60] sm:$0xff]  ;;  %1525 = vmatpush.msrb.mxu3 %v5479_v62 }
 0x1e0   : > { %9056 = vst [vmem:[#allocation24_spill] sm:$0xff] %v5497_v1  ;;  %1650 = vmatpush.msra.mxu2 %v5497_v1  ;;  %v5667_v1 = vld [vmem:[%s9063_s18 + $0x90] sm:$0xff] }
 0x1e1   : > { %1526 = vmatpush.msrb.mxu3 %v5492_v0  ;;  %9079 = vst [vmem:[#allocation45_spill] sm:$0xff] %v5667_v1 }
 0x1e2   : > { %1527 = vmatmul.f32.vlgmr.msrb.gmra.mxu3 %v4952_v11  ;;  %v1213_v11 = vld [vmem:[%s9055_s3 + $0x38] sm:$0xff] }
 0x1e4   : > { %v3958_v2 = vpop.eup %3957 }
 0x1e5   : > { %v3960_v4 = vpop.eup %3959  ;;  %1633 = vrot.lane.b32.xlu0 %v3958_v2, %s8730_s25  ;;  %v1221_v2 = vld [vmem:[%s9055_s3 + $0x78] sm:$0xff] }
 0x1e6   : > { %v5269_v5 = vadd.f32 %v3960_v4, %v1600_v3  ;;  %v5507_v3 = vld [vmem:[%s9055_s3 + $0x50] sm:$0xff]  ;;  %v1219_v4 = vld [vmem:[%s9055_s3 + $0x68] sm:$0xff]  ;;  %1669 = vmatpush.msra.mxu3 %v1221_v2 }
 0x1e7   : > { %9057 = vst [vmem:[#allocation25_spill] sm:$0xff] %v5507_v3  ;;  %1651 = vmatpush.msra.mxu2 %v5507_v3  ;;  %v1215_v2 = vld [vmem:[%s9055_s3 + $0x48] sm:$0xff] }
 0x1e8   : > { %9053 = vst [vmem:[#allocation23_spill] sm:$0xff] %v5269_v5  ;;  %1670 = vmatpush.msra.mxu3 %v1219_v4  ;;  %v1211_v4 = vld [vmem:[%s9055_s3 + $0x28] sm:$0xff] }
 0x1e9   : > { %v1311_v3 = vld [vmem:[%s9073_s10 + $0x1c8] sm:$0xff] }
 0x226   : > { %v1611_v48 = vpop.permute.xlu2 %1610 }
 0x227   : > { %v1613_v56 = vmul.f32 %v1611_v48, %v1605_v43  ;;  %v5518_v43 = vld [vmem:[%s9055_s3 + $0x40] sm:$0xff]  ;;  %v1217_v48 = vld [vmem:[%s9055_s3 + $0x58] sm:$0xff] }
 0x228   : > { %9058 = vst [vmem:[#allocation26_spill] sm:$0xff] %v5518_v43  ;;  %1652 = vmatpush.msra.mxu2 %v5518_v43  ;;  %1671 = vmatpush.msra.mxu3 %v1217_v48  ;;  %v5550_v48 = vld [vmem:[%s9055_s3 + $0x10] sm:$0xff]  ;;  %v5628_v43 = vld [vmem:[%s9073_s10 + $0x1e0] sm:$0xff] }
 0x229   : > { %1615 = vrot.lane.b32.xlu2 %v1613_v56, %s8730_s25  ;;  %v5528_v56 = vld [vmem:[%s9055_s3 + $0x30] sm:$0xff]  ;;  %9061 = vst [vmem:[#allocation29_spill] sm:$0xff] %v5550_v48  ;;  %1758 = vmatpush.msrb.mxu0 %v5628_v43 }
 0x22a   : > { %9059 = vst [vmem:[#allocation27_spill] sm:$0xff] %v5528_v56  ;;  %1653 = vmatpush.msra.mxu2 %v5528_v56  ;;  %1672 = vmatpush.msra.mxu3 %v1215_v2  ;;  %v5559_v2 = vld [vmem:[%s9055_s3] sm:$0xff]  ;;  %v5623_v56 = vld [vmem:[%s9063_s18 + $0xb8] sm:$0xff] }
 0x22b   : > { %9062 = vst [vmem:[#allocation30_spill] sm:$0xff] %v5559_v2 }
 0x22c   : > { %1654 = vmatpush.msra.mxu2 %v5537_v20  ;;  %1673 = vmatpush.msra.mxu3 %v1213_v11  ;;  %v1207_v11 = vld [vmem:[%s9055_s3 + $0x8] sm:$0xff]  ;;  %9072 = vst [vmem:[#allocation39_spill] sm:$0xff] %v5623_v56 }
 0x22d   : > { %9074 = vst [vmem:[#allocation40_spill] sm:$0xff] %v5628_v43  ;;  %v5680_v43 = vld [vmem:[%s9073_s10 + $0x180] sm:$0xff] }
 0x22e   : > { %1674 = vmatpush.msra.mxu3 %v1211_v4  ;;  %1655 = vmatpush.msra.mxu2 %v5550_v48  ;;  %v1385_v4 = vld [vmem:[%s4810_s13] sm:$0xff]  ;;  %9081 = vst [vmem:[#allocation47_spill] sm:$0xff] %v5680_v43 }
 0x22f   : > { %v5618_v48 = vld [vmem:[%s9063_s18 + $0xb0] sm:$0xff] }
 0x230   : > { %1675 = vmatpush.msra.mxu3 %v1209_v27  ;;  %1656 = vmatpush.msra.mxu2 %v5559_v2  ;;  %v5572_v27 = vld [vmem:[%s9063_s18 + $0xf0] sm:$0xff]  ;;  %v5577_v2 = vld [vmem:[%s9063_s18 + $0xf8] sm:$0xff]  ;;  %9071 = vst [vmem:[#allocation38_spill] sm:$0xff] %v5618_v48 }
 0x231   : > { %9064 = vst [vmem:[#allocation31_spill] sm:$0xff] %v5577_v2 }
 0x232   : > { %1676 = vmatpush.msra.mxu3 %v1207_v11  ;;  %1696 = vmatpush.msrb.mxu2 %v5572_v27  ;;  %v5606_v11 = vld [vmem:[%s9063_s18 + $0xc0] sm:$0xff] }
 0x233   : > { %9069 = vst [vmem:[#allocation36_spill] sm:$0xff] %v5606_v11 }
 0x234   : > { %1716 = vmatpush.msrb.mxu3 %v5577_v2  ;;  %v6289_v2 = vld [vmem:[%s9046_s28 + $0x38] sm:$0xff] }
 0x257   : > { %v1634_v5 = vpop.permute.xlu0 %1633 }
 0x258   : > { %v1636_v28 = vmul.f32 %v1634_v5, %v1385_v4  ;;  %v5582_v5 = vld [vmem:[%s9063_s18 + $0xe0] sm:$0xff]  ;;  %v5611_v4 = vld [vmem:[%s9063_s18 + $0xc8] sm:$0xff] }
 0x259   : > { %9065 = vst [vmem:[#allocation32_spill] sm:$0xff] %v5582_v5  ;;  %1697 = vmatpush.msrb.mxu2 %v5582_v5  ;;  %v1307_v5 = vld [vmem:[%s9073_s10 + $0x1a8] sm:$0xff] }
 0x25a   : > { %v1637_v20 = vadd.f32 %v5252_v60, %v1636_v28  ;;  %v5594_v28 = vld [vmem:[%s9063_s18 + $0xd0] sm:$0xff]  ;;  %v5599_v60 = vld [vmem:[%s9063_s18 + $0xd8] sm:$0xff]  ;;  %9070 = vst [vmem:[#allocation37_spill] sm:$0xff] %v5611_v4 }
 0x25b   : > { %9067 = vst [vmem:[#allocation34_spill] sm:$0xff] %v5594_v28  ;;  %1698 = vmatpush.msrb.mxu2 %v5594_v28  ;;  %v1315_v28 = vld [vmem:[%s9073_s10 + $0x1e8] sm:$0xff] }
 0x25c   : > { %3793 = vmatmul.msk.f32.vlgmr.msra.gmra.mxu2 %vm1625_vm2, %v1637_v20  ;;  %3794 = vmatmul.msk.f32.vlgmr.msra.gmra.mxu3 %vm1625_vm2, %v1637_v20  ;;  %v5589_v20 = vld [vmem:[%s9063_s18 + $0xe8] sm:$0xff]  ;;  %9068 = vst [vmem:[#allocation35_spill] sm:$0xff] %v5599_v60 }
 0x25d   : > { %9066 = vst [vmem:[#allocation33_spill] sm:$0xff] %v5589_v20  ;;  %1717 = vmatpush.msrb.mxu3 %v5589_v20  ;;  %1699 = vmatpush.msrb.mxu2 %v5606_v11  ;;  %v5646_v20 = vld [vmem:[%s9063_s18 + $0xa0] sm:$0xff]  ;;  %v5651_v11 = vld [vmem:[%s9063_s18 + $0xa8] sm:$0xff] }
 0x25e   : > { %9076 = vst [vmem:[#allocation42_spill] sm:$0xff] %v5646_v20  ;;  %1778 = vmatpush.msrb.mxu1 %v1315_v28  ;;  %v5672_v28 = vld [vmem:[%s9063_s18 + $0x98] sm:$0xff] }
 0x25f   : > { %1718 = vmatpush.msrb.mxu3 %v5599_v60  ;;  %v5638_v60 = vld [vmem:[%s9073_s10 + $0x1c0] sm:$0xff]  ;;  %9077 = vst [vmem:[#allocation43_spill] sm:$0xff] %v5651_v11  ;;  %1700 = vmatpush.msrb.mxu2 %v5618_v48 }
 0x260   : > { %9075 = vst [vmem:[#allocation41_spill] sm:$0xff] %v5638_v60  ;;  %1759 = vmatpush.msrb.mxu0 %v5638_v60  ;;  %1779 = vmatpush.msrb.mxu1 %v1311_v3  ;;  %v5688_v48 = vld [vmem:[%s9063_s18 + $0x80] sm:$0xff]  ;;  %v5693_v3 = vld [vmem:[%s9063_s18 + $0x88] sm:$0xff] }
 0x261   : > { %1719 = vmatpush.msrb.mxu3 %v5611_v4  ;;  %v5659_v4 = vld [vmem:[%s9073_s10 + $0x1a0] sm:$0xff]  ;;  %9080 = vst [vmem:[#allocation46_spill] sm:$0xff] %v5672_v28  ;;  %1701 = vmatpush.msrb.mxu2 %v5646_v20  ;;  %v5709_v20 = vld [vmem:[%s9063_s18 + $0x70] sm:$0xff] }
 0x262   : > { %9078 = vst [vmem:[#allocation44_spill] sm:$0xff] %v5659_v4  ;;  %1760 = vmatpush.msrb.mxu0 %v5659_v4  ;;  %1780 = vmatpush.msrb.mxu1 %v1307_v5  ;;  %v5701_v60 = vld [vmem:[%s9073_s10 + $0x160] sm:$0xff]  ;;  %v5714_v5 = vld [vmem:[%s9063_s18 + $0x78] sm:$0xff] }
 0x263   : > { %1720 = vmatpush.msrb.mxu3 %v5623_v56  ;;  %v1303_v56 = vld [vmem:[%s9073_s10 + $0x188] sm:$0xff]  ;;  %9082 = vst [vmem:[#allocation48_spill] sm:$0xff] %v5688_v48  ;;  %1702 = vmatpush.msrb.mxu2 %v5667_v1  ;;  %v5722_v4 = vld [vmem:[%s9073_s10 + $0x140] sm:$0xff] }
 0x264   : > { %9083 = vst [vmem:[#allocation49_spill] sm:$0xff] %v5693_v3  ;;  %1761 = vmatpush.msrb.mxu0 %v5680_v43  ;;  %1781 = vmatpush.msrb.mxu1 %v1303_v56  ;;  %v5730_v1 = vld [vmem:[%s9063_s18 + $0x60] sm:$0xff]  ;;  %v5735_v56 = vld [vmem:[%s9063_s18 + $0x68] sm:$0xff] }
 0x265   : > { %1721 = vmatpush.msrb.mxu3 %v5651_v11  ;;  %9084 = vst [vmem:[#allocation50_spill] sm:$0xff] %v5701_v60  ;;  %v1299_v11 = vld [vmem:[%s9073_s10 + $0x168] sm:$0xff]  ;;  %1703 = vmatpush.msrb.mxu2 %v5688_v48  ;;  %v5743_v43 = vld [vmem:[%s9073_s10 + $0x120] sm:$0xff]  ;;  %v5751_v48 = vld [vmem:[%s9063_s18 + $0x50] sm:$0xff] }
 0x266   : > { %9085 = vst [vmem:[#allocation51_spill] sm:$0xff] %v5709_v20  ;;  %1762 = vmatpush.msrb.mxu0 %v5701_v60  ;;  %1782 = vmatpush.msrb.mxu1 %v1299_v11  ;;  %v5756_v11 = vld [vmem:[%s9063_s18 + $0x58] sm:$0xff]  ;;  %v5764_v60 = vld [vmem:[%s9073_s10 + $0x100] sm:$0xff] }
 0x267   : > { %1722 = vmatpush.msrb.mxu3 %v5672_v28  ;;  %9086 = vst [vmem:[#allocation52_spill] sm:$0xff] %v5714_v5  ;;  %v1295_v28 = vld [vmem:[%s9073_s10 + $0x148] sm:$0xff]  ;;  %1704 = vmatpush.msrb.mxu2 %v5709_v20  ;;  %v5772_v20 = vld [vmem:[%s9063_s18 + $0x40] sm:$0xff] }
 0x268   : > { %9087 = vst [vmem:[#allocation53_spill] sm:$0xff] %v5722_v4  ;;  %1763 = vmatpush.msrb.mxu0 %v5722_v4  ;;  %1783 = vmatpush.msrb.mxu1 %v1295_v28  ;;  %v5777_v28 = vld [vmem:[%s9063_s18 + $0x48] sm:$0xff]  ;;  %v5785_v4 = vld [vmem:[%s9073_s10 + $0xe0] sm:$0xff] }
 0x269   : > { %1723 = vmatpush.msrb.mxu3 %v5693_v3  ;;  %9088 = vst [vmem:[#allocation54_spill] sm:$0xff] %v5730_v1  ;;  %v1291_v3 = vld [vmem:[%s9073_s10 + $0x128] sm:$0xff]  ;;  %1705 = vmatpush.msrb.mxu2 %v5730_v1  ;;  %v5793_v1 = vld [vmem:[%s9063_s18 + $0x30] sm:$0xff] }
 0x26a   : > { %9089 = vst [vmem:[#allocation55_spill] sm:$0xff] %v5735_v56  ;;  %1764 = vmatpush.msrb.mxu0 %v5743_v43  ;;  %1784 = vmatpush.msrb.mxu1 %v1291_v3  ;;  %v5798_v3 = vld [vmem:[%s9063_s18 + $0x38] sm:$0xff] }
 0x26b   : > { %1724 = vmatpush.msrb.mxu3 %v5714_v5  ;;  %9090 = vst [vmem:[#allocation56_spill] sm:$0xff] %v5743_v43  ;;  %v1287_v5 = vld [vmem:[%s9073_s10 + $0x108] sm:$0xff]  ;;  %1706 = vmatpush.msrb.mxu2 %v5751_v48  ;;  %v5806_v43 = vld [vmem:[%s9073_s10 + $0xc0] sm:$0xff] }
 0x26c   : > { %9091 = vst [vmem:[#allocation57_spill] sm:$0xff] %v5751_v48  ;;  %1765 = vmatpush.msrb.mxu0 %v5764_v60  ;;  %1785 = vmatpush.msrb.mxu1 %v1287_v5  ;;  %v5814_v48 = vld [vmem:[%s9063_s18 + $0x20] sm:$0xff]  ;;  %v5819_v5 = vld [vmem:[%s9063_s18 + $0x28] sm:$0xff] }
 0x26d   : > { %9092 = vst [vmem:[#allocation58_spill] sm:$0xff] %v5756_v11  ;;  %1725 = vmatpush.msrb.mxu3 %v5735_v56  ;;  %v1283_v56 = vld [vmem:[%s9073_s10 + $0xe8] sm:$0xff]  ;;  %1707 = vmatpush.msrb.mxu2 %v5772_v20 }
 0x26e   : > { %9093 = vst [vmem:[#allocation59_spill] sm:$0xff] %v5764_v60  ;;  %1766 = vmatpush.msrb.mxu0 %v5785_v4  ;;  %1786 = vmatpush.msrb.mxu1 %v1283_v56  ;;  %v5827_v60 = vld [vmem:[%s9063_s18 + $0x10] sm:$0xff]  ;;  %v5840_v56 = vld [vmem:[%s9063_s18] sm:$0xff] }
 0x26f   : > { %9094 = vst [vmem:[#allocation60_spill] sm:$0xff] %v5772_v20  ;;  %1726 = vmatpush.msrb.mxu3 %v5756_v11  ;;  %v1279_v11 = vld [vmem:[%s9073_s10 + $0xc8] sm:$0xff]  ;;  %1708 = vmatpush.msrb.mxu2 %v5793_v1 }
 0x270   : > { %9095 = vst [vmem:[#allocation61_spill] sm:$0xff] %v5777_v28  ;;  %1767 = vmatpush.msrb.mxu0 %v5806_v43  ;;  %1787 = vmatpush.msrb.mxu1 %v1279_v11  ;;  %v5852_v11 = vld [vmem:[%s9073_s10 + $0x1f0] sm:$0xff] }
 0x271   : > { %9096 = vst [vmem:[#allocation62_spill] sm:$0xff] %v5785_v4  ;;  %1727 = vmatpush.msrb.mxu3 %v5777_v28  ;;  %v5832_v28 = vld [vmem:[%s9063_s18 + $0x18] sm:$0xff]  ;;  %1709 = vmatpush.msrb.mxu2 %v5814_v48  ;;  %v5845_v4 = vld [vmem:[%s9063_s18 + $0x8] sm:$0xff] }
 0x272   : > { %9097 = vst [vmem:[#allocation63_spill] sm:$0xff] %v5793_v1 }
 0x273   : > { %9098 = vst [vmem:[#allocation64_spill] sm:$0xff] %v5798_v3  ;;  %1728 = vmatpush.msrb.mxu3 %v5798_v3  ;;  %1710 = vmatpush.msrb.mxu2 %v5827_v60  ;;  %v5959_v3 = vld [vmem:[%s9073_s10 + $0x130] sm:$0xff] }
 0x274   : > { %9099 = vst [vmem:[#allocation65_spill] sm:$0xff] %v5806_v43  ;;  %v5857_v43 = vld [vmem:[%s9073_s10 + $0x1f8] sm:$0xff] }
 0x275   : > { %9100 = vst [vmem:[#allocation66_spill] sm:$0xff] %v5814_v48  ;;  %1729 = vmatpush.msrb.mxu3 %v5819_v5  ;;  %1711 = vmatpush.msrb.mxu2 %v5840_v56  ;;  %v5943_v48 = vld [vmem:[%s9073_s10 + $0x158] sm:$0xff] }
 0x276   : > { %9101 = vst [vmem:[#allocation67_spill] sm:$0xff] %v5819_v5  ;;  %v5898_v5 = vld [vmem:[%s9073_s10 + $0x190] sm:$0xff] }
 0x277   : > { %9102 = vst [vmem:[#allocation68_spill] sm:$0xff] %v5827_v60  ;;  %1730 = vmatpush.msrb.mxu3 %v5832_v28  ;;  %v5864_v60 = vld [vmem:[%s9073_s10 + $0x1d0] sm:$0xff]  ;;  %1798 = vmatpush.msra.mxu2 %v5852_v11 }
 0x278   : > { %9103 = vst [vmem:[#allocation69_spill] sm:$0xff] %v5832_v28  ;;  %v5869_v28 = vld [vmem:[%s9073_s10 + $0x1d8] sm:$0xff] }
 0x279   : > { %9104 = vst [vmem:[#allocation70_spill] sm:$0xff] %v5840_v56  ;;  %1731 = vmatpush.msrb.mxu3 %v5845_v4  ;;  %v5876_v56 = vld [vmem:[%s9073_s10 + $0x1b0] sm:$0xff]  ;;  %1799 = vmatpush.msra.mxu2 %v5864_v60 }
 0x27a   : > { %9105 = vst [vmem:[#allocation71_spill] sm:$0xff] %v5845_v4  ;;  %v5881_v4 = vld [vmem:[%s9073_s10 + $0x1b8] sm:$0xff] }
 0x27b   : > { %9106 = vst [vmem:[#allocation72_spill] sm:$0xff] %v5852_v11  ;;  %1818 = vmatpush.msra.mxu3 %v5857_v43  ;;  %1800 = vmatpush.msra.mxu2 %v5876_v56  ;;  %v1275_v11 = vld [vmem:[%s9073_s10 + $0xa8] sm:$0xff] }
 0x27c   : > { %9107 = vst [vmem:[#allocation73_spill] sm:$0xff] %v5857_v43  ;;  %v5890_v43 = vld [vmem:[%s9073_s10 + $0xa0] sm:$0xff]  ;;  %1788 = vmatpush.msrb.mxu1 %v1275_v11  ;;  %v5919_v11 = vld [vmem:[%s9073_s10 + $0x170] sm:$0xff] }
 0x27d   : > { %9108 = vst [vmem:[#allocation74_spill] sm:$0xff] %v5864_v60  ;;  %1819 = vmatpush.msra.mxu3 %v5869_v28  ;;  %1768 = vmatpush.msrb.mxu0 %v5890_v43  ;;  %v5929_v60 = vld [vmem:[%s9073_s10 + $0x60] sm:$0xff] }
 0x27e   : > { %9109 = vst [vmem:[#allocation75_spill] sm:$0xff] %v5869_v28  ;;  %v5909_v28 = vld [vmem:[%s9073_s10 + $0x80] sm:$0xff]  ;;  %1801 = vmatpush.msra.mxu2 %v5898_v5 }
 0x27f   : > { %9110 = vst [vmem:[#allocation76_spill] sm:$0xff] %v5876_v56  ;;  %1820 = vmatpush.msra.mxu3 %v5881_v4  ;;  %v1271_v56 = vld [vmem:[%s9073_s10 + $0x88] sm:$0xff]  ;;  %1769 = vmatpush.msrb.mxu0 %v5909_v28 }
 0x280   : > { %9111 = vst [vmem:[#allocation77_spill] sm:$0xff] %v5881_v4  ;;  %v5904_v4 = vld [vmem:[%s9073_s10 + $0x198] sm:$0xff]  ;;  %1789 = vmatpush.msrb.mxu1 %v1271_v56  ;;  %1802 = vmatpush.msra.mxu2 %v5919_v11  ;;  %v5950_v56 = vld [vmem:[%s9073_s10 + $0x40] sm:$0xff] }
 0x281   : > { %9112 = vst [vmem:[#allocation78_spill] sm:$0xff] %v5890_v43  ;;  %1821 = vmatpush.msra.mxu3 %v5904_v4  ;;  %v5924_v43 = vld [vmem:[%s9073_s10 + $0x178] sm:$0xff]  ;;  %1770 = vmatpush.msrb.mxu0 %v5929_v60 }
 0x282   : > { %9113 = vst [vmem:[#allocation79_spill] sm:$0xff] %v5898_v5  ;;  %v5938_v5 = vld [vmem:[%s9073_s10 + $0x150] sm:$0xff] }
 0x283   : > { %9114 = vst [vmem:[#allocation80_spill] sm:$0xff] %v5904_v4  ;;  %v1267_v4 = vld [vmem:[%s9073_s10 + $0x68] sm:$0xff]  ;;  %1822 = vmatpush.msra.mxu3 %v5924_v43  ;;  %1803 = vmatpush.msra.mxu2 %v5938_v5 }
 0x284   : > { %9115 = vst [vmem:[#allocation81_spill] sm:$0xff] %v5909_v28  ;;  %v1263_v28 = vld [vmem:[%s9073_s10 + $0x48] sm:$0xff]  ;;  %1790 = vmatpush.msrb.mxu1 %v1267_v4  ;;  %1771 = vmatpush.msrb.mxu0 %v5950_v56  ;;  %v5974_v4 = vld [vmem:[%s9073_s10 + $0x20] sm:$0xff] }
 0x285   : > { %9116 = vst [vmem:[#allocation82_spill] sm:$0xff] %v5919_v11  ;;  %1823 = vmatpush.msra.mxu3 %v5943_v48  ;;  %1804 = vmatpush.msra.mxu2 %v5959_v3  ;;  %v6138_v11 = vld [vmem:[%s9046_s28 + $0x268] sm:$0xff] }
 0x286   : > { %9117 = vst [vmem:[#allocation83_spill] sm:$0xff] %v5924_v43  ;;  %v5964_v43 = vld [vmem:[%s9073_s10 + $0x138] sm:$0xff]  ;;  %1791 = vmatpush.msrb.mxu1 %v1263_v28  ;;  %1772 = vmatpush.msrb.mxu0 %v5974_v4  ;;  %v5986_v28 = vld [vmem:[%s9073_s10 + $0x110] sm:$0xff] }
 0x287   : > { %9118 = vst [vmem:[#allocation84_spill] sm:$0xff] %v5929_v60  ;;  %1824 = vmatpush.msra.mxu3 %v5964_v43  ;;  %v5979_v60 = vld [vmem:[%s9073_s10 + $0x28] sm:$0xff]  ;;  %1805 = vmatpush.msra.mxu2 %v5986_v28 }
 0x288   : > { %9119 = vst [vmem:[#allocation85_spill] sm:$0xff] %v5938_v5  ;;  %1792 = vmatpush.msrb.mxu1 %v5979_v60  ;;  %v6128_v5 = vld [vmem:[%s9073_s10 + $0x30] sm:$0xff] }
 0x289   : > { %9120 = vst [vmem:[#allocation86_spill] sm:$0xff] %v5943_v48  ;;  %v5998_v48 = vld [vmem:[%s9073_s10] sm:$0xff] }
 0x28a   : > { %9121 = vst [vmem:[#allocation87_spill] sm:$0xff] %v5950_v56  ;;  %1773 = vmatpush.msrb.mxu0 %v5998_v48  ;;  %v6032_v56 = vld [vmem:[%s9046_s28 + $0x348] sm:$0xff] }
 0x28b   : > { %9122 = vst [vmem:[#allocation88_spill] sm:$0xff] %v5959_v3  ;;  %v1448_v3 = vpop.f32.mrf.mxu3 }
 0x28c   : > { %9123 = vst [vmem:[#allocation89_spill] sm:$0xff] %v5964_v43  ;;  %v5991_v43 = vld [vmem:[%s9073_s10 + $0x118] sm:$0xff]  ;;  %1936 = vmatpush.msra.mxu0 %v6032_v56 }
 0x28d   : > { %9124 = vst [vmem:[#allocation90_spill] sm:$0xff] %v5974_v4  ;;  %1825 = vmatpush.msra.mxu3 %v5991_v43  ;;  %v6010_v4 = vld [vmem:[%s9073_s10 + $0xf0] sm:$0xff] }
 0x28e   : > { %9125 = vst [vmem:[#allocation91_spill] sm:$0xff] %v5979_v60  ;;  %v6003_v60 = vld [vmem:[%s9073_s10 + $0x8] sm:$0xff]  ;;  %1806 = vmatpush.msra.mxu2 %v6010_v4 }
 0x28f   : > { %9126 = vst [vmem:[#allocation92_spill] sm:$0xff] %v5986_v28  ;;  %1793 = vmatpush.msrb.mxu1 %v6003_v60  ;;  %v6056_v28 = vld [vmem:[%s9046_s28 + $0x310] sm:$0xff] }
 0x290   : > { %9127 = vst [vmem:[#allocation93_spill] sm:$0xff] %v5991_v43  ;;  %v6015_v43 = vld [vmem:[%s9073_s10 + $0xf8] sm:$0xff]  ;;  %1937 = vmatpush.msra.mxu0 %v6056_v28 }
 0x291   : > { %9128 = vst [vmem:[#allocation94_spill] sm:$0xff] %v5998_v48  ;;  %1826 = vmatpush.msra.mxu3 %v6015_v43  ;;  %v6022_v48 = vld [vmem:[%s9073_s10 + $0xd0] sm:$0xff] }
 0x292   : > { %9129 = vst [vmem:[#allocation95_spill] sm:$0xff] %v6003_v60  ;;  %v6027_v60 = vld [vmem:[%s9073_s10 + $0xd8] sm:$0xff]  ;;  %1807 = vmatpush.msra.mxu2 %v6022_v48 }
 0x293   : > { %9130 = vst [vmem:[#allocation96_spill] sm:$0xff] %v6010_v4  ;;  %1827 = vmatpush.msra.mxu3 %v6027_v60  ;;  %v6046_v4 = vld [vmem:[%s9073_s10 + $0xb0] sm:$0xff] }
 0x294   : > { %9131 = vst [vmem:[#allocation97_spill] sm:$0xff] %v6015_v43  ;;  %v6038_v43 = vld [vmem:[%s9046_s28 + $0x350] sm:$0xff]  ;;  %1808 = vmatpush.msra.mxu2 %v6046_v4 }
 0x295   : > { %9132 = vst [vmem:[#allocation98_spill] sm:$0xff] %v6022_v48  ;;  %1956 = vmatpush.msra.mxu1 %v6038_v43  ;;  %v6080_v48 = vld [vmem:[%s9046_s28 + $0x2d8] sm:$0xff] }
 0x296   : > { %9133 = vst [vmem:[#allocation99_spill] sm:$0xff] %v6027_v60  ;;  %v6070_v60 = vld [vmem:[%s9073_s10 + $0x90] sm:$0xff]  ;;  %1938 = vmatpush.msra.mxu0 %v6080_v48 }
 0x297   : > { %9134 = vst [vmem:[#allocation100_spill] sm:$0xff] %v6032_v56  ;;  %v6051_v56 = vld [vmem:[%s9073_s10 + $0xb8] sm:$0xff]  ;;  %1809 = vmatpush.msra.mxu2 %v6070_v60 }
 0x298   : > { %9135 = vst [vmem:[#allocation101_spill] sm:$0xff] %v6038_v43  ;;  %v6062_v43 = vld [vmem:[%s9046_s28 + $0x318] sm:$0xff]  ;;  %1828 = vmatpush.msra.mxu3 %v6051_v56 }
 0x299   : > { %9136 = vst [vmem:[#allocation102_spill] sm:$0xff] %v6046_v4  ;;  %1957 = vmatpush.msra.mxu1 %v6062_v43  ;;  %v6104_v4 = vld [vmem:[%s9073_s10 + $0x50] sm:$0xff] }
 0x29a   : > { %9137 = vst [vmem:[#allocation103_spill] sm:$0xff] %v6051_v56  ;;  %v6094_v56 = vld [vmem:[%s9073_s10 + $0x70] sm:$0xff] }
 0x29b   : > { %9138 = vst [vmem:[#allocation104_spill] sm:$0xff] %v6056_v28  ;;  %v6075_v28 = vld [vmem:[%s9073_s10 + $0x98] sm:$0xff]  ;;  %1810 = vmatpush.msra.mxu2 %v6094_v56 }
 0x29c   : > { %9139 = vst [vmem:[#allocation105_spill] sm:$0xff] %v6062_v43  ;;  %v6086_v43 = vld [vmem:[%s9046_s28 + $0x2e0] sm:$0xff]  ;;  %1829 = vmatpush.msra.mxu3 %v6075_v28 }
 0x29d   : > { %9140 = vst [vmem:[#allocation106_spill] sm:$0xff] %v6070_v60  ;;  %1958 = vmatpush.msra.mxu1 %v6086_v43  ;;  %v6120_v60 = vld [vmem:[%s9046_s28 + $0x2a8] sm:$0xff]  ;;  %1811 = vmatpush.msra.mxu2 %v6104_v4 }
 0x29e   : > { %9141 = vst [vmem:[#allocation107_spill] sm:$0xff] %v6075_v28  ;;  %v6114_v28 = vld [vmem:[%s9046_s28 + $0x2a0] sm:$0xff] }
 0x29f   : > { %9142 = vst [vmem:[#allocation108_spill] sm:$0xff] %v6080_v48  ;;  %v6099_v48 = vld [vmem:[%s9073_s10 + $0x78] sm:$0xff]  ;;  %1939 = vmatpush.msra.mxu0 %v6114_v28  ;;  %1959 = vmatpush.msra.mxu1 %v6120_v60 }
 0x2a0   : > { %9143 = vst [vmem:[#allocation109_spill] sm:$0xff] %v6086_v43  ;;  %v6109_v43 = vld [vmem:[%s9073_s10 + $0x58] sm:$0xff]  ;;  %1830 = vmatpush.msra.mxu3 %v6099_v48  ;;  %1812 = vmatpush.msra.mxu2 %v6128_v5 }
 0x2a1   : > { %9144 = vst [vmem:[#allocation110_spill] sm:$0xff] %v6094_v56  ;;  %1940 = vmatpush.msra.mxu0 %v6138_v11  ;;  %v6162_v56 = vld [vmem:[%s9046_s28 + $0x230] sm:$0xff] }
 0x2a2   : > { %9145 = vst [vmem:[#allocation111_spill] sm:$0xff] %v6099_v48  ;;  %1831 = vmatpush.msra.mxu3 %v6109_v43  ;;  %v6152_v48 = vld [vmem:[%s9073_s10 + $0x10] sm:$0xff] }
 0x2a3   : > { %9146 = vst [vmem:[#allocation112_spill] sm:$0xff] %v6104_v4  ;;  %1941 = vmatpush.msra.mxu0 %v6162_v56  ;;  %1813 = vmatpush.msra.mxu2 %v6152_v48 }
 0x2a4   : > { %9147 = vst [vmem:[#allocation113_spill] sm:$0xff] %v6109_v43  ;;  %v6176_v43 = vld [vmem:[%s9046_s28 + $0x1f8] sm:$0xff] }
 0x2a5   : > { %9148 = vst [vmem:[#allocation114_spill] sm:$0xff] %v6114_v28  ;;  %v6133_v28 = vld [vmem:[%s9073_s10 + $0x38] sm:$0xff]  ;;  %1942 = vmatpush.msra.mxu0 %v6176_v43 }
 0x2a6   : > { %9149 = vst [vmem:[#allocation115_spill] sm:$0xff] %v6120_v60  ;;  %v6144_v60 = vld [vmem:[%s9046_s28 + $0x270] sm:$0xff]  ;;  %1832 = vmatpush.msra.mxu3 %v6133_v28 }
 0x2a7   : > { %9150 = vst [vmem:[#allocation116_spill] sm:$0xff] %v6128_v5  ;;  %1960 = vmatpush.msra.mxu1 %v6144_v60  ;;  %v6276_v5 = vld [vmem:[%s9046_s28 + $0x70] sm:$0xff] }
 0x2a8   : > { %9151 = vst [vmem:[#allocation117_spill] sm:$0xff] %v6133_v28  ;;  %v6196_v28 = vld [vmem:[%s9046_s28 + $0x1c8] sm:$0xff] }
 0x2a9   : > { %9152 = vst [vmem:[#allocation118_spill] sm:$0xff] %v6138_v11  ;;  %v6157_v11 = vld [vmem:[%s9073_s10 + $0x18] sm:$0xff] }
 0x2aa   : > { %9153 = vst [vmem:[#allocation119_spill] sm:$0xff] %v6144_v60  ;;  %v6168_v60 = vld [vmem:[%s9046_s28 + $0x238] sm:$0xff]  ;;  %1833 = vmatpush.msra.mxu3 %v6157_v11 }
 0x2ab   : > { %9154 = vst [vmem:[#allocation120_spill] sm:$0xff] %v6152_v48  ;;  %1961 = vmatpush.msra.mxu1 %v6168_v60  ;;  %v6236_v48 = vld [vmem:[%s9046_s28 + $0x120] sm:$0xff] }
 0x2ac   : > { %9155 = vst [vmem:[#allocation121_spill] sm:$0xff] %v6157_v11  ;;  %v6208_v11 = vld [vmem:[%s9046_s28 + $0x190] sm:$0xff] }
 0x2ad   : > { %9156 = vst [vmem:[#allocation122_spill] sm:$0xff] %v6162_v56  ;;  %v6182_v56 = vld [vmem:[%s9046_s28 + $0x200] sm:$0xff] }
 0x2ae   : > { %9157 = vst [vmem:[#allocation123_spill] sm:$0xff] %v6168_v60  ;;  %1962 = vmatpush.msra.mxu1 %v6182_v56  ;;  %v6190_v60 = vld [vmem:[%s9046_s28 + $0x1c0] sm:$0xff] }
 0x2af   : > { %9158 = vst [vmem:[#allocation124_spill] sm:$0xff] %v6176_v43  ;;  %1943 = vmatpush.msra.mxu0 %v6190_v60  ;;  %v6213_v43 = vpop.f32.mrf.mxu3 }
 0x2b0   : > { %9159 = vst [vmem:[#allocation125_spill] sm:$0xff] %v6182_v56  ;;  %1963 = vmatpush.msra.mxu1 %v6196_v28  ;;  %v6202_v56 = vld [vmem:[%s9046_s28 + $0x188] sm:$0xff] }
 0x2b1   : > { %9160 = vst [vmem:[#allocation126_spill] sm:$0xff] %v6190_v60  ;;  %1944 = vmatpush.msra.mxu0 %v6202_v56  ;;  %v6211_v60 = vpop.f32.mrf.mxu2 }
 0x2b2   : > { %9161 = vst [vmem:[#allocation127_spill] sm:$0xff] %v6196_v28  ;;  %1964 = vmatpush.msra.mxu1 %v6208_v11  ;;  %v6218_v28 = vld [vmem:[%s9046_s28 + $0x150] sm:$0xff] }
 0x2b3   : > { %9162 = vst [vmem:[#allocation128_spill] sm:$0xff] %v6202_v56  ;;  %1945 = vmatpush.msra.mxu0 %v6218_v28  ;;  %v6224_v56 = vld [vmem:[%s9046_s28 + $0x158] sm:$0xff] }
 0x2b4   : > { %9163 = vst [vmem:[#allocation129_spill] sm:$0xff] %v6208_v11  ;;  %1965 = vmatpush.msra.mxu1 %v6224_v56  ;;  %v6230_v11 = vld [vmem:[%s9046_s28 + $0x118] sm:$0xff] }
 0x2b5   : > { %9164 = vst [vmem:[#allocation130_spill] sm:$0xff] %v6218_v28  ;;  %1946 = vmatpush.msra.mxu0 %v6230_v11  ;;  %v6242_v28 = vld [vmem:[%s9046_s28 + $0xe0] sm:$0xff] }
 0x2b6   : > { %9165 = vst [vmem:[#allocation131_spill] sm:$0xff] %v6224_v56  ;;  %1966 = vmatpush.msra.mxu1 %v6236_v48  ;;  %v6248_v56 = vld [vmem:[%s9046_s28 + $0xe8] sm:$0xff] }
 0x2b7   : > { %9166 = vst [vmem:[#allocation132_spill] sm:$0xff] %v6230_v11  ;;  %1947 = vmatpush.msra.mxu0 %v6242_v28  ;;  %v6254_v11 = vld [vmem:[%s9170_s22] ss:$0 sm:$0xff] }
 0x2b8   : > { %9167 = vst [vmem:[#allocation133_spill] sm:$0xff] %v6236_v48  ;;  %1967 = vmatpush.msra.mxu1 %v6248_v56  ;;  %v6259_v48 = vld [vmem:[%s9046_s28 + $0xa8] sm:$0xff] }
 0x2b9   : > { %9168 = vst [vmem:[#allocation134_spill] sm:$0xff] %v6242_v28  ;;  %1948 = vmatpush.msra.mxu0 %v6259_v48  ;;  %v6265_v28 = vld [vmem:[%s9046_s28 + $0xb0] sm:$0xff] }
 0x2ba   : > { %9169 = vst [vmem:[#allocation135_spill] sm:$0xff] %v6248_v56  ;;  %1968 = vmatpush.msra.mxu1 %v6265_v28  ;;  %v6271_v56 = vld [vmem:[%s9174_s24] ss:$0 sm:$0xff]  ;;  %s9327_s24 = smov 64  }
 0x2bb   : > { %9171 = vst [vmem:[#allocation136_spill] sm:$0xff] %v6254_v11  ;;  %1949 = vmatpush.msra.mxu0 %v6276_v5 }
 0x2bc   : > { %9172 = vst [vmem:[#allocation137_spill] sm:$0xff] %v6259_v48  ;;  %v6282_v48 = vld [vmem:[%s9046_s28 + $0x78] sm:$0xff] }
 0x2bd   : > { %9173 = vst [vmem:[#allocation138_spill] sm:$0xff] %v6265_v28  ;;  %1969 = vmatpush.msra.mxu1 %v6282_v48  ;;  %1950 = vmatpush.msra.mxu0 %v6289_v2 }
 0x2be   : > { %9176 = vst [vmem:[#allocation139_spill] sm:$0xff] %v6271_v56 }
 0x2bf   : > { %9177 = vst [vmem:[#allocation140_spill] sm:$0xff] %v6276_v5  ;;  %v6295_v5 = vld [vmem:[%s9046_s28 + $0x40] sm:$0xff] }
 0x2c0   : > { %9178 = vst [vmem:[#allocation141_spill] sm:$0xff] %v6282_v48  ;;  %1970 = vmatpush.msra.mxu1 %v6295_v5 }
 0x2c1   : > { %9179 = vst [vmem:[#allocation142_spill] sm:$0xff] %v6295_v5  ;;  %v6328_v5 = vld [vmem:[%s9046_s28 + $0x2f8] sm:$0xff] }
 0x2df   : > { %v1658_v28 = vpop.f32.mrf.mxu2  ;;  %v1678_v4 = vpop.f32.mrf.mxu3 }
 0x2e0   : > { %v1681_v1 = vadd.f32 %v1658_v28, %v1448_v3  ;;  %v1757_v20 = vadd.f32 %v6254_v11, %v1678_v4  ;;  %v6302_v3 = vld [vmem:[%s9046_s28] sm:$0xff]  ;;  %v6308_v4 = vld [vmem:[%s9046_s28 + $0x8] sm:$0xff] }
 0x2e1   : > { %1951 = vmatpush.msra.mxu0 %v6302_v3  ;;  %9180 = vst [vmem:[#allocation143_spill] sm:$0xff] %v6308_v4  ;;  %1971 = vmatpush.msra.mxu1 %v6308_v4 }
 0x2e2   : > { %v1685_v48 = vadd.f32 %v6271_v56, %v1681_v1  ;;  %1774 = vmatmul.f32.vlgmr.msrb.gmra.mxu0 %v1757_v20  ;;  %1794 = vmatmul.f32.vlgmr.msrb.gmra.mxu1 %v1757_v20  ;;  %v6314_v1 = vld [vmem:[%s9046_s28 + $0x368] sm:$0xff]  ;;  %v6321_v56 = vld [vmem:[%s9046_s28 + $0x330] sm:$0xff] }
 0x2e3   : > { %2016 = vmatpush.msrb.mxu0 %v6314_v1  ;;  %2036 = vmatpush.msrb.mxu1 %v5291_v9  ;;  %v6336_v9 = vld [vmem:[%s9046_s28 + $0x360] sm:$0xff] }
 0x2e4   : > { %vm1686_vm3 = vcmp.ge.f32.partialorder %v1685_v48, 0.0  ;;  %v1687_v28 = vmul.f32 0.33333334, %v1685_v48 }
 0x2e5   : > { %2017 = vmatpush.msrb.mxu0 %v6321_v56  ;;  %2037 = vmatpush.msrb.mxu1 %v5296_v10  ;;  %v6342_v10 = vld [vmem:[%s9046_s28 + $0x2c0] sm:$0xff] }
 0x2e6   : > { %v1688_v11 = vsel %vm1686_vm3, %v1685_v48, %v1687_v28  ;;  %v1388_v48 = vld [vmem:[%s4806_s29 + $0x8] sm:$0xff] }
 0x2e7   : > { %v3795_v4 = vclamps-f32 %v1688_v11, 3.0  ;;  %2018 = vmatpush.msrb.mxu0 %v6328_v5  ;;  %2038 = vmatpush.msrb.mxu1 %v5313_v14  ;;  %v6356_v14 = vld [vmem:[%s9046_s28 + $0x288] sm:$0xff] }
 0x2e9   : > { %1712 = vmatmul.f32.vlgmr.msrb.gmra.mxu2 %v3795_v4  ;;  %1732 = vmatmul.f32.vlgmr.msrb.gmra.mxu3 %v3795_v4 }
 0x2ea   : > { %1976 = vmatpush.msrb.mxu2 %v5185_v44  ;;  %1996 = vmatpush.msrb.mxu3 %v6336_v9  ;;  %v6350_v44 = vld [vmem:[%s9046_s28 + $0x328] sm:$0xff] }
 0x2eb   : > { %2019 = vmatpush.msrb.mxu0 %v6342_v10  ;;  %2039 = vmatpush.msrb.mxu1 %v5325_v16  ;;  %v6370_v16 = vld [vmem:[%s9046_s28 + $0x250] sm:$0xff] }
 0x2ec   : > { %1977 = vmatpush.msrb.mxu2 %v5190_v45  ;;  %1997 = vmatpush.msrb.mxu3 %v6350_v44  ;;  %v6364_v45 = vld [vmem:[%s9046_s28 + $0x2f0] sm:$0xff] }
 0x2ed   : > { %2020 = vmatpush.msrb.mxu0 %v6356_v14  ;;  %2040 = vmatpush.msrb.mxu1 %v5337_v18  ;;  %v6385_v18 = vld [vmem:[%s9046_s28 + $0x280] sm:$0xff] }
 0x2ee   : > { %1978 = vmatpush.msrb.mxu2 %v5196_v46  ;;  %1998 = vmatpush.msrb.mxu3 %v6364_v45  ;;  %v6378_v46 = vld [vmem:[%s9046_s28 + $0x2b8] sm:$0xff] }
 0x2ef   : > { %2021 = vmatpush.msrb.mxu0 %v6370_v16  ;;  %2041 = vmatpush.msrb.mxu1 %v5350_v21  ;;  %v6405_v21 = vld [vmem:[%s9046_s28 + $0x1e0] sm:$0xff] }
 0x2f0   : > { %1979 = vmatpush.msrb.mxu2 %v5202_v47  ;;  %1999 = vmatpush.msrb.mxu3 %v6378_v46  ;;  %v6391_v47 = vld [vmem:[%s9046_s28 + $0x218] sm:$0xff] }
 0x2f1   : > { %1814 = vmatmul.f32.vlgmr.msra.gmra.mxu2 %v1757_v20  ;;  %1834 = vmatmul.f32.vlgmr.msra.gmra.mxu3 %v1757_v20 }
 0x2f2   : > { %1980 = vmatpush.msrb.mxu2 %v5211_v50  ;;  %2000 = vmatpush.msrb.mxu3 %v6385_v18  ;;  %v6399_v50 = vld [vmem:[%s9046_s28 + $0x248] sm:$0xff] }
 0x2f3   : > { %2022 = vmatpush.msrb.mxu0 %v6391_v47  ;;  %2042 = vmatpush.msrb.mxu1 %v5362_v23  ;;  %v6419_v23 = vld [vmem:[%s9046_s28 + $0x1a8] sm:$0xff] }
 0x2f4   : > { %1981 = vmatpush.msrb.mxu2 %v5217_v51  ;;  %2001 = vmatpush.msrb.mxu3 %v6399_v50  ;;  %v6413_v51 = vld [vmem:[%s9046_s28 + $0x210] sm:$0xff] }
 0x2f5   : > { %2023 = vmatpush.msrb.mxu0 %v6405_v21  ;;  %2043 = vmatpush.msrb.mxu1 %v5374_v25  ;;  %v6433_v25 = vld [vmem:[%s9046_s28 + $0x170] sm:$0xff] }
 0x2f6   : > { %1982 = vmatpush.msrb.mxu2 %v5223_v52  ;;  %2002 = vmatpush.msrb.mxu3 %v6413_v51  ;;  %v6427_v52 = vld [vmem:[%s9046_s28 + $0x1d8] sm:$0xff] }
 0x2f7   : > { %2024 = vmatpush.msrb.mxu0 %v6419_v23  ;;  %2044 = vmatpush.msrb.mxu1 %v5386_v29  ;;  %v6447_v29 = vld [vmem:[%s9046_s28 + $0x138] sm:$0xff] }
 0x2f8   : > { %1983 = vmatpush.msrb.mxu2 %v5229_v53  ;;  %2003 = vmatpush.msrb.mxu3 %v6427_v52  ;;  %v6441_v53 = vld [vmem:[%s9046_s28 + $0x1a0] sm:$0xff] }
 0x2f9   : > { %2025 = vmatpush.msrb.mxu0 %v6433_v25  ;;  %2045 = vmatpush.msrb.mxu1 %v5398_v31  ;;  %v6461_v31 = vld [vmem:[%s9046_s28 + $0x100] sm:$0xff] }
 0x2fa   : > { %1984 = vmatpush.msrb.mxu2 %v5238_v55  ;;  %2004 = vmatpush.msrb.mxu3 %v6441_v53  ;;  %v6455_v55 = vld [vmem:[%s9046_s28 + $0x168] sm:$0xff] }
 0x2fb   : > { %2026 = vmatpush.msrb.mxu0 %v6447_v29  ;;  %2046 = vmatpush.msrb.mxu1 %v5410_v33  ;;  %v6475_v33 = vld [vmem:[%s9046_s28 + $0xc8] sm:$0xff] }
 0x2fc   : > { %1985 = vmatpush.msrb.mxu2 %v5244_v57  ;;  %2005 = vmatpush.msrb.mxu3 %v6455_v55  ;;  %v6469_v57 = vld [vmem:[%s9046_s28 + $0x130] sm:$0xff] }
 0x2fd   : > { %2027 = vmatpush.msrb.mxu0 %v6461_v31  ;;  %2047 = vmatpush.msrb.mxu1 %v5422_v35  ;;  %v6489_v35 = vld [vmem:[%s9046_s28 + $0x90] sm:$0xff] }
 0x2fe   : > { %1986 = vmatpush.msrb.mxu2 %v5250_v59  ;;  %2006 = vmatpush.msrb.mxu3 %v6469_v57  ;;  %v6483_v59 = vld [vmem:[%s9046_s28 + $0xf8] sm:$0xff] }
 0x2ff   : > { %2028 = vmatpush.msrb.mxu0 %v6475_v33  ;;  %2048 = vmatpush.msrb.mxu1 %v5434_v38  ;;  %v6503_v38 = vld [vmem:[%s9046_s28 + $0x58] sm:$0xff] }
 0x300   : > { %1987 = vmatpush.msrb.mxu2 %v5258_v61  ;;  %2007 = vmatpush.msrb.mxu3 %v6483_v59  ;;  %v6497_v61 = vld [vmem:[%s9046_s28 + $0xc0] sm:$0xff] }
 0x301   : > { %2029 = vmatpush.msrb.mxu0 %v6489_v35  ;;  %2049 = vmatpush.msrb.mxu1 %v5446_v40  ;;  %v6517_v40 = vld [vmem:[%s9046_s28 + $0x20] sm:$0xff] }
 0x302   : > { %1988 = vmatpush.msrb.mxu2 %v5274_v6  ;;  %2008 = vmatpush.msrb.mxu3 %v6497_v61  ;;  %v6511_v6 = vld [vmem:[%s9046_s28 + $0x88] sm:$0xff] }
 0x303   : > { %2030 = vmatpush.msrb.mxu0 %v6503_v38  ;;  %2050 = vmatpush.msrb.mxu1 %v5458_v42  ;;  %v6532_v42 = vld [vmem:[%s9046_s28 + $0x18] sm:$0xff] }
 0x304   : > { %1989 = vmatpush.msrb.mxu2 %v5280_v7  ;;  %2009 = vmatpush.msrb.mxu3 %v6511_v6  ;;  %v6525_v7 = vld [vmem:[%s9046_s28 + $0x50] sm:$0xff] }
 0x305   : > { %2031 = vmatpush.msrb.mxu0 %v6517_v40  ;;  %2051 = vmatpush.msrb.mxu1 %v5474_v58  ;;  %v1325_v58 = vld [vmem:[%s9197_s23] sm:$0xf] }
 0x306   : > { %1990 = vmatpush.msrb.mxu2 %v5285_v8  ;;  %2010 = vmatpush.msrb.mxu3 %v6525_v7  ;;  %v6539_v8 = vld [vmem:[%s8697_s8 + $0x78] sm:$0xff]  ;;  %v6652_v28 = vperm.slane %v1325_v58, 0 }
 0x307   : > { %9181 = vst [vmem:[#allocation144_spill] sm:$0xff] %v6539_v8 }
 0x308   : > { %1991 = vmatpush.msrb.mxu2 %v5301_v12  ;;  %2011 = vmatpush.msrb.mxu3 %v6532_v42  ;;  %v6546_v12 = vld [vmem:[%s8697_s8 + $0x70] sm:$0xff]  ;;  %9198 = vst [vmem:[#allocation160_spill] sm:$0xff] %v6652_v28 }
 0x309   : > { %9182 = vst [vmem:[#allocation145_spill] sm:$0xff] %v6546_v12 }
 0x30a   : > { %2056 = vmatpush.msra.mxu2 %v5308_v13  ;;  %2082 = vmatpush.msra.mxu3 %v6539_v8  ;;  %v6553_v13 = vld [vmem:[%s8697_s8 + $0x68] sm:$0xff] }
 0x30b   : > { %9183 = vst [vmem:[#allocation146_spill] sm:$0xff] %v6553_v13 }
 0x30c   : > { %2057 = vmatpush.msra.mxu2 %v5320_v15  ;;  %2083 = vmatpush.msra.mxu3 %v6546_v12  ;;  %v6560_v15 = vld [vmem:[%s8697_s8 + $0x60] sm:$0xff] }
 0x30d   : > { %9184 = vst [vmem:[#allocation147_spill] sm:$0xff] %v6560_v15 }
 0x30e   : > { %2058 = vmatpush.msra.mxu2 %v5332_v17  ;;  %2084 = vmatpush.msra.mxu3 %v6553_v13  ;;  %v6567_v17 = vld [vmem:[%s8697_s8 + $0x58] sm:$0xff] }
 0x30f   : > { %9185 = vst [vmem:[#allocation148_spill] sm:$0xff] %v6567_v17 }
 0x310   : > { %2059 = vmatpush.msra.mxu2 %v5345_v19  ;;  %2085 = vmatpush.msra.mxu3 %v6560_v15  ;;  %v6574_v19 = vld [vmem:[%s8697_s8 + $0x50] sm:$0xff] }
 0x311   : > { %9186 = vst [vmem:[#allocation149_spill] sm:$0xff] %v6574_v19 }
 0x312   : > { %2060 = vmatpush.msra.mxu2 %v5357_v22  ;;  %2086 = vmatpush.msra.mxu3 %v6567_v17  ;;  %v6581_v22 = vld [vmem:[%s8697_s8 + $0x48] sm:$0xff] }
 0x313   : > { %9187 = vst [vmem:[#allocation150_spill] sm:$0xff] %v6581_v22 }
 0x314   : > { %2061 = vmatpush.msra.mxu2 %v5369_v24  ;;  %2087 = vmatpush.msra.mxu3 %v6574_v19  ;;  %v6588_v24 = vld [vmem:[%s8697_s8 + $0x40] sm:$0xff] }
 0x315   : > { %9188 = vst [vmem:[#allocation151_spill] sm:$0xff] %v6588_v24 }
 0x316   : > { %2062 = vmatpush.msra.mxu2 %v5381_v26  ;;  %2088 = vmatpush.msra.mxu3 %v6581_v22  ;;  %v6595_v26 = vld [vmem:[%s8697_s8 + $0x38] sm:$0xff] }
 0x317   : > { %9189 = vst [vmem:[#allocation152_spill] sm:$0xff] %v6595_v26 }
 0x318   : > { %2063 = vmatpush.msra.mxu2 %v5393_v30  ;;  %2089 = vmatpush.msra.mxu3 %v6588_v24  ;;  %v6602_v30 = vld [vmem:[%s8697_s8 + $0x30] sm:$0xff] }
 0x319   : > { %9190 = vst [vmem:[#allocation153_spill] sm:$0xff] %v6602_v30 }
 0x31a   : > { %2064 = vmatpush.msra.mxu2 %v5405_v32  ;;  %2090 = vmatpush.msra.mxu3 %v6595_v26  ;;  %v6609_v32 = vld [vmem:[%s8697_s8 + $0x28] sm:$0xff]  ;;  %v1323_v26 = vld [vmem:[%s9200_s26] sm:$0x3] }
 0x31b   : > { %9191 = vst [vmem:[#allocation154_spill] sm:$0xff] %v6609_v32 }
 0x31c   : > { %2065 = vmatpush.msra.mxu2 %v5417_v34  ;;  %2091 = vmatpush.msra.mxu3 %v6602_v30  ;;  %v6616_v34 = vld [vmem:[%s8697_s8 + $0x20] sm:$0xff] }
 0x31d   : > { %9192 = vst [vmem:[#allocation155_spill] sm:$0xff] %v6616_v34 }
 0x31e   : > { %2066 = vmatpush.msra.mxu2 %v5429_v36  ;;  %2092 = vmatpush.msra.mxu3 %v6609_v32  ;;  %v6623_v36 = vld [vmem:[%s8697_s8 + $0x18] sm:$0xff] }
 0x31f   : > { %9193 = vst [vmem:[#allocation156_spill] sm:$0xff] %v6623_v36 }
 0x320   : > { %2067 = vmatpush.msra.mxu2 %v5441_v39  ;;  %2093 = vmatpush.msra.mxu3 %v6616_v34  ;;  %v6630_v39 = vld [vmem:[%s8697_s8 + $0x10] sm:$0xff] }
 0x321   : > { %9194 = vst [vmem:[#allocation157_spill] sm:$0xff] %v6630_v39 }
 0x322   : > { %2068 = vmatpush.msra.mxu2 %v5453_v41  ;;  %2094 = vmatpush.msra.mxu3 %v6623_v36  ;;  %v6637_v41 = vld [vmem:[%s8697_s8 + $0x8] sm:$0xff] }
 0x323   : > { %9195 = vst [vmem:[#allocation158_spill] sm:$0xff] %v6637_v41 }
 0x324   : > { %2069 = vmatpush.msra.mxu2 %v5467_v54  ;;  %2095 = vmatpush.msra.mxu3 %v6630_v39  ;;  %v6644_v54 = vld [vmem:[%s8697_s8] sm:$0xff] }
 0x325   : > { %9196 = vst [vmem:[#allocation159_spill] sm:$0xff] %v6644_v54 }
 0x326   : > { %2070 = vmatpush.msra.mxu2 %v5479_v62  ;;  %2096 = vmatpush.msra.mxu3 %v6637_v41  ;;  %v1387_v62 = vld [vmem:[%s4806_s29] sm:$0xff] }
 0x328   : > { %2071 = vmatpush.msra.mxu2 %v5492_v0  ;;  %2097 = vmatpush.msra.mxu3 %v6644_v54  ;;  %v6654_v0 = vperm.slane %v1325_v58, 1 }
 0x32a   : > { %9199 = vst [vmem:[#allocation161_spill] sm:$0xff] %v6654_v0 }
 0x35f   : > { %v1775_v20 = vpop.f32.mrf.mxu0  ;;  %v1795_v11 = vpop.f32.mrf.mxu1 }
 0x360   : > { %v1776_v4 = vadd.f32 %v1775_v20, %v1387_v62  ;;  %v1796_v41 = vadd.f32 %v1795_v11, %v1388_v48  ;;  %v6663_v62 = vperm.slane %v1323_v26, 0  ;;  %v6665_v48 = vperm.slane %v1323_v26, 1 }
 0x362   : > { %v1838_v39 = vadd.f32 %v1776_v4, %v5177_v37  ;;  %v1839_v36 = vadd.f32 %v1796_v41, %v5206_v49  ;;  %9201 = vst [vmem:[#allocation162_spill] sm:$0xff] %v6663_v62 }
 0x363   : > { %9202 = vst [vmem:[#allocation163_spill] sm:$0xff] %v6665_v48 }
 0x364   : > { %v1851_v54 = vadd.f32 %v6652_v28, %v1838_v39  ;;  %v1852_v34 = vadd.f32 %v6654_v0, %v1839_v36  ;;  %v1390_v0 = vld [vmem:[%s4806_s29 + $0x18] sm:$0xff] }
 0x366   : > { %v3798_v32 = vmul.f32 -1.442695, %v1851_v54  ;;  %v3799_v30 = vmul.f32 -1.442695, %v1852_v34 }
 0x368   : > { %3961 = vpow2.f32 %v3798_v32  ;;  %v1389_v32 = vld [vmem:[%s4806_s29 + $0x10] sm:$0xff] }
 0x369   : > { %3963 = vpow2.f32 %v3799_v30 }
 0x36c   : > { %v1713_v37 = vpop.f32.mrf.mxu2  ;;  %v1733_v49 = vpop.f32.mrf.mxu3 }
 0x36d   : > { %v1714_v39 = vadd.f32 %v1713_v37, %v6663_v62  ;;  %v1734_v36 = vadd.f32 %v1733_v49, %v6665_v48  ;;  %v6671_v62 = vperm.slane %v1325_v58, 2 }
 0x36e   : > { %v3962_v41 = vpop.eup %3961 }
 0x36f   : > { %v3964_v34 = vpop.eup %3963  ;;  %v1864_v54 = vadd.f32 1.0, %v3962_v41  ;;  %v3796_v20 = vclamps-f32 %v1714_v39, 8.0  ;;  %v3797_v11 = vclamps-f32 %v1734_v36, 8.0  ;;  %9203 = vst [vmem:[#allocation164_spill] sm:$0xff] %v6671_v62  ;;  %v6675_v41 = vperm.slane %v1325_v58, 3 }
 0x370   : > { %v1865_v4 = vadd.f32 1.0, %v3964_v34  ;;  %v3787_v34 = vld [vmem:[%s4808_s14 + $0x18] sm:$0xff] }
 0x371   : > { %3965 = vrcp.f32 %v1864_v54  ;;  %v1745_v30 = vsub.f32 0.0, %v3797_v11  ;;  %vm1872_vm4 = vweird.f32 %v1864_v54 }
 0x372   : > { %3967 = vrcp.f32 %v1865_v4  ;;  %vm1887_vm7 = vweird.f32 %v1865_v4 }
 0x373   : > { %3969 = vtanh.f32 %v3796_v20  ;;  %v1746_v26 = vmul.f32 1.442695, %v1745_v30 }
 0x374   : > { %v1815_v28 = vpop.f32.mrf.mxu2  ;;  %v1835_v24 = vpop.f32.mrf.mxu3 }
 0x375   : > { %3971 = vpow2.f32 %v1746_v26  ;;  %v1816_v37 = vadd.f32 %v1815_v28, %v1389_v32  ;;  %v1836_v49 = vadd.f32 %v1835_v24, %v1390_v0  ;;  %v1740_v26 = vmul.f32 0.5, %v3797_v11 }
 0x377   : > { %v3966_v48 = vpop.eup %3965  ;;  %v1840_v39 = vadd.f32 %v1816_v37, %v6211_v60  ;;  %v1841_v36 = vadd.f32 %v1836_v49, %v6213_v43  ;;  %v1741_v12 = vsub.f32 -0.9189385, %v1740_v26 }
 0x378   : > { %v3968_v22 = vpop.eup %3967  ;;  %v1868_v19 = vmul.f32 %v3966_v48, %v1864_v54  ;;  %vm1873_vm5 = vweird.f32 %v3966_v48 }
 0x379   : > { %v3970_v17 = vpop.eup %3969  ;;  %v1883_v20 = vmul.f32 %v3968_v22, %v1865_v4  ;;  %v1853_v30 = vadd.f32 %v6671_v62, %v1840_v39  ;;  %v1854_v0 = vadd.f32 %v6675_v41, %v1841_v36  ;;  %vm1888_vm6 = vweird.f32 %v3968_v22  ;;  %vm6680_vm8 = vmor %vm1872_vm4, %vm1873_vm5 }
 0x37a   : > { %v1869_v15 = vsub.f32 1.0, %v1868_v19  ;;  %v1743_v28 = vsub.f32 %v3787_v34, %v3970_v17  ;;  %v1893_v39 = vand.u32 2147483648, %v1865_v4  ;;  %v1878_v19 = vand.u32 2147483648, %v1864_v54  ;;  %vm1889_vm9 = vmor %vm1887_vm7, %vm1888_vm6 }
 0x37b   : > { %v3972_v32 = vpop.eup %3971  ;;  %v1884_v13 = vsub.f32 1.0, %v1883_v20  ;;  %v3800_v24 = vmul.f32 -1.442695, %v1853_v30  ;;  %v1891_v36 = vand.u32 2147483647, %v1865_v4 }
 0x37c   : > { %v1870_v60 = vmul.f32 %v3966_v48, %v1869_v15  ;;  %v1744_v37 = vmul.f32 %v1743_v28, %v1743_v28  ;;  %v1748_v43 = vmul.f32 0.5, %v3972_v32  ;;  %v1876_v15 = vand.u32 2147483647, %v1864_v54 }
 0x37d   : > { %v1885_v58 = vmul.f32 %v3968_v22, %v1884_v13  ;;  %3973 = vpow2.f32 %v3800_v24  ;;  %v1894_v26 = vor.u32 1.1754944e-38, %v1893_v39  ;;  %v1879_v28 = vor.u32 1.1754944e-38, %v1878_v19 }
 0x37e   : > { %v1871_v49 = vadd.f32 %v3966_v48, %v1870_v60  ;;  %v1749_v8 = vmul.f32 %v1748_v43, %v1744_v37  ;;  %3975 = vtanh.f32 %v1854_v0  ;;  %vm1877_vm10 = vcmp.eq.f32.partialorder %v1876_v15, 8.507059e+37  ;;  %v1380_v0 = vld [vmem:[#allocation3] sm:$0xff] }
 0x37f   : > { %v1886_v11 = vadd.f32 %v3968_v22, %v1885_v58  ;;  %vm1892_vm11 = vcmp.eq.f32.partialorder %v1891_v36, 8.507059e+37 }
 0x380   : > { %v6684_v34 = vsub.f32 %v1741_v12, %v1749_v8  ;;  %v1875_v13 = vsel %vm6680_vm8, %v3966_v48, %v1871_v49 }
 0x381   : > { %v1890_v20 = vsel %vm1889_vm9, %v3968_v22, %v1886_v11  ;;  %v1880_v60 = vsel %vm1877_vm10, %v1879_v28, %v1875_v13  ;;  %v6695_v13 = vld [vmem:[%s8701_s12 + $0x78] sm:$0xff]  ;;  %v9209_v28 = vld [vmem:[#allocation32_spill] sm:$0xff] }
 0x382   : > { %9206 = vst [vmem:[#allocation165_spill] sm:$0xff] %v6684_v34  ;;  %v1895_v37 = vsel %vm1892_vm11, %v1894_v26, %v1890_v20  ;;  %v9207_v20 = vld [vmem:[#allocation31_spill] sm:$0xff]  ;;  %v9208_v26 = vld [vmem:[#allocation24_spill] sm:$0xff] }
 0x383   : > { %v3974_v30 = vpop.eup %3973  ;;  %v1913_v54 = vmul.f32 %v1895_v37, %v1380_v0  ;;  %v9213_v0 = vld [vmem:[#allocation35_spill] sm:$0xff]  ;;  %v9214_v37 = vld [vmem:[#allocation26_spill] sm:$0xff]  ;;  %v9257_v34 = vld [vmem:[#allocation40_spill] sm:$0xff] }
 0x384   : > { %v1866_v32 = vadd.f32 1.0, %v3974_v30  ;;  %v3976_v24 = vpop.eup %3975  ;;  %v6704_v30 = vld [vmem:[%s8701_s12 + $0x70] sm:$0xff] }
 0x385   : > { %v1914_v4 = vmul.f32 %v3976_v24, %v1880_v60  ;;  %v9212_v24 = vld [vmem:[#allocation34_spill] sm:$0xff] }
 0x386   : > { %3977 = vrcp.f32 %v1866_v32  ;;  %v1908_v22 = vand.u32 2147483648, %v1866_v32  ;;  %v1906_v49 = vand.u32 2147483647, %v1866_v32  ;;  %vm1902_vm13 = vweird.f32 %v1866_v32  ;;  %v6722_v60 = vld [vmem:[%s8701_s12 + $0x60] sm:$0xff] }
 0x387   : > { %v6688_v12 = vadd.f32 %v1914_v4, %v1913_v54  ;;  %v9215_v54 = vld [vmem:[#allocation36_spill] sm:$0xff]  ;;  %v6730_v4 = vld [vmem:[%s8701_s12 + $0x58] sm:$0xff] }
 0x388   : > { %v1909_v19 = vor.u32 1.1754944e-38, %v1908_v22  ;;  %vm1907_vm15 = vcmp.eq.f32.partialorder %v1906_v49, 8.507059e+37  ;;  %v6739_v22 = vld [vmem:[%s8701_s12 + $0x50] sm:$0xff] }
 0x389   : > { %3979 = vtanh.f32 %v6688_v12  ;;  %v9220_v49 = vld [vmem:[#allocation28_spill] sm:$0xff] }
 0x38c   : > { %v3978_v8 = vpop.eup %3977 }
 0x38d   : > { %v1898_v43 = vmul.f32 %v3978_v8, %v1866_v32  ;;  %vm1903_vm12 = vweird.f32 %v3978_v8  ;;  %v9210_v32 = vld [vmem:[#allocation33_spill] sm:$0xff] }
 0x38e   : > { %vm1904_vm14 = vmor %vm1902_vm13, %vm1903_vm12 }
 0x38f   : > { %v1899_v48 = vsub.f32 1.0, %v1898_v43  ;;  %v3980_v17 = vpop.eup %3979  ;;  %v9217_v43 = vld [vmem:[#allocation27_spill] sm:$0xff] }
 0x391   : > { %v1900_v58 = vmul.f32 %v3978_v8, %v1899_v48  ;;  %v9218_v48 = vld [vmem:[#allocation38_spill] sm:$0xff] }
 0x393   : > { %v1901_v39 = vadd.f32 %v3978_v8, %v1900_v58  ;;  %v9219_v58 = vld [vmem:[#allocation39_spill] sm:$0xff] }
 0x395   : > { %v1905_v11 = vsel %vm1904_vm14, %v3978_v8, %v1901_v39  ;;  %v9216_v8 = vld [vmem:[#allocation37_spill] sm:$0xff]  ;;  %v9221_v39 = vld [vmem:[#allocation42_spill] sm:$0xff] }
 0x396   : > { %v1910_v15 = vsel %vm1907_vm15, %v1909_v19, %v1905_v11  ;;  %v6748_v19 = vld [vmem:[%s8701_s12 + $0x48] sm:$0xff] }
 0x397   : > { %v1917_v36 = vmul.f32 %v3980_v17, %v1910_v15  ;;  %v9222_v11 = vld [vmem:[#allocation43_spill] sm:$0xff]  ;;  %v9223_v17 = vld [vmem:[#allocation29_spill] sm:$0xff] }
 0x398   : > { %v9224_v15 = vld [vmem:[#allocation45_spill] sm:$0xff] }
 0x399   : > { %1918 = vst [vmem:[%s4814_s15] sm:$0xff] %v1917_v36  ;;  %1952 = vmatmul.f32.vlgmr.msra.gmra.mxu0 %v1917_v36  ;;  %1972 = vmatmul.f32.vlgmr.msra.gmra.mxu1 %v1917_v36 }
 0x39a   : > { %1992 = vmatmul.f32.vlgmr.msrb.gmra.mxu2 %v1917_v36  ;;  %2012 = vmatmul.f32.vlgmr.msrb.gmra.mxu3 %v1917_v36 }
 0x39b   : > { %2111 = vmatpush.msra.mxu0 %v6695_v13  ;;  %2181 = vmatpush.msra.mxu1 %v5484_v63  ;;  %v6713_v63 = vld [vmem:[%s8701_s12 + $0x68] sm:$0xff] }
 0x39c   : > { %2220 = vmatpush.msrb.mxu2 %v5572_v27  ;;  %2240 = vmatpush.msrb.mxu3 %v9207_v20  ;;  %v9211_v27 = vld [vmem:[#allocation25_spill] sm:$0xff]  ;;  %v9225_v20 = vld [vmem:[#allocation46_spill] sm:$0xff] }
 0x39d   : > { %2112 = vmatpush.msra.mxu0 %v6704_v30  ;;  %2182 = vmatpush.msra.mxu1 %v9208_v26  ;;  %v9226_v26 = vld [vmem:[#allocation30_spill] sm:$0xff] }
 0x39e   : > { %2221 = vmatpush.msrb.mxu2 %v9209_v28  ;;  %2241 = vmatpush.msrb.mxu3 %v9210_v32  ;;  %v9227_v28 = vld [vmem:[#allocation48_spill] sm:$0xff]  ;;  %v6766_v32 = vld [vmem:[%s8701_s12 + $0x38] sm:$0xff] }
 0x39f   : > { %2113 = vmatpush.msra.mxu0 %v6713_v63  ;;  %2183 = vmatpush.msra.mxu1 %v9211_v27  ;;  %v6772_v27 = vld [vmem:[%s9055_s3 + $0x78] sm:$0xff] }
 0x3a0   : > { %2222 = vmatpush.msrb.mxu2 %v9212_v24  ;;  %2242 = vmatpush.msrb.mxu3 %v9213_v0  ;;  %9228 = vst [vmem:[#allocation31_spill] sm:$0xff] %v6772_v27  ;;  %v9229_v24 = vld [vmem:[#allocation49_spill] sm:$0xff]  ;;  %v9230_v0 = vld [vmem:[#allocation51_spill] sm:$0xff] }
 0x3a1   : > { %2032 = vmatmul.f32.vlgmr.msrb.gmra.mxu0 %v1917_v36  ;;  %2052 = vmatmul.f32.vlgmr.msrb.gmra.mxu1 %v1917_v36 }
 0x3a2   : > { %2072 = vmatmul.f32.vlgmr.msra.gmra.mxu2 %v1917_v36  ;;  %2114 = vmatpush.msra.mxu0 %v6722_v60  ;;  %v6757_v36 = vld [vmem:[%s8701_s12 + $0x40] sm:$0xff] }
 0x3a3   : > { %2184 = vmatpush.msra.mxu1 %v9214_v37  ;;  %2223 = vmatpush.msrb.mxu2 %v9215_v54  ;;  %v6780_v37 = vld [vmem:[%s8701_s12 + $0x30] sm:$0xff]  ;;  %v6786_v54 = vld [vmem:[%s9055_s3 + $0x68] sm:$0xff] }
 0x3a4   : > { %2115 = vmatpush.msra.mxu0 %v6730_v4  ;;  %2243 = vmatpush.msrb.mxu3 %v9216_v8  ;;  %9231 = vst [vmem:[#allocation24_spill] sm:$0xff] %v6780_v37  ;;  %v9233_v8 = vld [vmem:[#allocation52_spill] sm:$0xff] }
 0x3a5   : > { %2185 = vmatpush.msra.mxu1 %v9217_v43  ;;  %2224 = vmatpush.msrb.mxu2 %v9218_v48  ;;  %9232 = vst [vmem:[#allocation32_spill] sm:$0xff] %v6786_v54  ;;  %v9234_v43 = vld [vmem:[#allocation54_spill] sm:$0xff]  ;;  %v6794_v48 = vld [vmem:[%s8701_s12 + $0x28] sm:$0xff] }
 0x3a6   : > { %2116 = vmatpush.msra.mxu0 %v6739_v22  ;;  %2244 = vmatpush.msrb.mxu3 %v9219_v58  ;;  %9235 = vst [vmem:[#allocation33_spill] sm:$0xff] %v6794_v48  ;;  %v6800_v58 = vld [vmem:[%s9055_s3 + $0x58] sm:$0xff] }
 0x3a7   : > { %2186 = vmatpush.msra.mxu1 %v9220_v49  ;;  %2225 = vmatpush.msrb.mxu2 %v9221_v39  ;;  %9236 = vst [vmem:[#allocation25_spill] sm:$0xff] %v6800_v58  ;;  %v9237_v49 = vld [vmem:[#allocation55_spill] sm:$0xff]  ;;  %v9238_v39 = vld [vmem:[#allocation57_spill] sm:$0xff] }
 0x3a8   : > { %2117 = vmatpush.msra.mxu0 %v6748_v19  ;;  %2245 = vmatpush.msrb.mxu3 %v9222_v11  ;;  %v6808_v11 = vld [vmem:[%s8701_s12 + $0x20] sm:$0xff] }
 0x3a9   : > { %2187 = vmatpush.msra.mxu1 %v9223_v17  ;;  %2226 = vmatpush.msrb.mxu2 %v9224_v15  ;;  %9239 = vst [vmem:[#allocation34_spill] sm:$0xff] %v6808_v11  ;;  %v6814_v17 = vld [vmem:[%s9055_s3 + $0x48] sm:$0xff]  ;;  %v9241_v15 = vld [vmem:[#allocation58_spill] sm:$0xff] }
 0x3aa   : > { %2118 = vmatpush.msra.mxu0 %v6757_v36  ;;  %2246 = vmatpush.msrb.mxu3 %v9225_v20  ;;  %9240 = vst [vmem:[#allocation35_spill] sm:$0xff] %v6814_v17  ;;  %v9242_v20 = vld [vmem:[#allocation60_spill] sm:$0xff] }
 0x3ab   : > { %2188 = vmatpush.msra.mxu1 %v9226_v26  ;;  %2227 = vmatpush.msrb.mxu2 %v9227_v28  ;;  %v6822_v26 = vld [vmem:[%s8701_s12 + $0x18] sm:$0xff] }
 0x3ac   : > { %2119 = vmatpush.msra.mxu0 %v6766_v32  ;;  %2247 = vmatpush.msrb.mxu3 %v9229_v24  ;;  %9243 = vst [vmem:[#allocation26_spill] sm:$0xff] %v6822_v26  ;;  %v6828_v28 = vld [vmem:[%s9055_s3 + $0x38] sm:$0xff] }
 0x3ad   : > { %2201 = vmatpush.msrb.mxu1 %v6772_v27  ;;  %2228 = vmatpush.msrb.mxu2 %v9230_v0  ;;  %9244 = vst [vmem:[#allocation36_spill] sm:$0xff] %v6828_v28  ;;  %v9245_v24 = vld [vmem:[#allocation61_spill] sm:$0xff]  ;;  %v9246_v0 = vld [vmem:[#allocation63_spill] sm:$0xff] }
 0x3ae   : > { %2120 = vmatpush.msra.mxu0 %v6780_v37  ;;  %2248 = vmatpush.msrb.mxu3 %v9233_v8  ;;  %v6836_v8 = vld [vmem:[%s8701_s12 + $0x10] sm:$0xff]  ;;  %v9328_v37 = vld [vmem:[#allocation23_spill] sm:$0xff] }
 0x3af   : > { %2202 = vmatpush.msrb.mxu1 %v6786_v54  ;;  %2229 = vmatpush.msrb.mxu2 %v9234_v43  ;;  %9247 = vst [vmem:[#allocation37_spill] sm:$0xff] %v6836_v8  ;;  %v6842_v43 = vld [vmem:[%s9055_s3 + $0x28] sm:$0xff]  ;;  %v9300_v54 = vld [vmem:[#allocation80_spill] sm:$0xff] }
 0x3b0   : > { %2121 = vmatpush.msra.mxu0 %v6794_v48  ;;  %2249 = vmatpush.msrb.mxu3 %v9237_v49  ;;  %9248 = vst [vmem:[#allocation27_spill] sm:$0xff] %v6842_v43  ;;  %v9249_v49 = vld [vmem:[#allocation64_spill] sm:$0xff]  ;;  %v9295_v48 = vld [vmem:[#allocation73_spill] sm:$0xff] }
 0x3b1   : > { %2203 = vmatpush.msrb.mxu1 %v6800_v58  ;;  %2230 = vmatpush.msrb.mxu2 %v9238_v39  ;;  %v9250_v39 = vld [vmem:[#allocation66_spill] sm:$0xff] }
 0x3b2   : > { %2122 = vmatpush.msra.mxu0 %v6808_v11  ;;  %2250 = vmatpush.msrb.mxu3 %v9241_v15  ;;  %v6850_v15 = vld [vmem:[%s8701_s12 + $0x8] sm:$0xff] }
 0x3b3   : > { %2204 = vmatpush.msrb.mxu1 %v6814_v17  ;;  %2231 = vmatpush.msrb.mxu2 %v9242_v20  ;;  %9251 = vst [vmem:[#allocation38_spill] sm:$0xff] %v6850_v15  ;;  %v6856_v20 = vld [vmem:[%s9055_s3 + $0x18] sm:$0xff] }
 0x3b4   : > { %2123 = vmatpush.msra.mxu0 %v6822_v26  ;;  %2251 = vmatpush.msrb.mxu3 %v9245_v24  ;;  %9252 = vst [vmem:[#allocation39_spill] sm:$0xff] %v6856_v20  ;;  %v9253_v24 = vld [vmem:[#allocation67_spill] sm:$0xff]  ;;  %v9266_v26 = vld [vmem:[#allocation76_spill] sm:$0xff] }
 0x3b5   : > { %2205 = vmatpush.msrb.mxu1 %v6828_v28  ;;  %2232 = vmatpush.msrb.mxu2 %v9246_v0  ;;  %v9254_v0 = vld [vmem:[#allocation68_spill] sm:$0xff]  ;;  %v9265_v28 = vld [vmem:[#allocation47_spill] sm:$0xff] }
 0x3b6   : > { %2124 = vmatpush.msra.mxu0 %v6836_v8  ;;  %2252 = vmatpush.msrb.mxu3 %v9249_v49  ;;  %v6864_v49 = vld [vmem:[%s8701_s12] sm:$0xff] }
 0x3b7   : > { %2206 = vmatpush.msrb.mxu1 %v6842_v43  ;;  %2233 = vmatpush.msrb.mxu2 %v9250_v39  ;;  %9255 = vst [vmem:[#allocation28_spill] sm:$0xff] %v6864_v49  ;;  %v6870_v39 = vld [vmem:[%s9055_s3 + $0x8] sm:$0xff]  ;;  %v9262_v43 = vld [vmem:[#allocation72_spill] sm:$0xff]  ;;  %v9264_v8 = vld [vmem:[#allocation74_spill] sm:$0xff] }
 0x3b8   : > { %2125 = vmatpush.msra.mxu0 %v6850_v15  ;;  %2253 = vmatpush.msrb.mxu3 %v9253_v24  ;;  %9256 = vst [vmem:[#allocation42_spill] sm:$0xff] %v6870_v39  ;;  %v9259_v24 = vld [vmem:[#allocation70_spill] sm:$0xff]  ;;  %v9261_v15 = vld [vmem:[#allocation71_spill] sm:$0xff] }
 0x3b9   : > { %2207 = vmatpush.msrb.mxu1 %v6856_v20  ;;  %2234 = vmatpush.msrb.mxu2 %v9254_v0  ;;  %v9258_v20 = vld [vmem:[#allocation69_spill] sm:$0xff] }
 0x3ba   : > { %2126 = vmatpush.msra.mxu0 %v6864_v49  ;;  %2254 = vmatpush.msrb.mxu3 %v9258_v20  ;;  %v9260_v0 = vld [vmem:[#allocation41_spill] sm:$0xff]  ;;  %v9263_v49 = vld [vmem:[#allocation44_spill] sm:$0xff] }
 0x3bb   : > { %2208 = vmatpush.msrb.mxu1 %v6870_v39  ;;  %2235 = vmatpush.msrb.mxu2 %v9259_v24  ;;  %v9267_v39 = vld [vmem:[#allocation50_spill] sm:$0xff]  ;;  %v9269_v20 = vld [vmem:[#allocation53_spill] sm:$0xff] }
 0x3bc   : > { %2279 = vmatpush.msrb.mxu0 %v9257_v34  ;;  %2255 = vmatpush.msrb.mxu3 %v9261_v15  ;;  %v9268_v34 = vld [vmem:[#allocation79_spill] sm:$0xff]  ;;  %v9270_v24 = vld [vmem:[#allocation82_spill] sm:$0xff]  ;;  %v9272_v15 = vld [vmem:[#allocation85_spill] sm:$0xff] }
 0x3bd   : > { %2319 = vmatpush.msra.mxu2 %v9262_v43  ;;  %v9273_v43 = vld [vmem:[#allocation59_spill] sm:$0xff] }
 0x3be   : > { %2280 = vmatpush.msrb.mxu0 %v9260_v0  ;;  %v9271_v0 = vld [vmem:[#allocation56_spill] sm:$0xff] }
 0x3bf   : > { %2320 = vmatpush.msra.mxu2 %v9264_v8  ;;  %v9275_v8 = vld [vmem:[#allocation62_spill] sm:$0xff] }
 0x3c0   : > { %2281 = vmatpush.msrb.mxu0 %v9263_v49  ;;  %v9274_v49 = vld [vmem:[#allocation88_spill] sm:$0xff] }
 0x3c1   : > { %2321 = vmatpush.msra.mxu2 %v9266_v26  ;;  %v9277_v26 = vld [vmem:[#allocation65_spill] sm:$0xff] }
 0x3c2   : > { %2282 = vmatpush.msrb.mxu0 %v9265_v28  ;;  %v9276_v28 = vld [vmem:[#allocation92_spill] sm:$0xff] }
 0x3c3   : > { %2322 = vmatpush.msra.mxu2 %v9268_v34  ;;  %v9279_v34 = vld [vmem:[#allocation78_spill] sm:$0xff] }
 0x3c4   : > { %2283 = vmatpush.msrb.mxu0 %v9267_v39  ;;  %v9278_v39 = vld [vmem:[#allocation96_spill] sm:$0xff] }
 0x3c5   : > { %2323 = vmatpush.msra.mxu2 %v9270_v24  ;;  %v9281_v24 = vld [vmem:[#allocation81_spill] sm:$0xff] }
 0x3c6   : > { %2284 = vmatpush.msrb.mxu0 %v9269_v20  ;;  %v9280_v20 = vld [vmem:[#allocation98_spill] sm:$0xff] }
 0x3c7   : > { %2324 = vmatpush.msra.mxu2 %v9272_v15  ;;  %v9283_v15 = vld [vmem:[#allocation84_spill] sm:$0xff] }
 0x3c8   : > { %2285 = vmatpush.msrb.mxu0 %v9271_v0  ;;  %v9282_v0 = vld [vmem:[#allocation102_spill] sm:$0xff] }
 0x3c9   : > { %2325 = vmatpush.msra.mxu2 %v9274_v49  ;;  %v9285_v49 = vld [vmem:[#allocation87_spill] sm:$0xff] }
 0x3ca   : > { %2286 = vmatpush.msrb.mxu0 %v9273_v43  ;;  %v9284_v43 = vld [vmem:[#allocation106_spill] sm:$0xff] }
 0x3cb   : > { %2326 = vmatpush.msra.mxu2 %v9276_v28  ;;  %v9287_v28 = vld [vmem:[#allocation90_spill] sm:$0xff] }
 0x3cc   : > { %2287 = vmatpush.msrb.mxu0 %v9275_v8  ;;  %v9286_v8 = vld [vmem:[#allocation110_spill] sm:$0xff] }
 0x3cd   : > { %2327 = vmatpush.msra.mxu2 %v9278_v39  ;;  %v9289_v39 = vld [vmem:[#allocation94_spill] sm:$0xff] }
 0x3ce   : > { %2288 = vmatpush.msrb.mxu0 %v9277_v26  ;;  %v9288_v26 = vld [vmem:[#allocation112_spill] sm:$0xff] }
 0x3cf   : > { %2328 = vmatpush.msra.mxu2 %v9280_v20  ;;  %v9291_v20 = vld [vmem:[#allocation120_spill] sm:$0xff] }
 0x3d0   : > { %2289 = vmatpush.msrb.mxu0 %v9279_v34  ;;  %v9290_v34 = vld [vmem:[#allocation116_spill] sm:$0xff] }
 0x3d1   : > { %2329 = vmatpush.msra.mxu2 %v9282_v0 }
 0x3d2   : > { %2290 = vmatpush.msrb.mxu0 %v9281_v24 }
 0x3d3   : > { %2330 = vmatpush.msra.mxu2 %v9284_v43 }
 0x3d4   : > { %2291 = vmatpush.msrb.mxu0 %v9283_v15  ;;  %v6911_v15 = vld [vmem:[%s9047_s27] ss:$0 sm:$0xff] }
 0x3d5   : > { %2331 = vmatpush.msra.mxu2 %v9286_v8  ;;  %9292 = vst [vmem:[#allocation43_spill] sm:$0xff] %v6911_v15 }
 0x3d6   : > { %2292 = vmatpush.msrb.mxu0 %v9285_v49  ;;  %v9293_v49 = vld [vmem:[#allocation22_spill] sm:$0xff] }
 0x3d7   : > { %2332 = vmatpush.msra.mxu2 %v9288_v26  ;;  %v6918_v26 = vld [vmem:[%s8700_s11] ss:$0 sm:$0xff] }
 0x3d8   : > { %2293 = vmatpush.msrb.mxu0 %v9287_v28  ;;  %9294 = vst [vmem:[#allocation29_spill] sm:$0xff] %v6918_v26 }
 0x3d9   : > { %2333 = vmatpush.msra.mxu2 %v9290_v34 }
 0x3da   : > { %2294 = vmatpush.msrb.mxu0 %v9289_v39 }
 0x3db   : > { %2334 = vmatpush.msra.mxu2 %v9291_v20 }
 0x416   : > { %v1953_v24 = vpop.f32.mrf.mxu0  ;;  %v1973_v0 = vpop.f32.mrf.mxu1 }
 0x417   : > { %v2076_v43 = vadd.f32 %v6911_v15, %v1953_v24  ;;  %v2104_v8 = vadd.f32 %v1973_v0, %v9293_v49  ;;  %v9296_v24 = vld [vmem:[#allocation75_spill] sm:$0xff]  ;;  %v9297_v0 = vld [vmem:[#allocation100_spill] sm:$0xff]  ;;  %v9298_v49 = vld [vmem:[#allocation77_spill] sm:$0xff] }
 0x418   : > { %v9299_v15 = vld [vmem:[#allocation104_spill] sm:$0xff] }
 0x419   : > { %vm2077_vm0 = vcmp.ge.f32.partialorder %v2076_v43, 0.0  ;;  %v2078_v28 = vmul.f32 0.33333334, %v2076_v43  ;;  %v2105_v39 = vadd.f32 %v6918_v26, %v2104_v8  ;;  %v9302_v8 = vld [vmem:[#allocation83_spill] sm:$0xff] }
 0x41b   : > { %v2079_v34 = vsel %vm2077_vm0, %v2076_v43, %v2078_v28  ;;  %vm2106_vm1 = vcmp.ge.f32.partialorder %v2105_v39, 0.0  ;;  %v2107_v20 = vmul.f32 0.33333334, %v2105_v39  ;;  %v9301_v43 = vld [vmem:[#allocation108_spill] sm:$0xff]  ;;  %v9303_v28 = vld [vmem:[#allocation114_spill] sm:$0xff] }
 0x41c   : > { %v3808_v17 = vclamps-f32 %v2079_v34, 3.0  ;;  %v9309_v34 = vld [vmem:[#allocation124_spill] sm:$0xff] }
 0x41d   : > { %v2108_v11 = vsel %vm2106_vm1, %v2105_v39, %v2107_v20  ;;  %v9308_v39 = vld [vmem:[#allocation93_spill] sm:$0xff]  ;;  %v9312_v20 = vld [vmem:[#allocation99_spill] sm:$0xff] }
 0x41e   : > { %v3810_v58 = vclamps-f32 %v2108_v11, 3.0  ;;  %2098 = vmatmul.f32.vlgmr.msra.gmra.mxu3 %v3808_v17  ;;  %v9304_v11 = vld [vmem:[#allocation86_spill] sm:$0xff] }
 0x41f   : > { %2339 = vmatpush.msra.mxu3 %v9295_v48  ;;  %v9305_v48 = vld [vmem:[#allocation118_spill] sm:$0xff] }
 0x420   : > { %2127 = vmatmul.f32.vlgmr.msra.gmra.mxu0 %v3810_v58  ;;  %v9306_v58 = vld [vmem:[#allocation89_spill] sm:$0xff]  ;;  %v9307_v17 = vld [vmem:[#allocation122_spill] sm:$0xff] }
 0x421   : > { %2340 = vmatpush.msra.mxu3 %v9296_v24  ;;  %2449 = vmatpush.msra.mxu0 %v9297_v0  ;;  %v9313_v24 = vld [vmem:[#allocation128_spill] sm:$0xff]  ;;  %v9314_v0 = vld [vmem:[#allocation103_spill] sm:$0xff] }
 0x423   : > { %2341 = vmatpush.msra.mxu3 %v9298_v49  ;;  %2450 = vmatpush.msra.mxu0 %v9299_v15  ;;  %v9310_v15 = vld [vmem:[#allocation97_spill] sm:$0xff]  ;;  %v9315_v49 = vld [vmem:[#allocation130_spill] sm:$0xff] }
 0x425   : > { %2342 = vmatpush.msra.mxu3 %v9300_v54  ;;  %2451 = vmatpush.msra.mxu0 %v9301_v43  ;;  %v9311_v54 = vld [vmem:[#allocation126_spill] sm:$0xff]  ;;  %v9316_v43 = vld [vmem:[#allocation107_spill] sm:$0xff] }
 0x427   : > { %2343 = vmatpush.msra.mxu3 %v9302_v8  ;;  %2452 = vmatpush.msra.mxu0 %v9303_v28  ;;  %v9317_v8 = vld [vmem:[#allocation132_spill] sm:$0xff]  ;;  %v9318_v28 = vld [vmem:[#allocation111_spill] sm:$0xff] }
 0x429   : > { %2344 = vmatpush.msra.mxu3 %v9304_v11  ;;  %2453 = vmatpush.msra.mxu0 %v9305_v48  ;;  %v9319_v11 = vld [vmem:[#allocation134_spill] sm:$0xff]  ;;  %v9320_v48 = vld [vmem:[#allocation113_spill] sm:$0xff] }
 0x42b   : > { %2345 = vmatpush.msra.mxu3 %v9306_v58  ;;  %2454 = vmatpush.msra.mxu0 %v9307_v17  ;;  %v9321_v58 = vld [vmem:[#allocation137_spill] sm:$0xff] }
 0x42c   : > { %v9322_v17 = vld [vmem:[#allocation117_spill] sm:$0xff] }
 0x42d   : > { %2346 = vmatpush.msra.mxu3 %v9308_v39  ;;  %2455 = vmatpush.msra.mxu0 %v9309_v34  ;;  %v9323_v39 = vld [vmem:[#allocation140_spill] sm:$0xff]  ;;  %v9324_v34 = vld [vmem:[#allocation121_spill] sm:$0xff] }
 0x42f   : > { %2347 = vmatpush.msra.mxu3 %v9310_v15  ;;  %2456 = vmatpush.msra.mxu0 %v9311_v54  ;;  %v6953_v15 = vpop.f32.mrf.mxu0  ;;  %v6955_v54 = vpop.f32.mrf.mxu3 }
 0x431   : > { %2348 = vmatpush.msra.mxu3 %v9312_v20  ;;  %2457 = vmatpush.msra.mxu0 %v9313_v24  ;;  %v6960_v24 = vld [vmem:[%s9052_s7] ss:$0 sm:$0xff] }
 0x432   : > { %9325 = vst [vmem:[#allocation45_spill] sm:$0xff] %v6960_v24 }
 0x433   : > { %2349 = vmatpush.msra.mxu3 %v9314_v0  ;;  %2458 = vmatpush.msra.mxu0 %v9315_v49 }
 0x435   : > { %2350 = vmatpush.msra.mxu3 %v9316_v43  ;;  %2459 = vmatpush.msra.mxu0 %v9317_v8 }
 0x437   : > { %2351 = vmatpush.msra.mxu3 %v9318_v28  ;;  %2460 = vmatpush.msra.mxu0 %v9319_v11 }
 0x439   : > { %2352 = vmatpush.msra.mxu3 %v9320_v48  ;;  %2461 = vmatpush.msra.mxu0 %v9321_v58 }
 0x43b   : > { %2353 = vmatpush.msra.mxu3 %v9322_v17  ;;  %2462 = vmatpush.msra.mxu0 %v9323_v39 }
 0x43d   : > { %2354 = vmatpush.msra.mxu3 %v9324_v34  ;;  %2463 = vmatpush.msra.mxu0 %v6289_v2  ;;  %v6966_v2 = vld [vmem:[%s8698_s9] ss:$0 sm:$0xff] }
 0x43e   : > { %9326 = vst [vmem:[#allocation46_spill] sm:$0xff] %v6966_v2 }
 0x43f   : > { %2464 = vmatpush.msra.mxu0 %v6302_v3 }
 0x49d   : > { %v2128_v20 = vpop.f32.mrf.mxu0 }
 0x49e   : > { %v2129_v0 = vadd.f32 %v6960_v24, %v2128_v20  ;;  %v1616_v20 = vpop.permute.xlu2 %1615 }
 0x4a0   : > { %v3811_v49 = vclamps-f32 %v2129_v0, 8.0 }
 0x4a1   : > { %v2099_v43 = vpop.f32.mrf.mxu3 }
 0x4a2   : > { %v2161_v8 = vmul.f32 0.5, %v3811_v49  ;;  %v2100_v3 = vadd.f32 %v6966_v2, %v2099_v43  ;;  %v1618_v43 = vadd.f32 %v1616_v20, %v9328_v37  ;;  %v7012_v20 = vld [vmem:[%s9073_s10 + $0x148] sm:$0xff] }
 0x4a3   : > { %9333 = vst [vmem:[#allocation52_spill] sm:$0xff] %v7012_v20 }
 0x4a4   : > { %v2162_v28 = vmul.f32 1.442695, %v2161_v8  ;;  %v3809_v11 = vclamps-f32 %v2100_v3, 8.0  ;;  %v3792_v3 = vadd.f32 -1.0, %v1618_v43  ;;  %v7030_v43 = vld [vmem:[%s9073_s10 + $0xe8] sm:$0xff] }
 0x4a5   : > { %9336 = vst [vmem:[#allocation57_spill] sm:$0xff] %v7030_v43 }
 0x4a6   : > { %3981 = vpow2.f32 %v2162_v28  ;;  %v2139_v48 = vsub.f32 0.0, %v3809_v11  ;;  %v2134_v58 = vsub.f32 %v3811_v49, %v3809_v11  ;;  %v2133_v0 = vsub.f32 %v3809_v11, %v3811_v49 }
 0x4a7   : > { %v1620_v28 = vmul.f32 0.5, %v3792_v3  ;;  %v7042_v3 = vld [vmem:[%s9073_s10 + $0xa8] sm:$0xff] }
 0x4a8   : > { %v2135_v17 = vmul.f32 1.442695, %v2134_v58  ;;  %v2140_v39 = vmul.f32 1.442695, %v2139_v48  ;;  %v3802_v48 = vld [vmem:[%s4810_s13 + $0x8] sm:$0xff]  ;;  %v2138_v37 = vmul.f32 %v2134_v58, %v2134_v58  ;;  %v7006_v58 = vld [vmem:[%s9073_s10 + $0x168] sm:$0xff] }
 0x4a9   : > { %9332 = vst [vmem:[#allocation51_spill] sm:$0xff] %v7006_v58 }
 0x4aa   : > { %3983 = vpow2.f32 %v2135_v17  ;;  %9338 = vst [vmem:[#allocation60_spill] sm:$0xff] %v7042_v3 }
 0x4ab   : > { %3985 = vpow2.f32 %v2140_v39  ;;  %v6986_v39 = vld [vmem:[%s9073_s10 + $0x1c8] sm:$0xff] }
 0x4ac   : > { %v3982_v34 = vpop.eup %3981  ;;  %9329 = vst [vmem:[#allocation30_spill] sm:$0xff] %v6986_v39 }
 0x4ad   : > { %2165 = vrot.lane.b32.xlu0 %v3982_v34, %s9327_s24 }
 0x4b0   : > { %v3984_v24 = vpop.eup %3983 }
 0x4b1   : > { %v6970_v26 = vadd.f32 %v3984_v24, %v2133_v0  ;;  %v3986_v8 = vpop.eup %3985  ;;  %v6980_v24 = vld [vmem:[%s9073_s10 + $0x1e8] sm:$0xff] }
 0x4b2   : > { %v7018_v0 = vld [vmem:[%s9073_s10 + $0x128] sm:$0xff] }
 0x4b3   : > { %9334 = vst [vmem:[#allocation54_spill] sm:$0xff] %v7018_v0 }
 0x4b5   : > { %2143 = vrot.lane.b32.xlu0 %v3986_v8, %s9327_s24  ;;  %v7036_v8 = vld [vmem:[%s9073_s10 + $0xc8] sm:$0xff] }
 0x4b6   : > { %9337 = vst [vmem:[#allocation58_spill] sm:$0xff] %v7036_v8 }
 0x4bd   : > { %1622 = vrot.lane.b32.xlu0 %v1620_v28, %s9327_s24  ;;  %v7048_v28 = vld [vmem:[%s9073_s10 + $0x88] sm:$0xff] }
 0x4be   : > { %9339 = vst [vmem:[#allocation61_spill] sm:$0xff] %v7048_v28 }
 0x51f   : > { %v2166_v17 = vpop.permute.xlu0 %2165 }
 0x520   : > { %v2168_v2 = vmul.f32 %v3802_v48, %v2166_v17  ;;  %v7054_v48 = vld [vmem:[%s9073_s10 + $0x68] sm:$0xff] }
 0x521   : > { %9340 = vst [vmem:[#allocation63_spill] sm:$0xff] %v7054_v48  ;;  %v7060_v17 = vld [vmem:[%s9073_s10 + $0x48] sm:$0xff] }
 0x522   : > { %v2169_v27 = vadd.f32 %v3811_v49, %v2168_v2  ;;  %v6992_v49 = vld [vmem:[%s9073_s10 + $0x1a8] sm:$0xff]  ;;  %9341 = vst [vmem:[#allocation64_spill] sm:$0xff] %v7060_v17 }
 0x523   : > { %9330 = vst [vmem:[#allocation48_spill] sm:$0xff] %v6992_v49  ;;  %v6999_v2 = vld [vmem:[%s9073_s10 + $0x188] sm:$0xff] }
 0x524   : > { %3813 = vmatmul.msk.f32.vlgmr.msra.gmra.mxu1 %vm1625_vm2, %v2169_v27  ;;  %9331 = vst [vmem:[#allocation49_spill] sm:$0xff] %v6999_v2 }
 0x525   : > { %2299 = vmatpush.msra.mxu1 %v6980_v24 }
 0x527   : > { %v2144_v11 = vpop.permute.xlu0 %2143  ;;  %2300 = vmatpush.msra.mxu1 %v6986_v39 }
 0x528   : > { %v2146_v34 = vmul.f32 %v2144_v11, %v2138_v37  ;;  %v9342_v37 = vld [vmem:[#allocation91_spill] sm:$0xff] }
 0x529   : > { %2301 = vmatpush.msra.mxu1 %v6992_v49  ;;  %v9343_v11 = vld [vmem:[#allocation95_spill] sm:$0xff] }
 0x52a   : > { %2148 = vrot.lane.b32.xlu0 %v2146_v34, %s9327_s24  ;;  %v9344_v34 = vld [vmem:[#allocation101_spill] sm:$0xff] }
 0x52b   : > { %2302 = vmatpush.msra.mxu1 %v6999_v2 }
 0x52c   : > { %3814 = vmatmul.msk.f32.vlgmr.msrb.gmra.mxu1 %vm1625_vm2, %v2169_v27  ;;  %v7024_v27 = vld [vmem:[%s9073_s10 + $0x108] sm:$0xff] }
 0x52d   : > { %2303 = vmatpush.msra.mxu1 %v7006_v58  ;;  %9335 = vst [vmem:[#allocation55_spill] sm:$0xff] %v7024_v27 }
 0x52f   : > { %2304 = vmatpush.msra.mxu1 %v7012_v20  ;;  %v1993_v20 = vpop.f32.mrf.mxu2 }
 0x531   : > { %2305 = vmatpush.msra.mxu1 %v7018_v0  ;;  %v9351_v0 = vld [vmem:[#allocation127_spill] sm:$0xff] }
 0x533   : > { %2306 = vmatpush.msra.mxu1 %v7024_v27  ;;  %v9350_v27 = vld [vmem:[#allocation125_spill] sm:$0xff] }
 0x535   : > { %2307 = vmatpush.msra.mxu1 %v7030_v43  ;;  %v9349_v43 = vld [vmem:[#allocation123_spill] sm:$0xff] }
 0x537   : > { %2308 = vmatpush.msra.mxu1 %v7036_v8  ;;  %v9347_v8 = vld [vmem:[#allocation115_spill] sm:$0xff] }
 0x539   : > { %2309 = vmatpush.msra.mxu1 %v7042_v3  ;;  %v9346_v3 = vld [vmem:[#allocation109_spill] sm:$0xff] }
 0x53b   : > { %2310 = vmatpush.msra.mxu1 %v7048_v28  ;;  %v9345_v28 = vld [vmem:[#allocation105_spill] sm:$0xff] }
 0x53d   : > { %2311 = vmatpush.msra.mxu1 %v7054_v48  ;;  %v9348_v48 = vld [vmem:[#allocation119_spill] sm:$0xff] }
 0x53f   : > { %2312 = vmatpush.msra.mxu1 %v7060_v17  ;;  %v9352_v17 = vld [vmem:[#allocation129_spill] sm:$0xff] }
 0x541   : > { %2313 = vmatpush.msra.mxu1 %v9342_v37  ;;  %v9353_v37 = vld [vmem:[#allocation131_spill] sm:$0xff] }
 0x543   : > { %2314 = vmatpush.msra.mxu1 %v9343_v11  ;;  %v9354_v11 = vld [vmem:[#allocation133_spill] sm:$0xff] }
 0x545   : > { %2469 = vmatpush.msrb.mxu1 %v9344_v34  ;;  %v9355_v34 = vld [vmem:[#allocation135_spill] sm:$0xff] }
 0x547   : > { %2470 = vmatpush.msrb.mxu1 %v9345_v28  ;;  %v9356_v28 = vld [vmem:[#allocation138_spill] sm:$0xff] }
 0x549   : > { %2471 = vmatpush.msrb.mxu1 %v9346_v3  ;;  %v9357_v3 = vld [vmem:[#allocation141_spill] sm:$0xff] }
 0x54b   : > { %2472 = vmatpush.msrb.mxu1 %v9347_v8  ;;  %v9358_v8 = vld [vmem:[#allocation142_spill] sm:$0xff] }
 0x54d   : > { %2473 = vmatpush.msrb.mxu1 %v9348_v48  ;;  %v9359_v48 = vld [vmem:[#allocation143_spill] sm:$0xff] }
 0x54f   : > { %2474 = vmatpush.msrb.mxu1 %v9349_v43  ;;  %v7081_v43 = vpop.permute.xlu0 %1622 }
 0x550   : > { %9360 = vst [vmem:[#allocation66_spill] sm:$0xff] %v7081_v43  ;;  %v9362_v43 = vld [vmem:[#allocation136_spill] sm:$0xff] }
 0x551   : > { %2475 = vmatpush.msrb.mxu1 %v9350_v27  ;;  %v7083_v27 = vpop.f32.mrf.mxu1 }
 0x553   : > { %2476 = vmatpush.msrb.mxu1 %v9351_v0 }
 0x555   : > { %2477 = vmatpush.msrb.mxu1 %v9352_v17 }
 0x557   : > { %2478 = vmatpush.msrb.mxu1 %v9353_v37 }
 0x559   : > { %2479 = vmatpush.msrb.mxu1 %v9354_v11 }
 0x55b   : > { %2480 = vmatpush.msrb.mxu1 %v9355_v34 }
 0x55d   : > { %2481 = vmatpush.msrb.mxu1 %v9356_v28  ;;  %v9361_v28 = vld [vmem:[#allocation139_spill] sm:$0xff] }
 0x55f   : > { %2482 = vmatpush.msrb.mxu1 %v9357_v3 }
 0x561   : > { %2483 = vmatpush.msrb.mxu1 %v9358_v8 }
 0x563   : > { %2484 = vmatpush.msrb.mxu1 %v9359_v48 }
 0x59c   : > { %v2149_v0 = vpop.permute.xlu0 %2148 }
 0x59d   : > { %v2151_v17 = vadd.f32 %v2149_v0, %v6970_v26  ;;  %v7092_v26 = vld [vmem:[%s9046_s28 + $0x358] sm:$0xff]  ;;  %v9376_v0 = vld [vmem:[#allocation147_spill] sm:$0xff] }
 0x59f   : > { %v3812_v37 = vadd.f32 -1.0, %v2151_v17  ;;  %v7344_v17 = vld [vmem:[%s9046_s28 + $0x298] sm:$0xff] }
 0x5a0   : > { %9377 = vst [vmem:[#allocation47_spill] sm:$0xff] %v7344_v17 }
 0x5a1   : > { %v2153_v11 = vmul.f32 0.5, %v3812_v37  ;;  %v2190_v58 = vpop.f32.mrf.mxu1  ;;  %v9378_v37 = vld [vmem:[#allocation148_spill] sm:$0xff] }
 0x5a2   : > { %v2213_v34 = vadd.f32 %v2190_v58, %v1993_v20  ;;  %v9372_v58 = vld [vmem:[#allocation145_spill] sm:$0xff]  ;;  %v9374_v20 = vld [vmem:[#allocation146_spill] sm:$0xff] }
 0x5a3   : > { %2155 = vrot.lane.b32.xlu0 %v2153_v11, %s9327_s24  ;;  %v7351_v11 = vld [vmem:[%s9046_s28 + $0x260] sm:$0xff] }
 0x5a4   : > { %v2214_v3 = vadd.f32 %v9361_v28, %v2213_v34  ;;  %9379 = vst [vmem:[#allocation76_spill] sm:$0xff] %v7351_v11  ;;  %v9380_v34 = vld [vmem:[#allocation149_spill] sm:$0xff]  ;;  %v7358_v28 = vld [vmem:[%s9046_s28 + $0x228] sm:$0xff] }
 0x5a5   : > { %9381 = vst [vmem:[#allocation50_spill] sm:$0xff] %v7358_v28 }
 0x5a6   : > { %vm2215_vm3 = vcmp.ge.f32.partialorder %v2214_v3, 0.0  ;;  %v2216_v8 = vmul.f32 0.33333334, %v2214_v3 }
 0x5a8   : > { %v2217_v2 = vsel %vm2215_vm3, %v2214_v3, %v2216_v8  ;;  %v9382_v3 = vld [vmem:[#allocation150_spill] sm:$0xff]  ;;  %v7365_v8 = vld [vmem:[%s9046_s28 + $0x1f0] sm:$0xff] }
 0x5a9   : > { %v3815_v48 = vclamps-f32 %v2217_v2, 3.0  ;;  %v2210_v49 = vpop.f32.mrf.mxu1  ;;  %v7100_v2 = vld [vmem:[%s9046_s28 + $0x370] sm:$0xff]  ;;  %9383 = vst [vmem:[#allocation79_spill] sm:$0xff] %v7365_v8 }
 0x5aa   : > { %v2278_v39 = vadd.f32 %v9362_v43, %v2210_v49  ;;  %v7106_v49 = vld [vmem:[%s9046_s28 + $0x320] sm:$0xff]  ;;  %v7337_v43 = vld [vmem:[%s9046_s28 + $0x2d0] sm:$0xff] }
 0x5ab   : > { %2236 = vmatmul.f32.vlgmr.msrb.gmra.mxu2 %v3815_v48  ;;  %2256 = vmatmul.f32.vlgmr.msrb.gmra.mxu3 %v3815_v48  ;;  %9375 = vst [vmem:[#allocation74_spill] sm:$0xff] %v7337_v43  ;;  %v9384_v48 = vld [vmem:[#allocation151_spill] sm:$0xff] }
 0x5ac   : > { %2295 = vmatmul.f32.vlgmr.msrb.gmra.mxu0 %v2278_v39  ;;  %2315 = vmatmul.f32.vlgmr.msra.gmra.mxu1 %v2278_v39 }
 0x5ad   : > { %2489 = vmatpush.msrb.mxu2 %v7092_v26  ;;  %2509 = vmatpush.msrb.mxu3 %v6336_v9  ;;  %v7120_v9 = vld [vmem:[%s9046_s28 + $0x2e8] sm:$0xff] }
 0x5ae   : > { %2529 = vmatpush.msrb.mxu0 %v6314_v1  ;;  %2549 = vmatpush.msra.mxu1 %v7100_v2  ;;  %v7114_v1 = vld [vmem:[%s9046_s28 + $0x338] sm:$0xff] }
 0x5af   : > { %2490 = vmatpush.msrb.mxu2 %v7106_v49  ;;  %2510 = vmatpush.msrb.mxu3 %v6350_v44  ;;  %v7134_v44 = vld [vmem:[%s9046_s28 + $0x2b0] sm:$0xff] }
 0x5b0   : > { %2530 = vmatpush.msrb.mxu0 %v6321_v56  ;;  %2550 = vmatpush.msra.mxu1 %v7114_v1  ;;  %v7128_v56 = vld [vmem:[%s9046_s28 + $0x300] sm:$0xff] }
 0x5b1   : > { %2491 = vmatpush.msrb.mxu2 %v7120_v9  ;;  %2511 = vmatpush.msrb.mxu3 %v6364_v45  ;;  %v7148_v45 = vld [vmem:[%s9046_s28 + $0x278] sm:$0xff] }
 0x5b2   : > { %2531 = vmatpush.msrb.mxu0 %v6328_v5  ;;  %2551 = vmatpush.msra.mxu1 %v7128_v56  ;;  %v7142_v5 = vld [vmem:[%s9046_s28 + $0x2c8] sm:$0xff] }
 0x5b3   : > { %2335 = vmatmul.f32.vlgmr.msra.gmra.mxu2 %v2278_v39  ;;  %2355 = vmatmul.f32.vlgmr.msra.gmra.mxu3 %v2278_v39  ;;  %v9370_v39 = vld [vmem:[#allocation144_spill] sm:$0xff] }
 0x5b4   : > { %2492 = vmatpush.msrb.mxu2 %v7134_v44  ;;  %2512 = vmatpush.msrb.mxu3 %v6378_v46  ;;  %v7162_v46 = vld [vmem:[%s9046_s28 + $0x240] sm:$0xff] }
 0x5b5   : > { %2532 = vmatpush.msrb.mxu0 %v6342_v10  ;;  %2552 = vmatpush.msra.mxu1 %v7142_v5  ;;  %v7156_v10 = vld [vmem:[%s9046_s28 + $0x290] sm:$0xff] }
 0x5b6   : > { %2493 = vmatpush.msrb.mxu2 %v7148_v45  ;;  %2513 = vmatpush.msrb.mxu3 %v6385_v18  ;;  %v7176_v18 = vld [vmem:[%s9046_s28 + $0x208] sm:$0xff] }
 0x5b7   : > { %2533 = vmatpush.msrb.mxu0 %v6356_v14  ;;  %2553 = vmatpush.msra.mxu1 %v7156_v10  ;;  %v7170_v14 = vld [vmem:[%s9046_s28 + $0x258] sm:$0xff] }
 0x5b8   : > { %2494 = vmatpush.msrb.mxu2 %v7162_v46  ;;  %2514 = vmatpush.msrb.mxu3 %v6399_v50  ;;  %v7190_v50 = vld [vmem:[%s9046_s28 + $0x1d0] sm:$0xff] }
 0x5b9   : > { %2534 = vmatpush.msrb.mxu0 %v6370_v16  ;;  %2554 = vmatpush.msra.mxu1 %v7170_v14  ;;  %v7184_v16 = vld [vmem:[%s9046_s28 + $0x220] sm:$0xff] }
 0x5ba   : > { %2495 = vmatpush.msrb.mxu2 %v7176_v18  ;;  %2515 = vmatpush.msrb.mxu3 %v6413_v51  ;;  %v7204_v51 = vld [vmem:[%s9046_s28 + $0x198] sm:$0xff] }
 0x5bb   : > { %2535 = vmatpush.msrb.mxu0 %v6391_v47  ;;  %2555 = vmatpush.msra.mxu1 %v7184_v16  ;;  %v7198_v47 = vld [vmem:[%s9046_s28 + $0x1e8] sm:$0xff] }
 0x5bc   : > { %2496 = vmatpush.msrb.mxu2 %v7190_v50  ;;  %2516 = vmatpush.msrb.mxu3 %v6427_v52  ;;  %v7218_v52 = vld [vmem:[%s9046_s28 + $0x160] sm:$0xff] }
 0x5bd   : > { %2536 = vmatpush.msrb.mxu0 %v6405_v21  ;;  %2556 = vmatpush.msra.mxu1 %v7198_v47  ;;  %v7212_v21 = vld [vmem:[%s9046_s28 + $0x1b0] sm:$0xff] }
 0x5be   : > { %2497 = vmatpush.msrb.mxu2 %v7204_v51  ;;  %2517 = vmatpush.msrb.mxu3 %v6441_v53  ;;  %v7232_v53 = vld [vmem:[%s9046_s28 + $0x128] sm:$0xff] }
 0x5bf   : > { %2537 = vmatpush.msrb.mxu0 %v6419_v23  ;;  %2557 = vmatpush.msra.mxu1 %v7212_v21  ;;  %v7226_v23 = vld [vmem:[%s9046_s28 + $0x178] sm:$0xff] }
 0x5c0   : > { %2498 = vmatpush.msrb.mxu2 %v7218_v52  ;;  %2518 = vmatpush.msrb.mxu3 %v6455_v55  ;;  %v7246_v55 = vld [vmem:[%s9046_s28 + $0xf0] sm:$0xff] }
 0x5c1   : > { %2538 = vmatpush.msrb.mxu0 %v6433_v25  ;;  %2558 = vmatpush.msra.mxu1 %v7226_v23  ;;  %v7240_v25 = vld [vmem:[%s9046_s28 + $0x140] sm:$0xff] }
 0x5c2   : > { %2499 = vmatpush.msrb.mxu2 %v7232_v53  ;;  %2519 = vmatpush.msrb.mxu3 %v6469_v57  ;;  %v7260_v57 = vld [vmem:[%s9046_s28 + $0xb8] sm:$0xff] }
 0x5c3   : > { %2539 = vmatpush.msrb.mxu0 %v6447_v29  ;;  %2559 = vmatpush.msra.mxu1 %v7240_v25  ;;  %v7254_v29 = vld [vmem:[%s9046_s28 + $0x108] sm:$0xff] }
 0x5c4   : > { %2500 = vmatpush.msrb.mxu2 %v7246_v55  ;;  %2520 = vmatpush.msrb.mxu3 %v6483_v59  ;;  %v7274_v59 = vld [vmem:[%s9046_s28 + $0x80] sm:$0xff] }
 0x5c5   : > { %2540 = vmatpush.msrb.mxu0 %v6461_v31  ;;  %2560 = vmatpush.msra.mxu1 %v7254_v29  ;;  %v7268_v31 = vld [vmem:[%s9046_s28 + $0xd0] sm:$0xff]  ;;  %9363 = vst [vmem:[#allocation67_spill] sm:$0xff] %v7274_v59 }
 0x5c6   : > { %2501 = vmatpush.msrb.mxu2 %v7260_v57  ;;  %2521 = vmatpush.msrb.mxu3 %v6497_v61  ;;  %v7288_v61 = vld [vmem:[%s9046_s28 + $0x48] sm:$0xff] }
 0x5c7   : > { %2541 = vmatpush.msrb.mxu0 %v6475_v33  ;;  %2561 = vmatpush.msra.mxu1 %v7268_v31  ;;  %v7282_v33 = vld [vmem:[%s9046_s28 + $0x98] sm:$0xff]  ;;  %9365 = vst [vmem:[#allocation40_spill] sm:$0xff] %v7288_v61 }
 0x5c8   : > { %2502 = vmatpush.msrb.mxu2 %v7274_v59  ;;  %2522 = vmatpush.msrb.mxu3 %v6511_v6  ;;  %9364 = vst [vmem:[#allocation68_spill] sm:$0xff] %v7282_v33  ;;  %v7302_v6 = vld [vmem:[%s9046_s28 + $0x10] sm:$0xff] }
 0x5c9   : > { %2542 = vmatpush.msrb.mxu0 %v6489_v35  ;;  %2562 = vmatpush.msra.mxu1 %v7282_v33  ;;  %v7296_v35 = vld [vmem:[%s9046_s28 + $0x60] sm:$0xff]  ;;  %9367 = vst [vmem:[#allocation70_spill] sm:$0xff] %v7302_v6 }
 0x5ca   : > { %2503 = vmatpush.msrb.mxu2 %v7288_v61  ;;  %2523 = vmatpush.msrb.mxu3 %v6525_v7  ;;  %9366 = vst [vmem:[#allocation69_spill] sm:$0xff] %v7296_v35  ;;  %v7316_v7 = vld [vmem:[%s9046_s28 + $0x28] sm:$0xff] }
 0x5cb   : > { %2543 = vmatpush.msrb.mxu0 %v6503_v38  ;;  %2563 = vmatpush.msra.mxu1 %v7296_v35  ;;  %v7309_v38 = vld [vmem:[%s9046_s28 + $0x378] sm:$0xff]  ;;  %9369 = vst [vmem:[#allocation71_spill] sm:$0xff] %v7316_v7 }
 0x5cc   : > { %2504 = vmatpush.msrb.mxu2 %v7302_v6  ;;  %2524 = vmatpush.msrb.mxu3 %v6532_v42  ;;  %9368 = vst [vmem:[#allocation41_spill] sm:$0xff] %v7309_v38  ;;  %v7323_v42 = vld [vmem:[%s9046_s28 + $0x340] sm:$0xff]  ;;  %v9404_v6 = vld [vmem:[#allocation163_spill] sm:$0xff] }
 0x5cd   : > { %2544 = vmatpush.msrb.mxu0 %v6517_v40  ;;  %2564 = vmatpush.msra.mxu1 %v7316_v7  ;;  %9371 = vst [vmem:[#allocation72_spill] sm:$0xff] %v7323_v42  ;;  %v7330_v40 = vld [vmem:[%s9046_s28 + $0x308] sm:$0xff] }
 0x5ce   : > { %2569 = vmatpush.msra.mxu2 %v7309_v38  ;;  %2595 = vmatpush.msra.mxu3 %v9370_v39  ;;  %9373 = vst [vmem:[#allocation44_spill] sm:$0xff] %v7330_v40  ;;  %v7372_v39 = vld [vmem:[%s9046_s28 + $0x1b8] sm:$0xff] }
 0x5cf   : > { %9385 = vst [vmem:[#allocation53_spill] sm:$0xff] %v7372_v39 }
 0x5d0   : > { %2570 = vmatpush.msra.mxu2 %v7323_v42  ;;  %2596 = vmatpush.msra.mxu3 %v9372_v58  ;;  %v9386_v58 = vld [vmem:[#allocation152_spill] sm:$0xff]  ;;  %v9402_v42 = vld [vmem:[#allocation161_spill] sm:$0xff] }
 0x5d2   : > { %2571 = vmatpush.msra.mxu2 %v7330_v40  ;;  %2597 = vmatpush.msra.mxu3 %v9374_v20  ;;  %v7379_v20 = vld [vmem:[%s9046_s28 + $0x180] sm:$0xff]  ;;  %v9401_v40 = vld [vmem:[#allocation160_spill] sm:$0xff] }
 0x5d3   : > { %9387 = vst [vmem:[#allocation82_spill] sm:$0xff] %v7379_v20 }
 0x5d4   : > { %2572 = vmatpush.msra.mxu2 %v7337_v43  ;;  %2598 = vmatpush.msra.mxu3 %v9376_v0  ;;  %v9388_v0 = vld [vmem:[#allocation153_spill] sm:$0xff] }
 0x5d6   : > { %2573 = vmatpush.msra.mxu2 %v7344_v17  ;;  %2599 = vmatpush.msra.mxu3 %v9378_v37  ;;  %v7386_v37 = vld [vmem:[%s9046_s28 + $0x148] sm:$0xff] }
 0x5d7   : > { %9389 = vst [vmem:[#allocation56_spill] sm:$0xff] %v7386_v37 }
 0x5d8   : > { %2574 = vmatpush.msra.mxu2 %v7351_v11  ;;  %2600 = vmatpush.msra.mxu3 %v9380_v34  ;;  %v9390_v34 = vld [vmem:[#allocation154_spill] sm:$0xff] }
 0x5da   : > { %2575 = vmatpush.msra.mxu2 %v7358_v28  ;;  %2601 = vmatpush.msra.mxu3 %v9382_v3  ;;  %v7393_v3 = vld [vmem:[%s9046_s28 + $0x110] sm:$0xff] }
 0x5db   : > { %9391 = vst [vmem:[#allocation85_spill] sm:$0xff] %v7393_v3 }
 0x5dc   : > { %2576 = vmatpush.msra.mxu2 %v7365_v8  ;;  %2602 = vmatpush.msra.mxu3 %v9384_v48  ;;  %v9392_v48 = vld [vmem:[#allocation155_spill] sm:$0xff]  ;;  %v3805_v8 = vld [vmem:[%s4806_s29 + $0x28] sm:$0xff] }
 0x5de   : > { %2577 = vmatpush.msra.mxu2 %v7372_v39  ;;  %2603 = vmatpush.msra.mxu3 %v9386_v58  ;;  %v7400_v58 = vld [vmem:[%s9046_s28 + $0xd8] sm:$0xff]  ;;  %v3804_v39 = vld [vmem:[%s4806_s29 + $0x20] sm:$0xff] }
 0x5df   : > { %9393 = vst [vmem:[#allocation59_spill] sm:$0xff] %v7400_v58 }
 0x5e0   : > { %2578 = vmatpush.msra.mxu2 %v7379_v20  ;;  %2604 = vmatpush.msra.mxu3 %v9388_v0  ;;  %v9394_v0 = vld [vmem:[#allocation156_spill] sm:$0xff]  ;;  %v2073_v20 = vpop.f32.mrf.mxu2 }
 0x5e2   : > { %2579 = vmatpush.msra.mxu2 %v7386_v37  ;;  %2605 = vmatpush.msra.mxu3 %v9390_v34  ;;  %v7407_v34 = vld [vmem:[%s9046_s28 + $0xa0] sm:$0xff]  ;;  %v9400_v37 = vld [vmem:[#allocation159_spill] sm:$0xff] }
 0x5e3   : > { %9395 = vst [vmem:[#allocation88_spill] sm:$0xff] %v7407_v34 }
 0x5e4   : > { %2580 = vmatpush.msra.mxu2 %v7393_v3  ;;  %2606 = vmatpush.msra.mxu3 %v9392_v48  ;;  %v9396_v3 = vld [vmem:[#allocation157_spill] sm:$0xff]  ;;  %v7414_v48 = vld [vmem:[%s9046_s28 + $0x68] sm:$0xff] }
 0x5e5   : > { %9397 = vst [vmem:[#allocation62_spill] sm:$0xff] %v7414_v48 }
 0x5e6   : > { %2581 = vmatpush.msra.mxu2 %v7400_v58  ;;  %2607 = vmatpush.msra.mxu3 %v9394_v0  ;;  %v9398_v58 = vld [vmem:[#allocation158_spill] sm:$0xff]  ;;  %v7421_v0 = vld [vmem:[%s9046_s28 + $0x30] sm:$0xff] }
 0x5e7   : > { %9399 = vst [vmem:[#allocation92_spill] sm:$0xff] %v7421_v0 }
 0x5e8   : > { %2582 = vmatpush.msra.mxu2 %v7407_v34  ;;  %2608 = vmatpush.msra.mxu3 %v9396_v3 }
 0x5ea   : > { %2583 = vmatpush.msra.mxu2 %v7414_v48  ;;  %2609 = vmatpush.msra.mxu3 %v9398_v58 }
 0x5ec   : > { %2584 = vmatpush.msra.mxu2 %v7421_v0  ;;  %2610 = vmatpush.msra.mxu3 %v9400_v37 }
 0x615   : > { %v2156_v34 = vpop.permute.xlu0 %2155 }
 0x616   : > { %v2158_v3 = vsel %vm1625_vm2, %v2156_v34, 0.0  ;;  %v9403_v34 = vld [vmem:[#allocation162_spill] sm:$0xff] }
 0x617   : > { %2159 = vadd.xlane.f32.xlu0 %v2158_v3 }
 0x629   : > { %v2296_v28 = vpop.f32.mrf.mxu0  ;;  %v2316_v48 = vpop.f32.mrf.mxu1 }
 0x62a   : > { %v2297_v11 = vadd.f32 %v3804_v39, %v2296_v28  ;;  %v2317_v58 = vadd.f32 %v3805_v8, %v2316_v48  ;;  %v3807_v39 = vld [vmem:[%s4806_s29 + $0x38] sm:$0xff] }
 0x62c   : > { %v2359_v17 = vadd.f32 %v2297_v11, %v6955_v54  ;;  %v2360_v43 = vadd.f32 %v2317_v58, %v6953_v15  ;;  %v3806_v11 = vld [vmem:[%s4806_s29 + $0x30] sm:$0xff] }
 0x62e   : > { %v2363_v0 = vadd.f32 %v2359_v17, %v9401_v40  ;;  %v2364_v37 = vadd.f32 %v2360_v43, %v9402_v42  ;;  %v2237_v7 = vpop.f32.mrf.mxu2  ;;  %v2257_v38 = vpop.f32.mrf.mxu3 }
 0x62f   : > { %v2238_v3 = vadd.f32 %v2237_v7, %v9403_v34  ;;  %v2258_v35 = vadd.f32 %v2257_v38, %v9404_v6 }
 0x630   : > { %v3818_v61 = vmul.f32 -1.442695, %v2363_v0  ;;  %v3819_v33 = vmul.f32 -1.442695, %v2364_v37 }
 0x631   : > { %v3816_v28 = vclamps-f32 %v2238_v3, 8.0  ;;  %v3817_v8 = vclamps-f32 %v2258_v35, 8.0 }
 0x632   : > { %3987 = vpow2.f32 %v3818_v61  ;;  %v3801_v61 = vld [vmem:[%s4808_s14 + $0x10] sm:$0xff] }
 0x633   : > { %3989 = vpow2.f32 %v3819_v33  ;;  %v2269_v54 = vsub.f32 0.0, %v3817_v8 }
 0x634   : > { %3991 = vtanh.f32 %v3816_v28 }
 0x635   : > { %v2270_v15 = vmul.f32 1.442695, %v2269_v54  ;;  %v2264_v54 = vmul.f32 0.5, %v3817_v8 }
 0x636   : > { %v2336_v17 = vpop.f32.mrf.mxu2  ;;  %v2356_v48 = vpop.f32.mrf.mxu3 }
 0x637   : > { %3993 = vpow2.f32 %v2270_v15  ;;  %v2337_v43 = vadd.f32 %v3806_v11, %v2336_v17  ;;  %v2357_v37 = vadd.f32 %v3807_v39, %v2356_v48 }
 0x638   : > { %v3988_v58 = vpop.eup %3987 }
 0x639   : > { %v3990_v7 = vpop.eup %3989  ;;  %v2376_v34 = vadd.f32 1.0, %v3988_v58  ;;  %v2361_v38 = vadd.f32 %v2337_v43, %v7083_v27  ;;  %v2362_v15 = vadd.f32 %v2357_v37, %v2073_v20  ;;  %v2265_v43 = vsub.f32 -0.9189385, %v2264_v54 }
 0x63a   : > { %v2377_v0 = vadd.f32 1.0, %v3990_v7  ;;  %v3992_v35 = vpop.eup %3991 }
 0x63b   : > { %3995 = vrcp.f32 %v2376_v34  ;;  %v2365_v33 = vadd.f32 %v2361_v38, %v6671_v62  ;;  %v2267_v11 = vsub.f32 %v3801_v61, %v3992_v35  ;;  %v2366_v27 = vadd.f32 %v2362_v15, %v6675_v41 }
 0x63c   : > { %3997 = vrcp.f32 %v2377_v0  ;;  %v2390_v8 = vand.u32 2147483648, %v2376_v34  ;;  %v2388_v61 = vand.u32 2147483647, %v2376_v34  ;;  %vm2384_vm6 = vweird.f32 %v2376_v34 }
 0x63d   : > { %v3994_v3 = vpop.eup %3993  ;;  %v3820_v28 = vmul.f32 -1.442695, %v2365_v33  ;;  %v2268_v6 = vmul.f32 %v2267_v11, %v2267_v11  ;;  %v2405_v33 = vand.u32 2147483648, %v2377_v0  ;;  %vm2399_vm7 = vweird.f32 %v2377_v0 }
 0x63e   : > { %v2272_v17 = vmul.f32 0.5, %v3994_v3  ;;  %v2403_v3 = vand.u32 2147483647, %v2377_v0  ;;  %v2391_v54 = vor.u32 1.1754944e-38, %v2390_v8  ;;  %vm2389_vm10 = vcmp.eq.f32.partialorder %v2388_v61, 8.507059e+37 }
 0x63f   : > { %3999 = vpow2.f32 %v3820_v28  ;;  %v2406_v28 = vor.u32 1.1754944e-38, %v2405_v33 }
 0x640   : > { %v2273_v39 = vmul.f32 %v2272_v17, %v2268_v6  ;;  %4001 = vtanh.f32 %v2366_v27  ;;  %vm2404_vm11 = vcmp.eq.f32.partialorder %v2403_v3, 8.507059e+37  ;;  %v7451_v3 = vld [vmem:[%s9055_s3 + $0x70] sm:$0xff] }
 0x641   : > { %v3996_v42 = vpop.eup %3995 }
 0x642   : > { %v3998_v58 = vpop.eup %3997  ;;  %v2380_v40 = vmul.f32 %v3996_v42, %v2376_v34  ;;  %v7440_v38 = vsub.f32 %v2265_v43, %v2273_v39  ;;  %vm2385_vm4 = vweird.f32 %v3996_v42 }
 0x643   : > { %v2395_v48 = vmul.f32 %v3998_v58, %v2377_v0  ;;  %vm2400_vm5 = vweird.f32 %v3998_v58  ;;  %vm2386_vm8 = vmor %vm2384_vm6, %vm2385_vm4 }
 0x644   : > { %v2381_v7 = vsub.f32 1.0, %v2380_v40  ;;  %9405 = vst [vmem:[#allocation65_spill] sm:$0xff] %v7440_v38  ;;  %vm2401_vm9 = vmor %vm2399_vm7, %vm2400_vm5  ;;  %v9426_v38 = vld [vmem:[#allocation36_spill] sm:$0xff] }
 0x645   : > { %v4000_v62 = vpop.eup %3999  ;;  %v2396_v59 = vsub.f32 1.0, %v2395_v48 }
 0x646   : > { %v2378_v20 = vadd.f32 1.0, %v4000_v62  ;;  %v2382_v37 = vmul.f32 %v3996_v42, %v2381_v7  ;;  %v4002_v62 = vpop.eup %4001 }
 0x647   : > { %v2397_v35 = vmul.f32 %v3998_v58, %v2396_v59 }
 0x648   : > { %4003 = vrcp.f32 %v2378_v20  ;;  %v2383_v6 = vadd.f32 %v3996_v42, %v2382_v37  ;;  %v2420_v7 = vand.u32 2147483648, %v2378_v20  ;;  %vm2414_vm13 = vweird.f32 %v2378_v20 }
 0x649   : > { %v2398_v40 = vadd.f32 %v3998_v58, %v2397_v35 }
 0x64a   : > { %v2387_v15 = vsel %vm2386_vm8, %v3996_v42, %v2383_v6  ;;  %v2418_v42 = vand.u32 2147483647, %v2378_v20  ;;  %v2421_v8 = vor.u32 1.1754944e-38, %v2420_v7  ;;  %v7463_v6 = vld [vmem:[%s9063_s18 + $0xf8] sm:$0xff]  ;;  %v7598_v7 = vld [vmem:[%s9063_s18 + $0x88] sm:$0xff] }
 0x64b   : > { %v2402_v11 = vsel %vm2401_vm9, %v3998_v58, %v2398_v40  ;;  %v2392_v17 = vsel %vm2389_vm10, %v2391_v54, %v2387_v15  ;;  %v7476_v40 = vld [vmem:[%s9063_s18 + $0xe0] sm:$0xff]  ;;  %v7495_v54 = vld [vmem:[%s9063_s18 + $0xd0] sm:$0xff]  ;;  %v7501_v15 = vld [vmem:[%s9063_s18 + $0xd8] sm:$0xff]  ;;  %9411 = vst [vmem:[#allocation102_spill] sm:$0xff] %v7598_v7 }
 0x64c   : > { %v2407_v27 = vsel %vm2404_vm11, %v2406_v28, %v2402_v11  ;;  %v2426_v43 = vmul.f32 %v4002_v62, %v2392_v17  ;;  %vm2419_vm15 = vcmp.eq.f32.partialorder %v2418_v42, 8.507059e+37  ;;  %v7482_v28 = vld [vmem:[%s9063_s18 + $0xe8] sm:$0xff]  ;;  %v7514_v11 = vld [vmem:[%s9063_s18 + $0xc0] sm:$0xff]  ;;  %v7527_v62 = vld [vmem:[%s9055_s3 + $0x30] sm:$0xff] }
 0x64d   : > { %v2425_v59 = vmul.f32 %v2407_v27, %v6688_v12  ;;  %v7533_v17 = vld [vmem:[%s9063_s18 + $0xb0] sm:$0xff]  ;;  %v7546_v27 = vld [vmem:[%s9055_s3 + $0x20] sm:$0xff] }
 0x64e   : > { %v4004_v39 = vpop.eup %4003  ;;  %v9413_v42 = vld [vmem:[#allocation24_spill] sm:$0xff] }
 0x64f   : > { %v2410_v48 = vmul.f32 %v4004_v39, %v2378_v20  ;;  %v7443_v34 = vadd.f32 %v2426_v43, %v2425_v59  ;;  %vm2415_vm12 = vweird.f32 %v4004_v39  ;;  %v7457_v20 = vld [vmem:[%s9063_s18 + $0xf0] sm:$0xff]  ;;  %v7552_v59 = vld [vmem:[%s9063_s18 + $0xa0] sm:$0xff] }
 0x650   : > { %vm2416_vm14 = vmor %vm2414_vm13, %vm2415_vm12  ;;  %v7565_v43 = vld [vmem:[%s9055_s3 + $0x10] sm:$0xff] }
 0x651   : > { %v2411_v0 = vsub.f32 1.0, %v2410_v48  ;;  %4005 = vtanh.f32 %v7443_v34  ;;  %v7584_v48 = vld [vmem:[%s9055_s3] sm:$0xff] }
 0x652   : > { %9408 = vst [vmem:[#allocation98_spill] sm:$0xff] %v7584_v48 }
 0x653   : > { %v2412_v33 = vmul.f32 %v4004_v39, %v2411_v0  ;;  %v7590_v0 = vld [vmem:[%s9063_s18 + $0x80] sm:$0xff] }
 0x654   : > { %9409 = vst [vmem:[#allocation81_spill] sm:$0xff] %v7590_v0 }
 0x655   : > { %v2413_v58 = vadd.f32 %v4004_v39, %v2412_v33  ;;  %v7604_v33 = vld [vmem:[%s9063_s18 + $0x70] sm:$0xff] }
 0x656   : > { %9412 = vst [vmem:[#allocation84_spill] sm:$0xff] %v7604_v33 }
 0x657   : > { %v2417_v37 = vsel %vm2416_vm14, %v4004_v39, %v2413_v58  ;;  %v4006_v12 = vpop.eup %4005  ;;  %v7571_v39 = vld [vmem:[%s9063_s18 + $0x90] sm:$0xff] }
 0x658   : > { %v2422_v35 = vsel %vm2419_vm15, %v2421_v8, %v2417_v37  ;;  %9406 = vst [vmem:[#allocation96_spill] sm:$0xff] %v7571_v39  ;;  %v9414_v58 = vld [vmem:[#allocation32_spill] sm:$0xff]  ;;  %v7618_v8 = vld [vmem:[%s9063_s18 + $0x60] sm:$0xff]  ;;  %v9417_v37 = vld [vmem:[#allocation33_spill] sm:$0xff] }
 0x659   : > { %v2429_v61 = vmul.f32 %v4006_v12, %v2422_v35  ;;  %9416 = vst [vmem:[#allocation87_spill] sm:$0xff] %v7618_v8  ;;  %v9418_v12 = vld [vmem:[#allocation25_spill] sm:$0xff]  ;;  %v7626_v35 = vld [vmem:[%s9063_s18 + $0x68] sm:$0xff] }
 0x65a   : > { %9419 = vst [vmem:[#allocation110_spill] sm:$0xff] %v7626_v35 }
 0x65b   : > { %3821 = vst [vmem:[%s4814_s15 + $0x8] sm:$0xff] %v2429_v61  ;;  %2465 = vmatmul.f32.vlgmr.msra.gmra.mxu0 %v2429_v61  ;;  %2485 = vmatmul.f32.vlgmr.msrb.gmra.mxu1 %v2429_v61 }
 0x65c   : > { %2505 = vmatmul.f32.vlgmr.msrb.gmra.mxu2 %v2429_v61  ;;  %2525 = vmatmul.f32.vlgmr.msrb.gmra.mxu3 %v2429_v61 }
 0x65d   : > { %2624 = vmatpush.msra.mxu0 %v6695_v13  ;;  %2694 = vmatpush.msrb.mxu1 %v7451_v3  ;;  %v7470_v13 = vld [vmem:[%s9055_s3 + $0x60] sm:$0xff] }
 0x65e   : > { %2733 = vmatpush.msrb.mxu2 %v7457_v20  ;;  %2753 = vmatpush.msrb.mxu3 %v7463_v6 }
 0x65f   : > { %2625 = vmatpush.msra.mxu0 %v6704_v30  ;;  %2695 = vmatpush.msrb.mxu1 %v7470_v13  ;;  %v7489_v30 = vld [vmem:[%s9055_s3 + $0x50] sm:$0xff] }
 0x660   : > { %2734 = vmatpush.msrb.mxu2 %v7476_v40  ;;  %2754 = vmatpush.msrb.mxu3 %v7482_v28 }
 0x661   : > { %2626 = vmatpush.msra.mxu0 %v6713_v63  ;;  %2696 = vmatpush.msrb.mxu1 %v7489_v30  ;;  %v7508_v63 = vld [vmem:[%s9055_s3 + $0x40] sm:$0xff] }
 0x662   : > { %2735 = vmatpush.msrb.mxu2 %v7495_v54  ;;  %2755 = vmatpush.msrb.mxu3 %v7501_v15 }
 0x663   : > { %2545 = vmatmul.f32.vlgmr.msrb.gmra.mxu0 %v2429_v61  ;;  %2565 = vmatmul.f32.vlgmr.msra.gmra.mxu1 %v2429_v61 }
 0x664   : > { %2585 = vmatmul.f32.vlgmr.msra.gmra.mxu2 %v2429_v61  ;;  %2627 = vmatpush.msra.mxu0 %v6722_v60  ;;  %v7521_v60 = vld [vmem:[%s9063_s18 + $0xc8] sm:$0xff]  ;;  %v7632_v61 = vld [vmem:[%s9063_s18 + $0x50] sm:$0xff] }
 0x665   : > { %2697 = vmatpush.msrb.mxu1 %v7508_v63  ;;  %2736 = vmatpush.msrb.mxu2 %v7514_v11  ;;  %9420 = vst [vmem:[#allocation90_spill] sm:$0xff] %v7632_v61 }
 0x666   : > { %2628 = vmatpush.msra.mxu0 %v6730_v4  ;;  %2756 = vmatpush.msrb.mxu3 %v7521_v60  ;;  %v7540_v4 = vld [vmem:[%s9063_s18 + $0xb8] sm:$0xff] }
 0x667   : > { %2698 = vmatpush.msrb.mxu1 %v7527_v62  ;;  %2737 = vmatpush.msrb.mxu2 %v7533_v17 }
 0x668   : > { %2629 = vmatpush.msra.mxu0 %v6739_v22  ;;  %2757 = vmatpush.msrb.mxu3 %v7540_v4  ;;  %v7559_v22 = vld [vmem:[%s9063_s18 + $0xa8] sm:$0xff] }
 0x669   : > { %2699 = vmatpush.msrb.mxu1 %v7546_v27  ;;  %2738 = vmatpush.msrb.mxu2 %v7552_v59 }
 0x66a   : > { %2630 = vmatpush.msra.mxu0 %v6748_v19  ;;  %2758 = vmatpush.msrb.mxu3 %v7559_v22  ;;  %v7578_v19 = vld [vmem:[%s9063_s18 + $0x98] sm:$0xff] }
 0x66b   : > { %2700 = vmatpush.msrb.mxu1 %v7565_v43  ;;  %2739 = vmatpush.msrb.mxu2 %v7571_v39  ;;  %9407 = vst [vmem:[#allocation78_spill] sm:$0xff] %v7578_v19 }
 0x66c   : > { %2631 = vmatpush.msra.mxu0 %v6757_v36  ;;  %2759 = vmatpush.msrb.mxu3 %v7578_v19  ;;  %v9410_v36 = vld [vmem:[#allocation31_spill] sm:$0xff] }
 0x66d   : > { %2701 = vmatpush.msrb.mxu1 %v7584_v48  ;;  %2740 = vmatpush.msrb.mxu2 %v7590_v0 }
 0x66e   : > { %2632 = vmatpush.msra.mxu0 %v6766_v32  ;;  %2760 = vmatpush.msrb.mxu3 %v7598_v7  ;;  %v7612_v32 = vld [vmem:[%s9063_s18 + $0x78] sm:$0xff] }
 0x66f   : > { %2714 = vmatpush.msra.mxu1 %v9410_v36  ;;  %2741 = vmatpush.msrb.mxu2 %v7604_v33  ;;  %9415 = vst [vmem:[#allocation106_spill] sm:$0xff] %v7612_v32  ;;  %v9421_v36 = vld [vmem:[#allocation34_spill] sm:$0xff] }
 0x670   : > { %2633 = vmatpush.msra.mxu0 %v9413_v42  ;;  %2761 = vmatpush.msrb.mxu3 %v7612_v32  ;;  %v9422_v42 = vld [vmem:[#allocation35_spill] sm:$0xff]  ;;  %v9476_v32 = vld [vmem:[#allocation29_spill] sm:$0xff] }
 0x671   : > { %2715 = vmatpush.msra.mxu1 %v9414_v58  ;;  %2742 = vmatpush.msrb.mxu2 %v7618_v8  ;;  %v7640_v58 = vld [vmem:[%s9063_s18 + $0x58] sm:$0xff] }
 0x672   : > { %2634 = vmatpush.msra.mxu0 %v9417_v37  ;;  %2762 = vmatpush.msrb.mxu3 %v7626_v35  ;;  %9423 = vst [vmem:[#allocation112_spill] sm:$0xff] %v7640_v58  ;;  %v7646_v37 = vld [vmem:[%s9063_s18 + $0x40] sm:$0xff]  ;;  %v9475_v35 = vld [vmem:[#allocation21_spill] sm:$0xff] }
 0x673   : > { %2716 = vmatpush.msra.mxu1 %v9418_v12  ;;  %2743 = vmatpush.msrb.mxu2 %v7632_v61  ;;  %9424 = vst [vmem:[#allocation94_spill] sm:$0xff] %v7646_v37  ;;  %v9425_v12 = vld [vmem:[#allocation26_spill] sm:$0xff] }
 0x674   : > { %2635 = vmatpush.msra.mxu0 %v9421_v36  ;;  %2763 = vmatpush.msrb.mxu3 %v7640_v58  ;;  %v7654_v36 = vld [vmem:[%s9063_s18 + $0x48] sm:$0xff]  ;;  %v9429_v58 = vld [vmem:[#allocation37_spill] sm:$0xff] }
 0x675   : > { %2717 = vmatpush.msra.mxu1 %v9422_v42  ;;  %2744 = vmatpush.msrb.mxu2 %v7646_v37  ;;  %9427 = vst [vmem:[#allocation116_spill] sm:$0xff] %v7654_v36  ;;  %v7660_v42 = vld [vmem:[%s9063_s18 + $0x30] sm:$0xff]  ;;  %v9430_v37 = vld [vmem:[#allocation27_spill] sm:$0xff] }
 0x676   : > { %2636 = vmatpush.msra.mxu0 %v9425_v12  ;;  %2764 = vmatpush.msrb.mxu3 %v7654_v36  ;;  %9428 = vst [vmem:[#allocation120_spill] sm:$0xff] %v7660_v42  ;;  %v7674_v12 = vld [vmem:[%s9063_s18 + $0x20] sm:$0xff] }
 0x677   : > { %2718 = vmatpush.msra.mxu1 %v9426_v38  ;;  %2745 = vmatpush.msrb.mxu2 %v7660_v42  ;;  %v7668_v38 = vld [vmem:[%s9063_s18 + $0x38] sm:$0xff]  ;;  %9432 = vst [vmem:[#allocation73_spill] sm:$0xff] %v7674_v12  ;;  %v9433_v36 = vld [vmem:[#allocation38_spill] sm:$0xff]  ;;  %v9434_v42 = vld [vmem:[#allocation39_spill] sm:$0xff] }
 0x678   : > { %2637 = vmatpush.msra.mxu0 %v9429_v58  ;;  %9431 = vst [vmem:[#allocation22_spill] sm:$0xff] %v7668_v38  ;;  %2765 = vmatpush.msrb.mxu3 %v7668_v38  ;;  %v7682_v58 = vld [vmem:[%s9063_s18 + $0x28] sm:$0xff]  ;;  %v9437_v38 = vld [vmem:[#allocation28_spill] sm:$0xff] }
 0x679   : > { %2719 = vmatpush.msra.mxu1 %v9430_v37  ;;  %2746 = vmatpush.msrb.mxu2 %v7674_v12  ;;  %9435 = vst [vmem:[#allocation75_spill] sm:$0xff] %v7682_v58  ;;  %v7688_v37 = vld [vmem:[%s9063_s18 + $0x10] sm:$0xff]  ;;  %v9438_v12 = vld [vmem:[#allocation42_spill] sm:$0xff] }
 0x67a   : > { %2638 = vmatpush.msra.mxu0 %v9433_v36  ;;  %2766 = vmatpush.msrb.mxu3 %v7682_v58  ;;  %9436 = vst [vmem:[#allocation100_spill] sm:$0xff] %v7688_v37  ;;  %v7696_v36 = vld [vmem:[%s9073_s10 + $0x1e0] sm:$0xff]  ;;  %v9474_v58 = vld [vmem:[#allocation43_spill] sm:$0xff] }
 0x67b   : > { %2720 = vmatpush.msra.mxu1 %v9434_v42  ;;  %2747 = vmatpush.msrb.mxu2 %v7688_v37  ;;  %9439 = vst [vmem:[#allocation77_spill] sm:$0xff] %v7696_v36  ;;  %v7702_v42 = vld [vmem:[%s9063_s18 + $0x18] sm:$0xff] }
 0x67c   : > { %2639 = vmatpush.msra.mxu0 %v9437_v38  ;;  %9440 = vst [vmem:[#allocation104_spill] sm:$0xff] %v7702_v42  ;;  %2767 = vmatpush.msrb.mxu3 %v7702_v42  ;;  %v7708_v38 = vld [vmem:[%s9063_s18] sm:$0xff]  ;;  %v7726_v42 = vld [vmem:[%s9073_s10 + $0x1f0] sm:$0xff] }
 0x67d   : > { %2721 = vmatpush.msra.mxu1 %v9438_v12  ;;  %9441 = vst [vmem:[#allocation80_spill] sm:$0xff] %v7708_v38  ;;  %2748 = vmatpush.msrb.mxu2 %v7708_v38  ;;  %v7714_v12 = vld [vmem:[%s9073_s10 + $0x1c0] sm:$0xff] }
 0x67e   : > { %2792 = vmatpush.msrb.mxu0 %v7696_v36  ;;  %9442 = vst [vmem:[#allocation108_spill] sm:$0xff] %v7714_v12  ;;  %v7720_v36 = vld [vmem:[%s9063_s18 + $0x8] sm:$0xff]  ;;  %v7732_v38 = vld [vmem:[%s9073_s10 + $0x1a0] sm:$0xff] }
 0x67f   : > { %9443 = vst [vmem:[#allocation83_spill] sm:$0xff] %v7720_v36  ;;  %2768 = vmatpush.msrb.mxu3 %v7720_v36  ;;  %2832 = vmatpush.msra.mxu2 %v7726_v42  ;;  %v7744_v36 = vld [vmem:[%s9073_s10 + $0x180] sm:$0xff] }
 0x680   : > { %2793 = vmatpush.msrb.mxu0 %v7714_v12  ;;  %9444 = vst [vmem:[#allocation114_spill] sm:$0xff] %v7726_v42  ;;  %v7738_v12 = vld [vmem:[%s9073_s10 + $0x1d0] sm:$0xff] }
 0x681   : > { %9445 = vst [vmem:[#allocation86_spill] sm:$0xff] %v7732_v38  ;;  %2833 = vmatpush.msra.mxu2 %v7738_v12  ;;  %v7750_v42 = vld [vmem:[%s9073_s10 + $0x1b0] sm:$0xff] }
 0x682   : > { %2794 = vmatpush.msrb.mxu0 %v7732_v38  ;;  %9446 = vst [vmem:[#allocation118_spill] sm:$0xff] %v7738_v12  ;;  %v7756_v38 = vld [vmem:[%s9073_s10 + $0x160] sm:$0xff]  ;;  %v7762_v12 = vld [vmem:[%s9073_s10 + $0x190] sm:$0xff] }
 0x683   : > { %9447 = vst [vmem:[#allocation89_spill] sm:$0xff] %v7744_v36  ;;  %2834 = vmatpush.msra.mxu2 %v7750_v42 }
 0x684   : > { %2795 = vmatpush.msrb.mxu0 %v7744_v36  ;;  %9448 = vst [vmem:[#allocation122_spill] sm:$0xff] %v7750_v42  ;;  %v7768_v36 = vld [vmem:[%s9073_s10 + $0x140] sm:$0xff]  ;;  %v7774_v42 = vld [vmem:[%s9073_s10 + $0x170] sm:$0xff] }
 0x685   : > { %9449 = vst [vmem:[#allocation93_spill] sm:$0xff] %v7756_v38  ;;  %2835 = vmatpush.msra.mxu2 %v7762_v12 }
 0x686   : > { %2796 = vmatpush.msrb.mxu0 %v7756_v38  ;;  %9450 = vst [vmem:[#allocation124_spill] sm:$0xff] %v7762_v12  ;;  %v7780_v38 = vld [vmem:[%s9073_s10 + $0x120] sm:$0xff]  ;;  %v7786_v12 = vld [vmem:[%s9073_s10 + $0x150] sm:$0xff] }
 0x687   : > { %9451 = vst [vmem:[#allocation97_spill] sm:$0xff] %v7768_v36  ;;  %2836 = vmatpush.msra.mxu2 %v7774_v42 }
 0x688   : > { %2797 = vmatpush.msrb.mxu0 %v7768_v36  ;;  %9452 = vst [vmem:[#allocation126_spill] sm:$0xff] %v7774_v42  ;;  %v7792_v36 = vld [vmem:[%s9073_s10 + $0x100] sm:$0xff]  ;;  %v7798_v42 = vld [vmem:[%s9073_s10 + $0x130] sm:$0xff] }
 0x689   : > { %9453 = vst [vmem:[#allocation99_spill] sm:$0xff] %v7780_v38  ;;  %2837 = vmatpush.msra.mxu2 %v7786_v12 }
 0x68a   : > { %2798 = vmatpush.msrb.mxu0 %v7780_v38  ;;  %9454 = vst [vmem:[#allocation128_spill] sm:$0xff] %v7786_v12  ;;  %v7804_v38 = vld [vmem:[%s9073_s10 + $0xe0] sm:$0xff]  ;;  %v7810_v12 = vld [vmem:[%s9073_s10 + $0x110] sm:$0xff] }
 0x68b   : > { %9455 = vst [vmem:[#allocation103_spill] sm:$0xff] %v7792_v36  ;;  %2838 = vmatpush.msra.mxu2 %v7798_v42 }
 0x68c   : > { %2799 = vmatpush.msrb.mxu0 %v7792_v36  ;;  %9456 = vst [vmem:[#allocation130_spill] sm:$0xff] %v7798_v42  ;;  %v7816_v36 = vld [vmem:[%s9073_s10 + $0xc0] sm:$0xff]  ;;  %v7822_v42 = vld [vmem:[%s9073_s10 + $0xf0] sm:$0xff] }
 0x68d   : > { %9457 = vst [vmem:[#allocation107_spill] sm:$0xff] %v7804_v38  ;;  %2839 = vmatpush.msra.mxu2 %v7810_v12 }
 0x68e   : > { %2800 = vmatpush.msrb.mxu0 %v7804_v38  ;;  %9458 = vst [vmem:[#allocation132_spill] sm:$0xff] %v7810_v12  ;;  %v7828_v38 = vld [vmem:[%s9073_s10 + $0xa0] sm:$0xff]  ;;  %v7834_v12 = vld [vmem:[%s9073_s10 + $0xd0] sm:$0xff] }
 0x68f   : > { %9459 = vst [vmem:[#allocation111_spill] sm:$0xff] %v7816_v36  ;;  %2840 = vmatpush.msra.mxu2 %v7822_v42 }
 0x690   : > { %2801 = vmatpush.msrb.mxu0 %v7816_v36  ;;  %9460 = vst [vmem:[#allocation134_spill] sm:$0xff] %v7822_v42  ;;  %v7840_v36 = vld [vmem:[%s9073_s10 + $0x80] sm:$0xff]  ;;  %v7846_v42 = vld [vmem:[%s9073_s10 + $0xb0] sm:$0xff] }
 0x691   : > { %9461 = vst [vmem:[#allocation113_spill] sm:$0xff] %v7828_v38  ;;  %2841 = vmatpush.msra.mxu2 %v7834_v12 }
 0x692   : > { %2802 = vmatpush.msrb.mxu0 %v7828_v38  ;;  %9462 = vst [vmem:[#allocation137_spill] sm:$0xff] %v7834_v12  ;;  %v7852_v38 = vld [vmem:[%s9073_s10 + $0x60] sm:$0xff]  ;;  %v7858_v12 = vld [vmem:[%s9073_s10 + $0x90] sm:$0xff] }
 0x693   : > { %9463 = vst [vmem:[#allocation117_spill] sm:$0xff] %v7840_v36  ;;  %2842 = vmatpush.msra.mxu2 %v7846_v42 }
 0x694   : > { %2803 = vmatpush.msrb.mxu0 %v7840_v36  ;;  %9464 = vst [vmem:[#allocation140_spill] sm:$0xff] %v7846_v42  ;;  %v7864_v36 = vld [vmem:[%s9073_s10 + $0x40] sm:$0xff]  ;;  %v7870_v42 = vld [vmem:[%s9073_s10 + $0x70] sm:$0xff] }
 0x695   : > { %9465 = vst [vmem:[#allocation121_spill] sm:$0xff] %v7852_v38  ;;  %2843 = vmatpush.msra.mxu2 %v7858_v12 }
 0x696   : > { %2804 = vmatpush.msrb.mxu0 %v7852_v38  ;;  %9466 = vst [vmem:[#allocation23_spill] sm:$0xff] %v7858_v12  ;;  %v7876_v38 = vld [vmem:[%s9073_s10 + $0x20] sm:$0xff]  ;;  %v7882_v12 = vld [vmem:[%s9073_s10 + $0x50] sm:$0xff] }
 0x697   : > { %9467 = vst [vmem:[#allocation91_spill] sm:$0xff] %v7864_v36  ;;  %2844 = vmatpush.msra.mxu2 %v7870_v42 }
 0x698   : > { %2805 = vmatpush.msrb.mxu0 %v7864_v36  ;;  %9468 = vst [vmem:[#allocation95_spill] sm:$0xff] %v7870_v42  ;;  %v7888_v36 = vld [vmem:[%s9073_s10] sm:$0xff]  ;;  %v7894_v42 = vld [vmem:[%s9073_s10 + $0x30] sm:$0xff] }
 0x699   : > { %9469 = vst [vmem:[#allocation101_spill] sm:$0xff] %v7876_v38  ;;  %2845 = vmatpush.msra.mxu2 %v7882_v12 }
 0x69a   : > { %2806 = vmatpush.msrb.mxu0 %v7876_v38  ;;  %9470 = vst [vmem:[#allocation105_spill] sm:$0xff] %v7882_v12  ;;  %v7900_v38 = vld [vmem:[%s9073_s10 + $0x10] sm:$0xff] }
 0x69b   : > { %9471 = vst [vmem:[#allocation109_spill] sm:$0xff] %v7888_v36  ;;  %2846 = vmatpush.msra.mxu2 %v7894_v42 }
 0x69c   : > { %2807 = vmatpush.msrb.mxu0 %v7888_v36  ;;  %9472 = vst [vmem:[#allocation115_spill] sm:$0xff] %v7894_v42 }
 0x69d   : > { %9473 = vst [vmem:[#allocation119_spill] sm:$0xff] %v7900_v38  ;;  %2847 = vmatpush.msra.mxu2 %v7900_v38  ;;  %v7909_v38 = vld [vmem:[%s9073_s10 + $0x1f8] sm:$0xff] }
 0x69e   : > { %9477 = vst [vmem:[#allocation123_spill] sm:$0xff] %v7909_v38 }
 0x6d8   : > { %v2466_v12 = vpop.f32.mrf.mxu0  ;;  %v2486_v37 = vpop.f32.mrf.mxu1 }
 0x6d9   : > { %v2589_v61 = vadd.f32 %v9474_v58, %v2466_v12  ;;  %v2617_v36 = vadd.f32 %v2486_v37, %v9475_v35  ;;  %v7915_v35 = vld [vmem:[%s9073_s10 + $0x1d8] sm:$0xff]  ;;  %v4311_v58 = vld [vmem:[%s9046_s28 + $0x268] sm:$0xff] }
 0x6da   : > { %9478 = vst [vmem:[#allocation125_spill] sm:$0xff] %v7915_v35  ;;  %v7960_v37 = vld [vmem:[%s9073_s10 + $0x138] sm:$0xff] }
 0x6db   : > { %vm2590_vm0 = vcmp.ge.f32.partialorder %v2589_v61, 0.0  ;;  %v2591_v8 = vmul.f32 0.33333334, %v2589_v61  ;;  %v2618_v33 = vadd.f32 %v9476_v32, %v2617_v36  ;;  %v7942_v32 = vld [vmem:[%s9073_s10 + $0x178] sm:$0xff]  ;;  %9483 = vst [vmem:[#allocation135_spill] sm:$0xff] %v7960_v37  ;;  %v4313_v36 = vld [vmem:[%s9046_s28 + $0x230] sm:$0xff] }
 0x6dc   : > { %9481 = vst [vmem:[#allocation131_spill] sm:$0xff] %v7942_v32  ;;  %v4315_v12 = vld [vmem:[%s9046_s28 + $0x1f8] sm:$0xff] }
 0x6dd   : > { %v2592_v7 = vsel %vm2590_vm0, %v2589_v61, %v2591_v8  ;;  %vm2619_vm1 = vcmp.ge.f32.partialorder %v2618_v33, 0.0  ;;  %v2620_v42 = vmul.f32 0.33333334, %v2618_v33  ;;  %v4309_v8 = vld [vmem:[%s9046_s28 + $0x2a0] sm:$0xff]  ;;  %v7951_v61 = vld [vmem:[%s9073_s10 + $0x158] sm:$0xff] }
 0x6de   : > { %v3829_v0 = vclamps-f32 %v2592_v7, 3.0  ;;  %v7933_v7 = vld [vmem:[%s9073_s10 + $0x198] sm:$0xff]  ;;  %9482 = vst [vmem:[#allocation133_spill] sm:$0xff] %v7951_v61 }
 0x6df   : > { %v2621_v48 = vsel %vm2619_vm1, %v2618_v33, %v2620_v42  ;;  %9480 = vst [vmem:[#allocation129_spill] sm:$0xff] %v7933_v7  ;;  %v4307_v33 = vld [vmem:[%s9046_s28 + $0x2d8] sm:$0xff] }
 0x6e0   : > { %v3831_v19 = vclamps-f32 %v2621_v48, 3.0  ;;  %2611 = vmatmul.f32.vlgmr.msra.gmra.mxu3 %v3829_v0  ;;  %v4303_v48 = vld [vmem:[%s9046_s28 + $0x348] sm:$0xff]  ;;  %v7924_v0 = vld [vmem:[%s9073_s10 + $0x1b8] sm:$0xff] }
 0x6e1   : > { %2852 = vmatpush.msra.mxu3 %v7909_v38  ;;  %9479 = vst [vmem:[#allocation127_spill] sm:$0xff] %v7924_v0  ;;  %v7969_v42 = vld [vmem:[%s9073_s10 + $0x118] sm:$0xff] }
 0x6e2   : > { %2640 = vmatmul.f32.vlgmr.msra.gmra.mxu0 %v3831_v19  ;;  %v4305_v19 = vld [vmem:[%s9046_s28 + $0x310] sm:$0xff]  ;;  %9484 = vst [vmem:[#allocation138_spill] sm:$0xff] %v7969_v42 }
 0x6e3   : > { %2853 = vmatpush.msra.mxu3 %v7915_v35  ;;  %2960 = vmatpush.msra.mxu0 %v4303_v48  ;;  %v7978_v48 = vld [vmem:[%s9073_s10 + $0xf8] sm:$0xff] }
 0x6e4   : > { %9485 = vst [vmem:[#allocation141_spill] sm:$0xff] %v7978_v48 }
 0x6e5   : > { %2854 = vmatpush.msra.mxu3 %v7924_v0  ;;  %2961 = vmatpush.msra.mxu0 %v4305_v19  ;;  %v4317_v19 = vld [vmem:[%s9046_s28 + $0x1c0] sm:$0xff] }
 0x6e7   : > { %2855 = vmatpush.msra.mxu3 %v7933_v7  ;;  %2962 = vmatpush.msra.mxu0 %v4307_v33  ;;  %v7987_v33 = vld [vmem:[%s9073_s10 + $0xd8] sm:$0xff] }
 0x6e8   : > { %9486 = vst [vmem:[#allocation142_spill] sm:$0xff] %v7987_v33 }
 0x6e9   : > { %2856 = vmatpush.msra.mxu3 %v7942_v32  ;;  %2963 = vmatpush.msra.mxu0 %v4309_v8  ;;  %v4319_v8 = vld [vmem:[%s9046_s28 + $0x188] sm:$0xff] }
 0x6eb   : > { %2857 = vmatpush.msra.mxu3 %v7951_v61  ;;  %2964 = vmatpush.msra.mxu0 %v4311_v58  ;;  %v7996_v58 = vld [vmem:[%s9073_s10 + $0xb8] sm:$0xff]  ;;  %v9494_v61 = vld [vmem:[#allocation46_spill] sm:$0xff] }
 0x6ec   : > { %9487 = vst [vmem:[#allocation143_spill] sm:$0xff] %v7996_v58 }
 0x6ed   : > { %2858 = vmatpush.msra.mxu3 %v7960_v37  ;;  %2965 = vmatpush.msra.mxu0 %v4313_v36  ;;  %v4321_v36 = vld [vmem:[%s9046_s28 + $0x150] sm:$0xff] }
 0x6ef   : > { %2859 = vmatpush.msra.mxu3 %v7969_v42  ;;  %2966 = vmatpush.msra.mxu0 %v4315_v12  ;;  %v8005_v12 = vld [vmem:[%s9073_s10 + $0x98] sm:$0xff] }
 0x6f0   : > { %9488 = vst [vmem:[#allocation139_spill] sm:$0xff] %v8005_v12 }
 0x6f1   : > { %2860 = vmatpush.msra.mxu3 %v7978_v48  ;;  %2967 = vmatpush.msra.mxu0 %v4317_v19  ;;  %v4323_v19 = vld [vmem:[%s9046_s28 + $0x118] sm:$0xff] }
 0x6f2   : > { %v9493_v48 = vld [vmem:[#allocation45_spill] sm:$0xff] }
 0x6f3   : > { %2861 = vmatpush.msra.mxu3 %v7987_v33  ;;  %2968 = vmatpush.msra.mxu0 %v4319_v8  ;;  %v8014_v8 = vld [vmem:[%s9073_s10 + $0x78] sm:$0xff] }
 0x6f4   : > { %9489 = vst [vmem:[#allocation136_spill] sm:$0xff] %v8014_v8 }
 0x6f5   : > { %2862 = vmatpush.msra.mxu3 %v7996_v58  ;;  %2969 = vmatpush.msra.mxu0 %v4321_v36  ;;  %v4325_v36 = vld [vmem:[%s9046_s28 + $0xe0] sm:$0xff]  ;;  %v8050_v58 = vpop.f32.mrf.mxu0 }
 0x6f7   : > { %2863 = vmatpush.msra.mxu3 %v8005_v12  ;;  %2970 = vmatpush.msra.mxu0 %v4323_v19  ;;  %v8023_v12 = vld [vmem:[%s9073_s10 + $0x58] sm:$0xff]  ;;  %v4327_v19 = vld [vmem:[%s9046_s28 + $0xa8] sm:$0xff] }
 0x6f8   : > { %9490 = vst [vmem:[#allocation144_spill] sm:$0xff] %v8023_v12 }
 0x6f9   : > { %2864 = vmatpush.msra.mxu3 %v8014_v8  ;;  %2971 = vmatpush.msra.mxu0 %v4325_v36  ;;  %v8032_v8 = vld [vmem:[%s9073_s10 + $0x38] sm:$0xff]  ;;  %v4329_v36 = vld [vmem:[%s9046_s28 + $0x70] sm:$0xff] }
 0x6fa   : > { %9491 = vst [vmem:[#allocation145_spill] sm:$0xff] %v8032_v8 }
 0x6fb   : > { %2865 = vmatpush.msra.mxu3 %v8023_v12  ;;  %2972 = vmatpush.msra.mxu0 %v4327_v19  ;;  %v8041_v12 = vld [vmem:[%s9073_s10 + $0x18] sm:$0xff] }
 0x6fc   : > { %9492 = vst [vmem:[#allocation146_spill] sm:$0xff] %v8041_v12  ;;  %v4331_v19 = vld [vmem:[%s9046_s28 + $0x38] sm:$0xff] }
 0x6fd   : > { %2866 = vmatpush.msra.mxu3 %v8032_v8  ;;  %2973 = vmatpush.msra.mxu0 %v4329_v36  ;;  %v4332_v8 = vld [vmem:[%s9046_s28] sm:$0xff]  ;;  %v8052_v36 = vpop.f32.mrf.mxu3 }
 0x6ff   : > { %2867 = vmatpush.msra.mxu3 %v8041_v12  ;;  %2974 = vmatpush.msra.mxu0 %v4331_v19 }
 0x701   : > { %2975 = vmatpush.msra.mxu0 %v4332_v8 }
 0x75f   : > { %v2641_v33 = vpop.f32.mrf.mxu0 }
 0x760   : > { %v2642_v42 = vadd.f32 %v9493_v48, %v2641_v33 }
 0x762   : > { %v3832_v37 = vclamps-f32 %v2642_v42, 8.0 }
 0x763   : > { %v2612_v12 = vpop.f32.mrf.mxu3 }
 0x764   : > { %v2613_v32 = vadd.f32 %v9494_v61, %v2612_v12  ;;  %v2674_v7 = vmul.f32 0.5, %v3832_v37  ;;  %v3823_v61 = vld [vmem:[%s4810_s13 + $0x10] sm:$0xff] }
 0x766   : > { %v8056_v0 = vclamps-f32 %v2613_v32, 8.0  ;;  %v2675_v19 = vmul.f32 1.442695, %v2674_v7  ;;  %v9496_v7 = vld [vmem:[#allocation30_spill] sm:$0xff] }
 0x768   : > { %4007 = vpow2.f32 %v2675_v19  ;;  %v8059_v35 = vsub.f32 %v3832_v37, %v8056_v0  ;;  %v2646_v48 = vsub.f32 %v8056_v0, %v3832_v37  ;;  %v9497_v19 = vld [vmem:[#allocation48_spill] sm:$0xff] }
 0x76a   : > { %v2648_v8 = vmul.f32 1.442695, %v8059_v35 }
 0x76c   : > { %4009 = vpow2.f32 %v2648_v8  ;;  %v9498_v8 = vld [vmem:[#allocation49_spill] sm:$0xff] }
 0x76e   : > { %v4008_v38 = vpop.eup %4007 }
 0x76f   : > { %2678 = vrot.lane.b32.xlu1 %v4008_v38, %s9327_s24  ;;  %v9499_v38 = vld [vmem:[#allocation51_spill] sm:$0xff] }
 0x772   : > { %v4010_v42 = vpop.eup %4009 }
 0x773   : > { %v8064_v33 = vadd.f32 %v4010_v42, %v2646_v48  ;;  %v9500_v48 = vld [vmem:[#allocation52_spill] sm:$0xff]  ;;  %v9501_v42 = vld [vmem:[#allocation54_spill] sm:$0xff] }
 0x775   : > { %9495 = vst [vmem:[#allocation147_spill] sm:$0xff] %v8064_v33 }
 0x7e1   : > { %v2679_v12 = vpop.permute.xlu1 %2678 }
 0x7e2   : > { %v2681_v32 = vmul.f32 %v3823_v61, %v2679_v12  ;;  %v9502_v61 = vld [vmem:[#allocation55_spill] sm:$0xff]  ;;  %v9504_v12 = vld [vmem:[#allocation58_spill] sm:$0xff] }
 0x7e4   : > { %v2682_v39 = vadd.f32 %v3832_v37, %v2681_v32  ;;  %v9503_v37 = vld [vmem:[#allocation57_spill] sm:$0xff] }
 0x7e5   : > { %v9506_v32 = vld [vmem:[#allocation61_spill] sm:$0xff] }
 0x7e6   : > { %3834 = vmatmul.msk.f32.vlgmr.msrb.gmra.mxu1 %vm1625_vm2, %v2682_v39 }
 0x7e7   : > { %2812 = vmatpush.msrb.mxu1 %v6980_v24  ;;  %v9505_v24 = vld [vmem:[#allocation60_spill] sm:$0xff] }
 0x7e9   : > { %2813 = vmatpush.msrb.mxu1 %v9496_v7  ;;  %v9507_v7 = vld [vmem:[#allocation63_spill] sm:$0xff] }
 0x7eb   : > { %2814 = vmatpush.msrb.mxu1 %v9497_v19  ;;  %v9508_v19 = vld [vmem:[#allocation64_spill] sm:$0xff] }
 0x7ed   : > { %2815 = vmatpush.msrb.mxu1 %v9498_v8  ;;  %v8092_v8 = vld [vmem:[%s9073_s10 + $0x8] sm:$0xff] }
 0x7ee   : > { %3835 = vmatmul.msk.f32.vlgmr.msra.gmra.mxu1 %vm1625_vm2, %v2682_v39  ;;  %v8086_v39 = vld [vmem:[%s9073_s10 + $0x28] sm:$0xff]  ;;  %9509 = vst [vmem:[#allocation148_spill] sm:$0xff] %v8092_v8 }
 0x7ef   : > { %2816 = vmatpush.msrb.mxu1 %v9499_v38  ;;  %v4335_v38 = vld [vmem:[%s9046_s28 + $0x350] sm:$0xff] }
 0x7f1   : > { %2817 = vmatpush.msrb.mxu1 %v9500_v48  ;;  %v4336_v48 = vld [vmem:[%s9046_s28 + $0x318] sm:$0xff] }
 0x7f3   : > { %2818 = vmatpush.msrb.mxu1 %v9501_v42  ;;  %v4337_v42 = vld [vmem:[%s9046_s28 + $0x2e0] sm:$0xff] }
 0x7f5   : > { %2819 = vmatpush.msrb.mxu1 %v9502_v61  ;;  %v4338_v61 = vld [vmem:[%s9046_s28 + $0x2a8] sm:$0xff] }
 0x7f7   : > { %2820 = vmatpush.msrb.mxu1 %v9503_v37  ;;  %v4339_v37 = vld [vmem:[%s9046_s28 + $0x270] sm:$0xff] }
 0x7f9   : > { %2821 = vmatpush.msrb.mxu1 %v9504_v12  ;;  %v4340_v12 = vld [vmem:[%s9046_s28 + $0x238] sm:$0xff] }
 0x7fb   : > { %2822 = vmatpush.msrb.mxu1 %v9505_v24  ;;  %v4341_v24 = vld [vmem:[%s9046_s28 + $0x200] sm:$0xff] }
 0x7fd   : > { %2823 = vmatpush.msrb.mxu1 %v9506_v32  ;;  %v4342_v32 = vld [vmem:[%s9046_s28 + $0x1c8] sm:$0xff] }
 0x7ff   : > { %2824 = vmatpush.msrb.mxu1 %v9507_v7  ;;  %v4343_v7 = vld [vmem:[%s9046_s28 + $0x190] sm:$0xff] }
 0x801   : > { %2825 = vmatpush.msrb.mxu1 %v9508_v19  ;;  %v4344_v19 = vld [vmem:[%s9046_s28 + $0x158] sm:$0xff] }
 0x803   : > { %2826 = vmatpush.msrb.mxu1 %v8086_v39 }
 0x805   : > { %2827 = vmatpush.msrb.mxu1 %v8092_v8 }
 0x807   : > { %2980 = vmatpush.msra.mxu1 %v4335_v38  ;;  %v4345_v38 = vld [vmem:[%s9046_s28 + $0x120] sm:$0xff] }
 0x809   : > { %2981 = vmatpush.msra.mxu1 %v4336_v48  ;;  %v4346_v48 = vld [vmem:[%s9046_s28 + $0xe8] sm:$0xff] }
 0x80b   : > { %2982 = vmatpush.msra.mxu1 %v4337_v42  ;;  %v4347_v42 = vld [vmem:[%s9046_s28 + $0xb0] sm:$0xff] }
 0x80d   : > { %2983 = vmatpush.msra.mxu1 %v4338_v61  ;;  %v4348_v61 = vld [vmem:[%s9046_s28 + $0x78] sm:$0xff] }
 0x80f   : > { %2984 = vmatpush.msra.mxu1 %v4339_v37  ;;  %v4349_v37 = vld [vmem:[%s9046_s28 + $0x40] sm:$0xff] }
 0x811   : > { %2985 = vmatpush.msra.mxu1 %v4340_v12  ;;  %v4350_v12 = vld [vmem:[%s9046_s28 + $0x8] sm:$0xff] }
 0x813   : > { %2986 = vmatpush.msra.mxu1 %v4341_v24  ;;  %v8143_v24 = vpop.f32.mrf.mxu1 }
 0x815   : > { %2987 = vmatpush.msra.mxu1 %v4342_v32  ;;  %v2506_v32 = vpop.f32.mrf.mxu2 }
 0x817   : > { %2988 = vmatpush.msra.mxu1 %v4343_v7 }
 0x819   : > { %2989 = vmatpush.msra.mxu1 %v4344_v19 }
 0x81b   : > { %2990 = vmatpush.msra.mxu1 %v4345_v38  ;;  %v8148_v38 = vld [vmem:[%s9175_s17] ss:$0 sm:$0xff] }
 0x81d   : > { %2991 = vmatpush.msra.mxu1 %v4346_v48 }
 0x81f   : > { %2992 = vmatpush.msra.mxu1 %v4347_v42 }
 0x821   : > { %2993 = vmatpush.msra.mxu1 %v4348_v61 }
 0x823   : > { %2994 = vmatpush.msra.mxu1 %v4349_v37 }
 0x825   : > { %2995 = vmatpush.msra.mxu1 %v4350_v12  ;;  %v8154_v12 = vld [vmem:[%s9170_s22] ss:$0 sm:$0xff] }
 0x863   : > { %v2703_v7 = vpop.f32.mrf.mxu1 }
 0x864   : > { %v2726_v19 = vadd.f32 %v2703_v7, %v2506_v32  ;;  %v4353_v32 = vld [vmem:[%s9046_s28 + $0x360] sm:$0xff]  ;;  %v4354_v7 = vld [vmem:[%s9046_s28 + $0x368] sm:$0xff] }
 0x866   : > { %v2727_v48 = vadd.f32 %v8148_v38, %v2726_v19  ;;  %v9511_v19 = vld [vmem:[#allocation68_spill] sm:$0xff] }
 0x868   : > { %vm2728_vm3 = vcmp.ge.f32.partialorder %v2727_v48, 0.0  ;;  %v2729_v42 = vmul.f32 0.33333334, %v2727_v48 }
 0x86a   : > { %v2730_v61 = vsel %vm2728_vm3, %v2727_v48, %v2729_v42  ;;  %v9512_v48 = vld [vmem:[#allocation40_spill] sm:$0xff]  ;;  %v4382_v42 = vld [vmem:[%s9046_s28 + $0x58] sm:$0xff] }
 0x86b   : > { %v3836_v37 = vclamps-f32 %v2730_v61, 3.0  ;;  %v2723_v33 = vpop.f32.mrf.mxu1  ;;  %v9513_v61 = vld [vmem:[#allocation69_spill] sm:$0xff] }
 0x86c   : > { %v2791_v8 = vadd.f32 %v8154_v12, %v2723_v33  ;;  %v4355_v33 = vld [vmem:[%s9046_s28 + $0x328] sm:$0xff] }
 0x86d   : > { %2749 = vmatmul.f32.vlgmr.msrb.gmra.mxu2 %v3836_v37  ;;  %2769 = vmatmul.f32.vlgmr.msrb.gmra.mxu3 %v3836_v37  ;;  %v9514_v37 = vld [vmem:[#allocation70_spill] sm:$0xff] }
 0x86e   : > { %2808 = vmatmul.f32.vlgmr.msrb.gmra.mxu0 %v2791_v8  ;;  %2828 = vmatmul.f32.vlgmr.msrb.gmra.mxu1 %v2791_v8 }
 0x86f   : > { %3000 = vmatpush.msrb.mxu2 %v7092_v26  ;;  %3020 = vmatpush.msrb.mxu3 %v4353_v32  ;;  %v4356_v26 = vld [vmem:[%s9046_s28 + $0x330] sm:$0xff]  ;;  %v4383_v32 = vld [vmem:[%s9046_s28 + $0x18] sm:$0xff] }
 0x870   : > { %3040 = vmatpush.msrb.mxu0 %v4354_v7  ;;  %3060 = vmatpush.msrb.mxu1 %v7100_v2  ;;  %v4357_v2 = vld [vmem:[%s9046_s28 + $0x2f0] sm:$0xff]  ;;  %v9515_v7 = vld [vmem:[#allocation41_spill] sm:$0xff] }
 0x871   : > { %3001 = vmatpush.msrb.mxu2 %v7106_v49  ;;  %3021 = vmatpush.msrb.mxu3 %v4355_v33  ;;  %v4358_v49 = vld [vmem:[%s9046_s28 + $0x2f8] sm:$0xff]  ;;  %v4384_v33 = vld [vmem:[%s9046_s28 + $0x20] sm:$0xff] }
 0x872   : > { %3041 = vmatpush.msrb.mxu0 %v4356_v26  ;;  %3061 = vmatpush.msrb.mxu1 %v7114_v1  ;;  %v4359_v1 = vld [vmem:[%s9046_s28 + $0x2b8] sm:$0xff]  ;;  %v9516_v26 = vld [vmem:[#allocation71_spill] sm:$0xff] }
 0x873   : > { %3002 = vmatpush.msrb.mxu2 %v7120_v9  ;;  %3022 = vmatpush.msrb.mxu3 %v4357_v2  ;;  %v4360_v9 = vld [vmem:[%s9046_s28 + $0x2c0] sm:$0xff]  ;;  %v4385_v2 = vld [vmem:[%s8697_s8 + $0x78] sm:$0xff] }
 0x874   : > { %3042 = vmatpush.msrb.mxu0 %v4358_v49  ;;  %3062 = vmatpush.msrb.mxu1 %v7128_v56  ;;  %v4361_v56 = vld [vmem:[%s9046_s28 + $0x280] sm:$0xff]  ;;  %v9517_v49 = vld [vmem:[#allocation72_spill] sm:$0xff] }
 0x875   : > { %2848 = vmatmul.f32.vlgmr.msra.gmra.mxu2 %v2791_v8  ;;  %2868 = vmatmul.f32.vlgmr.msra.gmra.mxu3 %v2791_v8  ;;  %v9510_v8 = vld [vmem:[#allocation67_spill] sm:$0xff] }
 0x876   : > { %3003 = vmatpush.msrb.mxu2 %v7134_v44  ;;  %3023 = vmatpush.msrb.mxu3 %v4359_v1  ;;  %v4362_v44 = vld [vmem:[%s9046_s28 + $0x288] sm:$0xff]  ;;  %v4386_v1 = vld [vmem:[%s8697_s8 + $0x70] sm:$0xff] }
 0x877   : > { %3043 = vmatpush.msrb.mxu0 %v4360_v9  ;;  %3063 = vmatpush.msrb.mxu1 %v7142_v5  ;;  %v4363_v5 = vld [vmem:[%s9046_s28 + $0x248] sm:$0xff]  ;;  %v9518_v9 = vld [vmem:[#allocation44_spill] sm:$0xff] }
 0x878   : > { %3004 = vmatpush.msrb.mxu2 %v7148_v45  ;;  %3024 = vmatpush.msrb.mxu3 %v4361_v56  ;;  %v4364_v45 = vld [vmem:[%s9046_s28 + $0x250] sm:$0xff]  ;;  %v4387_v56 = vld [vmem:[%s8697_s8 + $0x68] sm:$0xff] }
 0x879   : > { %3044 = vmatpush.msrb.mxu0 %v4362_v44  ;;  %3064 = vmatpush.msrb.mxu1 %v7156_v10  ;;  %v4365_v10 = vld [vmem:[%s9046_s28 + $0x210] sm:$0xff]  ;;  %v9519_v44 = vld [vmem:[#allocation74_spill] sm:$0xff] }
 0x87a   : > { %3005 = vmatpush.msrb.mxu2 %v7162_v46  ;;  %3025 = vmatpush.msrb.mxu3 %v4363_v5  ;;  %v4366_v46 = vld [vmem:[%s9046_s28 + $0x218] sm:$0xff]  ;;  %v4388_v5 = vld [vmem:[%s8697_s8 + $0x60] sm:$0xff] }
 0x87b   : > { %3045 = vmatpush.msrb.mxu0 %v4364_v45  ;;  %3065 = vmatpush.msrb.mxu1 %v7170_v14  ;;  %v4367_v14 = vld [vmem:[%s9046_s28 + $0x1d8] sm:$0xff]  ;;  %v9520_v45 = vld [vmem:[#allocation47_spill] sm:$0xff] }
 0x87c   : > { %3006 = vmatpush.msrb.mxu2 %v7176_v18  ;;  %3026 = vmatpush.msrb.mxu3 %v4365_v10  ;;  %v4368_v18 = vld [vmem:[%s9046_s28 + $0x1e0] sm:$0xff]  ;;  %v4389_v10 = vld [vmem:[%s8697_s8 + $0x58] sm:$0xff] }
 0x87d   : > { %3046 = vmatpush.msrb.mxu0 %v4366_v46  ;;  %3066 = vmatpush.msrb.mxu1 %v7184_v16  ;;  %v4369_v16 = vld [vmem:[%s9046_s28 + $0x1a0] sm:$0xff]  ;;  %v9521_v46 = vld [vmem:[#allocation76_spill] sm:$0xff] }
 0x87e   : > { %3007 = vmatpush.msrb.mxu2 %v7190_v50  ;;  %3027 = vmatpush.msrb.mxu3 %v4367_v14  ;;  %v4370_v50 = vld [vmem:[%s9046_s28 + $0x1a8] sm:$0xff]  ;;  %v4390_v14 = vld [vmem:[%s8697_s8 + $0x50] sm:$0xff] }
 0x87f   : > { %3047 = vmatpush.msrb.mxu0 %v4368_v18  ;;  %3067 = vmatpush.msrb.mxu1 %v7198_v47  ;;  %v4371_v47 = vld [vmem:[%s9046_s28 + $0x168] sm:$0xff]  ;;  %v9522_v18 = vld [vmem:[#allocation50_spill] sm:$0xff] }
 0x880   : > { %3008 = vmatpush.msrb.mxu2 %v7204_v51  ;;  %3028 = vmatpush.msrb.mxu3 %v4369_v16  ;;  %v4372_v51 = vld [vmem:[%s9046_s28 + $0x170] sm:$0xff]  ;;  %v4391_v16 = vld [vmem:[%s8697_s8 + $0x48] sm:$0xff] }
 0x881   : > { %3048 = vmatpush.msrb.mxu0 %v4370_v50  ;;  %3068 = vmatpush.msrb.mxu1 %v7212_v21  ;;  %v4373_v21 = vld [vmem:[%s9046_s28 + $0x130] sm:$0xff]  ;;  %v9523_v50 = vld [vmem:[#allocation79_spill] sm:$0xff] }
 0x882   : > { %3009 = vmatpush.msrb.mxu2 %v7218_v52  ;;  %3029 = vmatpush.msrb.mxu3 %v4371_v47  ;;  %v4374_v52 = vld [vmem:[%s9046_s28 + $0x138] sm:$0xff]  ;;  %v4392_v47 = vld [vmem:[%s8697_s8 + $0x40] sm:$0xff] }
 0x883   : > { %3049 = vmatpush.msrb.mxu0 %v4372_v51  ;;  %3069 = vmatpush.msrb.mxu1 %v7226_v23  ;;  %v4375_v23 = vld [vmem:[%s9046_s28 + $0xf8] sm:$0xff] }
 0x884   : > { %3010 = vmatpush.msrb.mxu2 %v7232_v53  ;;  %3030 = vmatpush.msrb.mxu3 %v4373_v21  ;;  %v4376_v53 = vld [vmem:[%s9046_s28 + $0x100] sm:$0xff]  ;;  %v9524_v51 = vld [vmem:[#allocation53_spill] sm:$0xff] }
 0x885   : > { %3050 = vmatpush.msrb.mxu0 %v4374_v52  ;;  %3070 = vmatpush.msrb.mxu1 %v7240_v25  ;;  %v4377_v25 = vld [vmem:[%s9046_s28 + $0xc0] sm:$0xff]  ;;  %v4393_v21 = vld [vmem:[%s8697_s8 + $0x38] sm:$0xff] }
 0x886   : > { %3011 = vmatpush.msrb.mxu2 %v7246_v55  ;;  %3031 = vmatpush.msrb.mxu3 %v4375_v23  ;;  %v4378_v55 = vld [vmem:[%s9046_s28 + $0xc8] sm:$0xff]  ;;  %v9525_v52 = vld [vmem:[#allocation82_spill] sm:$0xff]  ;;  %v4394_v23 = vld [vmem:[%s8697_s8 + $0x30] sm:$0xff] }
 0x887   : > { %3051 = vmatpush.msrb.mxu0 %v4376_v53  ;;  %3071 = vmatpush.msrb.mxu1 %v7254_v29  ;;  %v4379_v29 = vld [vmem:[%s9046_s28 + $0x88] sm:$0xff]  ;;  %v9526_v53 = vld [vmem:[#allocation56_spill] sm:$0xff] }
 0x888   : > { %3012 = vmatpush.msrb.mxu2 %v7260_v57  ;;  %3032 = vmatpush.msrb.mxu3 %v4377_v25  ;;  %v4380_v57 = vld [vmem:[%s9046_s28 + $0x90] sm:$0xff]  ;;  %v4395_v25 = vld [vmem:[%s8697_s8 + $0x28] sm:$0xff] }
 0x889   : > { %3052 = vmatpush.msrb.mxu0 %v4378_v55  ;;  %3072 = vmatpush.msrb.mxu1 %v7268_v31  ;;  %v4381_v31 = vld [vmem:[%s9046_s28 + $0x50] sm:$0xff]  ;;  %v9527_v55 = vld [vmem:[#allocation85_spill] sm:$0xff] }
 0x88a   : > { %3013 = vmatpush.msrb.mxu2 %v9510_v8  ;;  %3033 = vmatpush.msrb.mxu3 %v4379_v29  ;;  %v4396_v8 = vld [vmem:[%s8697_s8 + $0x20] sm:$0xff]  ;;  %v9528_v29 = vld [vmem:[#allocation59_spill] sm:$0xff] }
 0x88b   : > { %3053 = vmatpush.msrb.mxu0 %v4380_v57  ;;  %3073 = vmatpush.msrb.mxu1 %v9511_v19  ;;  %v4397_v57 = vld [vmem:[%s8697_s8 + $0x18] sm:$0xff]  ;;  %v9529_v19 = vld [vmem:[#allocation88_spill] sm:$0xff] }
 0x88c   : > { %3014 = vmatpush.msrb.mxu2 %v9512_v48  ;;  %3034 = vmatpush.msrb.mxu3 %v4381_v31  ;;  %v4398_v48 = vld [vmem:[%s8697_s8 + $0x10] sm:$0xff]  ;;  %v9530_v31 = vld [vmem:[#allocation62_spill] sm:$0xff] }
 0x88d   : > { %3054 = vmatpush.msrb.mxu0 %v4382_v42  ;;  %3074 = vmatpush.msrb.mxu1 %v9513_v61  ;;  %v4399_v42 = vld [vmem:[%s8697_s8 + $0x8] sm:$0xff]  ;;  %v9531_v61 = vld [vmem:[#allocation92_spill] sm:$0xff] }
 0x88e   : > { %3015 = vmatpush.msrb.mxu2 %v9514_v37  ;;  %3035 = vmatpush.msrb.mxu3 %v4383_v32  ;;  %v4400_v37 = vld [vmem:[%s8697_s8] sm:$0xff]  ;;  %v2586_v32 = vpop.f32.mrf.mxu2 }
 0x88f   : > { %3055 = vmatpush.msrb.mxu0 %v4384_v33  ;;  %3075 = vmatpush.msrb.mxu1 %v9516_v26  ;;  %v3826_v33 = vld [vmem:[%s4806_s29 + $0x48] sm:$0xff] }
 0x890   : > { %3080 = vmatpush.msra.mxu2 %v9515_v7  ;;  %3106 = vmatpush.msra.mxu3 %v4385_v2  ;;  %v3825_v7 = vld [vmem:[%s4806_s29 + $0x40] sm:$0xff] }
 0x892   : > { %3081 = vmatpush.msra.mxu2 %v9517_v49  ;;  %3107 = vmatpush.msra.mxu3 %v4386_v1 }
 0x894   : > { %3082 = vmatpush.msra.mxu2 %v9518_v9  ;;  %3108 = vmatpush.msra.mxu3 %v4387_v56 }
 0x896   : > { %3083 = vmatpush.msra.mxu2 %v9519_v44  ;;  %3109 = vmatpush.msra.mxu3 %v4388_v5  ;;  %v9532_v44 = vld [vmem:[#allocation160_spill] sm:$0xff] }
 0x898   : > { %3084 = vmatpush.msra.mxu2 %v9520_v45  ;;  %3110 = vmatpush.msra.mxu3 %v4389_v10  ;;  %v9533_v45 = vld [vmem:[#allocation161_spill] sm:$0xff] }
 0x89a   : > { %3085 = vmatpush.msra.mxu2 %v9521_v46  ;;  %3111 = vmatpush.msra.mxu3 %v4390_v14 }
 0x89c   : > { %3086 = vmatpush.msra.mxu2 %v9522_v18  ;;  %3112 = vmatpush.msra.mxu3 %v4391_v16  ;;  %v9534_v18 = vld [vmem:[#allocation162_spill] sm:$0xff] }
 0x89e   : > { %3087 = vmatpush.msra.mxu2 %v9523_v50  ;;  %3113 = vmatpush.msra.mxu3 %v4392_v47  ;;  %v9535_v50 = vld [vmem:[#allocation163_spill] sm:$0xff] }
 0x8a0   : > { %3088 = vmatpush.msra.mxu2 %v9524_v51  ;;  %3114 = vmatpush.msra.mxu3 %v4393_v21 }
 0x8a2   : > { %3089 = vmatpush.msra.mxu2 %v9525_v52  ;;  %3115 = vmatpush.msra.mxu3 %v4394_v23 }
 0x8a4   : > { %3090 = vmatpush.msra.mxu2 %v9526_v53  ;;  %3116 = vmatpush.msra.mxu3 %v4395_v25  ;;  %v3827_v53 = vld [vmem:[%s4806_s29 + $0x50] sm:$0xff] }
 0x8a6   : > { %3091 = vmatpush.msra.mxu2 %v9527_v55  ;;  %3117 = vmatpush.msra.mxu3 %v4396_v8  ;;  %v3828_v8 = vld [vmem:[%s4806_s29 + $0x58] sm:$0xff] }
 0x8a8   : > { %3092 = vmatpush.msra.mxu2 %v9528_v29  ;;  %3118 = vmatpush.msra.mxu3 %v4397_v57 }
 0x8aa   : > { %3093 = vmatpush.msra.mxu2 %v9529_v19  ;;  %3119 = vmatpush.msra.mxu3 %v4398_v48 }
 0x8ac   : > { %3094 = vmatpush.msra.mxu2 %v9530_v31  ;;  %3120 = vmatpush.msra.mxu3 %v4399_v42 }
 0x8ae   : > { %3095 = vmatpush.msra.mxu2 %v9531_v61  ;;  %3121 = vmatpush.msra.mxu3 %v4400_v37 }
 0x8eb   : > { %v2809_v26 = vpop.f32.mrf.mxu0  ;;  %v2829_v2 = vpop.f32.mrf.mxu1 }
 0x8ec   : > { %v2810_v49 = vadd.f32 %v3825_v7, %v2809_v26  ;;  %v2830_v1 = vadd.f32 %v3826_v33, %v2829_v2  ;;  %v9536_v7 = vld [vmem:[#allocation164_spill] sm:$0xff]  ;;  %v3822_v26 = vld [vmem:[%s4808_s14 + $0x8] sm:$0xff] }
 0x8ee   : > { %v2872_v9 = vadd.f32 %v2810_v49, %v8052_v36  ;;  %v2873_v56 = vadd.f32 %v2830_v1, %v8050_v58 }
 0x8f0   : > { %v2876_v5 = vadd.f32 %v2872_v9, %v9532_v44  ;;  %v2877_v10 = vadd.f32 %v2873_v56, %v9533_v45  ;;  %v2750_v46 = vpop.f32.mrf.mxu2  ;;  %v2770_v14 = vpop.f32.mrf.mxu3 }
 0x8f1   : > { %v2751_v16 = vadd.f32 %v2750_v46, %v9534_v18  ;;  %v2771_v47 = vadd.f32 %v2770_v14, %v9535_v50 }
 0x8f2   : > { %v3839_v51 = vmul.f32 -1.442695, %v2876_v5  ;;  %v3840_v21 = vmul.f32 -1.442695, %v2877_v10 }
 0x8f3   : > { %v3837_v52 = vclamps-f32 %v2751_v16, 8.0  ;;  %v3838_v23 = vclamps-f32 %v2771_v47, 8.0 }
 0x8f4   : > { %4011 = vpow2.f32 %v3839_v51 }
 0x8f5   : > { %4013 = vpow2.f32 %v3840_v21  ;;  %v2782_v36 = vsub.f32 0.0, %v3838_v23  ;;  %v2777_v1 = vmul.f32 0.5, %v3838_v23 }
 0x8f6   : > { %4015 = vtanh.f32 %v3837_v52 }
 0x8f7   : > { %v2783_v58 = vmul.f32 1.442695, %v2782_v36  ;;  %v2778_v47 = vsub.f32 -0.9189385, %v2777_v1 }
 0x8f8   : > { %v2849_v25 = vpop.f32.mrf.mxu2  ;;  %v2869_v29 = vpop.f32.mrf.mxu3 }
 0x8f9   : > { %4017 = vpow2.f32 %v2783_v58  ;;  %v2850_v55 = vadd.f32 %v3827_v53, %v2849_v25  ;;  %v2870_v61 = vadd.f32 %v3828_v8, %v2869_v29 }
 0x8fa   : > { %v4012_v57 = vpop.eup %4011 }
 0x8fb   : > { %v4014_v19 = vpop.eup %4013  ;;  %v2889_v48 = vadd.f32 1.0, %v4012_v57  ;;  %v2874_v31 = vadd.f32 %v2850_v55, %v8143_v24  ;;  %v2875_v9 = vadd.f32 %v2870_v61, %v2586_v32 }
 0x8fc   : > { %v2890_v42 = vadd.f32 1.0, %v4014_v19  ;;  %v4016_v37 = vpop.eup %4015 }
 0x8fd   : > { %4019 = vrcp.f32 %v2889_v48  ;;  %v2878_v33 = vadd.f32 %v2874_v31, %v9536_v7  ;;  %v2780_v56 = vsub.f32 %v3822_v26, %v4016_v37  ;;  %v2879_v24 = vadd.f32 %v2875_v9, %v6675_v41 }
 0x8fe   : > { %4021 = vrcp.f32 %v2890_v42  ;;  %v2918_v25 = vand.u32 2147483648, %v2890_v42  ;;  %v2903_v23 = vand.u32 2147483648, %v2889_v48  ;;  %v2901_v29 = vand.u32 2147483647, %v2889_v48 }
 0x8ff   : > { %v4018_v2 = vpop.eup %4017  ;;  %v3841_v49 = vmul.f32 -1.442695, %v2878_v33  ;;  %v2781_v10 = vmul.f32 %v2780_v56, %v2780_v56  ;;  %v2916_v57 = vand.u32 2147483647, %v2890_v42  ;;  %vm2897_vm6 = vweird.f32 %v2889_v48 }
 0x900   : > { %v2785_v5 = vmul.f32 0.5, %v4018_v2  ;;  %vm2912_vm7 = vweird.f32 %v2890_v42  ;;  %v2919_v61 = vor.u32 1.1754944e-38, %v2918_v25  ;;  %v2904_v37 = vor.u32 1.1754944e-38, %v2903_v23  ;;  %v4403_v25 = vld [vmem:[%s8701_s12 + $0x68] sm:$0xff]  ;;  %v9545_v23 = vld [vmem:[#allocation110_spill] sm:$0xff] }
 0x901   : > { %4023 = vpow2.f32 %v3841_v49  ;;  %vm2902_vm10 = vcmp.eq.f32.partialorder %v2901_v29, 8.507059e+37  ;;  %vm2917_vm11 = vcmp.eq.f32.partialorder %v2916_v57, 8.507059e+37  ;;  %v9547_v29 = vld [vmem:[#allocation112_spill] sm:$0xff]  ;;  %v9548_v57 = vld [vmem:[#allocation94_spill] sm:$0xff] }
 0x902   : > { %v2786_v51 = vmul.f32 %v2785_v5, %v2781_v10  ;;  %4025 = vtanh.f32 %v2879_v24 }
 0x903   : > { %v4020_v46 = vpop.eup %4019 }
 0x904   : > { %v4022_v14 = vpop.eup %4021  ;;  %v2893_v16 = vmul.f32 %v4020_v46, %v2889_v48  ;;  %v8363_v36 = vsub.f32 %v2778_v47, %v2786_v51  ;;  %vm2898_vm4 = vweird.f32 %v4020_v46 }
 0x905   : > { %v2908_v21 = vmul.f32 %v4022_v14, %v2890_v42  ;;  %vm2913_vm5 = vweird.f32 %v4022_v14  ;;  %vm2899_vm8 = vmor %vm2897_vm6, %vm2898_vm4 }
 0x906   : > { %v2894_v52 = vsub.f32 1.0, %v2893_v16  ;;  %vm2914_vm9 = vmor %vm2912_vm7, %vm2913_vm5 }
 0x907   : > { %v4024_v53 = vpop.eup %4023  ;;  %v2909_v58 = vsub.f32 1.0, %v2908_v21 }
 0x908   : > { %v2891_v32 = vadd.f32 1.0, %v4024_v53  ;;  %v2895_v55 = vmul.f32 %v4020_v46, %v2894_v52  ;;  %v4026_v2 = vpop.eup %4025  ;;  %v4401_v53 = vld [vmem:[%s8701_s12 + $0x78] sm:$0xff] }
 0x909   : > { %v2910_v8 = vmul.f32 %v4022_v14, %v2909_v58  ;;  %v4402_v58 = vld [vmem:[%s8701_s12 + $0x70] sm:$0xff] }
 0x90a   : > { %4027 = vrcp.f32 %v2891_v32  ;;  %v2896_v19 = vadd.f32 %v4020_v46, %v2895_v55  ;;  %v2933_v16 = vand.u32 2147483648, %v2891_v32  ;;  %vm2927_vm13 = vweird.f32 %v2891_v32  ;;  %v4415_v55 = vld [vmem:[%s8701_s12 + $0x20] sm:$0xff] }
 0x90b   : > { %v2911_v31 = vadd.f32 %v4022_v14, %v2910_v8  ;;  %v4416_v8 = vld [vmem:[%s9055_s3 + $0x48] sm:$0xff] }
 0x90c   : > { %v2900_v33 = vsel %vm2899_vm8, %v4020_v46, %v2896_v19  ;;  %v2931_v46 = vand.u32 2147483647, %v2891_v32  ;;  %v2934_v47 = vor.u32 1.1754944e-38, %v2933_v16  ;;  %v4417_v19 = vld [vmem:[%s8701_s12 + $0x18] sm:$0xff] }
 0x90d   : > { %v2915_v26 = vsel %vm2914_vm9, %v4022_v14, %v2911_v31  ;;  %v2905_v49 = vsel %vm2902_vm10, %v2904_v37, %v2900_v33  ;;  %v4418_v31 = vld [vmem:[%s9055_s3 + $0x38] sm:$0xff]  ;;  %v9550_v37 = vld [vmem:[#allocation120_spill] sm:$0xff] }
 0x90e   : > { %v2920_v1 = vsel %vm2917_vm11, %v2919_v61, %v2915_v26  ;;  %v2939_v56 = vmul.f32 %v4026_v2, %v2905_v49  ;;  %vm2932_vm15 = vcmp.eq.f32.partialorder %v2931_v46, 8.507059e+37  ;;  %v9549_v61 = vld [vmem:[#allocation116_spill] sm:$0xff]  ;;  %v4420_v26 = vld [vmem:[%s9055_s3 + $0x28] sm:$0xff]  ;;  %v9551_v2 = vld [vmem:[#allocation22_spill] sm:$0xff] }
 0x90f   : > { %v2938_v9 = vmul.f32 %v2920_v1, %v7443_v34  ;;  %v4419_v33 = vld [vmem:[%s8701_s12 + $0x10] sm:$0xff]  ;;  %v9552_v49 = vld [vmem:[#allocation73_spill] sm:$0xff]  ;;  %v4421_v1 = vld [vmem:[%s8701_s12 + $0x8] sm:$0xff] }
 0x910   : > { %v4028_v5 = vpop.eup %4027  ;;  %v9555_v16 = vld [vmem:[#allocation77_spill] sm:$0xff]  ;;  %v9557_v46 = vld [vmem:[#allocation80_spill] sm:$0xff] }
 0x911   : > { %v2923_v10 = vmul.f32 %v4028_v5, %v2891_v32  ;;  %v8366_v48 = vadd.f32 %v2939_v56, %v2938_v9  ;;  %vm2928_vm12 = vweird.f32 %v4028_v5  ;;  %v9546_v32 = vld [vmem:[#allocation90_spill] sm:$0xff]  ;;  %v4422_v9 = vld [vmem:[%s9055_s3 + $0x18] sm:$0xff]  ;;  %v9553_v56 = vld [vmem:[#allocation75_spill] sm:$0xff] }
 0x912   : > { %vm2929_vm14 = vmor %vm2927_vm13, %vm2928_vm12 }
 0x913   : > { %v2924_v42 = vsub.f32 1.0, %v2923_v10  ;;  %4029 = vtanh.f32 %v8366_v48  ;;  %v4423_v10 = vld [vmem:[%s8701_s12] sm:$0xff] }
 0x915   : > { %v2925_v24 = vmul.f32 %v4028_v5, %v2924_v42  ;;  %v4424_v42 = vld [vmem:[%s9055_s3 + $0x8] sm:$0xff] }
 0x917   : > { %v2926_v14 = vadd.f32 %v4028_v5, %v2925_v24  ;;  %v9556_v24 = vld [vmem:[#allocation104_spill] sm:$0xff] }
 0x919   : > { %v2930_v51 = vsel %vm2929_vm14, %v4028_v5, %v2926_v14  ;;  %v4030_v34 = vpop.eup %4029  ;;  %v9554_v5 = vld [vmem:[#allocation100_spill] sm:$0xff] }
 0x91a   : > { %v2935_v21 = vsel %vm2932_vm15, %v2934_v47, %v2930_v51  ;;  %v9558_v14 = vld [vmem:[#allocation108_spill] sm:$0xff]  ;;  %v9559_v47 = vld [vmem:[#allocation83_spill] sm:$0xff]  ;;  %v9560_v51 = vld [vmem:[#allocation114_spill] sm:$0xff] }
 0x91b   : > { %v2942_v52 = vmul.f32 %v4030_v34, %v2935_v21  ;;  %v9561_v34 = vld [vmem:[#allocation86_spill] sm:$0xff] }
 0x91c   : > { %v9562_v21 = vld [vmem:[#allocation118_spill] sm:$0xff] }
 0x91d   : > { %3842 = vst [vmem:[%s4814_s15 + $0x10] sm:$0xff] %v2942_v52  ;;  %2976 = vmatmul.f32.vlgmr.msra.gmra.mxu0 %v2942_v52  ;;  %2996 = vmatmul.f32.vlgmr.msra.gmra.mxu1 %v2942_v52 }
 0x91e   : > { %3016 = vmatmul.f32.vlgmr.msrb.gmra.mxu2 %v2942_v52  ;;  %3036 = vmatmul.f32.vlgmr.msrb.gmra.mxu3 %v2942_v52 }
 0x91f   : > { %3135 = vmatpush.msra.mxu0 %v4401_v53  ;;  %3205 = vmatpush.msra.mxu1 %v7451_v3  ;;  %v4404_v3 = vld [vmem:[%s8701_s12 + $0x60] sm:$0xff] }
 0x920   : > { %3244 = vmatpush.msrb.mxu2 %v7457_v20  ;;  %3264 = vmatpush.msrb.mxu3 %v7463_v6  ;;  %v4405_v20 = vld [vmem:[%s8701_s12 + $0x58] sm:$0xff]  ;;  %v4406_v6 = vld [vmem:[%s8701_s12 + $0x50] sm:$0xff]  ;;  %v9564_v53 = vld [vmem:[#allocation122_spill] sm:$0xff] }
 0x921   : > { %3136 = vmatpush.msra.mxu0 %v4402_v58  ;;  %3206 = vmatpush.msra.mxu1 %v7470_v13  ;;  %v4407_v13 = vld [vmem:[%s8701_s12 + $0x48] sm:$0xff]  ;;  %v9565_v58 = vld [vmem:[#allocation93_spill] sm:$0xff] }
 0x922   : > { %3245 = vmatpush.msrb.mxu2 %v7476_v40  ;;  %3265 = vmatpush.msrb.mxu3 %v7482_v28  ;;  %v9537_v40 = vld [vmem:[#allocation96_spill] sm:$0xff]  ;;  %v4408_v28 = vld [vmem:[%s8701_s12 + $0x40] sm:$0xff] }
 0x923   : > { %3137 = vmatpush.msra.mxu0 %v4403_v25  ;;  %3207 = vmatpush.msra.mxu1 %v7489_v30  ;;  %v9538_v30 = vld [vmem:[#allocation78_spill] sm:$0xff]  ;;  %v9566_v25 = vld [vmem:[#allocation124_spill] sm:$0xff] }
 0x924   : > { %3246 = vmatpush.msrb.mxu2 %v7495_v54  ;;  %3266 = vmatpush.msrb.mxu3 %v7501_v15  ;;  %v9539_v54 = vld [vmem:[#allocation98_spill] sm:$0xff]  ;;  %v9540_v15 = vld [vmem:[#allocation81_spill] sm:$0xff] }
 0x925   : > { %3056 = vmatmul.f32.vlgmr.msrb.gmra.mxu0 %v2942_v52  ;;  %3076 = vmatmul.f32.vlgmr.msrb.gmra.mxu1 %v2942_v52 }
 0x926   : > { %3096 = vmatmul.f32.vlgmr.msra.gmra.mxu2 %v2942_v52  ;;  %3138 = vmatpush.msra.mxu0 %v4404_v3  ;;  %v9563_v52 = vld [vmem:[#allocation89_spill] sm:$0xff] }
 0x927   : > { %3208 = vmatpush.msra.mxu1 %v7508_v63  ;;  %3247 = vmatpush.msrb.mxu2 %v7514_v11  ;;  %v4409_v63 = vld [vmem:[%s8701_s12 + $0x38] sm:$0xff] }
 0x928   : > { %3139 = vmatpush.msra.mxu0 %v4405_v20  ;;  %3267 = vmatpush.msrb.mxu3 %v7521_v60  ;;  %v4410_v11 = vld [vmem:[%s9055_s3 + $0x78] sm:$0xff]  ;;  %v9541_v60 = vld [vmem:[#allocation102_spill] sm:$0xff] }
 0x929   : > { %3209 = vmatpush.msra.mxu1 %v7527_v62  ;;  %3248 = vmatpush.msrb.mxu2 %v7533_v17  ;;  %v9542_v62 = vld [vmem:[#allocation84_spill] sm:$0xff]  ;;  %v9567_v3 = vld [vmem:[#allocation97_spill] sm:$0xff]  ;;  %v9568_v20 = vld [vmem:[#allocation126_spill] sm:$0xff] }
 0x92a   : > { %3140 = vmatpush.msra.mxu0 %v4406_v6  ;;  %3268 = vmatpush.msrb.mxu3 %v7540_v4  ;;  %v4411_v17 = vld [vmem:[%s8701_s12 + $0x30] sm:$0xff]  ;;  %v4412_v4 = vld [vmem:[%s9055_s3 + $0x68] sm:$0xff] }
 0x92b   : > { %3210 = vmatpush.msra.mxu1 %v7546_v27  ;;  %3249 = vmatpush.msrb.mxu2 %v7552_v59  ;;  %v9543_v27 = vld [vmem:[#allocation106_spill] sm:$0xff]  ;;  %v9544_v59 = vld [vmem:[#allocation87_spill] sm:$0xff] }
 0x92c   : > { %3141 = vmatpush.msra.mxu0 %v4407_v13  ;;  %3269 = vmatpush.msrb.mxu3 %v7559_v22  ;;  %v4413_v22 = vld [vmem:[%s8701_s12 + $0x28] sm:$0xff]  ;;  %v9570_v13 = vld [vmem:[#allocation128_spill] sm:$0xff] }
 0x92d   : > { %3211 = vmatpush.msra.mxu1 %v7565_v43  ;;  %3250 = vmatpush.msrb.mxu2 %v9537_v40  ;;  %v4414_v43 = vld [vmem:[%s9055_s3 + $0x58] sm:$0xff]  ;;  %v9569_v6 = vld [vmem:[#allocation99_spill] sm:$0xff] }
 0x92e   : > { %3142 = vmatpush.msra.mxu0 %v4408_v28  ;;  %3270 = vmatpush.msrb.mxu3 %v9538_v30  ;;  %v9571_v40 = vld [vmem:[#allocation103_spill] sm:$0xff]  ;;  %v9572_v28 = vld [vmem:[#allocation130_spill] sm:$0xff] }
 0x92f   : > { %3212 = vmatpush.msra.mxu1 %v9539_v54  ;;  %3251 = vmatpush.msrb.mxu2 %v9540_v15  ;;  %v9573_v30 = vld [vmem:[#allocation107_spill] sm:$0xff]  ;;  %v9574_v54 = vld [vmem:[#allocation132_spill] sm:$0xff] }
 0x930   : > { %3143 = vmatpush.msra.mxu0 %v4409_v63  ;;  %3271 = vmatpush.msrb.mxu3 %v9541_v60  ;;  %v9575_v15 = vld [vmem:[#allocation111_spill] sm:$0xff]  ;;  %v9576_v63 = vld [vmem:[#allocation134_spill] sm:$0xff]  ;;  %v9578_v60 = vld [vmem:[#allocation137_spill] sm:$0xff] }
 0x931   : > { %3225 = vmatpush.msrb.mxu1 %v4410_v11  ;;  %3252 = vmatpush.msrb.mxu2 %v9542_v62  ;;  %v9577_v11 = vld [vmem:[#allocation113_spill] sm:$0xff] }
 0x932   : > { %3144 = vmatpush.msra.mxu0 %v4411_v17  ;;  %3272 = vmatpush.msrb.mxu3 %v9543_v27  ;;  %v9579_v62 = vld [vmem:[#allocation117_spill] sm:$0xff]  ;;  %v9580_v17 = vld [vmem:[#allocation140_spill] sm:$0xff]  ;;  %v9582_v27 = vld [vmem:[#allocation23_spill] sm:$0xff] }
 0x933   : > { %3226 = vmatpush.msrb.mxu1 %v4412_v4  ;;  %3253 = vmatpush.msrb.mxu2 %v9544_v59  ;;  %v9581_v4 = vld [vmem:[#allocation121_spill] sm:$0xff]  ;;  %v9583_v59 = vld [vmem:[#allocation91_spill] sm:$0xff] }
 0x934   : > { %3145 = vmatpush.msra.mxu0 %v4413_v22  ;;  %3273 = vmatpush.msrb.mxu3 %v9545_v23  ;;  %v9584_v22 = vld [vmem:[#allocation95_spill] sm:$0xff]  ;;  %v9586_v23 = vld [vmem:[#allocation105_spill] sm:$0xff] }
 0x935   : > { %3227 = vmatpush.msrb.mxu1 %v4414_v43  ;;  %3254 = vmatpush.msrb.mxu2 %v9546_v32  ;;  %v9585_v43 = vld [vmem:[#allocation101_spill] sm:$0xff] }
 0x936   : > { %3146 = vmatpush.msra.mxu0 %v4415_v55  ;;  %3274 = vmatpush.msrb.mxu3 %v9547_v29  ;;  %v9587_v32 = vld [vmem:[#allocation109_spill] sm:$0xff]  ;;  %v9588_v55 = vld [vmem:[#allocation115_spill] sm:$0xff] }
 0x937   : > { %3228 = vmatpush.msrb.mxu1 %v4416_v8  ;;  %3255 = vmatpush.msrb.mxu2 %v9548_v57  ;;  %v9589_v8 = vld [vmem:[#allocation119_spill] sm:$0xff] }
 0x938   : > { %3147 = vmatpush.msra.mxu0 %v4417_v19  ;;  %3275 = vmatpush.msrb.mxu3 %v9549_v61  ;;  %v4425_v19 = vld [vmem:[%s9047_s27] ss:$0 sm:$0xff]  ;;  %v9590_v61 = vld [vmem:[#allocation20_spill] sm:$0xff] }
 0x939   : > { %3229 = vmatpush.msrb.mxu1 %v4418_v31  ;;  %3256 = vmatpush.msrb.mxu2 %v9550_v37 }
 0x93a   : > { %3148 = vmatpush.msra.mxu0 %v4419_v33  ;;  %3276 = vmatpush.msrb.mxu3 %v9551_v2 }
 0x93b   : > { %3230 = vmatpush.msrb.mxu1 %v4420_v26  ;;  %3257 = vmatpush.msrb.mxu2 %v9552_v49  ;;  %v4426_v26 = vld [vmem:[%s8700_s11] ss:$0 sm:$0xff] }
 0x93c   : > { %3149 = vmatpush.msra.mxu0 %v4421_v1  ;;  %3277 = vmatpush.msrb.mxu3 %v9553_v56 }
 0x93d   : > { %3231 = vmatpush.msrb.mxu1 %v4422_v9  ;;  %3258 = vmatpush.msrb.mxu2 %v9554_v5 }
 0x93e   : > { %3150 = vmatpush.msra.mxu0 %v4423_v10  ;;  %3278 = vmatpush.msrb.mxu3 %v9556_v24  ;;  %v9591_v10 = vld [vmem:[#allocation123_spill] sm:$0xff]  ;;  %v9594_v24 = vld [vmem:[#allocation129_spill] sm:$0xff] }
 0x93f   : > { %3232 = vmatpush.msrb.mxu1 %v4424_v42  ;;  %3259 = vmatpush.msrb.mxu2 %v9557_v46  ;;  %v9592_v42 = vld [vmem:[#allocation125_spill] sm:$0xff]  ;;  %v9595_v46 = vld [vmem:[#allocation131_spill] sm:$0xff] }
 0x940   : > { %3303 = vmatpush.msrb.mxu0 %v9555_v16  ;;  %3279 = vmatpush.msrb.mxu3 %v9559_v47  ;;  %v9593_v16 = vld [vmem:[#allocation127_spill] sm:$0xff] }
 0x941   : > { %3343 = vmatpush.msra.mxu2 %v9560_v51  ;;  %v9597_v47 = vld [vmem:[#allocation135_spill] sm:$0xff]  ;;  %v9598_v51 = vld [vmem:[#allocation138_spill] sm:$0xff] }
 0x942   : > { %3304 = vmatpush.msrb.mxu0 %v9558_v14  ;;  %v9596_v14 = vld [vmem:[#allocation133_spill] sm:$0xff] }
 0x943   : > { %3344 = vmatpush.msra.mxu2 %v9562_v21  ;;  %v9600_v21 = vld [vmem:[#allocation142_spill] sm:$0xff] }
 0x944   : > { %3305 = vmatpush.msrb.mxu0 %v9561_v34  ;;  %v9599_v34 = vld [vmem:[#allocation141_spill] sm:$0xff] }
 0x945   : > { %3345 = vmatpush.msra.mxu2 %v9564_v53  ;;  %v9602_v53 = vld [vmem:[#allocation139_spill] sm:$0xff] }
 0x946   : > { %3306 = vmatpush.msrb.mxu0 %v9563_v52  ;;  %v9601_v52 = vld [vmem:[#allocation143_spill] sm:$0xff] }
 0x947   : > { %3346 = vmatpush.msra.mxu2 %v9566_v25  ;;  %v9604_v25 = vld [vmem:[#allocation144_spill] sm:$0xff] }
 0x948   : > { %3307 = vmatpush.msrb.mxu0 %v9565_v58  ;;  %v9603_v58 = vld [vmem:[#allocation136_spill] sm:$0xff] }
 0x949   : > { %3347 = vmatpush.msra.mxu2 %v9568_v20  ;;  %v9606_v20 = vld [vmem:[#allocation146_spill] sm:$0xff] }
 0x94a   : > { %3308 = vmatpush.msrb.mxu0 %v9567_v3  ;;  %v9605_v3 = vld [vmem:[#allocation145_spill] sm:$0xff] }
 0x94b   : > { %3348 = vmatpush.msra.mxu2 %v9570_v13 }
 0x94c   : > { %3309 = vmatpush.msrb.mxu0 %v9569_v6 }
 0x94d   : > { %3349 = vmatpush.msra.mxu2 %v9572_v28  ;;  %v4427_v28 = vld [vmem:[%s9052_s7] ss:$0 sm:$0xff] }
 0x94e   : > { %3310 = vmatpush.msrb.mxu0 %v9571_v40 }
 0x94f   : > { %3350 = vmatpush.msra.mxu2 %v9574_v54 }
 0x950   : > { %3311 = vmatpush.msrb.mxu0 %v9573_v30 }
 0x951   : > { %3351 = vmatpush.msra.mxu2 %v9576_v63 }
 0x952   : > { %3312 = vmatpush.msrb.mxu0 %v9575_v15 }
 0x953   : > { %3352 = vmatpush.msra.mxu2 %v9578_v60 }
 0x954   : > { %3313 = vmatpush.msrb.mxu0 %v9577_v11  ;;  %v4428_v11 = vld [vmem:[%s8698_s9] ss:$0 sm:$0xff] }
 0x955   : > { %3353 = vmatpush.msra.mxu2 %v9580_v17 }
 0x956   : > { %3314 = vmatpush.msrb.mxu0 %v9579_v62 }
 0x957   : > { %3354 = vmatpush.msra.mxu2 %v9582_v27 }
 0x958   : > { %3315 = vmatpush.msrb.mxu0 %v9581_v4  ;;  %v2652_v4 = vsub.f32 0.0, %v8056_v0 }
 0x959   : > { %3355 = vmatpush.msra.mxu2 %v9584_v22 }
 0x95a   : > { %3316 = vmatpush.msrb.mxu0 %v9583_v59 }
 0x95b   : > { %3356 = vmatpush.msra.mxu2 %v9586_v23  ;;  %v2653_v23 = vmul.f32 1.442695, %v2652_v4 }
 0x95c   : > { %3317 = vmatpush.msrb.mxu0 %v9585_v43 }
 0x95d   : > { %3357 = vmatpush.msra.mxu2 %v9588_v55 }
 0x95e   : > { %3318 = vmatpush.msrb.mxu0 %v9587_v32 }
 0x95f   : > { %3358 = vmatpush.msra.mxu2 %v9589_v8 }
 0x99a   : > { %v2977_v29 = vpop.f32.mrf.mxu0  ;;  %v2997_v57 = vpop.f32.mrf.mxu1 }
 0x99b   : > { %v3100_v31 = vadd.f32 %v4425_v19, %v2977_v29  ;;  %v3128_v37 = vadd.f32 %v2997_v57, %v9590_v61  ;;  %v9607_v19 = vld [vmem:[#allocation165_spill] sm:$0xff] }
 0x99d   : > { %vm3101_vm0 = vcmp.ge.f32.partialorder %v3100_v31, 0.0  ;;  %v3102_v33 = vmul.f32 0.33333334, %v3100_v31  ;;  %v3129_v2 = vadd.f32 %v4426_v26, %v3128_v37 }
 0x99f   : > { %v3103_v49 = vsel %vm3101_vm0, %v3100_v31, %v3102_v33  ;;  %vm3130_vm1 = vcmp.ge.f32.partialorder %v3129_v2, 0.0  ;;  %v3131_v1 = vmul.f32 0.33333334, %v3129_v2  ;;  %v9608_v31 = vld [vmem:[#allocation66_spill] sm:$0xff] }
 0x9a0   : > { %v3849_v9 = vclamps-f32 %v3103_v49, 3.0  ;;  %v1626_v61 = vsel %vm1625_vm2, %v9608_v31, 0.0 }
 0x9a1   : > { %v3132_v56 = vsel %vm3130_vm1, %v3129_v2, %v3131_v1  ;;  %v8539_v13 = vpop.f32.mrf.mxu3  ;;  %v3843_v2 = vld [vmem:[%s4810_s13 + $0x18] sm:$0xff] }
 0x9a2   : > { %v3851_v5 = vclamps-f32 %v3132_v56, 3.0  ;;  %3122 = vmatmul.f32.vlgmr.msra.gmra.mxu3 %v3849_v9  ;;  %v8537_v6 = vpop.f32.mrf.mxu0  ;;  %v4429_v56 = vld [vmem:[%s9073_s10 + $0x1e8] sm:$0xff] }
 0x9a3   : > { %3363 = vmatpush.msra.mxu3 %v9591_v10 }
 0x9a4   : > { %3151 = vmatmul.f32.vlgmr.msra.gmra.mxu0 %v3851_v5  ;;  %v2651_v5 = vmul.f32 %v8059_v35, %v8059_v35  ;;  %v4433_v35 = vld [vmem:[%s9073_s10 + $0x168] sm:$0xff] }
 0x9a5   : > { %3364 = vmatpush.msra.mxu3 %v9592_v42  ;;  %v4430_v42 = vld [vmem:[%s9073_s10 + $0x1c8] sm:$0xff] }
 0x9a7   : > { %3365 = vmatpush.msra.mxu3 %v9593_v16 }
 0x9a9   : > { %3366 = vmatpush.msra.mxu3 %v9594_v24  ;;  %v4431_v24 = vld [vmem:[%s9073_s10 + $0x1a8] sm:$0xff] }
 0x9ab   : > { %3367 = vmatpush.msra.mxu3 %v9595_v46  ;;  %v4432_v46 = vld [vmem:[%s9073_s10 + $0x188] sm:$0xff] }
 0x9ad   : > { %3368 = vmatpush.msra.mxu3 %v9596_v14  ;;  %v4434_v14 = vld [vmem:[%s9073_s10 + $0x148] sm:$0xff] }
 0x9af   : > { %3369 = vmatpush.msra.mxu3 %v9597_v47  ;;  %v4435_v47 = vld [vmem:[%s9073_s10 + $0x128] sm:$0xff] }
 0x9b1   : > { %3370 = vmatpush.msra.mxu3 %v9598_v51  ;;  %v4436_v51 = vld [vmem:[%s9073_s10 + $0x108] sm:$0xff] }
 0x9b3   : > { %3371 = vmatpush.msra.mxu3 %v9599_v34  ;;  %v4437_v34 = vld [vmem:[%s9073_s10 + $0xe8] sm:$0xff] }
 0x9b5   : > { %3372 = vmatpush.msra.mxu3 %v9600_v21  ;;  %v4438_v21 = vld [vmem:[%s9073_s10 + $0xc8] sm:$0xff] }
 0x9b7   : > { %3373 = vmatpush.msra.mxu3 %v9601_v52  ;;  %v4439_v52 = vld [vmem:[%s9073_s10 + $0xa8] sm:$0xff] }
 0x9b9   : > { %3374 = vmatpush.msra.mxu3 %v9602_v53  ;;  %v4440_v53 = vld [vmem:[%s9073_s10 + $0x88] sm:$0xff] }
 0x9bb   : > { %3375 = vmatpush.msra.mxu3 %v9603_v58  ;;  %v4441_v58 = vld [vmem:[%s9073_s10 + $0x68] sm:$0xff] }
 0x9bd   : > { %3376 = vmatpush.msra.mxu3 %v9604_v25  ;;  %v4442_v25 = vld [vmem:[%s9073_s10 + $0x48] sm:$0xff] }
 0x9bf   : > { %3377 = vmatpush.msra.mxu3 %v9605_v3  ;;  %v9609_v3 = vld [vmem:[#allocation148_spill] sm:$0xff] }
 0x9c1   : > { %3378 = vmatpush.msra.mxu3 %v9606_v20  ;;  %v9610_v20 = vld [vmem:[#allocation65_spill] sm:$0xff] }
 0xa21   : > { %v3152_v40 = vpop.f32.mrf.mxu0 }
 0xa22   : > { %v3153_v30 = vadd.f32 %v4427_v28, %v3152_v40 }
 0xa24   : > { %v3852_v54 = vclamps-f32 %v3153_v30, 8.0 }
 0xa25   : > { %v3123_v15 = vpop.f32.mrf.mxu3 }
 0xa26   : > { %v3185_v63 = vmul.f32 0.5, %v3852_v54  ;;  %v3124_v60 = vadd.f32 %v4428_v11, %v3123_v15 }
 0xa28   : > { %v3186_v62 = vmul.f32 1.442695, %v3185_v63  ;;  %v3850_v17 = vclamps-f32 %v3124_v60, 8.0 }
 0xa2a   : > { %4031 = vpow2.f32 %v3186_v62  ;;  %v3163_v27 = vsub.f32 0.0, %v3850_v17  ;;  %v3158_v59 = vsub.f32 %v3852_v54, %v3850_v17  ;;  %v3157_v8 = vsub.f32 %v3850_v17, %v3852_v54 }
 0xa2c   : > { %v3164_v22 = vmul.f32 1.442695, %v3163_v27  ;;  %v3159_v43 = vmul.f32 1.442695, %v3158_v59  ;;  %v3162_v37 = vmul.f32 %v3158_v59, %v3158_v59  ;;  %v3017_v27 = vpop.f32.mrf.mxu2 }
 0xa2e   : > { %4033 = vpow2.f32 %v3164_v22 }
 0xa2f   : > { %4035 = vpow2.f32 %v3159_v43 }
 0xa30   : > { %v4032_v32 = vpop.eup %4031  ;;  %4037 = vpow2.f32 %v2653_v23 }
 0xa31   : > { %3189 = vrot.lane.b32.xlu1 %v4032_v32, %s9327_s24 }
 0xa34   : > { %v4034_v55 = vpop.eup %4033 }
 0xa35   : > { %v4036_v29 = vpop.eup %4035  ;;  %3167 = vrot.lane.b32.xlu2 %v4034_v55, %s9327_s24 }
 0xa36   : > { %v3161_v57 = vadd.f32 %v4036_v29, %v3157_v8  ;;  %v4038_v0 = vpop.eup %4037 }
 0xa39   : > { %2656 = vrot.lane.b32.xlu1 %v4038_v0, %s9327_s24 }
 0xa5e   : > { %1751 = vadd.xlane.f32.xlu2 %v9607_v19 }
 0xa63   : > { %1627 = vadd.xlane.f32.xlu1 %v1626_v61  ;;  %v3845_v61 = vld [vmem:[%s4806_s29 + $0x60] sm:$0xff] }
 0xa8f   : > { %v3168_v33 = vpop.permute.xlu2 %3167 }
 0xa90   : > { %v3170_v26 = vmul.f32 %v3168_v33, %v3162_v37  ;;  %v3846_v37 = vld [vmem:[%s4806_s29 + $0x68] sm:$0xff] }
 0xa92   : > { %3172 = vrot.lane.b32.xlu1 %v3170_v26, %s9327_s24 }
 0xaa3   : > { %v3190_v49 = vpop.permute.xlu1 %3189 }
 0xaa4   : > { %v3192_v1 = vmul.f32 %v3843_v2, %v3190_v49 }
 0xaa6   : > { %v3193_v9 = vadd.f32 %v3852_v54, %v3192_v1  ;;  %v9611_v54 = vld [vmem:[#allocation147_spill] sm:$0xff] }
 0xaa8   : > { %3854 = vmatmul.msk.f32.vlgmr.msra.gmra.mxu1 %vm1625_vm2, %v3193_v9 }
 0xaa9   : > { %3323 = vmatpush.msra.mxu1 %v4429_v56 }
 0xaab   : > { %v2657_v10 = vpop.permute.xlu1 %2656  ;;  %3324 = vmatpush.msra.mxu1 %v4430_v42 }
 0xaac   : > { %v2659_v16 = vmul.f32 %v2657_v10, %v2651_v5 }
 0xaad   : > { %3325 = vmatpush.msra.mxu1 %v4431_v24 }
 0xaae   : > { %2661 = vrot.lane.b32.xlu2 %v2659_v16, %s9327_s24 }
 0xaaf   : > { %3326 = vmatpush.msra.mxu1 %v4432_v46 }
 0xab0   : > { %3855 = vmatmul.msk.f32.vlgmr.msrb.gmra.mxu1 %vm1625_vm2, %v3193_v9 }
 0xab1   : > { %3327 = vmatpush.msra.mxu1 %v4433_v35 }
 0xab3   : > { %3328 = vmatpush.msra.mxu1 %v4434_v14 }
 0xab5   : > { %3329 = vmatpush.msra.mxu1 %v4435_v47  ;;  %v3847_v47 = vld [vmem:[%s4806_s29 + $0x70] sm:$0xff] }
 0xab7   : > { %3330 = vmatpush.msra.mxu1 %v4436_v51  ;;  %v3848_v51 = vld [vmem:[%s4806_s29 + $0x78] sm:$0xff] }
 0xab9   : > { %3331 = vmatpush.msra.mxu1 %v4437_v34 }
 0xabb   : > { %3332 = vmatpush.msra.mxu1 %v4438_v21 }
 0xabd   : > { %3333 = vmatpush.msra.mxu1 %v4439_v52 }
 0xabf   : > { %3334 = vmatpush.msra.mxu1 %v4440_v53 }
 0xac1   : > { %3335 = vmatpush.msra.mxu1 %v4441_v58 }
 0xac3   : > { %3336 = vmatpush.msra.mxu1 %v4442_v25 }
 0xac5   : > { %3337 = vmatpush.msra.mxu1 %v8086_v39  ;;  %v3077_v39 = vpop.f32.mrf.mxu1 }
 0xac7   : > { %3338 = vmatpush.msra.mxu1 %v9609_v3 }
 0xad1   : > { %v8606_v40 = vpop.xlane.xlu2 %1751 }
 0xad6   : > { %v8608_v28 = vpop.xlane.xlu1 %1627 }
 0xad7   : > { %2275 = vadd.xlane.f32.xlu2 %v9610_v20  ;;  %v2949_v20 = vld [vmem:[%s4808_s14] sm:$0xff] }
 0xb04   : > { %v3173_v63 = vpop.permute.xlu1 %3172 }
 0xb05   : > { %v3175_v60 = vadd.f32 %v3173_v63, %v3161_v57  ;;  %v8616_v57 = vpop.xlane.xlu0 %2159 }
 0xb07   : > { %v3853_v17 = vadd.f32 -1.0, %v3175_v60 }
 0xb08   : > { %v2662_v30 = vpop.permute.xlu2 %2661 }
 0xb09   : > { %v2664_v15 = vadd.f32 %v2662_v30, %v9611_v54  ;;  %v3177_v4 = vmul.f32 0.5, %v3853_v17 }
 0xb0b   : > { %v3833_v11 = vadd.f32 -1.0, %v2664_v15 }
 0xb0d   : > { %v2666_v62 = vmul.f32 0.5, %v3833_v11 }
 0xb0f   : > { %2668 = vrot.lane.b32.xlu0 %v2666_v62, %s9327_s24 }
 0xb17   : > { %3179 = vrot.lane.b32.xlu0 %v3177_v4, %s9327_s24 }
 0xb25   : > { %v3214_v59 = vpop.f32.mrf.mxu1 }
 0xb26   : > { %v3237_v22 = vadd.f32 %v3214_v59, %v3017_v27 }
 0xb28   : > { %v3238_v43 = vadd.f32 %v8148_v38, %v3237_v22 }
 0xb2a   : > { %vm3239_vm3 = vcmp.ge.f32.partialorder %v3238_v43, 0.0  ;;  %v3240_v23 = vmul.f32 0.33333334, %v3238_v43 }
 0xb2c   : > { %v3241_v32 = vsel %vm3239_vm3, %v3238_v43, %v3240_v23 }
 0xb2d   : > { %v3856_v55 = vclamps-f32 %v3241_v32, 3.0  ;;  %v3234_v8 = vpop.f32.mrf.mxu1 }
 0xb2e   : > { %v3302_v29 = vadd.f32 %v8154_v12, %v3234_v8  ;;  %v3097_v12 = vpop.f32.mrf.mxu2 }
 0xb2f   : > { %3260 = vmatmul.f32.vlgmr.msrb.gmra.mxu2 %v3856_v55  ;;  %3280 = vmatmul.f32.vlgmr.msrb.gmra.mxu3 %v3856_v55 }
 0xb30   : > { %3319 = vmatmul.f32.vlgmr.msrb.gmra.mxu0 %v3302_v29  ;;  %3339 = vmatmul.f32.vlgmr.msra.gmra.mxu1 %v3302_v29 }
 0xb37   : > { %3359 = vmatmul.f32.vlgmr.msra.gmra.mxu2 %v3302_v29  ;;  %3379 = vmatmul.f32.vlgmr.msra.gmra.mxu3 %v3302_v29 }
 0xb41   : > { %2788 = vadd.xlane.f32.xlu0 %v8363_v36 }
 0xb81   : > { %v2669_v38 = vpop.permute.xlu0 %2668 }
 0xb82   : > { %v2671_v0 = vsel %vm1625_vm2, %v2669_v38, 0.0 }
 0xb83   : > { %2672 = vadd.xlane.f32.xlu1 %v2671_v0 }
 0xb89   : > { %v3180_v19 = vpop.permute.xlu0 %3179 }
 0xb8a   : > { %v3182_v31 = vsel %vm1625_vm2, %v3180_v19, 0.0 }
 0xb8b   : > { %3183 = vadd.xlane.f32.xlu2 %v3182_v31 }
 0xbad   : > { %v3320_v33 = vpop.f32.mrf.mxu0  ;;  %v3340_v26 = vpop.f32.mrf.mxu1 }
 0xbae   : > { %v3321_v2 = vadd.f32 %v3845_v61, %v3320_v33  ;;  %v3341_v49 = vadd.f32 %v3846_v37, %v3340_v26 }
 0xbb0   : > { %v3383_v36 = vadd.f32 %v3321_v2, %v8539_v13  ;;  %v3384_v1 = vadd.f32 %v3341_v49, %v8537_v6 }
 0xbb2   : > { %v3387_v9 = vadd.f32 %v3383_v36, %v9532_v44  ;;  %v3388_v56 = vadd.f32 %v3384_v1, %v9533_v45  ;;  %v3261_v5 = vpop.f32.mrf.mxu2  ;;  %v3281_v10 = vpop.f32.mrf.mxu3 }
 0xbb3   : > { %v3262_v42 = vadd.f32 %v3261_v5, %v9534_v18  ;;  %v3282_v16 = vadd.f32 %v3281_v10, %v9535_v50 }
 0xbb4   : > { %v3859_v24 = vmul.f32 -1.442695, %v3387_v9  ;;  %v3860_v46 = vmul.f32 -1.442695, %v3388_v56 }
 0xbb5   : > { %v3857_v35 = vclamps-f32 %v3262_v42, 8.0  ;;  %v3858_v14 = vclamps-f32 %v3282_v16, 8.0 }
 0xbb6   : > { %4039 = vpow2.f32 %v3859_v24 }
 0xbb7   : > { %4041 = vpow2.f32 %v3860_v46  ;;  %v3293_v13 = vsub.f32 0.0, %v3858_v14  ;;  %v3288_v15 = vmul.f32 0.5, %v3858_v14 }
 0xbb8   : > { %4043 = vtanh.f32 %v3857_v35 }
 0xbb9   : > { %v3294_v44 = vmul.f32 1.442695, %v3293_v13  ;;  %v3289_v59 = vsub.f32 -0.9189385, %v3288_v15  ;;  %v2789_v15 = vpop.xlane.xlu0 %2788 }
 0xbba   : > { %v3360_v6 = vpop.f32.mrf.mxu2  ;;  %v3380_v34 = vpop.f32.mrf.mxu3 }
 0xbbb   : > { %4045 = vpow2.f32 %v3294_v44  ;;  %v3361_v45 = vadd.f32 %v3847_v47, %v3360_v6  ;;  %v3381_v58 = vadd.f32 %v3848_v51, %v3380_v34  ;;  %v3803_v51 = vld [vmem:[%s4812_s19 + $0x8] sm:$0xff]  ;;  %v1386_v34 = vld [vmem:[%s4812_s19] sm:$0xff] }
 0xbbc   : > { %v4040_v21 = vpop.eup %4039 }
 0xbbd   : > { %v4042_v18 = vpop.eup %4041  ;;  %v3400_v52 = vadd.f32 1.0, %v4040_v21  ;;  %v3385_v50 = vadd.f32 %v3361_v45, %v3077_v39  ;;  %v3386_v63 = vadd.f32 %v3381_v58, %v3097_v12  ;;  %v2276_v45 = vpop.xlane.xlu2 %2275  ;;  %v3844_v58 = vld [vmem:[%s4812_s19 + $0x18] sm:$0xff] }
 0xbbe   : > { %v3401_v53 = vadd.f32 1.0, %v4042_v18  ;;  %v4044_v25 = vpop.eup %4043  ;;  %v1919_v18 = vmul.f32 %v8608_v28, %v1386_v34 }
 0xbbf   : > { %4047 = vrcp.f32 %v3400_v52  ;;  %v3389_v3 = vadd.f32 %v3385_v50, %v9536_v7  ;;  %v3291_v11 = vsub.f32 %v2949_v20, %v4044_v25  ;;  %v3390_v39 = vadd.f32 %v3386_v63, %v6675_v41 }
 0xbc0   : > { %4049 = vrcp.f32 %v3401_v53  ;;  %v3429_v8 = vand.u32 2147483648, %v3401_v53  ;;  %v3414_v29 = vand.u32 2147483648, %v3400_v52  ;;  %v3412_v31 = vand.u32 2147483647, %v3400_v52 }
 0xbc1   : > { %v4046_v30 = vpop.eup %4045  ;;  %v3861_v54 = vmul.f32 -1.442695, %v3389_v3  ;;  %v3292_v62 = vmul.f32 %v3291_v11, %v3291_v11  ;;  %v3427_v12 = vand.u32 2147483647, %v3401_v53  ;;  %vm3408_vm5 = vweird.f32 %v3400_v52 }
 0xbc2   : > { %v3296_v60 = vmul.f32 0.5, %v4046_v30  ;;  %vm3423_vm6 = vweird.f32 %v3401_v53  ;;  %v3430_v37 = vor.u32 1.1754944e-38, %v3429_v8  ;;  %v3415_v33 = vor.u32 1.1754944e-38, %v3414_v29 }
 0xbc3   : > { %4051 = vpow2.f32 %v3861_v54  ;;  %vm3413_vm9 = vcmp.eq.f32.partialorder %v3412_v31, 8.507059e+37  ;;  %vm3428_vm10 = vcmp.eq.f32.partialorder %v3427_v12, 8.507059e+37  ;;  %v2432_v50 = vmul.f32 %v3803_v51, %v8616_v57 }
 0xbc4   : > { %v3297_v22 = vmul.f32 %v3296_v60, %v3292_v62  ;;  %4053 = vtanh.f32 %v3390_v39  ;;  %v2277_v63 = vsub.f32 0.0, %v2276_v45  ;;  %v1753_v11 = vsub.f32 0.0, %v8606_v40 }
 0xbc5   : > { %v4048_v17 = vpop.eup %4047  ;;  %v2433_v25 = vadd.f32 %v2432_v50, %v1919_v18  ;;  %v2790_v60 = vsub.f32 0.0, %v2789_v15 }
 0xbc6   : > { %v4050_v4 = vpop.eup %4049  ;;  %v3404_v27 = vmul.f32 %v4048_v17, %v3400_v52  ;;  %v3298_v7 = vsub.f32 %v3289_v59, %v3297_v22  ;;  %vm3409_vm2 = vweird.f32 %v4048_v17  ;;  %v3824_v52 = vld [vmem:[%s4812_s19 + $0x10] sm:$0xff]  ;;  %v2434_v62 = vmul.f32 %v3803_v51, %v2277_v63 }
 0xbc7   : > { %v3419_v43 = vmul.f32 %v4050_v4, %v3401_v53  ;;  %vm3424_vm4 = vweird.f32 %v4050_v4  ;;  %vm3410_vm7 = vmor %vm3408_vm5, %vm3409_vm2 }
 0xbc8   : > { %v3405_v23 = vsub.f32 1.0, %v3404_v27  ;;  %3299 = vadd.xlane.f32.xlu1 %v3298_v7  ;;  %vm3425_vm8 = vmor %vm3423_vm6, %vm3424_vm4 }
 0xbc9   : > { %v4052_v32 = vpop.eup %4051  ;;  %v3420_v55 = vsub.f32 1.0, %v3419_v43 }
 0xbca   : > { %v3402_v38 = vadd.f32 1.0, %v4052_v32  ;;  %v3406_v0 = vmul.f32 %v4048_v17, %v3405_v23  ;;  %v4054_v49 = vpop.eup %4053 }
 0xbcb   : > { %v3421_v19 = vmul.f32 %v4050_v4, %v3420_v55 }
 0xbcc   : > { %4055 = vrcp.f32 %v3402_v38  ;;  %v3407_v41 = vadd.f32 %v4048_v17, %v3406_v0  ;;  %v3444_v24 = vand.u32 2147483648, %v3402_v38  ;;  %v3442_v35 = vand.u32 2147483647, %v3402_v38 }
 0xbcd   : > { %v3422_v61 = vadd.f32 %v4050_v4, %v3421_v19  ;;  %vm3438_vm12 = vweird.f32 %v3402_v38 }
 0xbce   : > { %v3411_v26 = vsel %vm3410_vm7, %v4048_v17, %v3407_v41  ;;  %v3445_v13 = vor.u32 1.1754944e-38, %v3444_v24  ;;  %vm3443_vm14 = vcmp.eq.f32.partialorder %v3442_v35, 8.507059e+37  ;;  %v1921_v17 = vmul.f32 %v1753_v11, %v1386_v34 }
 0xbcf   : > { %v3426_v2 = vsel %vm3425_vm8, %v4050_v4, %v3422_v61  ;;  %v3416_v36 = vsel %vm3413_vm9, %v3415_v33, %v3411_v26  ;;  %v2947_v4 = vmul.f32 %v3824_v52, %v2790_v60 }
 0xbd0   : > { %v3431_v1 = vsel %vm3428_vm10, %v3430_v37, %v3426_v2  ;;  %v3450_v56 = vmul.f32 %v4054_v49, %v3416_v36  ;;  %v2435_v28 = vadd.f32 %v2434_v62, %v1921_v17 }
 0xbd1   : > { %v3449_v9 = vmul.f32 %v3431_v1, %v8366_v48 }
 0xbd2   : > { %v4056_v5 = vpop.eup %4055  ;;  %v2948_v59 = vadd.f32 %v2947_v4, %v2435_v28 }
 0xbd3   : > { %v3434_v10 = vmul.f32 %v4056_v5, %v3402_v38  ;;  %v3451_v42 = vadd.f32 %v3450_v56, %v3449_v9  ;;  %vm3439_vm11 = vweird.f32 %v4056_v5 }
 0xbd4   : > { %vm3440_vm13 = vmor %vm3438_vm12, %vm3439_vm11 }
 0xbd5   : > { %v3435_v16 = vsub.f32 1.0, %v3434_v10  ;;  %3461 = vst [vmem:[#allocation3] sm:$0xff] %v3451_v42  ;;  %4057 = vtanh.f32 %v3451_v42 }
 0xbd7   : > { %v3436_v46 = vmul.f32 %v4056_v5, %v3435_v16 }
 0xbd9   : > { %v3437_v14 = vadd.f32 %v4056_v5, %v3436_v46 }
 0xbdb   : > { %v3441_v48 = vsel %vm3440_vm13, %v4056_v5, %v3437_v14  ;;  %v4058_v47 = vpop.eup %4057 }
 0xbdc   : > { %v3446_v44 = vsel %vm3443_vm14, %v3445_v13, %v3441_v48 }
 0xbdd   : > { %v3453_v6 = vmul.f32 %v4058_v47, %v3446_v44 }
 0xbdf   : > { %3862 = vst [vmem:[%s4814_s15 + $0x18] sm:$0xff] %v3453_v6 }
 0xbe0   : > { %3460 = vst [vmem:[#allocation2] sm:$0xff] %v3453_v6 }
 0xbf6   : > { %v2673_v21 = vpop.xlane.xlu1 %2672 }
 0xbf7   : > { %v2945_v53 = vmul.f32 %v3824_v52, %v2673_v21 }
 0xbf9   : > { %v2946_v20 = vadd.f32 %v2945_v53, %v2433_v25 }
 0xbfe   : > { %v3184_v3 = vpop.xlane.xlu2 %3183 }
 0xbff   : > { %v3456_v30 = vmul.f32 %v3844_v58, %v3184_v3 }
 0xc01   : > { %v3457_v54 = vadd.f32 %v3456_v30, %v2946_v20 }
 0xc3b   : > { %v3300_v27 = vpop.xlane.xlu1 %3299 }
 0xc3c   : > { %v3301_v39 = vsub.f32 0.0, %v3300_v27  ;;  %3464 = sbr.rel (%p3786_p2) target bundleno = 3140 (0xc44), region = 249 }
 0xc3e   : > { %v3458_v57 = vmul.f32 %v3844_v58, %v3301_v39 }
 0xc40   : > { %v3459_v22 = vadd.f32 %v3458_v57, %v2948_v59 }
 0xc41   : > { %vm3465_vm15 = vcmask 7168  }
 0xc42   : > { %3466 = vst.msk [vmem:[%s4799_s30] sm:$0xff] %vm3465_vm15, %v3457_v54 }
 0xc43   : > { %3467 = vst.msk [vmem:[%s4804_s21] sm:$0xff] %vm3465_vm15, %v3459_v22 }
 0xc44 PF: > { %p3864_p3 = scmp.eq.s32.totalorder %s4497_s5, 0 }
 0xc46   : > { %3471 = sbr.rel (%p3864_p3) target bundleno = 3152 (0xc50), region = 253 }
 0xc4b   : > { %v3472_v40 = vld [vmem:[%s4799_s30] sm:$0xff]  ;;  %vm3474_vm0 = vcmask 7168  }
 0xc4c   : > { %v3476_v43 = vld [vmem:[%s4804_s21] sm:$0xff]  ;;  %v3473_v23 = vadd.f32 %v3472_v40, %v3457_v54 }
 0xc4d   : > { %v3477_v7 = vadd.f32 %v3476_v43, %v3459_v22 }
 0xc4e   : > { %3475 = vst.msk [vmem:[%s4799_s30] sm:$0xff] %vm3474_vm0, %v3473_v23 }
 0xc4f   : > { %3478 = vst.msk [vmem:[%s4804_s21] sm:$0xff] %vm3474_vm0, %v3477_v7 }
 0xc50 PF: > { %3493 = sbr.rel (!%p4728_p10) target bundleno = 3164 (0xc5c), region = 257  ;;  %s3875_s14 = sshll.u32 (%p4728_p10), %s4497_s5, 3  ;;  %v3533_v32 = vld [vmem:[%s4814_s15] sm:$0xff] (%p4728_p10)  ;;  %v3535_v55 = vld [vmem:[%s4814_s15 + $0x8] sm:$0xff] (%p4728_p10)  ;;  %v3537_v8 = vld [vmem:[%s4814_s15 + $0x10] sm:$0xff] (%p4728_p10) }
 0xc51   : > { %s3496_s19 = sadd.s32 (%p4728_p10), %s4501_s1, %s3875_s14  ;;  %s9613_s26 = sld [smem:[#allocation183_spill]] (%p4728_p10)  ;;  %v3539_v29 = vld [vmem:[%s4814_s15 + $0x18] sm:$0xff] (%p4728_p10) }
 0xc52   : > { %s3868_s24 = sshll.u32 (%p4728_p10), %s3496_s19, 3 }
 0xc57   : > { %s3498_s30 = scalar_lea.vmem %s9613_s26, %s3868_s24 }
 0xc58   : > { %3534 = vst [vmem:[%s3498_s30] sm:$0xff] %v3533_v32 }
 0xc59   : > { %3536 = vst [vmem:[%s3498_s30 + $0x10] sm:$0xff] %v3535_v55 }
 0xc5a   : > { %3538 = vst [vmem:[%s3498_s30 + $0x20] sm:$0xff] %v3537_v8 }
 0xc5b   : > { %3540 = vst [vmem:[%s3498_s30 + $0x30] sm:$0xff] %v3539_v29 }
 0xc5c PF: > { %s9614_s21 = sld [smem:[#allocation14_spill]] }
 0xc5d   : > { %s9615_s4 = sld [smem:[#allocation10_spill]] }
 0xc5e   : > { %s9616_s30 = sld [smem:[#allocation18_spill]] }
 0xc5f   : > { %s9617_s24 = sld [smem:[#allocation11_spill]] }
 0xc60   : > { %s9618_s25 = sld [smem:[#allocation17_spill]] }
 0xc61   : > { %s9619_s5 = sld [smem:[#allocation12_spill]] }
 0xc62   : > { %s34_s6 = sadd.s32 1, %s9614_s21   ;;  %s9620_s1 = sld [smem:[#allocation13_spill]] }
 0xc63   : > { %p31_p4 = scmp.ge.s32.totalorder %s34_s6, 6   ;;  %s9621_s26 = sld [smem:[#allocation15_spill]] }
 0xc64   : > { %s9622_s2 = sld [smem:[#allocation16_spill]] }
 0xc65   :  { %33 = sbr.rel (!%p31_p4) target bundleno = 26 (0x1a), region = 398 }

</bundles_post_ra>
